<compile_context>
chip_gen: v5e
topology: v5e:2x2
jax: 0.10.0
libtpu: 0.0.40
codegen_flags: <defaults>
</compile_context>

<pallas_src>
import functools
from dataclasses import dataclass

import jax
import jax.numpy as jnp
from jax.experimental import pallas as pl
from jax.experimental.pallas import tpu as pltpu

EPS = 1e-8
NEG_INF = -1e30       # channel padding -> exactly zero softmax weight
FAR = 1e5             # spatial coordinate of padded pixels -> kernel weight 0


@dataclass(frozen=True)
class DenseCRFParams:
    spatial_ker_weight: float
    bilateral_ker_weight: float
    alpha: float
    beta: float
    gamma: float


# ----------------------------- in-kernel helpers ------------------------------

def _softmax0(x):
    """Softmax over the channel (sublane) axis of a (c_pad, T) tile."""
    m = jnp.max(x, axis=0, keepdims=True)
    e = jnp.exp(x - m)
    return e / jnp.sum(e, axis=0, keepdims=True)


# ----------------------------------- kernel -----------------------------------

def _bcrf_kernel(sem_logits_ref, ins_logits_ref, a_feat_ref, bt_feat_ref,
                 w_sem_sp_ref, w_sem_bl_ref, w_ins_sp_ref, w_ins_bl_ref,
                 sem_compat_t_ref, ins2sem_ref, sem2ins_ref,
                 sem_out_ref, ins_out_ref,
                 wq_sem_sp, wq_sem_bl, wq_ins_sp, wq_ins_bl,
                 *, tile_n, c_pad, exp_dtype,
                 s_sem_sp, s_sem_bl_p, s_sem_bl_r,
                 s_ins_sp, s_ins_bl_p, s_ins_bl_r):
    it = pl.program_id(0)      # 0 = priming sweep; 1..num_iter = mean-field iters
    t = pl.program_id(1)       # output column tile (serial: carries wq scratch)

    rs = it & 1                # wq slot read this sweep (written by previous sweep)
    ws = (it + 1) & 1          # wq slot written this sweep (for the next sweep)

    cols = pl.ds(pl.multiple_of(t * tile_n, tile_n), tile_n)

    w_sem_sp = w_sem_sp_ref[...]     # (c_pad, 1) per-channel filter weights
    w_sem_bl = w_sem_bl_ref[...]
    w_ins_sp = w_ins_sp_ref[...]
    w_ins_bl = w_ins_bl_ref[...]

    # 1.0 in the (always free) last padded channel row: after the filter matmul
    # that output row equals sum_j K[j, t] == the permutohedral normalizer
    # filter(ones) -- no separate (N x TILE) column-sum reduction needed.
    ones_row = (jax.lax.broadcasted_iota(jnp.int32, (c_pad, 1), 0)
                == c_pad - 1).astype(jnp.float32)

    def _stage(sem_q, ins_q):
        # Weight-folded, normalizer-row-augmented, bf16 q for the NEXT sweep.
        wq_sem_sp[ws, :, cols] = (w_sem_sp * sem_q + ones_row).astype(jnp.bfloat16)
        wq_sem_bl[ws, :, cols] = (w_sem_bl * sem_q + ones_row).astype(jnp.bfloat16)
        wq_ins_sp[ws, :, cols] = (w_ins_sp * ins_q + ones_row).astype(jnp.bfloat16)
        wq_ins_bl[ws, :, cols] = (w_ins_bl * ins_q + ones_row).astype(jnp.bfloat16)

    # ---- priming sweep: stage q0 = softmax(logits) tile by tile ---------------
    @pl.when(it == 0)
    def _prime():
        _stage(_softmax0(sem_logits_ref[...]), _softmax0(ins_logits_ref[...]))
        # deterministic placeholder; overwritten by every real iteration
        sem_out_ref[...] = sem_logits_ref[...]
        ins_out_ref[...] = ins_logits_ref[...]

    # ---- one mean-field update for this column tile ---------------------------
    @pl.when(it > 0)
    def _step():
        # merged homogeneous-coordinate distance block: [d_pos | d_rgb]
        d = jnp.dot(a_feat_ref[...], bt_feat_ref[...],
                    preferred_element_type=jnp.float32)        # (N, 2*TILE)
        # clamp: s_* < 0, so any rounding-induced negative distance would blow
        # up exp(); one VPU pass on the merged block.
        d = jnp.maximum(d, 0.0)
        d_pos = d[:, :tile_n]
        d_rgb = d[:, tile_n:]

        def _filter(wq_ref, logk):
            # Normalized Gaussian filtering of the weight-folded q distribution.
            k = jnp.exp(logk.astype(exp_dtype)).astype(jnp.bfloat16)
            out = jnp.dot(wq_ref[rs], k,                        # bf16 MXU
                          preferred_element_type=jnp.float32)   # (c_pad, TILE)
            # row c_pad-1 is filter(ones) (K is symmetric) -> normalizer
            inv = pl.reciprocal(out[c_pad - 1:c_pad, :] + EPS, approx=True)
            return out * inv

        sem_msg = (_filter(wq_sem_sp, d_pos * s_sem_sp)
                   + _filter(wq_sem_bl, d_pos * s_sem_bl_p + d_rgb * s_sem_bl_r))
        ins_msg = (_filter(wq_ins_sp, d_pos * s_ins_sp)
                   + _filter(wq_ins_bl, d_pos * s_ins_bl_p + d_rgb * s_ins_bl_r))

        sem_logits_t = sem_logits_ref[...]
        ins_logits_t = ins_logits_ref[...]

        # _apply_compatibility_transform(x, T) == T^T @ x  (T^T passed in).
        # NB: the reference module ADDS the compatibility-transformed message.
        tmp_sem = sem_logits_t + jnp.dot(sem_compat_t_ref[...], sem_msg,
                                         preferred_element_type=jnp.float32)
        tmp_ins = ins_logits_t + ins_msg
        temp_sem_new = tmp_sem + jnp.dot(ins2sem_ref[...], _softmax0(tmp_ins),
                                         preferred_element_type=jnp.float32)
        temp_ins_new = tmp_ins + jnp.dot(sem2ins_ref[...], _softmax0(tmp_sem),
                                         preferred_element_type=jnp.float32)

        sem_out_ref[...] = temp_sem_new
        ins_out_ref[...] = temp_ins_new

        # stage next sweep's q into the parity write slot (no flip copy)
        _stage(_softmax0(temp_sem_new), _softmax0(temp_ins_new))


# --------------------------- budgets / chip queries ----------------------------

def _vmem_limit_bytes():
    phys = 0
    try:
        phys = int(pltpu.get_tpu_info().vmem_capacity_bytes)
    except Exception:
        phys = 0
    if phys <= 0:
        try:
            kind = jax.devices()[0].device_kind.lower()
        except Exception:
            kind = ""
        phys = (64 << 20) if ("v7" in kind or "7x" in kind) else (128 << 20)
    # leave headroom for Mosaic internal scratch / pipeline bookkeeping:
    # v7x (64 MiB phys) -> 48 MiB, v5e/v6e (128 MiB phys) -> 112 MiB
    return int(min(max(phys - (16 << 20), 32 << 20), 112 << 20))


def _use_bf16_exp():
    """bf16 EUP exists on v6e/v7x; keep f32 elementwise on v5e and older."""
    try:
        kind = jax.devices()[0].device_kind.lower()
    except Exception:
        return False
    return not any(v in kind for v in ("v2", "v3", "v4", "v5"))


def _pick_tile(n_pad, c_pad, vmem_limit):
    # Resident for the whole kernel:
    #   (n_pad, 16) f32 feature operand is lane-padded to 128 -> 512*n_pad bytes
    #   4 x (2, c_pad, n_pad) bf16 wq scratch -> 16*c_pad*n_pad bytes
    resident = 512 * n_pad + 16 * c_pad * n_pad + (4 << 20)
    for cand in (512, 256, 128):
        if n_pad % cand:
            continue
        # per-step temporaries: merged (n_pad, 2*cand) f32 distance block, its
        # two halves, per-filter logk (f32) + K (bf16) -> ~22 B per element,
        # plus the (small) double-buffered per-tile blocks.
        per_step = 22 * n_pad * cand + 2 * (128 + 8 * c_pad) * cand
        if resident + per_step <= vmem_limit:
            return cand
    raise ValueError(
        "PyTorchBCRF Pallas kernel: image too large -- the (N x tile) pairwise "
        f"kernel block does not fit in VMEM (N_pad={n_pad}, c_pad={c_pad}, "
        f"vmem_limit={vmem_limit} bytes) even with tile_n=128.")


# ----------------------------------- wrapper ----------------------------------

def bcrf_forward(image, semantic_logits, instance_logits, instance_cls_labels,
                 *, sem_params, ins_params, params, num_iterations):
    c_sem, height, width = semantic_logits.shape
    c_ins = instance_logits.shape[0]
    if num_iterations < 1:
        raise ValueError("num_iterations must be >= 1")

    # one extra padded channel row is reserved for the in-matmul normalizer
    c_pad = ((max(c_sem, c_ins) + 1 + 7) // 8) * 8
    n = height * width
    n_pad = max(128, ((n + 127) // 128) * 128)
    pad_n = n_pad - n

    vmem_limit = _vmem_limit_bytes()
    tile_n = _pick_tile(n_pad, c_pad, vmem_limit)
    n_tiles = n_pad // tile_n

    # ---- per-pixel filter features (plain JAX glue) --------------------------
    ys, xs = jnp.meshgrid(jnp.arange(height, dtype=jnp.float32),
                          jnp.arange(width, dtype=jnp.float32), indexing="ij")
    pos = jnp.stack([xs, ys], axis=-1).reshape(n, 2)
    rgb = image.reshape(image.shape[0], n).T.astype(jnp.float32)
    if pad_n:
        # padded pixels sit "infinitely" far away -> zero kernel weight
        pos = jnp.concatenate([pos, jnp.full((pad_n, 2), FAR, jnp.float32)], 0)
        rgb = jnp.concatenate([rgb, jnp.zeros((pad_n, 3), jnp.float32)], 0)

    sqp = jnp.sum(pos * pos, axis=1, keepdims=True)
    sqr = jnp.sum(rgb * rgb, axis=1, keepdims=True)
    one = jnp.ones((n_pad, 1), jnp.float32)

    # Homogeneous coordinates: A_i . Bt_j = ||f_i||^2 - 2<f_i,f_j> + ||f_j||^2.
    a_pos = jnp.concatenate([-2.0 * pos, one, sqp,
                             jnp.zeros((n_pad, 4), jnp.float32)], axis=1)
    a_rgb = jnp.concatenate([-2.0 * rgb, one, sqr,
                             jnp.zeros((n_pad, 3), jnp.float32)], axis=1)
    a_feat = jnp.concatenate([a_pos, a_rgb], axis=1)             # (n_pad, 16)

    bt_pos = jnp.concatenate([pos, sqp, one,
                              jnp.zeros((n_pad, 4), jnp.float32)], axis=1).T
    bt_rgb = jnp.concatenate([rgb, sqr, one,
                              jnp.zeros((n_pad, 3), jnp.float32)], axis=1).T
    # block-diagonal, tile-interleaved B^T: one (16, 2*tile_n) block gives
    # [d_pos | d_rgb] for tile t from a single MXU matmul.
    bt_pos = bt_pos.reshape(8, n_tiles, tile_n)
    bt_rgb = bt_rgb.reshape(8, n_tiles, tile_n)
    z8 = jnp.zeros_like(bt_pos)
    bt_feat = jnp.concatenate(
        [jnp.concatenate([bt_pos, z8], axis=2),
         jnp.concatenate([z8, bt_rgb], axis=2)], axis=0
    ).reshape(16, n_tiles * 2 * tile_n)

    # ---- logits: pad channels with -inf-ish, pad pixels with 0 ---------------
    def _prep_logits(x, c):
        x = x.reshape(c, n).astype(jnp.float32)
        x = jnp.pad(x, ((0, c_pad - c), (0, 0)), constant_values=NEG_INF)
        return jnp.pad(x, ((0, 0), (0, pad_n)))

    sem_l = _prep_logits(semantic_logits, c_sem)
    ins_l = _prep_logits(instance_logits, c_ins)

    # ---- learned parameters (gathers done in JAX), zero padded to c_pad ------
    def _pad_vec(v):
        return jnp.pad(v.astype(jnp.float32),
                       (0, c_pad - v.shape[0])).reshape(c_pad, 1)

    def _pad_mat(m):
        return jnp.pad(m.astype(jnp.float32),
                       ((0, c_pad - m.shape[0]), (0, c_pad - m.shape[1])))

    w_sem_sp = _pad_vec(params["sem_spatial_weights"])
    w_sem_bl = _pad_vec(params["sem_bilateral_weights"])
    w_ins_sp = _pad_vec(params["ins_spatial_weights"][instance_cls_labels])
    w_ins_bl = _pad_vec(params["ins_bilateral_weights"][instance_cls_labels])
    sem_compat_t = _pad_mat(params["sem_compatibility"].T)
    ins2sem = _pad_mat(params["cross_ins_sem"][instance_cls_labels].T)
    sem2ins = _pad_mat(params["cross_sem_ins"][instance_cls_labels])

    args = (sem_l, ins_l, a_feat, bt_feat,
            w_sem_sp, w_sem_bl, w_ins_sp, w_ins_bl,
            sem_compat_t, ins2sem, sem2ins)

    scales = dict(
        s_sem_sp=-0.5 / float(sem_params.gamma) ** 2,
        s_sem_bl_p=-0.5 / float(sem_params.alpha) ** 2,
        s_sem_bl_r=-0.5 / float(sem_params.beta) ** 2,
        s_ins_sp=-0.5 / float(ins_params.gamma) ** 2,
        s_ins_bl_p=-0.5 / float(ins_params.alpha) ** 2,
        s_ins_bl_r=-0.5 / float(ins_params.beta) ** 2,
    )

    cost = pl.CostEstimate(
        flops=int(210 * n_pad * n_pad * num_iterations),
        transcendentals=int(4 * n_pad * n_pad * num_iterations),
        bytes_accessed=int(n_pad * (600 + 16 * c_pad * (num_iterations + 1))
                           + 22 * n_pad * n_pad * num_iterations),
    )

    def _attempt(single_buffer, exp_dtype):
        kern = functools.partial(_bcrf_kernel, tile_n=tile_n, c_pad=c_pad,
                                 exp_dtype=exp_dtype, **scales)

        def _const(shape):
            # constant-index inputs need only one pipeline buffer
            if single_buffer:
                return pl.BlockSpec(shape, lambda it, t: (0, 0),
                                    pipeline_mode=pl.Buffered(1))
            return pl.BlockSpec(shape, lambda it, t: (0, 0))

        grid_spec = pltpu.PrefetchScalarGridSpec(
            num_scalar_prefetch=0,
            grid=(int(num_iterations) + 1, n_tiles),
            in_specs=[
                pl.BlockSpec((c_pad, tile_n), lambda it, t: (0, t)),   # sem logits
                pl.BlockSpec((c_pad, tile_n), lambda it, t: (0, t)),   # ins logits
                _const((n_pad, 16)),                                   # A features
                pl.BlockSpec((16, 2 * tile_n), lambda it, t: (0, t)),  # B^T tile
                _const((c_pad, 1)),                                    # w sem spatial
                _const((c_pad, 1)),                                    # w sem bilateral
                _const((c_pad, 1)),                                    # w ins spatial
                _const((c_pad, 1)),                                    # w ins bilateral
                _const((c_pad, c_pad)),                                # sem compat^T
                _const((c_pad, c_pad)),                                # ins->sem
                _const((c_pad, c_pad)),                                # sem->ins
            ],
            out_specs=[pl.BlockSpec((c_pad, tile_n), lambda it, t: (0, t)),
                       pl.BlockSpec((c_pad, tile_n), lambda it, t: (0, t))],
            scratch_shapes=[pltpu.VMEM((2, c_pad, n_pad), jnp.bfloat16)] * 4,
        )

        return pl.pallas_call(
            kern,
            out_shape=(jax.ShapeDtypeStruct((c_pad, n_pad), jnp.float32),
                       jax.ShapeDtypeStruct((c_pad, n_pad), jnp.float32)),
            grid_spec=grid_spec,
            # both axes serial: the carried wq scratch couples tiles within a
            # sweep and successive sweeps with each other.
            compiler_params=pltpu.CompilerParams(
                dimension_semantics=("arbitrary", "arbitrary"),
                vmem_limit_bytes=int(vmem_limit)),
            cost_estimate=cost,
        )(*args)

    try:
        sem_out, ins_out = _attempt(True,
                                    jnp.bfloat16 if _use_bf16_exp()
                                    else jnp.float32)
        jax.block_until_ready((sem_out, ins_out))
    except Exception:
        # conservative fallback: default double-buffered inputs, f32 exp
        sem_out, ins_out = _attempt(False, jnp.float32)

    return (sem_out[:c_sem, :n].reshape(c_sem, height, width),
            ins_out[:c_ins, :n].reshape(c_ins, height, width))


# ----------------------------------- init -------------------------------------

def make_bcrf_params(sem_params, n_stuff, n_thing):
    c_sem = n_stuff + 1
    n_thing_cls = n_thing + 1
    # TODO(synk): cu.initial_cross_compatibility definition unavailable; using a
    # deterministic synthetic init of the documented shape (n_thing+1, n_stuff+1).
    cross = jnp.full((n_thing_cls, c_sem), 0.1, dtype=jnp.float32)
    cross = cross.at[:, -1].set(1.0).at[0, :].set(0.0)
    return {
        "sem_spatial_weights": sem_params.spatial_ker_weight
                               * jnp.ones((c_sem,), jnp.float32),
        "sem_bilateral_weights": sem_params.bilateral_ker_weight
                                 * jnp.ones((c_sem,), jnp.float32),
        "sem_compatibility": jnp.eye(c_sem, dtype=jnp.float32),
        # NB: the reference module (faithfully) uses sem_params.spatial_ker_weight
        # for both instance weight vectors.
        "ins_spatial_weights": sem_params.spatial_ker_weight
                               * jnp.ones((n_thing_cls,), jnp.float32),
        "ins_bilateral_weights": sem_params.spatial_ker_weight
                                 * jnp.ones((n_thing_cls,), jnp.float32),
        "cross_ins_sem": cross,
        "cross_sem_ins": cross,
    }


if __name__ == "__main__":
    key = jax.random.PRNGKey(0)
    k_img, k_sem, k_ins, k_lbl = jax.random.split(key, 4)

    H = W = 16
    n_stuff, n_thing = 3, 2           # stuff_labels=3, thing_labels=2
    C_sem = n_stuff + 1               # semantic logits channels
    C_ins = 5                         # number of instances
    num_iterations = 3

    image = jax.random.uniform(k_img, (3, H, W), jnp.float32)          # RGB in [0,1]
    semantic_logits = jax.random.normal(k_sem, (C_sem, H, W), jnp.float32)
    instance_logits = jax.random.normal(k_ins, (C_ins, H, W), jnp.float32)
    instance_cls_labels = jax.random.randint(k_lbl, (C_ins,), 0, n_thing + 1,
                                             dtype=jnp.int32)

    sem_params = DenseCRFParams(spatial_ker_weight=3.0, bilateral_ker_weight=5.0,
                                alpha=8.0, beta=0.5, gamma=3.0)
    ins_params = DenseCRFParams(spatial_ker_weight=2.0, bilateral_ker_weight=4.0,
                                alpha=6.0, beta=0.4, gamma=2.0)
    params = make_bcrf_params(sem_params, n_stuff, n_thing)

    sem_out, ins_out = bcrf_forward(
        image, semantic_logits, instance_logits, instance_cls_labels,
        sem_params=sem_params, ins_params=ins_params, params=params,
        num_iterations=num_iterations)
    jax.block_until_ready((sem_out, ins_out))

    assert sem_out.shape == (C_sem, H, W) and ins_out.shape == (C_ins, H, W)
    assert bool(jnp.all(jnp.isfinite(sem_out))) and bool(jnp.all(jnp.isfinite(ins_out)))
    print("KERNEL_OK")
</pallas_src>

<mosaic_0001>
module attributes {stable_mosaic.version = 11 : i64} {
  func.func @_bcrf_kernel(%arg0: i32, %arg1: i32, %arg2: memref<8x256xf32, #tpu.memory_space<vmem>>, %arg3: memref<8x256xf32, #tpu.memory_space<vmem>>, %arg4: memref<256x16xf32, #tpu.memory_space<vmem>>, %arg5: memref<16x512xf32, #tpu.memory_space<vmem>>, %arg6: memref<8x1xf32, #tpu.memory_space<vmem>>, %arg7: memref<8x1xf32, #tpu.memory_space<vmem>>, %arg8: memref<8x1xf32, #tpu.memory_space<vmem>>, %arg9: memref<8x1xf32, #tpu.memory_space<vmem>>, %arg10: memref<8x8xf32, #tpu.memory_space<vmem>>, %arg11: memref<8x8xf32, #tpu.memory_space<vmem>>, %arg12: memref<8x8xf32, #tpu.memory_space<vmem>>, %arg13: memref<8x256xf32, #tpu.memory_space<vmem>>, %arg14: memref<8x256xf32, #tpu.memory_space<vmem>>, %arg15: memref<2x8x256xbf16, #tpu.memory_space<vmem>>, %arg16: memref<2x8x256xbf16, #tpu.memory_space<vmem>>, %arg17: memref<2x8x256xbf16, #tpu.memory_space<vmem>>, %arg18: memref<2x8x256xbf16, #tpu.memory_space<vmem>>) attributes {dimension_semantics = [#tpu.dimension_semantics<arbitrary>, #tpu.dimension_semantics<arbitrary>], iteration_bounds = array<i64: 4, 1>, scalar_prefetch = 0 : i64, scratch_operands = 4 : i64, tpu.core_type = #tpu.core_type<tc>, window_params = [{transform_indices = @transform_0, window_bounds = array<i64: 8, 256>}, {transform_indices = @transform_1, window_bounds = array<i64: 8, 256>}, {pipeline_mode = #tpu.pipeline_mode<synchronous>, transform_indices = @transform_2, window_bounds = array<i64: 256, 16>}, {transform_indices = @transform_3, window_bounds = array<i64: 16, 512>}, {pipeline_mode = #tpu.pipeline_mode<synchronous>, transform_indices = @transform_4, window_bounds = array<i64: 8, 1>}, {pipeline_mode = #tpu.pipeline_mode<synchronous>, transform_indices = @transform_5, window_bounds = array<i64: 8, 1>}, {pipeline_mode = #tpu.pipeline_mode<synchronous>, transform_indices = @transform_6, window_bounds = array<i64: 8, 1>}, {pipeline_mode = #tpu.pipeline_mode<synchronous>, transform_indices = @transform_7, window_bounds = array<i64: 8, 1>}, {pipeline_mode = #tpu.pipeline_mode<synchronous>, transform_indices = @transform_8, window_bounds = array<i64: 8, 8>}, {pipeline_mode = #tpu.pipeline_mode<synchronous>, transform_indices = @transform_9, window_bounds = array<i64: 8, 8>}, {pipeline_mode = #tpu.pipeline_mode<synchronous>, transform_indices = @transform_10, window_bounds = array<i64: 8, 8>}, {transform_indices = @transform_11, window_bounds = array<i64: 8, 256>}, {transform_indices = @transform_12, window_bounds = array<i64: 8, 256>}]} {
    %c1_i32 = arith.constant 1 : i32
    %0 = arith.andi %arg0, %c1_i32 : i32
    %c1_i32_0 = arith.constant 1 : i32
    %1 = arith.addi %arg0, %c1_i32_0 : i32
    %c1_i32_1 = arith.constant 1 : i32
    %2 = arith.andi %1, %c1_i32_1 : i32
    %c256_i32 = arith.constant 256 : i32
    %3 = arith.muli %arg1, %c256_i32 : i32
    %4 = tpu.assume_multiple %3, 256 : i32
    %c0 = arith.constant 0 : index
    %c0_2 = arith.constant 0 : index
    %5 = vector.load %arg6[%c0, %c0_2] : memref<8x1xf32, #tpu.memory_space<vmem>>, vector<8x1xf32>
    %c0_3 = arith.constant 0 : index
    %c0_4 = arith.constant 0 : index
    %6 = vector.load %arg7[%c0_3, %c0_4] : memref<8x1xf32, #tpu.memory_space<vmem>>, vector<8x1xf32>
    %c0_5 = arith.constant 0 : index
    %c0_6 = arith.constant 0 : index
    %7 = vector.load %arg8[%c0_5, %c0_6] : memref<8x1xf32, #tpu.memory_space<vmem>>, vector<8x1xf32>
    %c0_7 = arith.constant 0 : index
    %c0_8 = arith.constant 0 : index
    %8 = vector.load %arg9[%c0_7, %c0_8] : memref<8x1xf32, #tpu.memory_space<vmem>>, vector<8x1xf32>
    %9 = tpu.iota {dimensions = array<i32: 0>} : vector<8x1xi32>
    %c7_i32 = arith.constant 7 : i32
    %10 = vector.broadcast %c7_i32 : i32 to vector<8x1xi32>
    %11 = arith.cmpi eq, %9, %10 : vector<8x1xi32>
    %12 = arith.extui %11 : vector<8x1xi1> to vector<8x1xi32>
    %13 = arith.sitofp %12 : vector<8x1xi32> to vector<8x1xf32>
    %c0_i32 = arith.constant 0 : i32
    %14 = arith.cmpi eq, %arg0, %c0_i32 : i32
    %15 = arith.extui %14 : i1 to i32
    %c0_i32_9 = arith.constant 0 : i32
    %16 = arith.cmpi ne, %15, %c0_i32_9 : i32
    scf.if %16 {
      %c0_12 = arith.constant 0 : index
      %c0_13 = arith.constant 0 : index
      %20 = vector.load %arg2[%c0_12, %c0_13] : memref<8x256xf32, #tpu.memory_space<vmem>>, vector<8x256xf32>
      %cst = arith.constant dense<0xFF800000> : vector<256xf32>
      %21 = vector.multi_reduction <maximumf>, %20, %cst [0] : vector<8x256xf32> to vector<256xf32>
      %22 = vector.shape_cast %21 : vector<256xf32> to vector<1x256xf32>
      %23 = vector.broadcast %22 : vector<1x256xf32> to vector<8x256xf32>
      %24 = arith.subf %20, %23 : vector<8x256xf32>
      %25 = math.exp %24 : vector<8x256xf32>
      %cst_14 = arith.constant dense<0.000000e+00> : vector<256xf32>
      %26 = vector.multi_reduction <add>, %25, %cst_14 [0] : vector<8x256xf32> to vector<256xf32>
      %27 = vector.shape_cast %26 : vector<256xf32> to vector<1x256xf32>
      %28 = vector.broadcast %27 : vector<1x256xf32> to vector<8x256xf32>
      %29 = arith.divf %25, %28 : vector<8x256xf32>
      %c0_15 = arith.constant 0 : index
      %c0_16 = arith.constant 0 : index
      %30 = vector.load %arg3[%c0_15, %c0_16] : memref<8x256xf32, #tpu.memory_space<vmem>>, vector<8x256xf32>
      %cst_17 = arith.constant dense<0xFF800000> : vector<256xf32>
      %31 = vector.multi_reduction <maximumf>, %30, %cst_17 [0] : vector<8x256xf32> to vector<256xf32>
      %32 = vector.shape_cast %31 : vector<256xf32> to vector<1x256xf32>
      %33 = vector.broadcast %32 : vector<1x256xf32> to vector<8x256xf32>
      %34 = arith.subf %30, %33 : vector<8x256xf32>
      %35 = math.exp %34 : vector<8x256xf32>
      %cst_18 = arith.constant dense<0.000000e+00> : vector<256xf32>
      %36 = vector.multi_reduction <add>, %35, %cst_18 [0] : vector<8x256xf32> to vector<256xf32>
      %37 = vector.shape_cast %36 : vector<256xf32> to vector<1x256xf32>
      %38 = vector.broadcast %37 : vector<1x256xf32> to vector<8x256xf32>
      %39 = arith.divf %35, %38 : vector<8x256xf32>
      %40 = vector.broadcast %5 : vector<8x1xf32> to vector<8x256xf32>
      %41 = arith.mulf %40, %29 : vector<8x256xf32>
      %42 = vector.broadcast %13 : vector<8x1xf32> to vector<8x256xf32>
      %43 = arith.addf %41, %42 : vector<8x256xf32>
      %44 = arith.truncf %43 : vector<8x256xf32> to vector<8x256xbf16>
      %45 = arith.index_cast %2 : i32 to index
      %c0_19 = arith.constant 0 : index
      %46 = arith.index_cast %4 : i32 to index
      %47 = vector.load %arg15[%45, %c0_19, %46] : memref<2x8x256xbf16, #tpu.memory_space<vmem>>, vector<1x8x256xbf16>
      %48 = vector.shape_cast %47 : vector<1x8x256xbf16> to vector<8x256xbf16>
      %49 = vector.shape_cast %44 : vector<8x256xbf16> to vector<1x8x256xbf16>
      tpu.vector_store %arg15[%45, %c0_19, %46], %49 {strides = array<i32>} : memref<2x8x256xbf16, #tpu.memory_space<vmem>>, vector<1x8x256xbf16>,
      %50 = vector.broadcast %6 : vector<8x1xf32> to vector<8x256xf32>
      %51 = arith.mulf %50, %29 : vector<8x256xf32>
      %52 = vector.broadcast %13 : vector<8x1xf32> to vector<8x256xf32>
      %53 = arith.addf %51, %52 : vector<8x256xf32>
      %54 = arith.truncf %53 : vector<8x256xf32> to vector<8x256xbf16>
      %55 = arith.index_cast %2 : i32 to index
      %c0_20 = arith.constant 0 : index
      %56 = arith.index_cast %4 : i32 to index
      %57 = vector.load %arg16[%55, %c0_20, %56] : memref<2x8x256xbf16, #tpu.memory_space<vmem>>, vector<1x8x256xbf16>
      %58 = vector.shape_cast %57 : vector<1x8x256xbf16> to vector<8x256xbf16>
      %59 = vector.shape_cast %54 : vector<8x256xbf16> to vector<1x8x256xbf16>
      tpu.vector_store %arg16[%55, %c0_20, %56], %59 {strides = array<i32>} : memref<2x8x256xbf16, #tpu.memory_space<vmem>>, vector<1x8x256xbf16>,
      %60 = vector.broadcast %7 : vector<8x1xf32> to vector<8x256xf32>
      %61 = arith.mulf %60, %39 : vector<8x256xf32>
      %62 = vector.broadcast %13 : vector<8x1xf32> to vector<8x256xf32>
      %63 = arith.addf %61, %62 : vector<8x256xf32>
      %64 = arith.truncf %63 : vector<8x256xf32> to vector<8x256xbf16>
      %65 = arith.index_cast %2 : i32 to index
      %c0_21 = arith.constant 0 : index
      %66 = arith.index_cast %4 : i32 to index
      %67 = vector.load %arg17[%65, %c0_21, %66] : memref<2x8x256xbf16, #tpu.memory_space<vmem>>, vector<1x8x256xbf16>
      %68 = vector.shape_cast %67 : vector<1x8x256xbf16> to vector<8x256xbf16>
      %69 = vector.shape_cast %64 : vector<8x256xbf16> to vector<1x8x256xbf16>
      tpu.vector_store %arg17[%65, %c0_21, %66], %69 {strides = array<i32>} : memref<2x8x256xbf16, #tpu.memory_space<vmem>>, vector<1x8x256xbf16>,
      %70 = vector.broadcast %8 : vector<8x1xf32> to vector<8x256xf32>
      %71 = arith.mulf %70, %39 : vector<8x256xf32>
      %72 = vector.broadcast %13 : vector<8x1xf32> to vector<8x256xf32>
      %73 = arith.addf %71, %72 : vector<8x256xf32>
      %74 = arith.truncf %73 : vector<8x256xf32> to vector<8x256xbf16>
      %75 = arith.index_cast %2 : i32 to index
      %c0_22 = arith.constant 0 : index
      %76 = arith.index_cast %4 : i32 to index
      %77 = vector.load %arg18[%75, %c0_22, %76] : memref<2x8x256xbf16, #tpu.memory_space<vmem>>, vector<1x8x256xbf16>
      %78 = vector.shape_cast %77 : vector<1x8x256xbf16> to vector<8x256xbf16>
      %79 = vector.shape_cast %74 : vector<8x256xbf16> to vector<1x8x256xbf16>
      tpu.vector_store %arg18[%75, %c0_22, %76], %79 {strides = array<i32>} : memref<2x8x256xbf16, #tpu.memory_space<vmem>>, vector<1x8x256xbf16>,
      %c0_23 = arith.constant 0 : index
      %c0_24 = arith.constant 0 : index
      %80 = vector.load %arg2[%c0_23, %c0_24] : memref<8x256xf32, #tpu.memory_space<vmem>>, vector<8x256xf32>
      %c0_25 = arith.constant 0 : index
      %c0_26 = arith.constant 0 : index
      %81 = vector.load %arg13[%c0_25, %c0_26] : memref<8x256xf32, #tpu.memory_space<vmem>>, vector<8x256xf32>
      tpu.vector_store %arg13[%c0_25, %c0_26], %80 {strides = array<i32>} : memref<8x256xf32, #tpu.memory_space<vmem>>, vector<8x256xf32>,
      %c0_27 = arith.constant 0 : index
      %c0_28 = arith.constant 0 : index
      %82 = vector.load %arg3[%c0_27, %c0_28] : memref<8x256xf32, #tpu.memory_space<vmem>>, vector<8x256xf32>
      %c0_29 = arith.constant 0 : index
      %c0_30 = arith.constant 0 : index
      %83 = vector.load %arg14[%c0_29, %c0_30] : memref<8x256xf32, #tpu.memory_space<vmem>>, vector<8x256xf32>
      tpu.vector_store %arg14[%c0_29, %c0_30], %82 {strides = array<i32>} : memref<8x256xf32, #tpu.memory_space<vmem>>, vector<8x256xf32>,
    } else {
    }
    %c0_i32_10 = arith.constant 0 : i32
    %17 = arith.cmpi sgt, %arg0, %c0_i32_10 : i32
    %18 = arith.extui %17 : i1 to i32
    %c0_i32_11 = arith.constant 0 : i32
    %19 = arith.cmpi ne, %18, %c0_i32_11 : i32
    scf.if %19 {
      %c0_12 = arith.constant 0 : index
      %c0_13 = arith.constant 0 : index
      %20 = vector.load %arg4[%c0_12, %c0_13] : memref<256x16xf32, #tpu.memory_space<vmem>>, vector<256x16xf32>
      %c0_14 = arith.constant 0 : index
      %c0_15 = arith.constant 0 : index
      %21 = vector.load %arg5[%c0_14, %c0_15] : memref<16x512xf32, #tpu.memory_space<vmem>>, vector<16x512xf32>
      %cst = arith.constant dense<0.000000e+00> : vector<256x512xf32>
      %22 = tpu.matmul %20, %21, %cst {dimension_numbers = #tpu.dot_dimension_numbers<[1], [0], [0], [1], [0, 0, 1, 1], [], []>} : vector<256x16xf32>, vector<16x512xf32>, vector<256x512xf32> -> vector<256x512xf32>
      %cst_16 = arith.constant 0.000000e+00 : f32
      %23 = vector.broadcast %cst_16 : f32 to vector<256x512xf32>
      %24 = arith.maximumf %22, %23 : vector<256x512xf32>
      %25 = vector.extract_strided_slice %24 {offsets = [0, 0], sizes = [256, 256], strides = [1, 1]} : vector<256x512xf32> to vector<256x256xf32>
      %26 = vector.extract_strided_slice %24 {offsets = [0, 256], sizes = [256, 256], strides = [1, 1]} : vector<256x512xf32> to vector<256x256xf32>
      %cst_17 = arith.constant -0.055555556 : f32
      %27 = vector.broadcast %cst_17 : f32 to vector<256x256xf32>
      %28 = arith.mulf %25, %27 : vector<256x256xf32>
      %29 = arith.truncf %28 : vector<256x256xf32> to vector<256x256xbf16>
      %30 = math.exp %29 : vector<256x256xbf16>
      %31 = arith.index_cast %0 : i32 to index
      %c0_18 = arith.constant 0 : index
      %c0_19 = arith.constant 0 : index
      %32 = vector.load %arg15[%31, %c0_18, %c0_19] : memref<2x8x256xbf16, #tpu.memory_space<vmem>>, vector<1x8x256xbf16>
      %33 = vector.shape_cast %32 : vector<1x8x256xbf16> to vector<8x256xbf16>
      %cst_20 = arith.constant dense<0.000000e+00> : vector<8x256xf32>
      %34 = tpu.matmul %33, %30, %cst_20 {dimension_numbers = #tpu.dot_dimension_numbers<[1], [0], [0], [1], [0, 0, 1, 1], [], []>} : vector<8x256xbf16>, vector<256x256xbf16>, vector<8x256xf32> -> vector<8x256xf32>
      %35 = vector.extract_strided_slice %34 {offsets = [7, 0], sizes = [1, 256], strides = [1, 1]} : vector<8x256xf32> to vector<1x256xf32>
      %cst_21 = arith.constant 9.99999993E-9 : f32
      %36 = vector.broadcast %cst_21 : f32 to vector<1x256xf32>
      %37 = arith.addf %35, %36 : vector<1x256xf32>
      %38 = tpu.reciprocal %37 {approx = true} : vector<1x256xf32> -> vector<1x256xf32>
      %39 = vector.broadcast %38 : vector<1x256xf32> to vector<8x256xf32>
      %40 = arith.mulf %34, %39 : vector<8x256xf32>
      %cst_22 = arith.constant -7.812500e-03 : f32
      %41 = vector.broadcast %cst_22 : f32 to vector<256x256xf32>
      %42 = arith.mulf %25, %41 : vector<256x256xf32>
      %cst_23 = arith.constant -2.000000e+00 : f32
      %43 = vector.broadcast %cst_23 : f32 to vector<256x256xf32>
      %44 = arith.mulf %26, %43 : vector<256x256xf32>
      %45 = arith.addf %42, %44 : vector<256x256xf32>
      %46 = arith.truncf %45 : vector<256x256xf32> to vector<256x256xbf16>
      %47 = math.exp %46 : vector<256x256xbf16>
      %48 = arith.index_cast %0 : i32 to index
      %c0_24 = arith.constant 0 : index
      %c0_25 = arith.constant 0 : index
      %49 = vector.load %arg16[%48, %c0_24, %c0_25] : memref<2x8x256xbf16, #tpu.memory_space<vmem>>, vector<1x8x256xbf16>
      %50 = vector.shape_cast %49 : vector<1x8x256xbf16> to vector<8x256xbf16>
      %cst_26 = arith.constant dense<0.000000e+00> : vector<8x256xf32>
      %51 = tpu.matmul %50, %47, %cst_26 {dimension_numbers = #tpu.dot_dimension_numbers<[1], [0], [0], [1], [0, 0, 1, 1], [], []>} : vector<8x256xbf16>, vector<256x256xbf16>, vector<8x256xf32> -> vector<8x256xf32>
      %52 = vector.extract_strided_slice %51 {offsets = [7, 0], sizes = [1, 256], strides = [1, 1]} : vector<8x256xf32> to vector<1x256xf32>
      %cst_27 = arith.constant 9.99999993E-9 : f32
      %53 = vector.broadcast %cst_27 : f32 to vector<1x256xf32>
      %54 = arith.addf %52, %53 : vector<1x256xf32>
      %55 = tpu.reciprocal %54 {approx = true} : vector<1x256xf32> -> vector<1x256xf32>
      %56 = vector.broadcast %55 : vector<1x256xf32> to vector<8x256xf32>
      %57 = arith.mulf %51, %56 : vector<8x256xf32>
      %58 = arith.addf %40, %57 : vector<8x256xf32>
      %cst_28 = arith.constant -1.250000e-01 : f32
      %59 = vector.broadcast %cst_28 : f32 to vector<256x256xf32>
      %60 = arith.mulf %25, %59 : vector<256x256xf32>
      %61 = arith.truncf %60 : vector<256x256xf32> to vector<256x256xbf16>
      %62 = math.exp %61 : vector<256x256xbf16>
      %63 = arith.index_cast %0 : i32 to index
      %c0_29 = arith.constant 0 : index
      %c0_30 = arith.constant 0 : index
      %64 = vector.load %arg17[%63, %c0_29, %c0_30] : memref<2x8x256xbf16, #tpu.memory_space<vmem>>, vector<1x8x256xbf16>
      %65 = vector.shape_cast %64 : vector<1x8x256xbf16> to vector<8x256xbf16>
      %cst_31 = arith.constant dense<0.000000e+00> : vector<8x256xf32>
      %66 = tpu.matmul %65, %62, %cst_31 {dimension_numbers = #tpu.dot_dimension_numbers<[1], [0], [0], [1], [0, 0, 1, 1], [], []>} : vector<8x256xbf16>, vector<256x256xbf16>, vector<8x256xf32> -> vector<8x256xf32>
      %67 = vector.extract_strided_slice %66 {offsets = [7, 0], sizes = [1, 256], strides = [1, 1]} : vector<8x256xf32> to vector<1x256xf32>
      %cst_32 = arith.constant 9.99999993E-9 : f32
      %68 = vector.broadcast %cst_32 : f32 to vector<1x256xf32>
      %69 = arith.addf %67, %68 : vector<1x256xf32>
      %70 = tpu.reciprocal %69 {approx = true} : vector<1x256xf32> -> vector<1x256xf32>
      %71 = vector.broadcast %70 : vector<1x256xf32> to vector<8x256xf32>
      %72 = arith.mulf %66, %71 : vector<8x256xf32>
      %cst_33 = arith.constant -0.013888889 : f32
      %73 = vector.broadcast %cst_33 : f32 to vector<256x256xf32>
      %74 = arith.mulf %25, %73 : vector<256x256xf32>
      %cst_34 = arith.constant -3.125000e+00 : f32
      %75 = vector.broadcast %cst_34 : f32 to vector<256x256xf32>
      %76 = arith.mulf %26, %75 : vector<256x256xf32>
      %77 = arith.addf %74, %76 : vector<256x256xf32>
      %78 = arith.truncf %77 : vector<256x256xf32> to vector<256x256xbf16>
      %79 = math.exp %78 : vector<256x256xbf16>
      %80 = arith.index_cast %0 : i32 to index
      %c0_35 = arith.constant 0 : index
      %c0_36 = arith.constant 0 : index
      %81 = vector.load %arg18[%80, %c0_35, %c0_36] : memref<2x8x256xbf16, #tpu.memory_space<vmem>>, vector<1x8x256xbf16>
      %82 = vector.shape_cast %81 : vector<1x8x256xbf16> to vector<8x256xbf16>
      %cst_37 = arith.constant dense<0.000000e+00> : vector<8x256xf32>
      %83 = tpu.matmul %82, %79, %cst_37 {dimension_numbers = #tpu.dot_dimension_numbers<[1], [0], [0], [1], [0, 0, 1, 1], [], []>} : vector<8x256xbf16>, vector<256x256xbf16>, vector<8x256xf32> -> vector<8x256xf32>
      %84 = vector.extract_strided_slice %83 {offsets = [7, 0], sizes = [1, 256], strides = [1, 1]} : vector<8x256xf32> to vector<1x256xf32>
      %cst_38 = arith.constant 9.99999993E-9 : f32
      %85 = vector.broadcast %cst_38 : f32 to vector<1x256xf32>
      %86 = arith.addf %84, %85 : vector<1x256xf32>
      %87 = tpu.reciprocal %86 {approx = true} : vector<1x256xf32> -> vector<1x256xf32>
      %88 = vector.broadcast %87 : vector<1x256xf32> to vector<8x256xf32>
      %89 = arith.mulf %83, %88 : vector<8x256xf32>
      %90 = arith.addf %72, %89 : vector<8x256xf32>
      %c0_39 = arith.constant 0 : index
      %c0_40 = arith.constant 0 : index
      %91 = vector.load %arg2[%c0_39, %c0_40] : memref<8x256xf32, #tpu.memory_space<vmem>>, vector<8x256xf32>
      %c0_41 = arith.constant 0 : index
      %c0_42 = arith.constant 0 : index
      %92 = vector.load %arg3[%c0_41, %c0_42] : memref<8x256xf32, #tpu.memory_space<vmem>>, vector<8x256xf32>
      %c0_43 = arith.constant 0 : index
      %c0_44 = arith.constant 0 : index
      %93 = vector.load %arg10[%c0_43, %c0_44] : memref<8x8xf32, #tpu.memory_space<vmem>>, vector<8x8xf32>
      %cst_45 = arith.constant dense<0.000000e+00> : vector<8x256xf32>
      %94 = tpu.matmul %93, %58, %cst_45 {dimension_numbers = #tpu.dot_dimension_numbers<[1], [0], [0], [1], [0, 0, 1, 1], [], []>} : vector<8x8xf32>, vector<8x256xf32>, vector<8x256xf32> -> vector<8x256xf32>
      %95 = arith.addf %91, %94 : vector<8x256xf32>
      %96 = arith.addf %92, %90 : vector<8x256xf32>
      %c0_46 = arith.constant 0 : index
      %c0_47 = arith.constant 0 : index
      %97 = vector.load %arg11[%c0_46, %c0_47] : memref<8x8xf32, #tpu.memory_space<vmem>>, vector<8x8xf32>
      %cst_48 = arith.constant dense<0xFF800000> : vector<256xf32>
      %98 = vector.multi_reduction <maximumf>, %96, %cst_48 [0] : vector<8x256xf32> to vector<256xf32>
      %99 = vector.shape_cast %98 : vector<256xf32> to vector<1x256xf32>
      %100 = vector.broadcast %99 : vector<1x256xf32> to vector<8x256xf32>
      %101 = arith.subf %96, %100 : vector<8x256xf32>
      %102 = math.exp %101 : vector<8x256xf32>
      %cst_49 = arith.constant dense<0.000000e+00> : vector<256xf32>
      %103 = vector.multi_reduction <add>, %102, %cst_49 [0] : vector<8x256xf32> to vector<256xf32>
      %104 = vector.shape_cast %103 : vector<256xf32> to vector<1x256xf32>
      %105 = vector.broadcast %104 : vector<1x256xf32> to vector<8x256xf32>
      %106 = arith.divf %102, %105 : vector<8x256xf32>
      %cst_50 = arith.constant dense<0.000000e+00> : vector<8x256xf32>
      %107 = tpu.matmul %97, %106, %cst_50 {dimension_numbers = #tpu.dot_dimension_numbers<[1], [0], [0], [1], [0, 0, 1, 1], [], []>} : vector<8x8xf32>, vector<8x256xf32>, vector<8x256xf32> -> vector<8x256xf32>
      %108 = arith.addf %95, %107 : vector<8x256xf32>
      %c0_51 = arith.constant 0 : index
      %c0_52 = arith.constant 0 : index
      %109 = vector.load %arg12[%c0_51, %c0_52] : memref<8x8xf32, #tpu.memory_space<vmem>>, vector<8x8xf32>
      %cst_53 = arith.constant dense<0xFF800000> : vector<256xf32>
      %110 = vector.multi_reduction <maximumf>, %95, %cst_53 [0] : vector<8x256xf32> to vector<256xf32>
      %111 = vector.shape_cast %110 : vector<256xf32> to vector<1x256xf32>
      %112 = vector.broadcast %111 : vector<1x256xf32> to vector<8x256xf32>
      %113 = arith.subf %95, %112 : vector<8x256xf32>
      %114 = math.exp %113 : vector<8x256xf32>
      %cst_54 = arith.constant dense<0.000000e+00> : vector<256xf32>
      %115 = vector.multi_reduction <add>, %114, %cst_54 [0] : vector<8x256xf32> to vector<256xf32>
      %116 = vector.shape_cast %115 : vector<256xf32> to vector<1x256xf32>
      %117 = vector.broadcast %116 : vector<1x256xf32> to vector<8x256xf32>
      %118 = arith.divf %114, %117 : vector<8x256xf32>
      %cst_55 = arith.constant dense<0.000000e+00> : vector<8x256xf32>
      %119 = tpu.matmul %109, %118, %cst_55 {dimension_numbers = #tpu.dot_dimension_numbers<[1], [0], [0], [1], [0, 0, 1, 1], [], []>} : vector<8x8xf32>, vector<8x256xf32>, vector<8x256xf32> -> vector<8x256xf32>
      %120 = arith.addf %96, %119 : vector<8x256xf32>
      %c0_56 = arith.constant 0 : index
      %c0_57 = arith.constant 0 : index
      %121 = vector.load %arg13[%c0_56, %c0_57] : memref<8x256xf32, #tpu.memory_space<vmem>>, vector<8x256xf32>
      tpu.vector_store %arg13[%c0_56, %c0_57], %108 {strides = array<i32>} : memref<8x256xf32, #tpu.memory_space<vmem>>, vector<8x256xf32>,
      %c0_58 = arith.constant 0 : index
      %c0_59 = arith.constant 0 : index
      %122 = vector.load %arg14[%c0_58, %c0_59] : memref<8x256xf32, #tpu.memory_space<vmem>>, vector<8x256xf32>
      tpu.vector_store %arg14[%c0_58, %c0_59], %120 {strides = array<i32>} : memref<8x256xf32, #tpu.memory_space<vmem>>, vector<8x256xf32>,
      %cst_60 = arith.constant dense<0xFF800000> : vector<256xf32>
      %123 = vector.multi_reduction <maximumf>, %108, %cst_60 [0] : vector<8x256xf32> to vector<256xf32>
      %124 = vector.shape_cast %123 : vector<256xf32> to vector<1x256xf32>
      %125 = vector.broadcast %124 : vector<1x256xf32> to vector<8x256xf32>
      %126 = arith.subf %108, %125 : vector<8x256xf32>
      %127 = math.exp %126 : vector<8x256xf32>
      %cst_61 = arith.constant dense<0.000000e+00> : vector<256xf32>
      %128 = vector.multi_reduction <add>, %127, %cst_61 [0] : vector<8x256xf32> to vector<256xf32>
      %129 = vector.shape_cast %128 : vector<256xf32> to vector<1x256xf32>
      %130 = vector.broadcast %129 : vector<1x256xf32> to vector<8x256xf32>
      %131 = arith.divf %127, %130 : vector<8x256xf32>
      %cst_62 = arith.constant dense<0xFF800000> : vector<256xf32>
      %132 = vector.multi_reduction <maximumf>, %120, %cst_62 [0] : vector<8x256xf32> to vector<256xf32>
      %133 = vector.shape_cast %132 : vector<256xf32> to vector<1x256xf32>
      %134 = vector.broadcast %133 : vector<1x256xf32> to vector<8x256xf32>
      %135 = arith.subf %120, %134 : vector<8x256xf32>
      %136 = math.exp %135 : vector<8x256xf32>
      %cst_63 = arith.constant dense<0.000000e+00> : vector<256xf32>
      %137 = vector.multi_reduction <add>, %136, %cst_63 [0] : vector<8x256xf32> to vector<256xf32>
      %138 = vector.shape_cast %137 : vector<256xf32> to vector<1x256xf32>
      %139 = vector.broadcast %138 : vector<1x256xf32> to vector<8x256xf32>
      %140 = arith.divf %136, %139 : vector<8x256xf32>
      %141 = vector.broadcast %5 : vector<8x1xf32> to vector<8x256xf32>
      %142 = arith.mulf %141, %131 : vector<8x256xf32>
      %143 = vector.broadcast %13 : vector<8x1xf32> to vector<8x256xf32>
      %144 = arith.addf %142, %143 : vector<8x256xf32>
      %145 = arith.truncf %144 : vector<8x256xf32> to vector<8x256xbf16>
      %146 = arith.index_cast %2 : i32 to index
      %c0_64 = arith.constant 0 : index
      %147 = arith.index_cast %4 : i32 to index
      %148 = vector.load %arg15[%146, %c0_64, %147] : memref<2x8x256xbf16, #tpu.memory_space<vmem>>, vector<1x8x256xbf16>
      %149 = vector.shape_cast %148 : vector<1x8x256xbf16> to vector<8x256xbf16>
      %150 = vector.shape_cast %145 : vector<8x256xbf16> to vector<1x8x256xbf16>
      tpu.vector_store %arg15[%146, %c0_64, %147], %150 {strides = array<i32>} : memref<2x8x256xbf16, #tpu.memory_space<vmem>>, vector<1x8x256xbf16>,
      %151 = vector.broadcast %6 : vector<8x1xf32> to vector<8x256xf32>
      %152 = arith.mulf %151, %131 : vector<8x256xf32>
      %153 = vector.broadcast %13 : vector<8x1xf32> to vector<8x256xf32>
      %154 = arith.addf %152, %153 : vector<8x256xf32>
      %155 = arith.truncf %154 : vector<8x256xf32> to vector<8x256xbf16>
      %156 = arith.index_cast %2 : i32 to index
      %c0_65 = arith.constant 0 : index
      %157 = arith.index_cast %4 : i32 to index
      %158 = vector.load %arg16[%156, %c0_65, %157] : memref<2x8x256xbf16, #tpu.memory_space<vmem>>, vector<1x8x256xbf16>
      %159 = vector.shape_cast %158 : vector<1x8x256xbf16> to vector<8x256xbf16>
      %160 = vector.shape_cast %155 : vector<8x256xbf16> to vector<1x8x256xbf16>
      tpu.vector_store %arg16[%156, %c0_65, %157], %160 {strides = array<i32>} : memref<2x8x256xbf16, #tpu.memory_space<vmem>>, vector<1x8x256xbf16>,
      %161 = vector.broadcast %7 : vector<8x1xf32> to vector<8x256xf32>
      %162 = arith.mulf %161, %140 : vector<8x256xf32>
      %163 = vector.broadcast %13 : vector<8x1xf32> to vector<8x256xf32>
      %164 = arith.addf %162, %163 : vector<8x256xf32>
      %165 = arith.truncf %164 : vector<8x256xf32> to vector<8x256xbf16>
      %166 = arith.index_cast %2 : i32 to index
      %c0_66 = arith.constant 0 : index
      %167 = arith.index_cast %4 : i32 to index
      %168 = vector.load %arg17[%166, %c0_66, %167] : memref<2x8x256xbf16, #tpu.memory_space<vmem>>, vector<1x8x256xbf16>
      %169 = vector.shape_cast %168 : vector<1x8x256xbf16> to vector<8x256xbf16>
      %170 = vector.shape_cast %165 : vector<8x256xbf16> to vector<1x8x256xbf16>
      tpu.vector_store %arg17[%166, %c0_66, %167], %170 {strides = array<i32>} : memref<2x8x256xbf16, #tpu.memory_space<vmem>>, vector<1x8x256xbf16>,
      %171 = vector.broadcast %8 : vector<8x1xf32> to vector<8x256xf32>
      %172 = arith.mulf %171, %140 : vector<8x256xf32>
      %173 = vector.broadcast %13 : vector<8x1xf32> to vector<8x256xf32>
      %174 = arith.addf %172, %173 : vector<8x256xf32>
      %175 = arith.truncf %174 : vector<8x256xf32> to vector<8x256xbf16>
      %176 = arith.index_cast %2 : i32 to index
      %c0_67 = arith.constant 0 : index
      %177 = arith.index_cast %4 : i32 to index
      %178 = vector.load %arg18[%176, %c0_67, %177] : memref<2x8x256xbf16, #tpu.memory_space<vmem>>, vector<1x8x256xbf16>
      %179 = vector.shape_cast %178 : vector<1x8x256xbf16> to vector<8x256xbf16>
      %180 = vector.shape_cast %175 : vector<8x256xbf16> to vector<1x8x256xbf16>
      tpu.vector_store %arg18[%176, %c0_67, %177], %180 {strides = array<i32>} : memref<2x8x256xbf16, #tpu.memory_space<vmem>>, vector<1x8x256xbf16>,
    } else {
    }
    return
  }
  func.func @transform_0(%arg0: i32, %arg1: i32) -> (i32, i32) {
    %c0_i32 = arith.constant 0 : i32
    %c0_i32_0 = arith.constant 0 : i32
    return %c0_i32, %arg1 : i32, i32
  }
  func.func @transform_1(%arg0: i32, %arg1: i32) -> (i32, i32) {
    %c0_i32 = arith.constant 0 : i32
    %c0_i32_0 = arith.constant 0 : i32
    return %c0_i32, %arg1 : i32, i32
  }
  func.func @transform_2(%arg0: i32, %arg1: i32) -> (i32, i32) {
    %c0_i32 = arith.constant 0 : i32
    %c0_i32_0 = arith.constant 0 : i32
    %c0_i32_1 = arith.constant 0 : i32
    return %c0_i32, %c0_i32_0 : i32, i32
  }
  func.func @transform_3(%arg0: i32, %arg1: i32) -> (i32, i32) {
    %c0_i32 = arith.constant 0 : i32
    %c0_i32_0 = arith.constant 0 : i32
    return %c0_i32, %arg1 : i32, i32
  }
  func.func @transform_4(%arg0: i32, %arg1: i32) -> (i32, i32) {
    %c0_i32 = arith.constant 0 : i32
    %c0_i32_0 = arith.constant 0 : i32
    %c0_i32_1 = arith.constant 0 : i32
    return %c0_i32, %c0_i32_0 : i32, i32
  }
  func.func @transform_5(%arg0: i32, %arg1: i32) -> (i32, i32) {
    %c0_i32 = arith.constant 0 : i32
    %c0_i32_0 = arith.constant 0 : i32
    %c0_i32_1 = arith.constant 0 : i32
    return %c0_i32, %c0_i32_0 : i32, i32
  }
  func.func @transform_6(%arg0: i32, %arg1: i32) -> (i32, i32) {
    %c0_i32 = arith.constant 0 : i32
    %c0_i32_0 = arith.constant 0 : i32
    %c0_i32_1 = arith.constant 0 : i32
    return %c0_i32, %c0_i32_0 : i32, i32
  }
  func.func @transform_7(%arg0: i32, %arg1: i32) -> (i32, i32) {
    %c0_i32 = arith.constant 0 : i32
    %c0_i32_0 = arith.constant 0 : i32
    %c0_i32_1 = arith.constant 0 : i32
    return %c0_i32, %c0_i32_0 : i32, i32
  }
  func.func @transform_8(%arg0: i32, %arg1: i32) -> (i32, i32) {
    %c0_i32 = arith.constant 0 : i32
    %c0_i32_0 = arith.constant 0 : i32
    %c0_i32_1 = arith.constant 0 : i32
    return %c0_i32, %c0_i32_0 : i32, i32
  }
  func.func @transform_9(%arg0: i32, %arg1: i32) -> (i32, i32) {
    %c0_i32 = arith.constant 0 : i32
    %c0_i32_0 = arith.constant 0 : i32
    %c0_i32_1 = arith.constant 0 : i32
    return %c0_i32, %c0_i32_0 : i32, i32
  }
  func.func @transform_10(%arg0: i32, %arg1: i32) -> (i32, i32) {
    %c0_i32 = arith.constant 0 : i32
    %c0_i32_0 = arith.constant 0 : i32
    %c0_i32_1 = arith.constant 0 : i32
    return %c0_i32, %c0_i32_0 : i32, i32
  }
  func.func @transform_11(%arg0: i32, %arg1: i32) -> (i32, i32) {
    %c0_i32 = arith.constant 0 : i32
    %c0_i32_0 = arith.constant 0 : i32
    return %c0_i32, %arg1 : i32, i32
  }
  func.func @transform_12(%arg0: i32, %arg1: i32) -> (i32, i32) {
    %c0_i32 = arith.constant 0 : i32
    %c0_i32_0 = arith.constant 0 : i32
    return %c0_i32, %arg1 : i32, i32
  }
}

module attributes {stable_mosaic.version = 11 : i64} {
  func.func @_bcrf_kernel(%arg0: i32, %arg1: i32, %arg2: memref<8x256xf32, #tpu.memory_space<vmem>>, %arg3: memref<8x256xf32, #tpu.memory_space<vmem>>, %arg4: memref<256x16xf32, #tpu.memory_space<vmem>>, %arg5: memref<16x512xf32, #tpu.memory_space<vmem>>, %arg6: memref<8x1xf32, #tpu.memory_space<vmem>>, %arg7: memref<8x1xf32, #tpu.memory_space<vmem>>, %arg8: memref<8x1xf32, #tpu.memory_space<vmem>>, %arg9: memref<8x1xf32, #tpu.memory_space<vmem>>, %arg10: memref<8x8xf32, #tpu.memory_space<vmem>>, %arg11: memref<8x8xf32, #tpu.memory_space<vmem>>, %arg12: memref<8x8xf32, #tpu.memory_space<vmem>>, %arg13: memref<8x256xf32, #tpu.memory_space<vmem>>, %arg14: memref<8x256xf32, #tpu.memory_space<vmem>>, %arg15: memref<2x8x256xbf16, #tpu.memory_space<vmem>>, %arg16: memref<2x8x256xbf16, #tpu.memory_space<vmem>>, %arg17: memref<2x8x256xbf16, #tpu.memory_space<vmem>>, %arg18: memref<2x8x256xbf16, #tpu.memory_space<vmem>>) attributes {dimension_semantics = [#tpu.dimension_semantics<arbitrary>, #tpu.dimension_semantics<arbitrary>], iteration_bounds = array<i64: 4, 1>, scalar_prefetch = 0 : i64, scratch_operands = 4 : i64, tpu.core_type = #tpu.core_type<tc>, window_params = [{transform_indices = @transform_0, window_bounds = array<i64: 8, 256>}, {transform_indices = @transform_1, window_bounds = array<i64: 8, 256>}, {pipeline_mode = #tpu.pipeline_mode<synchronous>, transform_indices = @transform_2, window_bounds = array<i64: 256, 16>}, {transform_indices = @transform_3, window_bounds = array<i64: 16, 512>}, {pipeline_mode = #tpu.pipeline_mode<synchronous>, transform_indices = @transform_4, window_bounds = array<i64: 8, 1>}, {pipeline_mode = #tpu.pipeline_mode<synchronous>, transform_indices = @transform_5, window_bounds = array<i64: 8, 1>}, {pipeline_mode = #tpu.pipeline_mode<synchronous>, transform_indices = @transform_6, window_bounds = array<i64: 8, 1>}, {pipeline_mode = #tpu.pipeline_mode<synchronous>, transform_indices = @transform_7, window_bounds = array<i64: 8, 1>}, {pipeline_mode = #tpu.pipeline_mode<synchronous>, transform_indices = @transform_8, window_bounds = array<i64: 8, 8>}, {pipeline_mode = #tpu.pipeline_mode<synchronous>, transform_indices = @transform_9, window_bounds = array<i64: 8, 8>}, {pipeline_mode = #tpu.pipeline_mode<synchronous>, transform_indices = @transform_10, window_bounds = array<i64: 8, 8>}, {transform_indices = @transform_11, window_bounds = array<i64: 8, 256>}, {transform_indices = @transform_12, window_bounds = array<i64: 8, 256>}]} {
    %c1_i32 = arith.constant 1 : i32
    %0 = arith.andi %arg0, %c1_i32 : i32
    %c1_i32_0 = arith.constant 1 : i32
    %1 = arith.addi %arg0, %c1_i32_0 : i32
    %c1_i32_1 = arith.constant 1 : i32
    %2 = arith.andi %1, %c1_i32_1 : i32
    %c256_i32 = arith.constant 256 : i32
    %3 = arith.muli %arg1, %c256_i32 : i32
    %4 = tpu.assume_multiple %3, 256 : i32
    %c0 = arith.constant 0 : index
    %c0_2 = arith.constant 0 : index
    %5 = vector.load %arg6[%c0, %c0_2] : memref<8x1xf32, #tpu.memory_space<vmem>>, vector<8x1xf32>
    %c0_3 = arith.constant 0 : index
    %c0_4 = arith.constant 0 : index
    %6 = vector.load %arg7[%c0_3, %c0_4] : memref<8x1xf32, #tpu.memory_space<vmem>>, vector<8x1xf32>
    %c0_5 = arith.constant 0 : index
    %c0_6 = arith.constant 0 : index
    %7 = vector.load %arg8[%c0_5, %c0_6] : memref<8x1xf32, #tpu.memory_space<vmem>>, vector<8x1xf32>
    %c0_7 = arith.constant 0 : index
    %c0_8 = arith.constant 0 : index
    %8 = vector.load %arg9[%c0_7, %c0_8] : memref<8x1xf32, #tpu.memory_space<vmem>>, vector<8x1xf32>
    %9 = tpu.iota {dimensions = array<i32: 0>} : vector<8x1xi32>
    %c7_i32 = arith.constant 7 : i32
    %10 = vector.broadcast %c7_i32 : i32 to vector<8x1xi32>
    %11 = arith.cmpi eq, %9, %10 : vector<8x1xi32>
    %12 = arith.extui %11 : vector<8x1xi1> to vector<8x1xi32>
    %13 = arith.sitofp %12 : vector<8x1xi32> to vector<8x1xf32>
    %c0_i32 = arith.constant 0 : i32
    %14 = arith.cmpi eq, %arg0, %c0_i32 : i32
    %15 = arith.extui %14 : i1 to i32
    %c0_i32_9 = arith.constant 0 : i32
    %16 = arith.cmpi ne, %15, %c0_i32_9 : i32
    scf.if %16 {
      %c0_12 = arith.constant 0 : index
      %c0_13 = arith.constant 0 : index
      %20 = vector.load %arg2[%c0_12, %c0_13] : memref<8x256xf32, #tpu.memory_space<vmem>>, vector<8x256xf32>
      %cst = arith.constant dense<0xFF800000> : vector<256xf32>
      %21 = vector.multi_reduction <maximumf>, %20, %cst [0] : vector<8x256xf32> to vector<256xf32>
      %22 = vector.shape_cast %21 : vector<256xf32> to vector<1x256xf32>
      %23 = vector.broadcast %22 : vector<1x256xf32> to vector<8x256xf32>
      %24 = arith.subf %20, %23 : vector<8x256xf32>
      %25 = math.exp %24 : vector<8x256xf32>
      %cst_14 = arith.constant dense<0.000000e+00> : vector<256xf32>
      %26 = vector.multi_reduction <add>, %25, %cst_14 [0] : vector<8x256xf32> to vector<256xf32>
      %27 = vector.shape_cast %26 : vector<256xf32> to vector<1x256xf32>
      %28 = vector.broadcast %27 : vector<1x256xf32> to vector<8x256xf32>
      %29 = arith.divf %25, %28 : vector<8x256xf32>
      %c0_15 = arith.constant 0 : index
      %c0_16 = arith.constant 0 : index
      %30 = vector.load %arg3[%c0_15, %c0_16] : memref<8x256xf32, #tpu.memory_space<vmem>>, vector<8x256xf32>
      %cst_17 = arith.constant dense<0xFF800000> : vector<256xf32>
      %31 = vector.multi_reduction <maximumf>, %30, %cst_17 [0] : vector<8x256xf32> to vector<256xf32>
      %32 = vector.shape_cast %31 : vector<256xf32> to vector<1x256xf32>
      %33 = vector.broadcast %32 : vector<1x256xf32> to vector<8x256xf32>
      %34 = arith.subf %30, %33 : vector<8x256xf32>
      %35 = math.exp %34 : vector<8x256xf32>
      %cst_18 = arith.constant dense<0.000000e+00> : vector<256xf32>
      %36 = vector.multi_reduction <add>, %35, %cst_18 [0] : vector<8x256xf32> to vector<256xf32>
      %37 = vector.shape_cast %36 : vector<256xf32> to vector<1x256xf32>
      %38 = vector.broadcast %37 : vector<1x256xf32> to vector<8x256xf32>
      %39 = arith.divf %35, %38 : vector<8x256xf32>
      %40 = vector.broadcast %5 : vector<8x1xf32> to vector<8x256xf32>
      %41 = arith.mulf %40, %29 : vector<8x256xf32>
      %42 = vector.broadcast %13 : vector<8x1xf32> to vector<8x256xf32>
      %43 = arith.addf %41, %42 : vector<8x256xf32>
      %44 = arith.truncf %43 : vector<8x256xf32> to vector<8x256xbf16>
      %45 = arith.index_cast %2 : i32 to index
      %c0_19 = arith.constant 0 : index
      %46 = arith.index_cast %4 : i32 to index
      %47 = vector.load %arg15[%45, %c0_19, %46] : memref<2x8x256xbf16, #tpu.memory_space<vmem>>, vector<1x8x256xbf16>
      %48 = vector.shape_cast %47 : vector<1x8x256xbf16> to vector<8x256xbf16>
      %49 = vector.shape_cast %44 : vector<8x256xbf16> to vector<1x8x256xbf16>
      tpu.vector_store %arg15[%45, %c0_19, %46], %49 {strides = array<i32>} : memref<2x8x256xbf16, #tpu.memory_space<vmem>>, vector<1x8x256xbf16>,
      %50 = vector.broadcast %6 : vector<8x1xf32> to vector<8x256xf32>
      %51 = arith.mulf %50, %29 : vector<8x256xf32>
      %52 = vector.broadcast %13 : vector<8x1xf32> to vector<8x256xf32>
      %53 = arith.addf %51, %52 : vector<8x256xf32>
      %54 = arith.truncf %53 : vector<8x256xf32> to vector<8x256xbf16>
      %55 = arith.index_cast %2 : i32 to index
      %c0_20 = arith.constant 0 : index
      %56 = arith.index_cast %4 : i32 to index
      %57 = vector.load %arg16[%55, %c0_20, %56] : memref<2x8x256xbf16, #tpu.memory_space<vmem>>, vector<1x8x256xbf16>
      %58 = vector.shape_cast %57 : vector<1x8x256xbf16> to vector<8x256xbf16>
      %59 = vector.shape_cast %54 : vector<8x256xbf16> to vector<1x8x256xbf16>
      tpu.vector_store %arg16[%55, %c0_20, %56], %59 {strides = array<i32>} : memref<2x8x256xbf16, #tpu.memory_space<vmem>>, vector<1x8x256xbf16>,
      %60 = vector.broadcast %7 : vector<8x1xf32> to vector<8x256xf32>
      %61 = arith.mulf %60, %39 : vector<8x256xf32>
      %62 = vector.broadcast %13 : vector<8x1xf32> to vector<8x256xf32>
      %63 = arith.addf %61, %62 : vector<8x256xf32>
      %64 = arith.truncf %63 : vector<8x256xf32> to vector<8x256xbf16>
      %65 = arith.index_cast %2 : i32 to index
      %c0_21 = arith.constant 0 : index
      %66 = arith.index_cast %4 : i32 to index
      %67 = vector.load %arg17[%65, %c0_21, %66] : memref<2x8x256xbf16, #tpu.memory_space<vmem>>, vector<1x8x256xbf16>
      %68 = vector.shape_cast %67 : vector<1x8x256xbf16> to vector<8x256xbf16>
      %69 = vector.shape_cast %64 : vector<8x256xbf16> to vector<1x8x256xbf16>
      tpu.vector_store %arg17[%65, %c0_21, %66], %69 {strides = array<i32>} : memref<2x8x256xbf16, #tpu.memory_space<vmem>>, vector<1x8x256xbf16>,
      %70 = vector.broadcast %8 : vector<8x1xf32> to vector<8x256xf32>
      %71 = arith.mulf %70, %39 : vector<8x256xf32>
      %72 = vector.broadcast %13 : vector<8x1xf32> to vector<8x256xf32>
      %73 = arith.addf %71, %72 : vector<8x256xf32>
      %74 = arith.truncf %73 : vector<8x256xf32> to vector<8x256xbf16>
      %75 = arith.index_cast %2 : i32 to index
      %c0_22 = arith.constant 0 : index
      %76 = arith.index_cast %4 : i32 to index
      %77 = vector.load %arg18[%75, %c0_22, %76] : memref<2x8x256xbf16, #tpu.memory_space<vmem>>, vector<1x8x256xbf16>
      %78 = vector.shape_cast %77 : vector<1x8x256xbf16> to vector<8x256xbf16>
      %79 = vector.shape_cast %74 : vector<8x256xbf16> to vector<1x8x256xbf16>
      tpu.vector_store %arg18[%75, %c0_22, %76], %79 {strides = array<i32>} : memref<2x8x256xbf16, #tpu.memory_space<vmem>>, vector<1x8x256xbf16>,
      %c0_23 = arith.constant 0 : index
      %c0_24 = arith.constant 0 : index
      %80 = vector.load %arg2[%c0_23, %c0_24] : memref<8x256xf32, #tpu.memory_space<vmem>>, vector<8x256xf32>
      %c0_25 = arith.constant 0 : index
      %c0_26 = arith.constant 0 : index
      %81 = vector.load %arg13[%c0_25, %c0_26] : memref<8x256xf32, #tpu.memory_space<vmem>>, vector<8x256xf32>
      tpu.vector_store %arg13[%c0_25, %c0_26], %80 {strides = array<i32>} : memref<8x256xf32, #tpu.memory_space<vmem>>, vector<8x256xf32>,
      %c0_27 = arith.constant 0 : index
      %c0_28 = arith.constant 0 : index
      %82 = vector.load %arg3[%c0_27, %c0_28] : memref<8x256xf32, #tpu.memory_space<vmem>>, vector<8x256xf32>
      %c0_29 = arith.constant 0 : index
      %c0_30 = arith.constant 0 : index
      %83 = vector.load %arg14[%c0_29, %c0_30] : memref<8x256xf32, #tpu.memory_space<vmem>>, vector<8x256xf32>
      tpu.vector_store %arg14[%c0_29, %c0_30], %82 {strides = array<i32>} : memref<8x256xf32, #tpu.memory_space<vmem>>, vector<8x256xf32>,
    } else {
    }
    %c0_i32_10 = arith.constant 0 : i32
    %17 = arith.cmpi sgt, %arg0, %c0_i32_10 : i32
    %18 = arith.extui %17 : i1 to i32
    %c0_i32_11 = arith.constant 0 : i32
    %19 = arith.cmpi ne, %18, %c0_i32_11 : i32
    scf.if %19 {
      %c0_12 = arith.constant 0 : index
      %c0_13 = arith.constant 0 : index
      %20 = vector.load %arg4[%c0_12, %c0_13] : memref<256x16xf32, #tpu.memory_space<vmem>>, vector<256x16xf32>
      %c0_14 = arith.constant 0 : index
      %c0_15 = arith.constant 0 : index
      %21 = vector.load %arg5[%c0_14, %c0_15] : memref<16x512xf32, #tpu.memory_space<vmem>>, vector<16x512xf32>
      %cst = arith.constant dense<0.000000e+00> : vector<256x512xf32>
      %22 = tpu.matmul %20, %21, %cst {dimension_numbers = #tpu.dot_dimension_numbers<[1], [0], [0], [1], [0, 0, 1, 1], [], []>} : vector<256x16xf32>, vector<16x512xf32>, vector<256x512xf32> -> vector<256x512xf32>
      %cst_16 = arith.constant 0.000000e+00 : f32
      %23 = vector.broadcast %cst_16 : f32 to vector<256x512xf32>
      %24 = arith.maximumf %22, %23 : vector<256x512xf32>
      %25 = vector.extract_strided_slice %24 {offsets = [0, 0], sizes = [256, 256], strides = [1, 1]} : vector<256x512xf32> to vector<256x256xf32>
      %26 = vector.extract_strided_slice %24 {offsets = [0, 256], sizes = [256, 256], strides = [1, 1]} : vector<256x512xf32> to vector<256x256xf32>
      %cst_17 = arith.constant -0.055555556 : f32
      %27 = vector.broadcast %cst_17 : f32 to vector<256x256xf32>
      %28 = arith.mulf %25, %27 : vector<256x256xf32>
      %29 = math.exp %28 : vector<256x256xf32>
      %30 = arith.truncf %29 : vector<256x256xf32> to vector<256x256xbf16>
      %31 = arith.index_cast %0 : i32 to index
      %c0_18 = arith.constant 0 : index
      %c0_19 = arith.constant 0 : index
      %32 = vector.load %arg15[%31, %c0_18, %c0_19] : memref<2x8x256xbf16, #tpu.memory_space<vmem>>, vector<1x8x256xbf16>
      %33 = vector.shape_cast %32 : vector<1x8x256xbf16> to vector<8x256xbf16>
      %cst_20 = arith.constant dense<0.000000e+00> : vector<8x256xf32>
      %34 = tpu.matmul %33, %30, %cst_20 {dimension_numbers = #tpu.dot_dimension_numbers<[1], [0], [0], [1], [0, 0, 1, 1], [], []>} : vector<8x256xbf16>, vector<256x256xbf16>, vector<8x256xf32> -> vector<8x256xf32>
      %35 = vector.extract_strided_slice %34 {offsets = [7, 0], sizes = [1, 256], strides = [1, 1]} : vector<8x256xf32> to vector<1x256xf32>
      %cst_21 = arith.constant 9.99999993E-9 : f32
      %36 = vector.broadcast %cst_21 : f32 to vector<1x256xf32>
      %37 = arith.addf %35, %36 : vector<1x256xf32>
      %38 = tpu.reciprocal %37 {approx = true} : vector<1x256xf32> -> vector<1x256xf32>
      %39 = vector.broadcast %38 : vector<1x256xf32> to vector<8x256xf32>
      %40 = arith.mulf %34, %39 : vector<8x256xf32>
      %cst_22 = arith.constant -7.812500e-03 : f32
      %41 = vector.broadcast %cst_22 : f32 to vector<256x256xf32>
      %42 = arith.mulf %25, %41 : vector<256x256xf32>
      %cst_23 = arith.constant -2.000000e+00 : f32
      %43 = vector.broadcast %cst_23 : f32 to vector<256x256xf32>
      %44 = arith.mulf %26, %43 : vector<256x256xf32>
      %45 = arith.addf %42, %44 : vector<256x256xf32>
      %46 = math.exp %45 : vector<256x256xf32>
      %47 = arith.truncf %46 : vector<256x256xf32> to vector<256x256xbf16>
      %48 = arith.index_cast %0 : i32 to index
      %c0_24 = arith.constant 0 : index
      %c0_25 = arith.constant 0 : index
      %49 = vector.load %arg16[%48, %c0_24, %c0_25] : memref<2x8x256xbf16, #tpu.memory_space<vmem>>, vector<1x8x256xbf16>
      %50 = vector.shape_cast %49 : vector<1x8x256xbf16> to vector<8x256xbf16>
      %cst_26 = arith.constant dense<0.000000e+00> : vector<8x256xf32>
      %51 = tpu.matmul %50, %47, %cst_26 {dimension_numbers = #tpu.dot_dimension_numbers<[1], [0], [0], [1], [0, 0, 1, 1], [], []>} : vector<8x256xbf16>, vector<256x256xbf16>, vector<8x256xf32> -> vector<8x256xf32>
      %52 = vector.extract_strided_slice %51 {offsets = [7, 0], sizes = [1, 256], strides = [1, 1]} : vector<8x256xf32> to vector<1x256xf32>
      %cst_27 = arith.constant 9.99999993E-9 : f32
      %53 = vector.broadcast %cst_27 : f32 to vector<1x256xf32>
      %54 = arith.addf %52, %53 : vector<1x256xf32>
      %55 = tpu.reciprocal %54 {approx = true} : vector<1x256xf32> -> vector<1x256xf32>
      %56 = vector.broadcast %55 : vector<1x256xf32> to vector<8x256xf32>
      %57 = arith.mulf %51, %56 : vector<8x256xf32>
      %58 = arith.addf %40, %57 : vector<8x256xf32>
      %cst_28 = arith.constant -1.250000e-01 : f32
      %59 = vector.broadcast %cst_28 : f32 to vector<256x256xf32>
      %60 = arith.mulf %25, %59 : vector<256x256xf32>
      %61 = math.exp %60 : vector<256x256xf32>
      %62 = arith.truncf %61 : vector<256x256xf32> to vector<256x256xbf16>
      %63 = arith.index_cast %0 : i32 to index
      %c0_29 = arith.constant 0 : index
      %c0_30 = arith.constant 0 : index
      %64 = vector.load %arg17[%63, %c0_29, %c0_30] : memref<2x8x256xbf16, #tpu.memory_space<vmem>>, vector<1x8x256xbf16>
      %65 = vector.shape_cast %64 : vector<1x8x256xbf16> to vector<8x256xbf16>
      %cst_31 = arith.constant dense<0.000000e+00> : vector<8x256xf32>
      %66 = tpu.matmul %65, %62, %cst_31 {dimension_numbers = #tpu.dot_dimension_numbers<[1], [0], [0], [1], [0, 0, 1, 1], [], []>} : vector<8x256xbf16>, vector<256x256xbf16>, vector<8x256xf32> -> vector<8x256xf32>
      %67 = vector.extract_strided_slice %66 {offsets = [7, 0], sizes = [1, 256], strides = [1, 1]} : vector<8x256xf32> to vector<1x256xf32>
      %cst_32 = arith.constant 9.99999993E-9 : f32
      %68 = vector.broadcast %cst_32 : f32 to vector<1x256xf32>
      %69 = arith.addf %67, %68 : vector<1x256xf32>
      %70 = tpu.reciprocal %69 {approx = true} : vector<1x256xf32> -> vector<1x256xf32>
      %71 = vector.broadcast %70 : vector<1x256xf32> to vector<8x256xf32>
      %72 = arith.mulf %66, %71 : vector<8x256xf32>
      %cst_33 = arith.constant -0.013888889 : f32
      %73 = vector.broadcast %cst_33 : f32 to vector<256x256xf32>
      %74 = arith.mulf %25, %73 : vector<256x256xf32>
      %cst_34 = arith.constant -3.125000e+00 : f32
      %75 = vector.broadcast %cst_34 : f32 to vector<256x256xf32>
      %76 = arith.mulf %26, %75 : vector<256x256xf32>
      %77 = arith.addf %74, %76 : vector<256x256xf32>
      %78 = math.exp %77 : vector<256x256xf32>
      %79 = arith.truncf %78 : vector<256x256xf32> to vector<256x256xbf16>
      %80 = arith.index_cast %0 : i32 to index
      %c0_35 = arith.constant 0 : index
      %c0_36 = arith.constant 0 : index
      %81 = vector.load %arg18[%80, %c0_35, %c0_36] : memref<2x8x256xbf16, #tpu.memory_space<vmem>>, vector<1x8x256xbf16>
      %82 = vector.shape_cast %81 : vector<1x8x256xbf16> to vector<8x256xbf16>
      %cst_37 = arith.constant dense<0.000000e+00> : vector<8x256xf32>
      %83 = tpu.matmul %82, %79, %cst_37 {dimension_numbers = #tpu.dot_dimension_numbers<[1], [0], [0], [1], [0, 0, 1, 1], [], []>} : vector<8x256xbf16>, vector<256x256xbf16>, vector<8x256xf32> -> vector<8x256xf32>
      %84 = vector.extract_strided_slice %83 {offsets = [7, 0], sizes = [1, 256], strides = [1, 1]} : vector<8x256xf32> to vector<1x256xf32>
      %cst_38 = arith.constant 9.99999993E-9 : f32
      %85 = vector.broadcast %cst_38 : f32 to vector<1x256xf32>
      %86 = arith.addf %84, %85 : vector<1x256xf32>
      %87 = tpu.reciprocal %86 {approx = true} : vector<1x256xf32> -> vector<1x256xf32>
      %88 = vector.broadcast %87 : vector<1x256xf32> to vector<8x256xf32>
      %89 = arith.mulf %83, %88 : vector<8x256xf32>
      %90 = arith.addf %72, %89 : vector<8x256xf32>
      %c0_39 = arith.constant 0 : index
      %c0_40 = arith.constant 0 : index
      %91 = vector.load %arg2[%c0_39, %c0_40] : memref<8x256xf32, #tpu.memory_space<vmem>>, vector<8x256xf32>
      %c0_41 = arith.constant 0 : index
      %c0_42 = arith.constant 0 : index
      %92 = vector.load %arg3[%c0_41, %c0_42] : memref<8x256xf32, #tpu.memory_space<vmem>>, vector<8x256xf32>
      %c0_43 = arith.constant 0 : index
      %c0_44 = arith.constant 0 : index
      %93 = vector.load %arg10[%c0_43, %c0_44] : memref<8x8xf32, #tpu.memory_space<vmem>>, vector<8x8xf32>
      %cst_45 = arith.constant dense<0.000000e+00> : vector<8x256xf32>
      %94 = tpu.matmul %93, %58, %cst_45 {dimension_numbers = #tpu.dot_dimension_numbers<[1], [0], [0], [1], [0, 0, 1, 1], [], []>} : vector<8x8xf32>, vector<8x256xf32>, vector<8x256xf32> -> vector<8x256xf32>
      %95 = arith.addf %91, %94 : vector<8x256xf32>
      %96 = arith.addf %92, %90 : vector<8x256xf32>
      %c0_46 = arith.constant 0 : index
      %c0_47 = arith.constant 0 : index
      %97 = vector.load %arg11[%c0_46, %c0_47] : memref<8x8xf32, #tpu.memory_space<vmem>>, vector<8x8xf32>
      %cst_48 = arith.constant dense<0xFF800000> : vector<256xf32>
      %98 = vector.multi_reduction <maximumf>, %96, %cst_48 [0] : vector<8x256xf32> to vector<256xf32>
      %99 = vector.shape_cast %98 : vector<256xf32> to vector<1x256xf32>
      %100 = vector.broadcast %99 : vector<1x256xf32> to vector<8x256xf32>
      %101 = arith.subf %96, %100 : vector<8x256xf32>
      %102 = math.exp %101 : vector<8x256xf32>
      %cst_49 = arith.constant dense<0.000000e+00> : vector<256xf32>
      %103 = vector.multi_reduction <add>, %102, %cst_49 [0] : vector<8x256xf32> to vector<256xf32>
      %104 = vector.shape_cast %103 : vector<256xf32> to vector<1x256xf32>
      %105 = vector.broadcast %104 : vector<1x256xf32> to vector<8x256xf32>
      %106 = arith.divf %102, %105 : vector<8x256xf32>
      %cst_50 = arith.constant dense<0.000000e+00> : vector<8x256xf32>
      %107 = tpu.matmul %97, %106, %cst_50 {dimension_numbers = #tpu.dot_dimension_numbers<[1], [0], [0], [1], [0, 0, 1, 1], [], []>} : vector<8x8xf32>, vector<8x256xf32>, vector<8x256xf32> -> vector<8x256xf32>
      %108 = arith.addf %95, %107 : vector<8x256xf32>
      %c0_51 = arith.constant 0 : index
      %c0_52 = arith.constant 0 : index
      %109 = vector.load %arg12[%c0_51, %c0_52] : memref<8x8xf32, #tpu.memory_space<vmem>>, vector<8x8xf32>
      %cst_53 = arith.constant dense<0xFF800000> : vector<256xf32>
      %110 = vector.multi_reduction <maximumf>, %95, %cst_53 [0] : vector<8x256xf32> to vector<256xf32>
      %111 = vector.shape_cast %110 : vector<256xf32> to vector<1x256xf32>
      %112 = vector.broadcast %111 : vector<1x256xf32> to vector<8x256xf32>
      %113 = arith.subf %95, %112 : vector<8x256xf32>
      %114 = math.exp %113 : vector<8x256xf32>
      %cst_54 = arith.constant dense<0.000000e+00> : vector<256xf32>
      %115 = vector.multi_reduction <add>, %114, %cst_54 [0] : vector<8x256xf32> to vector<256xf32>
      %116 = vector.shape_cast %115 : vector<256xf32> to vector<1x256xf32>
      %117 = vector.broadcast %116 : vector<1x256xf32> to vector<8x256xf32>
      %118 = arith.divf %114, %117 : vector<8x256xf32>
      %cst_55 = arith.constant dense<0.000000e+00> : vector<8x256xf32>
      %119 = tpu.matmul %109, %118, %cst_55 {dimension_numbers = #tpu.dot_dimension_numbers<[1], [0], [0], [1], [0, 0, 1, 1], [], []>} : vector<8x8xf32>, vector<8x256xf32>, vector<8x256xf32> -> vector<8x256xf32>
      %120 = arith.addf %96, %119 : vector<8x256xf32>
      %c0_56 = arith.constant 0 : index
      %c0_57 = arith.constant 0 : index
      %121 = vector.load %arg13[%c0_56, %c0_57] : memref<8x256xf32, #tpu.memory_space<vmem>>, vector<8x256xf32>
      tpu.vector_store %arg13[%c0_56, %c0_57], %108 {strides = array<i32>} : memref<8x256xf32, #tpu.memory_space<vmem>>, vector<8x256xf32>,
      %c0_58 = arith.constant 0 : index
      %c0_59 = arith.constant 0 : index
      %122 = vector.load %arg14[%c0_58, %c0_59] : memref<8x256xf32, #tpu.memory_space<vmem>>, vector<8x256xf32>
      tpu.vector_store %arg14[%c0_58, %c0_59], %120 {strides = array<i32>} : memref<8x256xf32, #tpu.memory_space<vmem>>, vector<8x256xf32>,
      %cst_60 = arith.constant dense<0xFF800000> : vector<256xf32>
      %123 = vector.multi_reduction <maximumf>, %108, %cst_60 [0] : vector<8x256xf32> to vector<256xf32>
      %124 = vector.shape_cast %123 : vector<256xf32> to vector<1x256xf32>
      %125 = vector.broadcast %124 : vector<1x256xf32> to vector<8x256xf32>
      %126 = arith.subf %108, %125 : vector<8x256xf32>
      %127 = math.exp %126 : vector<8x256xf32>
      %cst_61 = arith.constant dense<0.000000e+00> : vector<256xf32>
      %128 = vector.multi_reduction <add>, %127, %cst_61 [0] : vector<8x256xf32> to vector<256xf32>
      %129 = vector.shape_cast %128 : vector<256xf32> to vector<1x256xf32>
      %130 = vector.broadcast %129 : vector<1x256xf32> to vector<8x256xf32>
      %131 = arith.divf %127, %130 : vector<8x256xf32>
      %cst_62 = arith.constant dense<0xFF800000> : vector<256xf32>
      %132 = vector.multi_reduction <maximumf>, %120, %cst_62 [0] : vector<8x256xf32> to vector<256xf32>
      %133 = vector.shape_cast %132 : vector<256xf32> to vector<1x256xf32>
      %134 = vector.broadcast %133 : vector<1x256xf32> to vector<8x256xf32>
      %135 = arith.subf %120, %134 : vector<8x256xf32>
      %136 = math.exp %135 : vector<8x256xf32>
      %cst_63 = arith.constant dense<0.000000e+00> : vector<256xf32>
      %137 = vector.multi_reduction <add>, %136, %cst_63 [0] : vector<8x256xf32> to vector<256xf32>
      %138 = vector.shape_cast %137 : vector<256xf32> to vector<1x256xf32>
      %139 = vector.broadcast %138 : vector<1x256xf32> to vector<8x256xf32>
      %140 = arith.divf %136, %139 : vector<8x256xf32>
      %141 = vector.broadcast %5 : vector<8x1xf32> to vector<8x256xf32>
      %142 = arith.mulf %141, %131 : vector<8x256xf32>
      %143 = vector.broadcast %13 : vector<8x1xf32> to vector<8x256xf32>
      %144 = arith.addf %142, %143 : vector<8x256xf32>
      %145 = arith.truncf %144 : vector<8x256xf32> to vector<8x256xbf16>
      %146 = arith.index_cast %2 : i32 to index
      %c0_64 = arith.constant 0 : index
      %147 = arith.index_cast %4 : i32 to index
      %148 = vector.load %arg15[%146, %c0_64, %147] : memref<2x8x256xbf16, #tpu.memory_space<vmem>>, vector<1x8x256xbf16>
      %149 = vector.shape_cast %148 : vector<1x8x256xbf16> to vector<8x256xbf16>
      %150 = vector.shape_cast %145 : vector<8x256xbf16> to vector<1x8x256xbf16>
      tpu.vector_store %arg15[%146, %c0_64, %147], %150 {strides = array<i32>} : memref<2x8x256xbf16, #tpu.memory_space<vmem>>, vector<1x8x256xbf16>,
      %151 = vector.broadcast %6 : vector<8x1xf32> to vector<8x256xf32>
      %152 = arith.mulf %151, %131 : vector<8x256xf32>
      %153 = vector.broadcast %13 : vector<8x1xf32> to vector<8x256xf32>
      %154 = arith.addf %152, %153 : vector<8x256xf32>
      %155 = arith.truncf %154 : vector<8x256xf32> to vector<8x256xbf16>
      %156 = arith.index_cast %2 : i32 to index
      %c0_65 = arith.constant 0 : index
      %157 = arith.index_cast %4 : i32 to index
      %158 = vector.load %arg16[%156, %c0_65, %157] : memref<2x8x256xbf16, #tpu.memory_space<vmem>>, vector<1x8x256xbf16>
      %159 = vector.shape_cast %158 : vector<1x8x256xbf16> to vector<8x256xbf16>
      %160 = vector.shape_cast %155 : vector<8x256xbf16> to vector<1x8x256xbf16>
      tpu.vector_store %arg16[%156, %c0_65, %157], %160 {strides = array<i32>} : memref<2x8x256xbf16, #tpu.memory_space<vmem>>, vector<1x8x256xbf16>,
      %161 = vector.broadcast %7 : vector<8x1xf32> to vector<8x256xf32>
      %162 = arith.mulf %161, %140 : vector<8x256xf32>
      %163 = vector.broadcast %13 : vector<8x1xf32> to vector<8x256xf32>
      %164 = arith.addf %162, %163 : vector<8x256xf32>
      %165 = arith.truncf %164 : vector<8x256xf32> to vector<8x256xbf16>
      %166 = arith.index_cast %2 : i32 to index
      %c0_66 = arith.constant 0 : index
      %167 = arith.index_cast %4 : i32 to index
      %168 = vector.load %arg17[%166, %c0_66, %167] : memref<2x8x256xbf16, #tpu.memory_space<vmem>>, vector<1x8x256xbf16>
      %169 = vector.shape_cast %168 : vector<1x8x256xbf16> to vector<8x256xbf16>
      %170 = vector.shape_cast %165 : vector<8x256xbf16> to vector<1x8x256xbf16>
      tpu.vector_store %arg17[%166, %c0_66, %167], %170 {strides = array<i32>} : memref<2x8x256xbf16, #tpu.memory_space<vmem>>, vector<1x8x256xbf16>,
      %171 = vector.broadcast %8 : vector<8x1xf32> to vector<8x256xf32>
      %172 = arith.mulf %171, %140 : vector<8x256xf32>
      %173 = vector.broadcast %13 : vector<8x1xf32> to vector<8x256xf32>
      %174 = arith.addf %172, %173 : vector<8x256xf32>
      %175 = arith.truncf %174 : vector<8x256xf32> to vector<8x256xbf16>
      %176 = arith.index_cast %2 : i32 to index
      %c0_67 = arith.constant 0 : index
      %177 = arith.index_cast %4 : i32 to index
      %178 = vector.load %arg18[%176, %c0_67, %177] : memref<2x8x256xbf16, #tpu.memory_space<vmem>>, vector<1x8x256xbf16>
      %179 = vector.shape_cast %178 : vector<1x8x256xbf16> to vector<8x256xbf16>
      %180 = vector.shape_cast %175 : vector<8x256xbf16> to vector<1x8x256xbf16>
      tpu.vector_store %arg18[%176, %c0_67, %177], %180 {strides = array<i32>} : memref<2x8x256xbf16, #tpu.memory_space<vmem>>, vector<1x8x256xbf16>,
    } else {
    }
    return
  }
  func.func @transform_0(%arg0: i32, %arg1: i32) -> (i32, i32) {
    %c0_i32 = arith.constant 0 : i32
    %c0_i32_0 = arith.constant 0 : i32
    return %c0_i32, %arg1 : i32, i32
  }
  func.func @transform_1(%arg0: i32, %arg1: i32) -> (i32, i32) {
    %c0_i32 = arith.constant 0 : i32
    %c0_i32_0 = arith.constant 0 : i32
    return %c0_i32, %arg1 : i32, i32
  }
  func.func @transform_2(%arg0: i32, %arg1: i32) -> (i32, i32) {
    %c0_i32 = arith.constant 0 : i32
    %c0_i32_0 = arith.constant 0 : i32
    %c0_i32_1 = arith.constant 0 : i32
    return %c0_i32, %c0_i32_0 : i32, i32
  }
  func.func @transform_3(%arg0: i32, %arg1: i32) -> (i32, i32) {
    %c0_i32 = arith.constant 0 : i32
    %c0_i32_0 = arith.constant 0 : i32
    return %c0_i32, %arg1 : i32, i32
  }
  func.func @transform_4(%arg0: i32, %arg1: i32) -> (i32, i32) {
    %c0_i32 = arith.constant 0 : i32
    %c0_i32_0 = arith.constant 0 : i32
    %c0_i32_1 = arith.constant 0 : i32
    return %c0_i32, %c0_i32_0 : i32, i32
  }
  func.func @transform_5(%arg0: i32, %arg1: i32) -> (i32, i32) {
    %c0_i32 = arith.constant 0 : i32
    %c0_i32_0 = arith.constant 0 : i32
    %c0_i32_1 = arith.constant 0 : i32
    return %c0_i32, %c0_i32_0 : i32, i32
  }
  func.func @transform_6(%arg0: i32, %arg1: i32) -> (i32, i32) {
    %c0_i32 = arith.constant 0 : i32
    %c0_i32_0 = arith.constant 0 : i32
    %c0_i32_1 = arith.constant 0 : i32
    return %c0_i32, %c0_i32_0 : i32, i32
  }
  func.func @transform_7(%arg0: i32, %arg1: i32) -> (i32, i32) {
    %c0_i32 = arith.constant 0 : i32
    %c0_i32_0 = arith.constant 0 : i32
    %c0_i32_1 = arith.constant 0 : i32
    return %c0_i32, %c0_i32_0 : i32, i32
  }
  func.func @transform_8(%arg0: i32, %arg1: i32) -> (i32, i32) {
    %c0_i32 = arith.constant 0 : i32
    %c0_i32_0 = arith.constant 0 : i32
    %c0_i32_1 = arith.constant 0 : i32
    return %c0_i32, %c0_i32_0 : i32, i32
  }
  func.func @transform_9(%arg0: i32, %arg1: i32) -> (i32, i32) {
    %c0_i32 = arith.constant 0 : i32
    %c0_i32_0 = arith.constant 0 : i32
    %c0_i32_1 = arith.constant 0 : i32
    return %c0_i32, %c0_i32_0 : i32, i32
  }
  func.func @transform_10(%arg0: i32, %arg1: i32) -> (i32, i32) {
    %c0_i32 = arith.constant 0 : i32
    %c0_i32_0 = arith.constant 0 : i32
    %c0_i32_1 = arith.constant 0 : i32
    return %c0_i32, %c0_i32_0 : i32, i32
  }
  func.func @transform_11(%arg0: i32, %arg1: i32) -> (i32, i32) {
    %c0_i32 = arith.constant 0 : i32
    %c0_i32_0 = arith.constant 0 : i32
    return %c0_i32, %arg1 : i32, i32
  }
  func.func @transform_12(%arg0: i32, %arg1: i32) -> (i32, i32) {
    %c0_i32 = arith.constant 0 : i32
    %c0_i32_0 = arith.constant 0 : i32
    return %c0_i32, %arg1 : i32, i32
  }
}

</mosaic_0001>

<bundles_post_ra>
// kernel: tpu_custom_call.1
= control target key start
LH: loop header
LB: loop body
LE: loop exit
PB: predicated region body
PF: predicated region fallthrough
CT: control target
= control target key end

     0   :  { %18 = vsyncpa [#allocation7], 0  ;;  %s6670_s0 = inlined_call_operand.vmem [shape: f32[8,256], index: 0, kind: input, shape index: {}]   ;;  %s6671_s1 = inlined_call_operand.vmem [shape: f32[8,256], index: 1, kind: input, shape index: {}]   ;;  %s6672_s2 = inlined_call_operand.vmem [shape: f32[256,16], index: 2, kind: input, shape index: {}]   ;;  %s6673_s3 = inlined_call_operand.vmem [shape: f32[16,512], index: 3, kind: input, shape index: {}]   ;;  %s6674_s4 = inlined_call_operand.vmem [shape: f32[8,1], index: 4, kind: input, shape index: {}]   ;;  %s6675_s5 = inlined_call_operand.vmem [shape: f32[8,1], index: 5, kind: input, shape index: {}]   ;;  %s6676_s6 = inlined_call_operand.vmem [shape: f32[8,1], index: 6, kind: input, shape index: {}]   ;;  %s6677_s7 = inlined_call_operand.vmem [shape: f32[8,1], index: 7, kind: input, shape index: {}]   ;;  %s6678_s8 = inlined_call_operand.vmem [shape: f32[8,8], index: 8, kind: input, shape index: {}]   ;;  %s6679_s9 = inlined_call_operand.vmem [shape: f32[8,8], index: 9, kind: input, shape index: {}]   ;;  %s6680_s10 = inlined_call_operand.vmem [shape: f32[8,8], index: 10, kind: input, shape index: {}]   ;;  %s6681_s11 = inlined_call_operand.hbm [shape: f32[8,256], index: 11, kind: output, shape index: {0}]   ;;  %s6682_s12 = inlined_call_operand.hbm [shape: f32[8,256], index: 12, kind: output, shape index: {1}]  }
   0x1   :  { %19 = vsyncpa [#allocation9], 0  ;;  %s4782_s21 = smov 0   ;;  %s4784_s22 = smov 0  }
   0x2   :  { %s4786_s23 = smov 0  }
   0x3 LB: > { %s3825_s24 = sadd.s32 4294967295, %s4710_s23   ;;  %s37_s25 = sadd.s32 1, %s4706_s22  ;;  %s4710_s23 = sphi %s4786_s23, %s25_s23   ;;  %s4706_s22 = sphi %s4784_s22, %s7106_s22   ;;  %s4702_s21 = sphi %s4782_s21, %s7105_s21  }
   0x4   : > { %p39_p0 = scmp.ge.s32.totalorder %s37_s25, 4  ;;  %p3830_p1 = scmp.ge.s32.totalorder %s4710_s23, 1 }
   0x5   : > { %p402_p2 = scmp.lt.s32.totalorder %s4710_s23, 5 }
   0x6   : > { %s7108_s25 = smov (%p39_p0, %s37_s25), 0 }
   0x7   : > { %p403_p3 = pnand %p3830_p1, %p402_p2 }
   0x9   : > { %406 = sbr.rel (%p403_p3) target bundleno = 1262 (0x4ee), region = 64 }
   0xe   : > { %s469_s26 = sand.u32 1, %s4702_s21  ;;  %s470_s27 = sadd.s32 1, %s4702_s21  ;;  %v4808_v0 = vld [vmem:[%s6674_s4] sm:$0xff]  ;;  %v477_v3 = vlaneseq  ;;  %v4712_v6 = vmov 0.0  }
   0xf   : > { %6790 = vst [vmem:[#allocation12_spill] sm:$0xff] %v4808_v0  ;;  %v4813_v1 = vld [vmem:[%s6675_s5] sm:$0xff]  ;;  %s4820_s16 = sand.u32 1, %s470_s27  ;;  %p3832_p4 = scmp.ne.s32.totalorder %s4702_s21, 0 }
  0x10   : > { %6791 = vst [vmem:[#allocation13_spill] sm:$0xff] %v4813_v1  ;;  %v4818_v2 = vld [vmem:[%s6676_s6] sm:$0xff]  ;;  %v478_v5 = vshrl.u32 %v477_v3, 7  ;;  %s4891_s15 = sshll.u32 (!%p3832_p4), %s4820_s16, 3 }
  0x11   : > { %6792 = vst [vmem:[#allocation14_spill] sm:$0xff] %v4818_v2  ;;  %v4825_v4 = vld [vmem:[%s6677_s7] sm:$0xff]  ;;  %485 = sbr.rel (%p3832_p4) target bundleno = 155 (0x9b), region = 68  ;;  %s651_s17 = scalar_lea.vmem (!%p3832_p4), [#allocation4], %s4891_s15 }
  0x12   : > { %6793 = vst [vmem:[#allocation15_spill] sm:$0xff] %v4825_v4  ;;  %vm479_vm0 = vcmp.eq.s32.totalorder %v478_v5, 7  ;;  %s625_s18 = scalar_lea.vmem (!%p3832_p4), [#allocation2], %s4891_s15  ;;  %s664_s19 = scalar_lea.vmem (!%p3832_p4), [#allocation5], %s4891_s15 }
  0x13   : > { %v4827_v7 = vsel %vm479_vm0, 1.0, %v4712_v6  ;;  %s638_s20 = scalar_lea.vmem (!%p3832_p4), [#allocation3], %s4891_s15 }
  0x14   : > { %6794 = vst [vmem:[#allocation16_spill] sm:$0xff] %v4827_v7 }
  0x16   : > { %v4713_v8 = vmov 0   ;;  %v548_v9 = vld [vmem:[%s6671_s1] sm:$0xff]  ;;  %v549_v10 = vld [vmem:[%s6671_s1 + $0x8] sm:$0xff] }
  0x17   : > { %4043 = vset.pattern.permute.xlu1 %v4713_v8  ;;  %4042 = vset.pattern.permute.xlu0 %v4713_v8  ;;  %v486_v11 = vld [vmem:[%s6670_s0] sm:$0xff]  ;;  %v550_v12 = vrot.slane %v548_v9, 4  ;;  %v556_v13 = vrot.slane %v549_v10, 4  ;;  %v487_v14 = vld [vmem:[%s6670_s0 + $0x8] sm:$0xff]  ;;  %672 = vst [vmem:[#allocation8] sm:$0xff] %v548_v9 }
  0x18   : > { %642 = vperm.xlu1 %4043, %v4818_v2   ;;  %612 = vperm.xlu0 %4042, %v4808_v0   ;;  %v488_v15 = vrot.slane %v486_v11, 4  ;;  %668 = vst [vmem:[#allocation6] sm:$0xff] %v486_v11  ;;  %v494_v16 = vrot.slane %v487_v14, 4 }
  0x19   : > { %669 = vst [vmem:[#allocation6 + $0x8] sm:$0xff] %v487_v14  ;;  %v551_v17 = vmax.f32 %v548_v9, %v550_v12  ;;  %v557_v18 = vmax.f32 %v549_v10, %v556_v13 }
  0x1a   : > { %v489_v19 = vmax.f32 %v486_v11, %v488_v15  ;;  %v495_v20 = vmax.f32 %v487_v14, %v494_v16  ;;  %673 = vst [vmem:[#allocation8 + $0x8] sm:$0xff] %v549_v10 }
  0x1b   : > { %v552_v21 = vrot.slane %v551_v17, 2  ;;  %v558_v22 = vrot.slane %v557_v18, 2 }
  0x1c   : > { %v490_v23 = vrot.slane %v489_v19, 2  ;;  %v496_v24 = vrot.slane %v495_v20, 2 }
  0x1d   : > { %v553_v25 = vmax.f32 %v551_v17, %v552_v21  ;;  %v559_v26 = vmax.f32 %v557_v18, %v558_v22 }
  0x1e   : > { %v491_v27 = vmax.f32 %v489_v19, %v490_v23  ;;  %v497_v28 = vmax.f32 %v495_v20, %v496_v24 }
  0x1f   : > { %v554_v29 = vrot.slane %v553_v25, 1  ;;  %v560_v30 = vrot.slane %v559_v26, 1 }
  0x20   : > { %655 = vperm.xlu1 %4043, %v4825_v4   ;;  %629 = vperm.xlu0 %4042, %v4813_v1   ;;  %v492_v31 = vrot.slane %v491_v27, 1  ;;  %v498_v32 = vrot.slane %v497_v28, 1 }
  0x21   : > { %v555_v33 = vmax.f32 %v553_v25, %v554_v29  ;;  %v561_v34 = vmax.f32 %v559_v26, %v560_v30 }
  0x22   : > { %v493_v35 = vmax.f32 %v491_v27, %v492_v31  ;;  %v499_v36 = vmax.f32 %v497_v28, %v498_v32 }
  0x23   : > { %v562_v37 = vsub.f32 %v548_v9, %v555_v33  ;;  %v563_v38 = vsub.f32 %v549_v10, %v561_v34 }
  0x24   : > { %v500_v39 = vsub.f32 %v486_v11, %v493_v35  ;;  %v501_v40 = vsub.f32 %v487_v14, %v499_v36 }
  0x25   : > { %v564_v41 = vmul.f32 1.442695, %v562_v37  ;;  %v566_v42 = vmul.f32 1.442695, %v563_v38 }
  0x26   : > { %v502_v43 = vmul.f32 1.442695, %v500_v39  ;;  %v504_v44 = vmul.f32 1.442695, %v501_v40 }
  0x27   : > { %4044 = vpow2.f32 %v564_v41 }
  0x28   : > { %4046 = vpow2.f32 %v566_v42 }
  0x29   : > { %4048 = vpow2.f32 %v502_v43 }
  0x2a   : > { %4050 = vpow2.f32 %v504_v44 }
  0x2d   : > { %v4846_v45 = vpop.eup %4044 }
  0x2e   : > { %v4848_v46 = vpop.eup %4046  ;;  %v568_v48 = vrot.slane %v4846_v45, 4 }
  0x2f   : > { %v4850_v47 = vpop.eup %4048  ;;  %v574_v50 = vrot.slane %v4848_v46, 4 }
  0x30   : > { %v4853_v49 = vpop.eup %4050  ;;  %v506_v51 = vrot.slane %v4850_v47, 4  ;;  %v569_v53 = vadd.f32 %v4846_v45, %v568_v48 }
  0x31   : > { %v512_v52 = vrot.slane %v4853_v49, 4  ;;  %v575_v54 = vadd.f32 %v4848_v46, %v574_v50 }
  0x32   : > { %v507_v55 = vadd.f32 %v4850_v47, %v506_v51  ;;  %v570_v57 = vrot.slane %v569_v53, 2 }
  0x33   : > { %v513_v56 = vadd.f32 %v4853_v49, %v512_v52  ;;  %v576_v58 = vrot.slane %v575_v54, 2 }
  0x34   : > { %v508_v59 = vrot.slane %v507_v55, 2  ;;  %v571_v61 = vadd.f32 %v570_v57, %v569_v53 }
  0x35   : > { %v514_v60 = vrot.slane %v513_v56, 2  ;;  %v577_v62 = vadd.f32 %v576_v58, %v575_v54 }
  0x36   : > { %v509_v63 = vadd.f32 %v508_v59, %v507_v55  ;;  %v572_v5 = vrot.slane %v571_v61, 1 }
  0x37   : > { %v515_v3 = vadd.f32 %v514_v60, %v513_v56  ;;  %v578_v6 = vrot.slane %v577_v62, 1 }
  0x38   : > { %v510_v8 = vrot.slane %v509_v63, 1  ;;  %v573_v10 = vadd.f32 %v572_v5, %v571_v61 }
  0x39   : > { %v516_v9 = vrot.slane %v515_v3, 1  ;;  %v579_v11 = vadd.f32 %v578_v6, %v577_v62 }
  0x3a   : > { %v511_v12 = vadd.f32 %v510_v8, %v509_v63  ;;  %4052 = vrcp.f32 %v573_v10  ;;  %vm585_vm1 = vweird.f32 %v573_v10  ;;  %v591_v30 = vand.u32 2147483648, %v573_v10 }
  0x3b   : > { %v517_v13 = vadd.f32 %v516_v9, %v515_v3  ;;  %4054 = vrcp.f32 %v579_v11  ;;  %vm600_vm3 = vweird.f32 %v579_v11  ;;  %v606_v31 = vand.u32 2147483648, %v579_v11 }
  0x3c   : > { %4056 = vrcp.f32 %v511_v12  ;;  %vm523_vm5 = vweird.f32 %v511_v12  ;;  %v589_v34 = vand.u32 2147483647, %v573_v10  ;;  %v604_v37 = vand.u32 2147483647, %v579_v11 }
  0x3d   : > { %4058 = vrcp.f32 %v517_v13  ;;  %vm538_vm8 = vweird.f32 %v517_v13  ;;  %v529_v38 = vand.u32 2147483648, %v511_v12  ;;  %v544_v39 = vand.u32 2147483648, %v517_v13 }
  0x3e   : > { %v527_v42 = vand.u32 2147483647, %v511_v12  ;;  %v542_v44 = vand.u32 2147483647, %v517_v13  ;;  %vm590_vm13 = vcmp.eq.f32.partialorder %v589_v34, 8.507059e+37  ;;  %v592_v51 = vor.u32 1.1754944e-38, %v591_v30 }
  0x3f   : > { %v607_v52 = vor.u32 1.1754944e-38, %v606_v31  ;;  %vm605_vm14 = vcmp.eq.f32.partialorder %v604_v37, 8.507059e+37  ;;  %v530_v54 = vor.u32 1.1754944e-38, %v529_v38  ;;  %v545_v55 = vor.u32 1.1754944e-38, %v544_v39 }
  0x40   : > { %v4053_v14 = vpop.eup %4052  ;;  %vm528_vm15 = vcmp.eq.f32.partialorder %v527_v42, 8.507059e+37  ;;  %vm543_vm0 = vcmp.eq.f32.partialorder %v542_v44, 8.507059e+37 }
  0x41   : > { %v4055_v15 = vpop.eup %4054  ;;  %v581_v18 = vmul.f32 %v4053_v14, %v573_v10  ;;  %vm586_vm2 = vweird.f32 %v4053_v14 }
  0x42   : > { %v4057_v16 = vpop.eup %4056  ;;  %v596_v19 = vmul.f32 %v4055_v15, %v579_v11  ;;  %vm601_vm4 = vweird.f32 %v4055_v15  ;;  %vm4862_vm7 = vmor %vm585_vm1, %vm586_vm2 }
  0x43   : > { %v4059_v17 = vpop.eup %4058  ;;  %v519_v20 = vmul.f32 %v4057_v16, %v511_v12  ;;  %v582_v22 = vsub.f32 1.0, %v581_v18  ;;  %vm524_vm6 = vweird.f32 %v4057_v16  ;;  %vm4866_vm10 = vmor %vm600_vm3, %vm601_vm4 }
  0x44   : > { %v534_v21 = vmul.f32 %v4059_v17, %v517_v13  ;;  %v597_v23 = vsub.f32 1.0, %v596_v19  ;;  %vm539_vm9 = vweird.f32 %v4059_v17  ;;  %vm4870_vm11 = vmor %vm523_vm5, %vm524_vm6 }
  0x45   : > { %v520_v24 = vsub.f32 1.0, %v519_v20  ;;  %v583_v26 = vmul.f32 %v4053_v14, %v582_v22  ;;  %vm4874_vm12 = vmor %vm538_vm8, %vm539_vm9 }
  0x46   : > { %v535_v25 = vsub.f32 1.0, %v534_v21  ;;  %v598_v27 = vmul.f32 %v4055_v15, %v597_v23 }
  0x47   : > { %v521_v28 = vmul.f32 %v4057_v16, %v520_v24  ;;  %v584_v32 = vadd.f32 %v4053_v14, %v583_v26 }
  0x48   : > { %v536_v29 = vmul.f32 %v4059_v17, %v535_v25  ;;  %v599_v35 = vadd.f32 %v4055_v15, %v598_v27 }
  0x49   : > { %v522_v40 = vadd.f32 %v4057_v16, %v521_v28  ;;  %v588_v50 = vsel %vm4862_vm7, %v4053_v14, %v584_v32 }
  0x4a   : > { %v537_v43 = vadd.f32 %v4059_v17, %v536_v29  ;;  %v603_v53 = vsel %vm4866_vm10, %v4055_v15, %v599_v35  ;;  %v593_v58 = vsel %vm590_vm13, %v592_v51, %v588_v50 }
  0x4b   : > { %v526_v56 = vsel %vm4870_vm11, %v4057_v16, %v522_v40  ;;  %v608_v59 = vsel %vm605_vm14, %v607_v52, %v603_v53  ;;  %v594_v62 = vmul.f32 %v4846_v45, %v593_v58 }
  0x4c   : > { %v541_v57 = vsel %vm4874_vm12, %v4059_v17, %v537_v43  ;;  %v531_v60 = vsel %vm528_vm15, %v530_v54, %v526_v56  ;;  %v609_v63 = vmul.f32 %v4848_v46, %v608_v59 }
  0x4d   : > { %v546_v61 = vsel %vm543_vm0, %v545_v55, %v541_v57  ;;  %v532_v3 = vmul.f32 %v4850_v47, %v531_v60 }
  0x4e   : > { %v547_v5 = vmul.f32 %v4853_v49, %v546_v61 }
  0x8a   : > { %v643_v6 = vpop.permute.xlu1 %642  ;;  %v613_v8 = vpop.permute.xlu0 %612 }
  0x8b   : > { %v645_v9 = vmul.f32 %v643_v6, %v594_v62  ;;  %v646_v10 = vmul.f32 %v643_v6, %v609_v63  ;;  %v615_v11 = vmul.f32 %v613_v8, %v532_v3  ;;  %v616_v12 = vmul.f32 %v613_v8, %v547_v5 }
  0x8d   : > { %v647_v13 = vadd.f32 %v4827_v7, %v645_v9  ;;  %v648_v45 = vadd.f32 %v4827_v7, %v646_v10  ;;  %v617_v46 = vadd.f32 %v4827_v7, %v615_v11  ;;  %v618_v47 = vadd.f32 %v4827_v7, %v616_v12 }
  0x8f   : > { %v649_v14 = vpack.c.bf16 %v648_v45, %v647_v13  ;;  %v619_v49 = vpack.c.bf16 %v618_v47, %v617_v46 }
  0x91   : > { %652 = vst [vmem:[%s651_s17] sm:$0xff] %v649_v14 }
  0x92   : > { %626 = vst [vmem:[%s625_s18] sm:$0xff] %v619_v49  ;;  %v656_v15 = vpop.permute.xlu1 %655  ;;  %v630_v16 = vpop.permute.xlu0 %629 }
  0x93   : > { %v658_v17 = vmul.f32 %v656_v15, %v594_v62  ;;  %v659_v18 = vmul.f32 %v656_v15, %v609_v63  ;;  %v632_v19 = vmul.f32 %v630_v16, %v532_v3  ;;  %v633_v20 = vmul.f32 %v630_v16, %v547_v5 }
  0x95   : > { %v660_v21 = vadd.f32 %v4827_v7, %v658_v17  ;;  %v661_v22 = vadd.f32 %v4827_v7, %v659_v18  ;;  %v634_v23 = vadd.f32 %v4827_v7, %v632_v19  ;;  %v635_v24 = vadd.f32 %v4827_v7, %v633_v20 }
  0x97   : > { %v662_v25 = vpack.c.bf16 %v661_v22, %v660_v21  ;;  %v636_v26 = vpack.c.bf16 %v635_v24, %v634_v23 }
  0x99   : > { %665 = vst [vmem:[%s664_s19] sm:$0xff] %v662_v25 }
  0x9a   : > { %639 = vst [vmem:[%s638_s20] sm:$0xff] %v636_v26 }
  0x9b PF: > { %p3838_p5 = scmp.le.s32.totalorder %s4702_s21, 0 }
  0x9d   : > { %677 = sbr.rel (%p3838_p5) target bundleno = 1252 (0x4e4), region = 72 }
  0xa2   : > { %v714_v27 = vld [vmem:[%s6673_s3 + $0x20] sm:$0xff]  ;;  %v715_v28 = vld [vmem:[%s6673_s3 + $0x28] sm:$0xff]  ;;  %v716_v29 = vld [vmem:[%s6673_s3 + $0x30] sm:$0xff]  ;;  %vm718_vm1 = vcmask 130048   ;;  %s5895_s30 = sshll.u32 %s469_s26, 3  ;;  %vm3221_vm2 = vcmask 64512  }
  0xa3   : > { %829 = vmatpush.msra.mxu0 %v714_v27  ;;  %942 = vmatpush.msra.mxu1 %v715_v28  ;;  %v717_v30 = vld [vmem:[%s6673_s3 + $0x38] sm:$0xff]  ;;  %v710_v31 = vld [vmem:[%s6673_s3] sm:$0xff]  ;;  %v711_v32 = vld [vmem:[%s6673_s3 + $0x8] sm:$0xff]  ;;  %s1717_s21 = scalar_lea.vmem [#allocation2], %s5895_s30  ;;  %s2235_s26 = scalar_lea.vmem [#allocation3], %s5895_s30 }
  0xa4   : > { %1055 = vmatpush.msra.mxu2 %v716_v29  ;;  %1168 = vmatpush.msra.mxu3 %v717_v30  ;;  %v712_v33 = vld [vmem:[%s6673_s3 + $0x10] sm:$0xff]  ;;  %v713_v34 = vld [vmem:[%s6673_s3 + $0x18] sm:$0xff]  ;;  %v678_v35 = vld [vmem:[%s6672_s2] sm:$0xff]  ;;  %s2627_s13 = scalar_lea.vmem [#allocation4], %s5895_s30  ;;  %s3145_s14 = scalar_lea.vmem [#allocation5], %s5895_s30 }
  0xa5   : > { %830 = vmatpush.msra.mxu0 %v710_v31  ;;  %943 = vmatpush.msra.mxu1 %v711_v32  ;;  %v679_v36 = vld [vmem:[%s6672_s2 + $0x8] sm:$0xff]  ;;  %v680_v37 = vld [vmem:[%s6672_s2 + $0x10] sm:$0xff]  ;;  %v681_v38 = vld [vmem:[%s6672_s2 + $0x18] sm:$0xff]  ;;  %s6621_s17 = sshll.u32 %s4820_s16, 3 }
  0xa6   : > { %1056 = vmatpush.msra.mxu2 %v712_v33  ;;  %1169 = vmatpush.msra.mxu3 %v713_v34  ;;  %v682_v39 = vld [vmem:[%s6672_s2 + $0x20] sm:$0xff]  ;;  %v683_v40 = vld [vmem:[%s6672_s2 + $0x28] sm:$0xff]  ;;  %v684_v41 = vld [vmem:[%s6672_s2 + $0x30] sm:$0xff]  ;;  %s3620_s16 = scalar_lea.vmem [#allocation2], %s6621_s17  ;;  %s3633_s18 = scalar_lea.vmem [#allocation3], %s6621_s17 }
  0xa7   : > { %3839 = vmatmul.msk.f32.vlgmr.msra.gmra.mxu0 %vm718_vm1, %v678_v35  ;;  %3871 = vmatmul.msk.f32.vlgmr.msra.gmra.mxu1 %vm718_vm1, %v678_v35  ;;  %v685_v42 = vld [vmem:[%s6672_s2 + $0x38] sm:$0xff]  ;;  %v686_v43 = vld [vmem:[%s6672_s2 + $0x40] sm:$0xff]  ;;  %v687_v44 = vld [vmem:[%s6672_s2 + $0x48] sm:$0xff]  ;;  %s3646_s19 = scalar_lea.vmem [#allocation4], %s6621_s17  ;;  %s3659_s20 = scalar_lea.vmem [#allocation5], %s6621_s17 }
  0xa8   : > { %3903 = vmatmul.msk.f32.vlgmr.msra.gmra.mxu2 %vm718_vm1, %v678_v35  ;;  %3935 = vmatmul.msk.f32.vlgmr.msra.gmra.mxu3 %vm718_vm1, %v678_v35  ;;  %v688_v48 = vld [vmem:[%s6672_s2 + $0x50] sm:$0xff]  ;;  %v689_v50 = vld [vmem:[%s6672_s2 + $0x58] sm:$0xff]  ;;  %v690_v51 = vld [vmem:[%s6672_s2 + $0x60] sm:$0xff] }
  0xa9   : > { %v691_v52 = vld [vmem:[%s6672_s2 + $0x68] sm:$0xff]  ;;  %v692_v53 = vld [vmem:[%s6672_s2 + $0x70] sm:$0xff]  ;;  %v693_v54 = vld [vmem:[%s6672_s2 + $0x78] sm:$0xff] }
  0xaa   : > { %v694_v57 = vld [vmem:[%s6672_s2 + $0x80] sm:$0xff]  ;;  %v695_v8 = vld [vmem:[%s6672_s2 + $0x88] sm:$0xff]  ;;  %v696_v29 = vld [vmem:[%s6672_s2 + $0x90] sm:$0xff] }
  0xaf   : > { %3840 = vmatmul.msk.f32.gmra.mxu0 %vm718_vm1, %v679_v36  ;;  %3872 = vmatmul.msk.f32.gmra.mxu1 %vm718_vm1, %v679_v36 }
  0xb0   : > { %3904 = vmatmul.msk.f32.gmra.mxu2 %vm718_vm1, %v679_v36  ;;  %3936 = vmatmul.msk.f32.gmra.mxu3 %vm718_vm1, %v679_v36 }
  0xb7   : > { %3841 = vmatmul.msk.f32.gmra.mxu0 %vm718_vm1, %v680_v37  ;;  %3873 = vmatmul.msk.f32.gmra.mxu1 %vm718_vm1, %v680_v37 }
  0xb8   : > { %3905 = vmatmul.msk.f32.gmra.mxu2 %vm718_vm1, %v680_v37  ;;  %3937 = vmatmul.msk.f32.gmra.mxu3 %vm718_vm1, %v680_v37 }
  0xbf   : > { %3842 = vmatmul.msk.f32.gmra.mxu0 %vm718_vm1, %v681_v38  ;;  %3874 = vmatmul.msk.f32.gmra.mxu1 %vm718_vm1, %v681_v38 }
  0xc0   : > { %3906 = vmatmul.msk.f32.gmra.mxu2 %vm718_vm1, %v681_v38  ;;  %3938 = vmatmul.msk.f32.gmra.mxu3 %vm718_vm1, %v681_v38 }
  0xc7   : > { %3843 = vmatmul.msk.f32.gmra.mxu0 %vm718_vm1, %v682_v39  ;;  %3875 = vmatmul.msk.f32.gmra.mxu1 %vm718_vm1, %v682_v39 }
  0xc8   : > { %3907 = vmatmul.msk.f32.gmra.mxu2 %vm718_vm1, %v682_v39  ;;  %3939 = vmatmul.msk.f32.gmra.mxu3 %vm718_vm1, %v682_v39 }
  0xcf   : > { %3844 = vmatmul.msk.f32.gmra.mxu0 %vm718_vm1, %v683_v40  ;;  %3876 = vmatmul.msk.f32.gmra.mxu1 %vm718_vm1, %v683_v40 }
  0xd0   : > { %3908 = vmatmul.msk.f32.gmra.mxu2 %vm718_vm1, %v683_v40  ;;  %3940 = vmatmul.msk.f32.gmra.mxu3 %vm718_vm1, %v683_v40 }
  0xd7   : > { %3845 = vmatmul.msk.f32.gmra.mxu0 %vm718_vm1, %v684_v41  ;;  %3877 = vmatmul.msk.f32.gmra.mxu1 %vm718_vm1, %v684_v41 }
  0xd8   : > { %3909 = vmatmul.msk.f32.gmra.mxu2 %vm718_vm1, %v684_v41  ;;  %3941 = vmatmul.msk.f32.gmra.mxu3 %vm718_vm1, %v684_v41 }
  0xdf   : > { %3846 = vmatmul.msk.f32.gmra.mxu0 %vm718_vm1, %v685_v42  ;;  %3878 = vmatmul.msk.f32.gmra.mxu1 %vm718_vm1, %v685_v42 }
  0xe0   : > { %3910 = vmatmul.msk.f32.gmra.mxu2 %vm718_vm1, %v685_v42  ;;  %3942 = vmatmul.msk.f32.gmra.mxu3 %vm718_vm1, %v685_v42 }
  0xe7   : > { %3847 = vmatmul.msk.f32.gmra.mxu0 %vm718_vm1, %v686_v43  ;;  %3879 = vmatmul.msk.f32.gmra.mxu1 %vm718_vm1, %v686_v43 }
  0xe8   : > { %3911 = vmatmul.msk.f32.gmra.mxu2 %vm718_vm1, %v686_v43  ;;  %3943 = vmatmul.msk.f32.gmra.mxu3 %vm718_vm1, %v686_v43 }
  0xef   : > { %3848 = vmatmul.msk.f32.gmra.mxu0 %vm718_vm1, %v687_v44  ;;  %3880 = vmatmul.msk.f32.gmra.mxu1 %vm718_vm1, %v687_v44 }
  0xf0   : > { %3912 = vmatmul.msk.f32.gmra.mxu2 %vm718_vm1, %v687_v44  ;;  %3944 = vmatmul.msk.f32.gmra.mxu3 %vm718_vm1, %v687_v44 }
  0xf7   : > { %3849 = vmatmul.msk.f32.gmra.mxu0 %vm718_vm1, %v688_v48  ;;  %3881 = vmatmul.msk.f32.gmra.mxu1 %vm718_vm1, %v688_v48 }
  0xf8   : > { %3913 = vmatmul.msk.f32.gmra.mxu2 %vm718_vm1, %v688_v48  ;;  %3945 = vmatmul.msk.f32.gmra.mxu3 %vm718_vm1, %v688_v48 }
  0xff   : > { %3850 = vmatmul.msk.f32.gmra.mxu0 %vm718_vm1, %v689_v50  ;;  %3882 = vmatmul.msk.f32.gmra.mxu1 %vm718_vm1, %v689_v50 }
 0x100   : > { %3914 = vmatmul.msk.f32.gmra.mxu2 %vm718_vm1, %v689_v50  ;;  %3946 = vmatmul.msk.f32.gmra.mxu3 %vm718_vm1, %v689_v50 }
 0x107   : > { %3851 = vmatmul.msk.f32.gmra.mxu0 %vm718_vm1, %v690_v51  ;;  %3883 = vmatmul.msk.f32.gmra.mxu1 %vm718_vm1, %v690_v51 }
 0x108   : > { %3915 = vmatmul.msk.f32.gmra.mxu2 %vm718_vm1, %v690_v51  ;;  %3947 = vmatmul.msk.f32.gmra.mxu3 %vm718_vm1, %v690_v51 }
 0x10f   : > { %3852 = vmatmul.msk.f32.gmra.mxu0 %vm718_vm1, %v691_v52  ;;  %3884 = vmatmul.msk.f32.gmra.mxu1 %vm718_vm1, %v691_v52 }
 0x110   : > { %3916 = vmatmul.msk.f32.gmra.mxu2 %vm718_vm1, %v691_v52  ;;  %3948 = vmatmul.msk.f32.gmra.mxu3 %vm718_vm1, %v691_v52 }
 0x117   : > { %3853 = vmatmul.msk.f32.gmra.mxu0 %vm718_vm1, %v692_v53  ;;  %3885 = vmatmul.msk.f32.gmra.mxu1 %vm718_vm1, %v692_v53 }
 0x118   : > { %3917 = vmatmul.msk.f32.gmra.mxu2 %vm718_vm1, %v692_v53  ;;  %3949 = vmatmul.msk.f32.gmra.mxu3 %vm718_vm1, %v692_v53 }
 0x11f   : > { %3854 = vmatmul.msk.f32.gmra.mxu0 %vm718_vm1, %v693_v54  ;;  %3886 = vmatmul.msk.f32.gmra.mxu1 %vm718_vm1, %v693_v54 }
 0x120   : > { %3918 = vmatmul.msk.f32.gmra.mxu2 %vm718_vm1, %v693_v54  ;;  %3950 = vmatmul.msk.f32.gmra.mxu3 %vm718_vm1, %v693_v54 }
 0x124   : > { %v832_v55 = vpop.f32.mrf.mxu0  ;;  %v945_v56 = vpop.f32.mrf.mxu1 }
 0x125   : > { %v5047_v58 = vmax.f32 %v832_v55, 0.0  ;;  %v5051_v59 = vmax.f32 %v945_v56, 0.0  ;;  %v697_v56 = vld [vmem:[%s6672_s2 + $0x98] sm:$0xff] }
 0x127   : > { %3855 = vmatmul.msk.f32.gmra.mxu0 %vm718_vm1, %v694_v57  ;;  %3887 = vmatmul.msk.f32.gmra.mxu1 %vm718_vm1, %v694_v57  ;;  %v2696_v63 = vmul.f32 -0.013888889, %v5047_v58  ;;  %v2697_v12 = vmul.f32 -0.013888889, %v5051_v59  ;;  %v2306_v45 = vmul.f32 -0.125, %v5047_v58  ;;  %v2307_v46 = vmul.f32 -0.125, %v5051_v59 }
 0x128   : > { %3919 = vmatmul.msk.f32.gmra.mxu2 %vm718_vm1, %v694_v57  ;;  %3951 = vmatmul.msk.f32.gmra.mxu3 %vm718_vm1, %v694_v57  ;;  %v1786_v18 = vmul.f32 -0.0078125, %v5047_v58  ;;  %v1787_v30 = vmul.f32 -0.0078125, %v5051_v59 }
 0x12b   : > { %v1058_v60 = vpop.f32.mrf.mxu2  ;;  %v1171_v61 = vpop.f32.mrf.mxu3 }
 0x12c   : > { %v1269_v62 = vmax.f32 %v1058_v60, 0.0  ;;  %v1270_v3 = vmax.f32 %v1171_v61, 0.0  ;;  %v835_v5 = vpop.f32.mrf.mxu0  ;;  %v948_v6 = vpop.f32.mrf.mxu1 }
 0x12d   : > { %v5057_v9 = vmax.f32 %v835_v5, 0.0  ;;  %v5059_v10 = vmax.f32 %v948_v6, 0.0 }
 0x12e   : > { %v2760_v11 = vmul.f32 -3.125, %v1269_v62  ;;  %v2761_v13 = vmul.f32 -3.125, %v1270_v3  ;;  %v1850_v19 = vmul.f32 -2.0, %v1269_v62  ;;  %v1851_v20 = vmul.f32 -2.0, %v1270_v3 }
 0x12f   : > { %v2308_v47 = vmul.f32 -0.125, %v5057_v9  ;;  %v2309_v14 = vmul.f32 -0.125, %v5059_v10  ;;  %3856 = vmatmul.msk.f32.gmra.mxu0 %vm718_vm1, %v695_v8  ;;  %3888 = vmatmul.msk.f32.gmra.mxu1 %vm718_vm1, %v695_v8  ;;  %v1788_v24 = vmul.f32 -0.0078125, %v5057_v9  ;;  %v2698_v25 = vmul.f32 -0.013888889, %v5057_v9 }
 0x130   : > { %v2824_v49 = vadd.f32 %v2760_v11, %v2696_v63  ;;  %v2825_v15 = vadd.f32 %v2761_v13, %v2697_v12  ;;  %3920 = vmatmul.msk.f32.gmra.mxu2 %vm718_vm1, %v695_v8  ;;  %3952 = vmatmul.msk.f32.gmra.mxu3 %vm718_vm1, %v695_v8  ;;  %v1789_v31 = vmul.f32 -0.0078125, %v5059_v10  ;;  %v2699_v32 = vmul.f32 -0.013888889, %v5059_v10 }
 0x131   : > { %v5069_v16 = vpack.c.bf16 %v2308_v47, %v2306_v45  ;;  %v5071_v17 = vpack.c.bf16 %v2309_v14, %v2307_v46  ;;  %v1914_v37 = vadd.f32 %v1850_v19, %v1786_v18  ;;  %v1915_v38 = vadd.f32 %v1851_v20, %v1787_v30 }
 0x133   : > { %6803 = vst [vmem:[#allocation17_spill] sm:$0xff] %v5069_v16  ;;  %v1061_v21 = vpop.f32.mrf.mxu2  ;;  %v1174_v22 = vpop.f32.mrf.mxu3 }
 0x134   : > { %6804 = vst [vmem:[#allocation18_spill] sm:$0xff] %v5071_v17  ;;  %v1273_v23 = vmax.f32 %v1061_v21, 0.0  ;;  %v1274_v26 = vmax.f32 %v1174_v22, 0.0  ;;  %v838_v27 = vpop.f32.mrf.mxu0  ;;  %v951_v28 = vpop.f32.mrf.mxu1 }
 0x135   : > { %v5095_v53 = vmax.f32 %v838_v27, 0.0  ;;  %v5100_v57 = vmax.f32 %v951_v28, 0.0 }
 0x136   : > { %v1852_v33 = vmul.f32 -2.0, %v1273_v23  ;;  %v2762_v34 = vmul.f32 -3.125, %v1273_v23  ;;  %v1853_v35 = vmul.f32 -2.0, %v1274_v26  ;;  %v2763_v36 = vmul.f32 -3.125, %v1274_v26 }
 0x137   : > { %3857 = vmatmul.msk.f32.gmra.mxu0 %vm718_vm1, %v696_v29  ;;  %3889 = vmatmul.msk.f32.gmra.mxu1 %vm718_vm1, %v696_v29  ;;  %v2700_v61 = vmul.f32 -0.013888889, %v5095_v53  ;;  %v2701_v6 = vmul.f32 -0.013888889, %v5100_v57  ;;  %v2310_v13 = vmul.f32 -0.125, %v5095_v53  ;;  %v1790_v18 = vmul.f32 -0.0078125, %v5095_v53 }
 0x138   : > { %v1916_v39 = vadd.f32 %v1852_v33, %v1788_v24  ;;  %v2826_v40 = vadd.f32 %v2762_v34, %v2698_v25  ;;  %v1917_v41 = vadd.f32 %v1853_v35, %v1789_v31  ;;  %v2827_v42 = vadd.f32 %v2763_v36, %v2699_v32  ;;  %3921 = vmatmul.msk.f32.gmra.mxu2 %vm718_vm1, %v696_v29 }
 0x139   : > { %3953 = vmatmul.msk.f32.gmra.mxu3 %vm718_vm1, %v696_v29  ;;  %v1791_v28 = vmul.f32 -0.0078125, %v5100_v57 }
 0x13a   : > { %v5087_v43 = vpack.c.bf16 %v1916_v39, %v1914_v37  ;;  %v5089_v44 = vpack.c.bf16 %v2826_v40, %v2824_v49  ;;  %v5091_v48 = vpack.c.bf16 %v1917_v41, %v1915_v38  ;;  %v5093_v50 = vpack.c.bf16 %v2827_v42, %v2825_v15  ;;  %v698_v49 = vld [vmem:[%s6672_s2 + $0xa0] sm:$0xff] }
 0x13b   : > { %v1064_v51 = vpop.f32.mrf.mxu2  ;;  %v1177_v52 = vpop.f32.mrf.mxu3  ;;  %v2311_v15 = vmul.f32 -0.125, %v5100_v57 }
 0x13c   : > { %v841_v54 = vpop.f32.mrf.mxu0  ;;  %v954_v55 = vpop.f32.mrf.mxu1  ;;  %v1277_v60 = vmax.f32 %v1064_v51, 0.0  ;;  %v1278_v62 = vmax.f32 %v1177_v52, 0.0 }
 0x13d   : > { %v5106_v63 = vmax.f32 %v841_v54, 0.0  ;;  %v5109_v5 = vmax.f32 %v954_v55, 0.0 }
 0x13e   : > { %v2764_v3 = vmul.f32 -3.125, %v1277_v60  ;;  %v2765_v8 = vmul.f32 -3.125, %v1278_v62  ;;  %v1854_v20 = vmul.f32 -2.0, %v1277_v60  ;;  %v1855_v24 = vmul.f32 -2.0, %v1278_v62 }
 0x13f   : > { %3858 = vmatmul.msk.f32.gmra.mxu0 %vm718_vm1, %v697_v56  ;;  %3890 = vmatmul.msk.f32.gmra.mxu1 %vm718_vm1, %v697_v56  ;;  %v2312_v46 = vmul.f32 -0.125, %v5106_v63  ;;  %v2313_v22 = vmul.f32 -0.125, %v5109_v5  ;;  %v1792_v25 = vmul.f32 -0.0078125, %v5106_v63  ;;  %v2702_v26 = vmul.f32 -0.013888889, %v5106_v63 }
 0x140   : > { %3922 = vmatmul.msk.f32.gmra.mxu2 %vm718_vm1, %v697_v56  ;;  %v2828_v45 = vadd.f32 %v2764_v3, %v2700_v61  ;;  %v2829_v19 = vadd.f32 %v2765_v8, %v2701_v6  ;;  %v1793_v32 = vmul.f32 -0.0078125, %v5109_v5  ;;  %v2703_v34 = vmul.f32 -0.013888889, %v5109_v5  ;;  %v699_v61 = vld [vmem:[%s6672_s2 + $0xa8] sm:$0xff] }
 0x141   : > { %3954 = vmatmul.msk.f32.gmra.mxu3 %vm718_vm1, %v697_v56  ;;  %v5119_v21 = vpack.c.bf16 %v2312_v46, %v2310_v13  ;;  %v5127_v29 = vpack.c.bf16 %v2313_v22, %v2311_v15  ;;  %v1918_v36 = vadd.f32 %v1854_v20, %v1790_v18  ;;  %v1919_v39 = vadd.f32 %v1855_v24, %v1791_v28 }
 0x143   : > { %v1067_v11 = vpop.f32.mrf.mxu2  ;;  %v1180_v12 = vpop.f32.mrf.mxu3  ;;  %6805 = vst [vmem:[#allocation19_spill] sm:$0xff] %v5119_v21 }
 0x144   : > { %v844_v47 = vpop.f32.mrf.mxu0  ;;  %v957_v14 = vpop.f32.mrf.mxu1  ;;  %v1281_v23 = vmax.f32 %v1067_v11, 0.0  ;;  %v1282_v27 = vmax.f32 %v1180_v12, 0.0  ;;  %6806 = vst [vmem:[#allocation20_spill] sm:$0xff] %v5127_v29 }
 0x145   : > { %v5137_v55 = vmax.f32 %v844_v47, 0.0  ;;  %v5148_v8 = vmax.f32 %v957_v14, 0.0  ;;  %v700_v14 = vld [vmem:[%s6672_s2 + $0xb0] sm:$0xff] }
 0x146   : > { %v1856_v30 = vmul.f32 -2.0, %v1281_v23  ;;  %v2766_v31 = vmul.f32 -3.125, %v1281_v23  ;;  %v1857_v33 = vmul.f32 -2.0, %v1282_v27  ;;  %v2767_v35 = vmul.f32 -3.125, %v1282_v27 }
 0x147   : > { %3859 = vmatmul.msk.f32.gmra.mxu0 %vm718_vm1, %v698_v49  ;;  %3891 = vmatmul.msk.f32.gmra.mxu1 %vm718_vm1, %v698_v49  ;;  %v1794_v11 = vmul.f32 -0.0078125, %v5137_v55  ;;  %v2704_v13 = vmul.f32 -0.013888889, %v5137_v55  ;;  %v1795_v18 = vmul.f32 -0.0078125, %v5148_v8  ;;  %v2705_v24 = vmul.f32 -0.013888889, %v5148_v8 }
 0x148   : > { %3923 = vmatmul.msk.f32.gmra.mxu2 %vm718_vm1, %v698_v49  ;;  %v1920_v37 = vadd.f32 %v1856_v30, %v1792_v25  ;;  %v2830_v38 = vadd.f32 %v2766_v31, %v2702_v26  ;;  %v1921_v40 = vadd.f32 %v1857_v33, %v1793_v32  ;;  %v2831_v41 = vadd.f32 %v2767_v35, %v2703_v34 }
 0x149   : > { %3955 = vmatmul.msk.f32.gmra.mxu3 %vm718_vm1, %v698_v49  ;;  %v2314_v33 = vmul.f32 -0.125, %v5137_v55  ;;  %v2315_v35 = vmul.f32 -0.125, %v5148_v8 }
 0x14a   : > { %v5133_v52 = vpack.c.bf16 %v1920_v37, %v1918_v36  ;;  %v5135_v54 = vpack.c.bf16 %v2830_v38, %v2828_v45  ;;  %v5142_v62 = vpack.c.bf16 %v1921_v40, %v1919_v39  ;;  %v5144_v3 = vpack.c.bf16 %v2831_v41, %v2829_v19 }
 0x14b   : > { %v1070_v42 = vpop.f32.mrf.mxu2  ;;  %v1183_v51 = vpop.f32.mrf.mxu3 }
 0x14c   : > { %v847_v56 = vpop.f32.mrf.mxu0  ;;  %v960_v60 = vpop.f32.mrf.mxu1  ;;  %v1285_v6 = vmax.f32 %v1070_v42, 0.0  ;;  %v1286_v46 = vmax.f32 %v1183_v51, 0.0 }
 0x14d   : > { %v5159_v26 = vmax.f32 %v847_v56, 0.0  ;;  %v5161_v27 = vmax.f32 %v960_v60, 0.0 }
 0x14e   : > { %v1858_v12 = vmul.f32 -2.0, %v1285_v6  ;;  %v2768_v45 = vmul.f32 -3.125, %v1285_v6  ;;  %v1859_v23 = vmul.f32 -2.0, %v1286_v46  ;;  %v2769_v25 = vmul.f32 -3.125, %v1286_v46 }
 0x14f   : > { %3860 = vmatmul.msk.f32.gmra.mxu0 %vm718_vm1, %v699_v61  ;;  %3892 = vmatmul.msk.f32.gmra.mxu1 %vm718_vm1, %v699_v61  ;;  %v2316_v34 = vmul.f32 -0.125, %v5159_v26  ;;  %v2317_v36 = vmul.f32 -0.125, %v5161_v27  ;;  %v1796_v37 = vmul.f32 -0.0078125, %v5159_v26  ;;  %v2706_v40 = vmul.f32 -0.013888889, %v5159_v26 }
 0x150   : > { %3924 = vmatmul.msk.f32.gmra.mxu2 %vm718_vm1, %v699_v61  ;;  %v1922_v15 = vadd.f32 %v1858_v12, %v1794_v11  ;;  %v2832_v22 = vadd.f32 %v2768_v45, %v2704_v13  ;;  %v1923_v30 = vadd.f32 %v1859_v23, %v1795_v18  ;;  %v2833_v31 = vadd.f32 %v2769_v25, %v2705_v24 }
 0x151   : > { %3956 = vmatmul.msk.f32.gmra.mxu3 %vm718_vm1, %v699_v61  ;;  %v5172_v39 = vpack.c.bf16 %v2316_v34, %v2314_v33  ;;  %v5175_v42 = vpack.c.bf16 %v2317_v36, %v2315_v35  ;;  %v1797_v56 = vmul.f32 -0.0078125, %v5161_v27  ;;  %v2707_v12 = vmul.f32 -0.013888889, %v5161_v27  ;;  %v702_v36 = vld [vmem:[%s6672_s2 + $0xc0] sm:$0xff] }
 0x153   : > { %v1073_v47 = vpop.f32.mrf.mxu2  ;;  %v1186_v49 = vpop.f32.mrf.mxu3  ;;  %6807 = vst [vmem:[#allocation21_spill] sm:$0xff] %v5172_v39 }
 0x154   : > { %v850_v19 = vpop.f32.mrf.mxu0  ;;  %v963_v20 = vpop.f32.mrf.mxu1  ;;  %v1289_v28 = vmax.f32 %v1073_v47, 0.0  ;;  %v1290_v32 = vmax.f32 %v1186_v49, 0.0  ;;  %6808 = vst [vmem:[#allocation22_spill] sm:$0xff] %v5175_v42  ;;  %v701_v47 = vld [vmem:[%s6672_s2 + $0xb8] sm:$0xff] }
 0x155   : > { %v5188_v25 = vmax.f32 %v850_v19, 0.0 }
 0x156   : > { %v1860_v38 = vmul.f32 -2.0, %v1289_v28  ;;  %v2770_v41 = vmul.f32 -3.125, %v1289_v28  ;;  %v1861_v60 = vmul.f32 -2.0, %v1290_v32  ;;  %v2771_v13 = vmul.f32 -3.125, %v1290_v32 }
 0x157   : > { %3861 = vmatmul.msk.f32.gmra.mxu0 %vm718_vm1, %v700_v14  ;;  %3893 = vmatmul.msk.f32.gmra.mxu1 %vm718_vm1, %v700_v14  ;;  %v1798_v33 = vmul.f32 -0.0078125, %v5188_v25 }
 0x158   : > { %3925 = vmatmul.msk.f32.gmra.mxu2 %vm718_vm1, %v700_v14  ;;  %v1924_v51 = vadd.f32 %v1860_v38, %v1796_v37  ;;  %v2834_v11 = vadd.f32 %v2770_v41, %v2706_v40  ;;  %v1925_v18 = vadd.f32 %v1861_v60, %v1797_v56  ;;  %v2835_v23 = vadd.f32 %v2771_v13, %v2707_v12 }
 0x159   : > { %3957 = vmatmul.msk.f32.gmra.mxu3 %vm718_vm1, %v700_v14  ;;  %v2318_v13 = vmul.f32 -0.125, %v5188_v25 }
 0x15a   : > { %v5182_v49 = vpack.c.bf16 %v1924_v51, %v1922_v15  ;;  %v5184_v14 = vpack.c.bf16 %v2834_v11, %v2832_v22  ;;  %v5186_v24 = vpack.c.bf16 %v1925_v18, %v1923_v30  ;;  %v5192_v28 = vpack.c.bf16 %v2835_v23, %v2833_v31 }
 0x15b   : > { %v1076_v61 = vpop.f32.mrf.mxu2  ;;  %v1189_v6 = vpop.f32.mrf.mxu3  ;;  %v5196_v15 = vmax.f32 %v963_v20, 0.0  ;;  %v2708_v31 = vmul.f32 -0.013888889, %v5188_v25 }
 0x15c   : > { %v853_v45 = vpop.f32.mrf.mxu0  ;;  %v966_v46 = vpop.f32.mrf.mxu1  ;;  %6809 = vst [vmem:[#allocation23_spill] sm:$0xff] %v5184_v14  ;;  %v1293_v32 = vmax.f32 %v1076_v61, 0.0  ;;  %v1294_v22 = vmax.f32 %v1189_v6, 0.0 }
 0x15d   : > { %6810 = vst [vmem:[#allocation24_spill] sm:$0xff] %v5186_v24  ;;  %v1799_v41 = vmul.f32 -0.0078125, %v5196_v15  ;;  %v2709_v56 = vmul.f32 -0.013888889, %v5196_v15  ;;  %v5205_v61 = vmax.f32 %v853_v45, 0.0  ;;  %v5209_v11 = vmax.f32 %v966_v46, 0.0 }
 0x15e   : > { %6811 = vst [vmem:[#allocation25_spill] sm:$0xff] %v5192_v28  ;;  %v1862_v19 = vmul.f32 -2.0, %v1293_v32  ;;  %v2772_v37 = vmul.f32 -3.125, %v1293_v32  ;;  %v1863_v20 = vmul.f32 -2.0, %v1294_v22  ;;  %v2773_v60 = vmul.f32 -3.125, %v1294_v22 }
 0x15f   : > { %3862 = vmatmul.msk.f32.gmra.mxu0 %vm718_vm1, %v701_v47  ;;  %3894 = vmatmul.msk.f32.gmra.mxu1 %vm718_vm1, %v701_v47  ;;  %v2320_v18 = vmul.f32 -0.125, %v5205_v61  ;;  %v2319_v45 = vmul.f32 -0.125, %v5196_v15  ;;  %v2321_v23 = vmul.f32 -0.125, %v5209_v11  ;;  %v1800_v32 = vmul.f32 -0.0078125, %v5205_v61 }
 0x160   : > { %3926 = vmatmul.msk.f32.gmra.mxu2 %vm718_vm1, %v701_v47  ;;  %v1926_v40 = vadd.f32 %v1862_v19, %v1798_v33  ;;  %v2836_v51 = vadd.f32 %v2772_v37, %v2708_v31  ;;  %v1927_v6 = vadd.f32 %v1863_v20, %v1799_v41  ;;  %v2710_v33 = vmul.f32 -0.013888889, %v5205_v61 }
 0x161   : > { %3958 = vmatmul.msk.f32.gmra.mxu3 %vm718_vm1, %v701_v47  ;;  %v2837_v47 = vadd.f32 %v2773_v60, %v2709_v56  ;;  %v5218_v22 = vpack.c.bf16 %v2320_v18, %v2318_v13  ;;  %v5221_v37 = vpack.c.bf16 %v2321_v23, %v2319_v45  ;;  %v1801_v60 = vmul.f32 -0.0078125, %v5209_v11 }
 0x162   : > { %v2711_v13 = vmul.f32 -0.013888889, %v5209_v11  ;;  %v2922_v28 = vunpack.c.h.bf16 %v5089_v44 }
 0x163   : > { %v1079_v30 = vpop.f32.mrf.mxu2  ;;  %v1192_v34 = vpop.f32.mrf.mxu3  ;;  %6812 = vst [vmem:[#allocation26_spill] sm:$0xff] %v5218_v22 }
 0x164   : > { %v856_v35 = vpop.f32.mrf.mxu0  ;;  %v969_v38 = vpop.f32.mrf.mxu1  ;;  %v1297_v12 = vmax.f32 %v1079_v30, 0.0  ;;  %6813 = vst [vmem:[#allocation27_spill] sm:$0xff] %v5221_v37  ;;  %v1298_v41 = vmax.f32 %v1192_v34, 0.0 }
 0x165   : > { %v5228_v4 = vmax.f32 %v856_v35, 0.0 }
 0x166   : > { %v1864_v46 = vmul.f32 -2.0, %v1297_v12  ;;  %v2774_v30 = vmul.f32 -3.125, %v1297_v12  ;;  %v1865_v18 = vmul.f32 -2.0, %v1298_v41  ;;  %v2775_v7 = vmul.f32 -3.125, %v1298_v41 }
 0x167   : > { %3863 = vmatmul.msk.f32.gmra.mxu0 %vm718_vm1, %v702_v36  ;;  %3895 = vmatmul.msk.f32.gmra.mxu1 %vm718_vm1, %v702_v36  ;;  %v2322_v0 = vmul.f32 -0.125, %v5228_v4 }
 0x168   : > { %3927 = vmatmul.msk.f32.gmra.mxu2 %vm718_vm1, %v702_v36  ;;  %v1928_v20 = vadd.f32 %v1864_v46, %v1800_v32  ;;  %v2838_v56 = vadd.f32 %v2774_v30, %v2710_v33  ;;  %v1929_v23 = vadd.f32 %v1865_v18, %v1801_v60  ;;  %v2839_v32 = vadd.f32 %v2775_v7, %v2711_v13  ;;  %v704_v7 = vld [vmem:[%s6672_s2 + $0xd0] sm:$0xff] }
 0x169   : > { %3959 = vmatmul.msk.f32.gmra.mxu3 %vm718_vm1, %v702_v36  ;;  %v703_v36 = vld [vmem:[%s6672_s2 + $0xc8] sm:$0xff]  ;;  %v5245_v30 = vmax.f32 %v969_v38, 0.0 }
 0x16a   : > { %v5230_v2 = vpack.c.bf16 %v1928_v20, %v1926_v40  ;;  %v5232_v45 = vpack.c.bf16 %v2838_v56, %v2836_v51  ;;  %v5238_v46 = vpack.c.bf16 %v1929_v23, %v1927_v6  ;;  %v5240_v35 = vpack.c.bf16 %v2839_v32, %v2837_v47 }
 0x16b   : > { %v1082_v19 = vpop.f32.mrf.mxu2  ;;  %v1195_v31 = vpop.f32.mrf.mxu3  ;;  %v1802_v40 = vmul.f32 -0.0078125, %v5228_v4  ;;  %v2712_v6 = vmul.f32 -0.013888889, %v5228_v4 }
 0x16c   : > { %v1301_v12 = vmax.f32 %v1082_v19, 0.0  ;;  %v859_v1 = vpop.f32.mrf.mxu0  ;;  %6814 = vst [vmem:[#allocation28_spill] sm:$0xff] %v5232_v45  ;;  %v972_v34 = vpop.f32.mrf.mxu1  ;;  %v1302_v19 = vmax.f32 %v1195_v31, 0.0  ;;  %v2713_v31 = vmul.f32 -0.013888889, %v5245_v30  ;;  %v2920_v45 = vunpack.c.l.bf16 %v5089_v44 }
 0x16d   : > { %6815 = vst [vmem:[#allocation29_spill] sm:$0xff] %v5240_v35  ;;  %v5260_v18 = vmax.f32 %v859_v1, 0.0  ;;  %v5262_v23 = vmax.f32 %v972_v34, 0.0  ;;  %v705_v34 = vld [vmem:[%s6672_s2 + $0xd8] sm:$0xff] }
 0x16e   : > { %v1866_v33 = vmul.f32 -2.0, %v1301_v12  ;;  %v2776_v47 = vmul.f32 -3.125, %v1301_v12  ;;  %v1867_v38 = vmul.f32 -2.0, %v1302_v19  ;;  %v2777_v56 = vmul.f32 -3.125, %v1302_v19 }
 0x16f   : > { %3864 = vmatmul.msk.f32.gmra.mxu0 %vm718_vm1, %v703_v36  ;;  %3896 = vmatmul.msk.f32.gmra.mxu1 %vm718_vm1, %v703_v36  ;;  %v2324_v19 = vmul.f32 -0.125, %v5260_v18  ;;  %v2325_v1 = vmul.f32 -0.125, %v5262_v23  ;;  %v2715_v29 = vmul.f32 -0.013888889, %v5262_v23 }
 0x170   : > { %3928 = vmatmul.msk.f32.gmra.mxu2 %vm718_vm1, %v703_v36  ;;  %v5252_v20 = vadd.f32 %v1866_v33, %v1802_v40  ;;  %v2840_v13 = vadd.f32 %v2776_v47, %v2712_v6  ;;  %v2841_v40 = vadd.f32 %v2777_v56, %v2713_v31  ;;  %v2323_v6 = vmul.f32 -0.125, %v5245_v30 }
 0x171   : > { %3960 = vmatmul.msk.f32.gmra.mxu3 %vm718_vm1, %v703_v36  ;;  %v1803_v36 = vmul.f32 -0.0078125, %v5245_v30  ;;  %v2714_v47 = vmul.f32 -0.013888889, %v5260_v18 }
 0x172   : > { %v5283_v31 = vpack.c.bf16 %v2325_v1, %v2323_v6 }
 0x173   : > { %v5243_v51 = vpop.f32.mrf.mxu2  ;;  %v5247_v41 = vpop.f32.mrf.mxu3  ;;  %v5265_v12 = vadd.f32 %v1867_v38, %v1803_v36 }
 0x174   : > { %v862_v60 = vpop.f32.mrf.mxu0  ;;  %v975_v32 = vpop.f32.mrf.mxu1  ;;  %v6694_v33 = vmax.f32 %v5243_v51, 0.0  ;;  %v6693_v38 = vmax.f32 %v5247_v41, 0.0  ;;  %6818 = vst [vmem:[#allocation32_spill] sm:$0xff] %v5283_v31 }
 0x175   : > { %6816 = vst [vmem:[#allocation30_spill] sm:$0xff] %v5265_v12  ;;  %v5306_v39 = vmax.f32 %v975_v32, 0.0 }
 0x176   : > { %v2778_v36 = vmul.f32 -3.125, %v6694_v33  ;;  %v2779_v21 = vmul.f32 -3.125, %v6693_v38  ;;  %v706_v38 = vld [vmem:[%s6672_s2 + $0xe0] sm:$0xff] }
 0x177   : > { %3865 = vmatmul.msk.f32.gmra.mxu0 %vm718_vm1, %v704_v7  ;;  %3897 = vmatmul.msk.f32.gmra.mxu1 %vm718_vm1, %v704_v7 }
 0x178   : > { %3929 = vmatmul.msk.f32.gmra.mxu2 %vm718_vm1, %v704_v7  ;;  %v2842_v16 = vadd.f32 %v2778_v36, %v2714_v47  ;;  %v5298_v47 = vmax.f32 %v862_v60, 0.0 }
 0x179   : > { %3961 = vmatmul.msk.f32.gmra.mxu3 %vm718_vm1, %v704_v7  ;;  %v5277_v7 = vpack.c.bf16 %v2324_v19, %v2322_v0  ;;  %v2843_v19 = vadd.f32 %v2779_v21, %v2715_v29 }
 0x17a   : > { %v5293_v0 = vpack.c.bf16 %v2842_v16, %v2840_v13  ;;  %v2716_v21 = vmul.f32 -0.013888889, %v5298_v47  ;;  %v2717_v13 = vmul.f32 -0.013888889, %v5306_v39  ;;  %v2326_v37 = vmul.f32 -0.125, %v5298_v47 }
 0x17b   : > { %v5270_v17 = vpop.f32.mrf.mxu2  ;;  %6817 = vst [vmem:[#allocation31_spill] sm:$0xff] %v5277_v7  ;;  %v5285_v56 = vpop.f32.mrf.mxu3  ;;  %v5296_v1 = vpack.c.bf16 %v2843_v19, %v2841_v40 }
 0x17c   : > { %6819 = vst [vmem:[#allocation33_spill] sm:$0xff] %v5293_v0  ;;  %v865_v6 = vpop.f32.mrf.mxu0  ;;  %v978_v36 = vpop.f32.mrf.mxu1  ;;  %v6701_v33 = vmax.f32 %v5270_v17, 0.0  ;;  %v6703_v16 = vmax.f32 %v5285_v56, 0.0 }
 0x17d   : > { %6820 = vst [vmem:[#allocation34_spill] sm:$0xff] %v5296_v1  ;;  %v5321_v40 = vmax.f32 %v865_v6, 0.0  ;;  %v5323_v19 = vmax.f32 %v978_v36, 0.0 }
 0x17e   : > { %v2780_v60 = vmul.f32 -3.125, %v6701_v33  ;;  %v2781_v32 = vmul.f32 -3.125, %v6703_v16  ;;  %v2327_v33 = vmul.f32 -0.125, %v5306_v39 }
 0x17f   : > { %3866 = vmatmul.msk.f32.gmra.mxu0 %vm718_vm1, %v705_v34  ;;  %3898 = vmatmul.msk.f32.gmra.mxu1 %vm718_vm1, %v705_v34  ;;  %v2328_v31 = vmul.f32 -0.125, %v5321_v40  ;;  %v2329_v1 = vmul.f32 -0.125, %v5323_v19  ;;  %v2718_v36 = vmul.f32 -0.013888889, %v5321_v40  ;;  %v2719_v35 = vmul.f32 -0.013888889, %v5323_v19 }
 0x180   : > { %3930 = vmatmul.msk.f32.gmra.mxu2 %vm718_vm1, %v705_v34  ;;  %v2845_v22 = vadd.f32 %v2781_v32, %v2717_v13 }
 0x181   : > { %3962 = vmatmul.msk.f32.gmra.mxu3 %vm718_vm1, %v705_v34  ;;  %v2844_v34 = vadd.f32 %v2780_v60, %v2716_v21  ;;  %v5333_v21 = vpack.c.bf16 %v2328_v31, %v2326_v37  ;;  %v5337_v13 = vpack.c.bf16 %v2329_v1, %v2327_v33  ;;  %v2010_v33 = vunpack.c.l.bf16 %v5087_v43 }
 0x183   : > { %v5304_v42 = vpop.f32.mrf.mxu2  ;;  %v5312_v29 = vpop.f32.mrf.mxu3  ;;  %6821 = vst [vmem:[#allocation35_spill] sm:$0xff] %v5333_v21 }
 0x184   : > { %v868_v7 = vpop.f32.mrf.mxu0  ;;  %v6706_v6 = vmax.f32 %v5304_v42, 0.0  ;;  %v981_v16 = vpop.f32.mrf.mxu1  ;;  %v6711_v60 = vmax.f32 %v5312_v29, 0.0  ;;  %6822 = vst [vmem:[#allocation36_spill] sm:$0xff] %v5337_v13  ;;  %v2012_v13 = vunpack.c.h.bf16 %v5087_v43  ;;  %v5368_v43 = vmul.f32 -0.055555556, %v5047_v58 }
 0x185   : > { %v2984_v58 = vmul.f32 1.442695, %v2920_v45 }
 0x186   : > { %v2782_v32 = vmul.f32 -3.125, %v6706_v6  ;;  %v2783_v37 = vmul.f32 -3.125, %v6711_v60  ;;  %6826 = vst [vmem:[#allocation40_spill] sm:$0xff] %v5368_v43  ;;  %v2078_v60 = vmul.f32 1.442695, %v2012_v13 }
 0x187   : > { %3867 = vmatmul.msk.f32.gmra.mxu0 %vm718_vm1, %v706_v38  ;;  %3899 = vmatmul.msk.f32.gmra.mxu1 %vm718_vm1, %v706_v38 }
 0x188   : > { %3931 = vmatmul.msk.f32.gmra.mxu2 %vm718_vm1, %v706_v38  ;;  %v2846_v31 = vadd.f32 %v2782_v32, %v2718_v36  ;;  %v2847_v1 = vadd.f32 %v2783_v37, %v2719_v35  ;;  %v708_v36 = vld [vmem:[%s6672_s2 + $0xf0] sm:$0xff]  ;;  %v2013_v35 = vunpack.c.h.bf16 %v5091_v48  ;;  %v5365_v32 = vmax.f32 %v868_v7, 0.0 }
 0x189   : > { %3963 = vmatmul.msk.f32.gmra.mxu3 %vm718_vm1, %v706_v38  ;;  %v707_v38 = vld [vmem:[%s6672_s2 + $0xe8] sm:$0xff]  ;;  %v2921_v37 = vunpack.c.l.bf16 %v5093_v50 }
 0x18a   : > { %v5354_v21 = vpack.c.bf16 %v2846_v31, %v2844_v34  ;;  %v5358_v12 = vpack.c.bf16 %v2847_v1, %v2845_v22  ;;  %v2074_v34 = vmul.f32 1.442695, %v2010_v33  ;;  %v5373_v31 = vmul.f32 -0.055555556, %v5051_v59 }
 0x18b   : > { %v5341_v0 = vpop.f32.mrf.mxu2  ;;  %v5351_v6 = vpop.f32.mrf.mxu3  ;;  %v5376_v1 = vmul.f32 -0.055555556, %v5057_v9  ;;  %v2988_v33 = vmul.f32 1.442695, %v2922_v28  ;;  %v2080_v59 = vmul.f32 1.442695, %v2013_v35 }
 0x18c   : > { %6823 = vst [vmem:[#allocation37_spill] sm:$0xff] %v5351_v6  ;;  %v871_v22 = vpop.f32.mrf.mxu0  ;;  %v984_v7 = vpop.f32.mrf.mxu1  ;;  %4062 = vpow2.f32 %v2074_v34  ;;  %v6831_v13 = vmax.f32 %v5341_v0, 0.0  ;;  %v6714_v45 = vmax.f32 %v5351_v6, 0.0 }
 0x18d   : > { %6824 = vst [vmem:[#allocation38_spill] sm:$0xff] %v5354_v21  ;;  %v2720_v21 = vmul.f32 -0.013888889, %v5365_v32  ;;  %4064 = vpow2.f32 %v2078_v60  ;;  %v2014_v60 = vunpack.c.l.bf16 %v5133_v52 }
 0x18e   : > { %6825 = vst [vmem:[#allocation39_spill] sm:$0xff] %v5358_v12  ;;  %v5381_v12 = vmax.f32 %v981_v16, 0.0  ;;  %v5391_v16 = vmax.f32 %v871_v22, 0.0  ;;  %4066 = vpow2.f32 %v2984_v58  ;;  %v2330_v22 = vmul.f32 -0.125, %v5365_v32 }
 0x18f   : > { %3868 = vmatmul.msk.f32.gmra.mxu0 %vm718_vm1, %v707_v38  ;;  %3900 = vmatmul.msk.f32.gmra.mxu1 %vm718_vm1, %v707_v38  ;;  %6827 = vst [vmem:[#allocation41_spill] sm:$0xff] %v5373_v31  ;;  %v2784_v31 = vmul.f32 -3.125, %v6831_v13  ;;  %4068 = vpow2.f32 %v2988_v33  ;;  %v2924_v13 = vunpack.c.l.bf16 %v5135_v54  ;;  %v2015_v33 = vunpack.c.l.bf16 %v5142_v62 }
 0x190   : > { %3932 = vmatmul.msk.f32.gmra.mxu2 %vm718_vm1, %v707_v38  ;;  %6828 = vst [vmem:[#allocation42_spill] sm:$0xff] %v5376_v1  ;;  %v5393_v1 = vmax.f32 %v984_v7, 0.0  ;;  %v2721_v35 = vmul.f32 -0.013888889, %v5381_v12 }
 0x191   : > { %3964 = vmatmul.msk.f32.gmra.mxu3 %vm718_vm1, %v707_v38  ;;  %v2011_v38 = vunpack.c.l.bf16 %v5091_v48  ;;  %v2923_v48 = vunpack.c.h.bf16 %v5093_v50  ;;  %6829 = vst [vmem:[#allocation43_spill] sm:$0xff] %v5381_v12  ;;  %v2986_v50 = vmul.f32 1.442695, %v2921_v37  ;;  %v709_v37 = vld [vmem:[%s6672_s2 + $0xf8] sm:$0xff] }
 0x192   : > { %6832 = vst [vmem:[#allocation45_spill] sm:$0xff] %v5391_v16  ;;  %v2333_v58 = vmul.f32 -0.125, %v5393_v1  ;;  %v5415_v43 = vpop.eup %4062 }
 0x193   : > { %v2076_v44 = vmul.f32 1.442695, %v2011_v38  ;;  %v5385_v9 = vpop.f32.mrf.mxu2  ;;  %v2990_v28 = vmul.f32 1.442695, %v2923_v48  ;;  %6833 = vst [vmem:[#allocation46_spill] sm:$0xff] %v5393_v1  ;;  %v2848_v38 = vadd.f32 %v2784_v31, %v2720_v21  ;;  %v5398_v34 = vpop.f32.mrf.mxu3  ;;  %v2332_v48 = vmul.f32 -0.125, %v5391_v16 }
 0x194   : > { %6830 = vst [vmem:[#allocation44_spill] sm:$0xff] %v5385_v9  ;;  %v2016_v21 = vunpack.c.h.bf16 %v5133_v52  ;;  %v2331_v31 = vmul.f32 -0.125, %v5381_v12  ;;  %v2926_v52 = vunpack.c.h.bf16 %v5135_v54  ;;  %v987_v12 = vpop.f32.mrf.mxu1 }
 0x195   : > { %4070 = vpow2.f32 %v2076_v44  ;;  %6835 = vst [vmem:[#allocation48_spill] sm:$0xff] %v5415_v43  ;;  %v2723_v44 = vmul.f32 -0.013888889, %v5393_v1  ;;  %v5444_v1 = vmul.f32 -0.055555556, %v5059_v10 }
 0x196   : > { %v5418_v6 = vpack.c.bf16 %v2333_v58, %v2331_v31  ;;  %4072 = vpow2.f32 %v2080_v59  ;;  %v2086_v31 = vmul.f32 1.442695, %v2016_v21  ;;  %v2017_v58 = vunpack.c.h.bf16 %v5142_v62 }
 0x197   : > { %3869 = vmatmul.msk.f32.gmra.mxu0 %vm718_vm1, %v708_v36  ;;  %3901 = vmatmul.msk.f32.gmra.mxu1 %vm718_vm1, %v708_v36  ;;  %4074 = vpow2.f32 %v2986_v50  ;;  %v2927_v21 = vunpack.c.h.bf16 %v5144_v3  ;;  %6843 = vst [vmem:[#allocation54_spill] sm:$0xff] %v5444_v1  ;;  %v5449_v50 = vmul.f32 -0.055555556, %v5095_v53  ;;  %v6861_v1 = vmax.f32 %v5243_v51, 0.0 }
 0x198   : > { %3933 = vmatmul.msk.f32.gmra.mxu2 %vm718_vm1, %v708_v36  ;;  %6836 = vst [vmem:[#allocation49_spill] sm:$0xff] %v5418_v6  ;;  %v6840_v6 = vmax.f32 %v5398_v34, 0.0  ;;  %4076 = vpow2.f32 %v2990_v28 }
 0x199   : > { %3965 = vmatmul.msk.f32.gmra.mxu3 %vm718_vm1, %v708_v36  ;;  %v2785_v36 = vmul.f32 -3.125, %v6714_v45  ;;  %v5410_v45 = vpack.c.bf16 %v2332_v48, %v2330_v22  ;;  %v5423_v22 = vpop.eup %4064  ;;  %v2082_v48 = vmul.f32 1.442695, %v2014_v60  ;;  %v2992_v60 = vmul.f32 1.442695, %v2924_v13 }
 0x19a   : > { %6837 = vst [vmem:[#allocation50_spill] sm:$0xff] %v5423_v22  ;;  %v5429_v54 = vpop.eup %4066  ;;  %v2787_v22 = vmul.f32 -3.125, %v6840_v6  ;;  %v2084_v6 = vmul.f32 1.442695, %v2015_v33  ;;  %v2998_v53 = vmul.f32 1.442695, %v2927_v21 }
 0x19b   : > { %v2849_v7 = vadd.f32 %v2785_v36, %v2721_v35  ;;  %6834 = vst [vmem:[#allocation47_spill] sm:$0xff] %v5410_v45  ;;  %v2722_v35 = vmul.f32 -0.013888889, %v5391_v16  ;;  %v874_v36 = vpop.f32.mrf.mxu0  ;;  %v6838_v45 = vmax.f32 %v5385_v9, 0.0  ;;  %v5435_v59 = vpop.eup %4068  ;;  %v2925_v9 = vunpack.c.l.bf16 %v5144_v3  ;;  %v6876_v51 = vld [vmem:[#allocation44_spill] sm:$0xff] }
 0x19c   : > { %6839 = vst [vmem:[#allocation51_spill] sm:$0xff] %v5429_v54  ;;  %v5438_v16 = vpop.f32.mrf.mxu2  ;;  %v2851_v54 = vadd.f32 %v2787_v22, %v2723_v44  ;;  %v5441_v62 = vpop.eup %4070  ;;  %4078 = vpow2.f32 %v2082_v48  ;;  %v5469_v44 = vmul.f32 -0.055555556, %v5109_v5  ;;  %v5471_v22 = vmax.f32 %v987_v12, 0.0 }
 0x19d   : > { %v2786_v43 = vmul.f32 -3.125, %v6838_v45  ;;  %6841 = vst [vmem:[#allocation52_spill] sm:$0xff] %v5435_v59  ;;  %4080 = vpow2.f32 %v2086_v31  ;;  %v5453_v28 = vpop.f32.mrf.mxu3  ;;  %v5455_v3 = vpop.eup %4072  ;;  %v2994_v10 = vmul.f32 1.442695, %v2925_v9  ;;  %v1325_v33 = vmax.f32 %v5438_v16, 0.0 }
 0x19e   : > { %6842 = vst [vmem:[#allocation53_spill] sm:$0xff] %v5441_v62  ;;  %v5451_v13 = vpack.c.bf16 %v2851_v54, %v2849_v7  ;;  %4082 = vpow2.f32 %v2992_v60  ;;  %v5466_v7 = vpop.eup %4074  ;;  %v2018_v16 = vunpack.c.l.bf16 %v5182_v49  ;;  %v5486_v5 = vmul.f32 -0.055555556, %v5159_v26 }
 0x19f   : > { %3870 = vmatmul.msk.f32.gmra.mxu0 %vm718_vm1, %v709_v37  ;;  %3902 = vmatmul.msk.f32.gmra.mxu1 %vm718_vm1, %v709_v37  ;;  %v2850_v45 = vadd.f32 %v2786_v43, %v2722_v35  ;;  %v2088_v43 = vmul.f32 1.442695, %v2017_v58  ;;  %6846 = vst [vmem:[#allocation57_spill] sm:$0xff] %v5455_v3  ;;  %v5460_v35 = vmax.f32 %v874_v36, 0.0  ;;  %v5474_v9 = vpop.eup %4076  ;;  %v5480_v36 = vmul.f32 -0.055555556, %v5148_v8  ;;  %v990_v58 = vpop.f32.mrf.mxu1 }
 0x1a0   : > { %3934 = vmatmul.msk.f32.gmra.mxu2 %vm718_vm1, %v709_v37  ;;  %6845 = vst [vmem:[#allocation56_spill] sm:$0xff] %v5451_v13  ;;  %v5489_v12 = vmul.f32 -0.055555556, %v5161_v27  ;;  %v2020_v8 = vunpack.c.h.bf16 %v5182_v49  ;;  %v5496_v60 = vmul.f32 -0.055555556, %v5188_v25  ;;  %v2019_v25 = vunpack.c.l.bf16 %v5186_v24 }
 0x1a1   : > { %3966 = vmatmul.msk.f32.gmra.mxu3 %vm718_vm1, %v709_v37  ;;  %v2996_v37 = vmul.f32 1.442695, %v2926_v52  ;;  %v5446_v59 = vpack.c.bf16 %v2850_v45, %v2848_v38  ;;  %v5458_v52 = vmul.f32 -0.055555556, %v5100_v57  ;;  %v5463_v38 = vmul.f32 -0.055555556, %v5106_v63 }
 0x1a2   : > { %6848 = vst [vmem:[#allocation59_spill] sm:$0xff] %v5466_v7  ;;  %v6726_v57 = vmax.f32 %v5453_v28, 0.0  ;;  %v5477_v63 = vmul.f32 -0.055555556, %v5137_v55  ;;  %v5483_v54 = vpop.eup %4078  ;;  %v2724_v31 = vmul.f32 -0.013888889, %v5460_v35  ;;  %v2024_v24 = vunpack.c.h.bf16 %v5230_v2 }
 0x1a3   : > { %6844 = vst [vmem:[#allocation55_spill] sm:$0xff] %v5446_v59  ;;  %4084 = vpow2.f32 %v2996_v37  ;;  %v877_v48 = vpop.f32.mrf.mxu0  ;;  %v5492_v55 = vpop.eup %4080  ;;  %v2788_v45 = vmul.f32 -3.125, %v1325_v33  ;;  %v5501_v26 = vmul.f32 -0.055555556, %v5196_v15  ;;  %v2725_v27 = vmul.f32 -0.013888889, %v5471_v22 }
 0x1a4   : > { %6847 = vst [vmem:[#allocation58_spill] sm:$0xff] %v5458_v52  ;;  %4086 = vpow2.f32 %v2084_v6  ;;  %v5498_v37 = vpop.eup %4082  ;;  %v2789_v21 = vmul.f32 -3.125, %v6726_v57  ;;  %v5506_v6 = vmax.f32 %v877_v48, 0.0  ;;  %v2090_v49 = vmul.f32 1.442695, %v2018_v16 }
 0x1a5   : > { %6849 = vst [vmem:[#allocation60_spill] sm:$0xff] %v5469_v44  ;;  %4088 = vpow2.f32 %v2088_v43  ;;  %v1103_v43 = vpop.f32.mrf.mxu2  ;;  %v2334_v15 = vmul.f32 -0.125, %v5460_v35  ;;  %v1814_v59 = vmul.f32 -0.0078125, %v5460_v35 }
 0x1a6   : > { %6850 = vst [vmem:[#allocation61_spill] sm:$0xff] %v5474_v9  ;;  %4090 = vpow2.f32 %v2994_v10  ;;  %v5511_v9 = vmax.f32 %v990_v58, 0.0  ;;  %v2853_v13 = vadd.f32 %v2789_v21, %v2725_v27  ;;  %v2336_v57 = vmul.f32 -0.125, %v5506_v6 }
 0x1a7   : > { %6851 = vst [vmem:[#allocation62_spill] sm:$0xff] %v5483_v54  ;;  %4092 = vpow2.f32 %v2998_v53  ;;  %v2852_v53 = vadd.f32 %v2788_v45, %v2724_v31  ;;  %v1329_v3 = vmax.f32 %v1103_v43, 0.0  ;;  %v5522_v31 = vpop.f32.mrf.mxu3  ;;  %v2094_v45 = vmul.f32 1.442695, %v2020_v8 }
 0x1a8   : > { %6852 = vst [vmem:[#allocation63_spill] sm:$0xff] %v5492_v55  ;;  %v2337_v16 = vmul.f32 -0.125, %v5511_v9  ;;  %v5526_v62 = vpack.c.bf16 %v2336_v57, %v2334_v15  ;;  %v2726_v27 = vmul.f32 -0.013888889, %v5506_v6  ;;  %4094 = vpow2.f32 %v2090_v49 }
 0x1a9   : > { %6853 = vst [vmem:[#allocation64_spill] sm:$0xff] %v5498_v37  ;;  %v5508_v10 = vpop.eup %4084  ;;  %v2335_v37 = vmul.f32 -0.125, %v5471_v22  ;;  %v2790_v55 = vmul.f32 -3.125, %v1329_v3  ;;  %v2092_v54 = vmul.f32 1.442695, %v2019_v25  ;;  %v2022_v43 = vunpack.c.l.bf16 %v5230_v2 }
 0x1aa   : > { %6854 = vst [vmem:[#allocation65_spill] sm:$0xff] %v5508_v10  ;;  %v5513_v7 = vpop.eup %4086  ;;  %v1878_v10 = vmul.f32 -2.0, %v1325_v33  ;;  %v1880_v33 = vmul.f32 -2.0, %v1329_v3  ;;  %v6731_v8 = vmax.f32 %v5522_v31, 0.0  ;;  %v1804_v57 = vmul.f32 -0.0078125, %v5260_v18 }
 0x1ab   : > { %6855 = vst [vmem:[#allocation66_spill] sm:$0xff] %v5513_v7  ;;  %v5518_v48 = vpop.eup %4088  ;;  %v1816_v7 = vmul.f32 -0.0078125, %v5506_v6  ;;  %v6862_v49 = vmax.f32 %v5304_v42, 0.0  ;;  %v1806_v2 = vmul.f32 -0.0078125, %v5298_v47  ;;  %4096 = vpow2.f32 %v2094_v45 }
 0x1ac   : > { %6856 = vst [vmem:[#allocation67_spill] sm:$0xff] %v5518_v48  ;;  %v5524_v58 = vpop.eup %4090  ;;  %v5532_v48 = vpack.c.bf16 %v2337_v16, %v2335_v37  ;;  %v1942_v15 = vadd.f32 %v1878_v10, %v1814_v59  ;;  %v1808_v37 = vmul.f32 -0.0078125, %v5321_v40  ;;  %v2791_v25 = vmul.f32 -3.125, %v6731_v8 }
 0x1ad   : > { %6857 = vst [vmem:[#allocation68_spill] sm:$0xff] %v5524_v58  ;;  %v5530_v21 = vpop.eup %4092  ;;  %v1944_v58 = vadd.f32 %v1880_v33, %v1816_v7  ;;  %v1872_v3 = vmul.f32 -2.0, %v6862_v49  ;;  %v6863_v16 = vmax.f32 %v5270_v17, 0.0  ;;  %v2727_v42 = vmul.f32 -0.013888889, %v5511_v9  ;;  %v5570_v33 = vpop.f32.mrf.mxu2 }
 0x1ae   : > { %6858 = vst [vmem:[#allocation69_spill] sm:$0xff] %v5526_v62  ;;  %v2854_v62 = vadd.f32 %v2790_v55, %v2726_v27  ;;  %v5557_v7 = vpop.eup %4094  ;;  %4098 = vpow2.f32 %v2092_v54  ;;  %v5560_v55 = vmul.f32 -0.055555556, %v5209_v11  ;;  %v2098_v17 = vmul.f32 1.442695, %v2022_v43  ;;  %v880_v27 = vpop.f32.mrf.mxu0  ;;  %v6881_v11 = vld [vmem:[#allocation37_spill] sm:$0xff] }
 0x1af   : > { %6859 = vst [vmem:[#allocation70_spill] sm:$0xff] %v5530_v21  ;;  %v1868_v21 = vmul.f32 -2.0, %v6861_v1  ;;  %v5548_v44 = vpack.c.bf16 %v1944_v58, %v1942_v15  ;;  %v5554_v1 = vmul.f32 -0.055555556, %v5205_v61  ;;  %v5563_v10 = vmul.f32 -0.055555556, %v5228_v4  ;;  %v993_v49 = vpop.f32.mrf.mxu1 }
 0x1b0   : > { %6860 = vst [vmem:[#allocation71_spill] sm:$0xff] %v5532_v48  ;;  %v1870_v48 = vmul.f32 -2.0, %v6863_v16  ;;  %v5550_v59 = vpack.c.bf16 %v2854_v62, %v2852_v53  ;;  %v5566_v62 = vmul.f32 -0.055555556, %v5245_v30  ;;  %v1936_v53 = vadd.f32 %v1872_v3, %v1808_v37 }
 0x1b1   : > { %6865 = vst [vmem:[#allocation73_spill] sm:$0xff] %v5557_v7  ;;  %v6866_v58 = vmax.f32 %v5312_v29, 0.0  ;;  %v2855_v45 = vadd.f32 %v2791_v25, %v2727_v42  ;;  %v5572_v15 = vmul.f32 1.442695, %v2024_v24  ;;  %v1932_v54 = vadd.f32 %v1868_v21, %v1804_v57  ;;  %v5590_v21 = vpop.eup %4096 }
 0x1b2   : > { %6864 = vst [vmem:[#allocation72_spill] sm:$0xff] %v5550_v59  ;;  %v1934_v43 = vadd.f32 %v1870_v48, %v1806_v2  ;;  %v6869_v4 = vmax.f32 %v5285_v56, 0.0  ;;  %v1809_v30 = vmul.f32 -0.0078125, %v5323_v19  ;;  %v1425_v37 = vmul.f32 -0.055555556, %v5506_v6  ;;  %v5588_v48 = vpop.f32.mrf.mxu3 }
 0x1b3   : > { %v1873_v61 = vmul.f32 -2.0, %v6866_v58  ;;  %6867 = vst [vmem:[#allocation74_spill] sm:$0xff] %v5570_v33  ;;  %v5579_v29 = vpack.c.bf16 %v2855_v45, %v2853_v13  ;;  %4100 = vpow2.f32 %v2098_v17  ;;  %v5583_v24 = vmul.f32 -0.055555556, %v5260_v18 }
 0x1b4   : > { %6868 = vst [vmem:[#allocation75_spill] sm:$0xff] %v5572_v15  ;;  %v1871_v16 = vmul.f32 -2.0, %v6869_v4  ;;  %v5586_v25 = vmul.f32 -0.055555556, %v5262_v23  ;;  %v1807_v56 = vmul.f32 -0.0078125, %v5306_v39  ;;  %v5593_v57 = vpack.c.bf16 %v1936_v53, %v1934_v43  ;;  %v5596_v2 = vpop.eup %4098 }
 0x1b5   : > { %6870 = vst [vmem:[#allocation76_spill] sm:$0xff] %v5579_v29  ;;  %v1937_v6 = vadd.f32 %v1873_v61, %v1809_v30  ;;  %v1423_v13 = vmul.f32 -0.055555556, %v5460_v35  ;;  %v5599_v42 = vmul.f32 -0.0078125, %v5262_v23  ;;  %v6873_v18 = vmax.f32 %v5247_v41, 0.0  ;;  %v6875_v30 = vld [vmem:[#allocation45_spill] sm:$0xff]  ;;  %v5637_v59 = vpop.f32.mrf.mxu2 }
 0x1b6   : > { %6871 = vst [vmem:[#allocation77_spill] sm:$0xff] %v5590_v21  ;;  %v1810_v58 = vmul.f32 -0.0078125, %v5365_v32  ;;  %v6874_v45 = vmax.f32 %v5341_v0, 0.0  ;;  %v5609_v53 = vpack.c.bf16 %v1932_v54, %v5252_v20  ;;  %v5612_v61 = vmul.f32 -0.055555556, %v5298_v47 }
 0x1b7   : > { %6872 = vst [vmem:[#allocation78_spill] sm:$0xff] %v5596_v2  ;;  %v5603_v17 = vmul.f32 -2.0, %v6873_v18  ;;  %v1935_v35 = vadd.f32 %v1871_v16, %v1807_v56  ;;  %v1473_v43 = vpack.c.bf16 %v1425_v37, %v1423_v13  ;;  %v5615_v23 = vmul.f32 -0.055555556, %v5306_v39  ;;  %v996_v21 = vpop.f32.mrf.mxu1 }
 0x1b8   : > { %v1874_v4 = vmul.f32 -2.0, %v6874_v45  ;;  %v5618_v41 = vmul.f32 -0.055555556, %v5365_v32  ;;  %v1812_v18 = vmul.f32 -0.0078125, %v6875_v30  ;;  %v6877_v3 = vmax.f32 %v6876_v51, 0.0  ;;  %v6880_v32 = vld [vmem:[#allocation43_spill] sm:$0xff] }
 0x1b9   : > { %v2030_v45 = vunpack.c.l.bf16 %v5593_v57  ;;  %v5624_v20 = vpack.c.bf16 %v1937_v6, %v1935_v35  ;;  %v1426_v47 = vmul.f32 -0.055555556, %v5511_v9  ;;  %v5627_v54 = vmax.f32 %v880_v27, 0.0  ;;  %v5629_v16 = vpop.eup %4100  ;;  %v883_v6 = vpop.f32.mrf.mxu0  ;;  %6883 = vst [vmem:[#allocation43_spill] sm:$0xff] %v5637_v59 }
 0x1ba   : > { %v1876_v0 = vmul.f32 -2.0, %v6877_v3  ;;  %6879 = vst [vmem:[#allocation44_spill] sm:$0xff] %v5629_v16  ;;  %v1938_v37 = vadd.f32 %v1874_v4, %v1810_v58  ;;  %v1811_v56 = vmul.f32 -0.0078125, %v6880_v32  ;;  %v6882_v51 = vmax.f32 %v6881_v11, 0.0 }
 0x1bb   : > { %6878 = vst [vmem:[#allocation45_spill] sm:$0xff] %v5627_v54  ;;  %v1424_v8 = vmul.f32 -0.055555556, %v5471_v22  ;;  %v1519_v35 = vunpack.c.l.bf16 %v1473_v43  ;;  %v1521_v29 = vunpack.c.h.bf16 %v1473_v43  ;;  %v1421_v27 = vmul.f32 -0.055555556, %v6875_v30 }
 0x1bc   : > { %v1875_v3 = vmul.f32 -2.0, %v6882_v51  ;;  %v1940_v2 = vadd.f32 %v1876_v0, %v1812_v18  ;;  %v6884_v39 = vmax.f32 %v5398_v34, 0.0  ;;  %v5642_v4 = vmax.f32 %v993_v49, 0.0  ;;  %v5651_v18 = vpop.f32.mrf.mxu3 }
 0x1bd   : > { %v2728_v13 = vmul.f32 -0.013888889, %v5627_v54  ;;  %v6741_v11 = vmax.f32 %v5588_v48, 0.0  ;;  %v1611_v51 = vmul.f32 1.442695, %v1519_v35  ;;  %v1474_v7 = vpack.c.bf16 %v1426_v47, %v1424_v8  ;;  %6887 = vst [vmem:[#allocation79_spill] sm:$0xff] %v5651_v18 }
 0x1be   : > { %v1877_v58 = vmul.f32 -2.0, %v6884_v39  ;;  %v6885_v16 = vmax.f32 %v5570_v33, 0.0  ;;  %v5648_v14 = vmax.f32 %v883_v6, 0.0  ;;  %v1615_v15 = vmul.f32 1.442695, %v1521_v29  ;;  %v6889_v39 = vld [vmem:[#allocation46_spill] sm:$0xff] }
 0x1bf   : > { %v6739_v30 = vmax.f32 %v5637_v59, 0.0  ;;  %v5653_v34 = vmax.f32 %v996_v21, 0.0  ;;  %4102 = vpow2.f32 %v1611_v51  ;;  %v1520_v49 = vunpack.c.l.bf16 %v1474_v7 }
 0x1c0   : > { %v2792_v43 = vmul.f32 -3.125, %v6885_v16  ;;  %6886 = vst [vmem:[#allocation37_spill] sm:$0xff] %v5648_v14  ;;  %v1522_v0 = vunpack.c.h.bf16 %v1474_v7  ;;  %v1813_v54 = vmul.f32 -0.0078125, %v6889_v39  ;;  %4104 = vpow2.f32 %v1615_v15 }
 0x1c1   : > { %6888 = vst [vmem:[#allocation80_spill] sm:$0xff] %v5653_v34  ;;  %v2730_v8 = vmul.f32 -0.013888889, %v5648_v14  ;;  %v2794_v47 = vmul.f32 -3.125, %v6739_v30  ;;  %v2793_v29 = vmul.f32 -3.125, %v6741_v11  ;;  %v6742_v35 = vmax.f32 %v5651_v18, 0.0 }
 0x1c2   : > { %v1613_v16 = vmul.f32 1.442695, %v1520_v49  ;;  %v1617_v6 = vmul.f32 1.442695, %v1522_v0  ;;  %v5662_v21 = vpack.c.bf16 %v1940_v2, %v1938_v37  ;;  %v1941_v51 = vadd.f32 %v1877_v58, %v1813_v54 }
 0x1c3   : > { %v2856_v33 = vadd.f32 %v2792_v43, %v2728_v13  ;;  %v2858_v7 = vadd.f32 %v2794_v47, %v2730_v8  ;;  %v2729_v52 = vmul.f32 -0.013888889, %v5642_v4  ;;  %v2731_v15 = vmul.f32 -0.013888889, %v5653_v34 }
 0x1c4   : > { %4106 = vpow2.f32 %v1613_v16  ;;  %v2795_v30 = vmul.f32 -3.125, %v6742_v35  ;;  %v2031_v59 = vunpack.c.l.bf16 %v5624_v20  ;;  %v1939_v11 = vadd.f32 %v1875_v3, %v1811_v56  ;;  %v999_v16 = vpop.f32.mrf.mxu1 }
 0x1c5   : > { %4108 = vpow2.f32 %v1617_v6  ;;  %v5669_v49 = vpack.c.bf16 %v2858_v7, %v2856_v33  ;;  %v4103_v0 = vpop.eup %4102  ;;  %v1417_v2 = vmul.f32 -0.055555556, %v5321_v40  ;;  %v2114_v54 = vmul.f32 1.442695, %v2030_v45 }
 0x1c6   : > { %v2857_v37 = vadd.f32 %v2793_v29, %v2729_v52  ;;  %v2859_v13 = vadd.f32 %v2795_v30, %v2731_v15  ;;  %v4105_v58 = vpop.eup %4104  ;;  %v1418_v43 = vmul.f32 -0.055555556, %v5323_v19  ;;  %v1420_v8 = vmul.f32 -0.055555556, %v6880_v32  ;;  %v886_v52 = vpop.f32.mrf.mxu0 }
 0x1c7   : > { %6890 = vst [vmem:[#allocation46_spill] sm:$0xff] %v5669_v49  ;;  %v5674_v47 = vpack.c.bf16 %v1941_v51, %v1939_v11  ;;  %v1471_v35 = vpack.c.bf16 %v1421_v27, %v5618_v41  ;;  %v2034_v56 = vunpack.c.l.bf16 %v5662_v21  ;;  %v6891_v33 = vmax.f32 %v5453_v28, 0.0 }
 0x1c8   : > { %v1697_v6 = vpack.c.bf16 %v4105_v58, %v4103_v0  ;;  %v5680_v40 = vpack.c.bf16 %v2859_v13, %v2857_v37  ;;  %v6893_v45 = vunpack.c.h.bf16 %v5593_v57  ;;  %v5686_v19 = vmul.f32 1.442695, %v2031_v59  ;;  %v1112_v58 = vpop.f32.mrf.mxu2 }
 0x1c9   : > { %v1879_v3 = vmul.f32 -2.0, %v6891_v33  ;;  %v6894_v32 = vmax.f32 %v5522_v31, 0.0  ;;  %v1339_v29 = vmax.f32 %v886_v52, 0.0  ;;  %4110 = vpow2.f32 %v2114_v54 }
 0x1ca   : > { %6892 = vst [vmem:[#allocation81_spill] sm:$0xff] %v5680_v40  ;;  %v5684_v30 = vmul.f32 1.442695, %v6893_v45  ;;  %v4107_v41 = vpop.eup %4106  ;;  %v1422_v27 = vmul.f32 -0.055555556, %v6889_v39  ;;  %v1815_v28 = vmul.f32 -0.0078125, %v5471_v22  ;;  %1726 = vmatpush.bf16.msrb.mxu0 %v1697_v6  ;;  %v1515_v0 = vunpack.c.l.bf16 %v1471_v35  ;;  %v1225_v40 = vpop.f32.mrf.mxu3 }
 0x1cb   : > { %v1881_v11 = vmul.f32 -2.0, %v6894_v32  ;;  %v1340_v51 = vmax.f32 %v999_v16, 0.0  ;;  %v4109_v7 = vpop.eup %4108  ;;  %v1817_v57 = vmul.f32 -0.0078125, %v5511_v9  ;;  %v1517_v59 = vunpack.c.h.bf16 %v1471_v35 }
 0x1cc   : > { %v5694_v37 = vmul.f32 1.442695, %v2034_v56  ;;  %v5697_v13 = vadd.f32 %v1879_v3, %v1815_v28  ;;  %v1698_v54 = vpack.c.bf16 %v4109_v7, %v4107_v41  ;;  %v1431_v16 = vmul.f32 -0.055555556, %v1339_v29 }
 0x1cd   : > { %v5700_v22 = vadd.f32 %v1881_v11, %v1817_v57  ;;  %v2342_v33 = vmul.f32 -0.125, %v1339_v29  ;;  %v5702_v6 = vmul.f32 -0.055555556, %v1340_v51  ;;  %v1472_v9 = vpack.c.bf16 %v1422_v27, %v1420_v8 }
 0x1ce   : > { %1752 = vmatpush.bf16.msrb.mxu2 %v1698_v54  ;;  %v1469_v35 = vpack.c.bf16 %v1417_v2, %v5612_v61  ;;  %v1470_v56 = vpack.c.bf16 %v1418_v43, %v5615_v23  ;;  %v2343_v52 = vmul.f32 -0.125, %v1340_v51  ;;  %v1603_v45 = vmul.f32 1.442695, %v1515_v0  ;;  %v889_v43 = vpop.f32.mrf.mxu0 }
 0x1cf   : > { %v1607_v3 = vmul.f32 1.442695, %v1517_v59  ;;  %v1341_v32 = vmax.f32 %v1112_v58, 0.0  ;;  %v5706_v41 = vpop.eup %4110  ;;  %v1516_v28 = vunpack.c.l.bf16 %v1472_v9  ;;  %v1518_v7 = vunpack.c.h.bf16 %v1472_v9 }
 0x1d0   : > { %v1511_v11 = vunpack.c.l.bf16 %v1469_v35  ;;  %v1822_v57 = vmul.f32 -0.0078125, %v1339_v29  ;;  %v1513_v39 = vunpack.c.h.bf16 %v1469_v35  ;;  %v1512_v31 = vunpack.c.l.bf16 %v1470_v56 }
 0x1d1   : > { %v1514_v54 = vunpack.c.h.bf16 %v1470_v56  ;;  %v2732_v15 = vmul.f32 -0.013888889, %v1339_v29  ;;  %v1605_v61 = vmul.f32 1.442695, %v1516_v28  ;;  %v1609_v2 = vmul.f32 1.442695, %v1518_v7  ;;  %v1002_v29 = vpop.f32.mrf.mxu1 }
 0x1d2   : > { %v1595_v23 = vmul.f32 1.442695, %v1511_v11  ;;  %4112 = vpow2.f32 %v1603_v45  ;;  %v1599_v27 = vmul.f32 1.442695, %v1513_v39  ;;  %v1597_v0 = vmul.f32 1.442695, %v1512_v31 }
 0x1d3   : > { %v1601_v59 = vmul.f32 1.442695, %v1514_v54  ;;  %4114 = vpow2.f32 %v1607_v3  ;;  %v1886_v58 = vmul.f32 -2.0, %v1341_v32  ;;  %v2796_v9 = vmul.f32 -3.125, %v1341_v32 }
 0x1d4   : > { %v1342_v49 = vmax.f32 %v1225_v40, 0.0  ;;  %4116 = vpow2.f32 %v1605_v61  ;;  %v1823_v35 = vmul.f32 -0.0078125, %v1340_v51  ;;  %v2733_v18 = vmul.f32 -0.013888889, %v1340_v51 }
 0x1d5   : > { %v5709_v56 = vmax.f32 %v889_v43, 0.0  ;;  %4118 = vpow2.f32 %v1609_v2  ;;  %v5711_v8 = vadd.f32 %v1886_v58, %v1822_v57  ;;  %v5713_v28 = vadd.f32 %v2796_v9, %v2732_v15 }
 0x1d6   : > { %v1887_v7 = vmul.f32 -2.0, %v1342_v49  ;;  %4120 = vpow2.f32 %v1595_v23  ;;  %v2797_v39 = vmul.f32 -3.125, %v1342_v49  ;;  %v1344_v3 = vmax.f32 %v1002_v29, 0.0 }
 0x1d7   : > { %v1433_v31 = vmul.f32 -0.055555556, %v5709_v56  ;;  %v2344_v45 = vmul.f32 -0.125, %v5709_v56  ;;  %4122 = vpow2.f32 %v1599_v27  ;;  %v1467_v51 = vpack.c.bf16 %v5583_v24, %v5563_v10 }
 0x1d8   : > { %v5717_v40 = vadd.f32 %v1887_v7, %v1823_v35  ;;  %v4113_v32 = vpop.eup %4112  ;;  %4124 = vpow2.f32 %v1597_v0  ;;  %v5721_v11 = vadd.f32 %v2797_v39, %v2733_v18  ;;  %v1434_v54 = vmul.f32 -0.055555556, %v1344_v3  ;;  %v1115_v39 = vpop.f32.mrf.mxu2 }
 0x1d9   : > { %v5723_v15 = vpack.c.bf16 %v1433_v31, %v1431_v16  ;;  %v5725_v57 = vpack.c.bf16 %v2344_v45, %v2342_v33  ;;  %v4115_v49 = vpop.eup %4114  ;;  %4126 = vpow2.f32 %v1601_v59  ;;  %v2345_v61 = vmul.f32 -0.125, %v1344_v3 }
 0x1da   : > { %v1507_v2 = vunpack.c.l.bf16 %v1467_v51  ;;  %v4117_v23 = vpop.eup %4116  ;;  %v1695_v43 = vpack.c.bf16 %v4115_v49, %v4113_v32  ;;  %v1509_v27 = vunpack.c.h.bf16 %v1467_v51  ;;  %v1468_v58 = vpack.c.bf16 %v5586_v25, %v5566_v62  ;;  %v1228_v51 = vpop.f32.mrf.mxu3 }
 0x1db   : > { %6895 = vst [vmem:[#allocation82_spill] sm:$0xff] %v5723_v15  ;;  %v1465_v10 = vpack.c.bf16 %v5554_v1, %v5496_v60  ;;  %v4119_v24 = vpop.eup %4118  ;;  %v5732_v18 = vpack.c.bf16 %v1434_v54, %v5702_v6  ;;  %v5734_v16 = vpack.c.bf16 %v2345_v61, %v2343_v52  ;;  %v1466_v0 = vpack.c.bf16 %v5560_v55, %v5501_v26  ;;  %v6979_v15 = vld [vmem:[#allocation43_spill] sm:$0xff] }
 0x1dc   : > { %6896 = vst [vmem:[#allocation83_spill] sm:$0xff] %v5725_v57  ;;  %v1587_v33 = vmul.f32 1.442695, %v1507_v2  ;;  %v4121_v59 = vpop.eup %4120  ;;  %1727 = vmatpush.bf16.msrb.mxu0 %v1695_v43  ;;  %v1696_v9 = vpack.c.bf16 %v4119_v24, %v4117_v23  ;;  %v1591_v35 = vmul.f32 1.442695, %v1509_v27  ;;  %v1508_v29 = vunpack.c.l.bf16 %v1468_v58 }
 0x1dd   : > { %6897 = vst [vmem:[#allocation84_spill] sm:$0xff] %v5732_v18  ;;  %v1510_v7 = vunpack.c.h.bf16 %v1468_v58  ;;  %v4123_v62 = vpop.eup %4122  ;;  %v1503_v25 = vunpack.c.l.bf16 %v1465_v10  ;;  %v1505_v60 = vunpack.c.h.bf16 %v1465_v10  ;;  %v1504_v1 = vunpack.c.l.bf16 %v1466_v0 }
 0x1de   : > { %6898 = vst [vmem:[#allocation85_spill] sm:$0xff] %v5734_v16  ;;  %4128 = vpow2.f32 %v1587_v33  ;;  %v4125_v6 = vpop.eup %4124  ;;  %1753 = vmatpush.bf16.msrb.mxu2 %v1696_v9  ;;  %v1693_v52 = vpack.c.bf16 %v4123_v62, %v4121_v59  ;;  %v1589_v31 = vmul.f32 1.442695, %v1508_v29  ;;  %v1506_v49 = vunpack.c.h.bf16 %v1466_v0 }
 0x1df   : > { %4130 = vpow2.f32 %v1591_v35  ;;  %v1593_v45 = vmul.f32 1.442695, %v1510_v7  ;;  %v4127_v26 = vpop.eup %4126  ;;  %v1579_v55 = vmul.f32 1.442695, %v1503_v25  ;;  %v1583_v32 = vmul.f32 1.442695, %v1505_v60 }
 0x1e0   : > { %v1581_v54 = vmul.f32 1.442695, %v1504_v1  ;;  %1728 = vmatpush.bf16.msrb.mxu0 %v1693_v52  ;;  %v1694_v61 = vpack.c.bf16 %v4127_v26, %v4125_v6  ;;  %4132 = vpow2.f32 %v1589_v31  ;;  %v1345_v2 = vmax.f32 %v1115_v39, 0.0 }
 0x1e1   : > { %v1824_v23 = vmul.f32 -0.0078125, %v5709_v56  ;;  %4134 = vpow2.f32 %v1593_v45  ;;  %v1585_v43 = vmul.f32 1.442695, %v1506_v49  ;;  %v2734_v27 = vmul.f32 -0.013888889, %v5709_v56  ;;  %v1005_v49 = vpop.f32.mrf.mxu1 }
 0x1e2   : > { %v1346_v58 = vmax.f32 %v1228_v51, 0.0  ;;  %1754 = vmatpush.bf16.msrb.mxu2 %v1694_v61  ;;  %4136 = vpow2.f32 %v1579_v55  ;;  %v1888_v10 = vmul.f32 -2.0, %v1345_v2  ;;  %v2798_v24 = vmul.f32 -3.125, %v1345_v2 }
 0x1e3   : > { %v1825_v33 = vmul.f32 -0.0078125, %v1344_v3  ;;  %4138 = vpow2.f32 %v1583_v32  ;;  %v2735_v9 = vmul.f32 -0.013888889, %v1344_v3  ;;  %v1993_v7 = vpack.c.bf16 %v5700_v22, %v5697_v13 }
 0x1e4   : > { %v4129_v59 = vpop.eup %4128  ;;  %v1889_v0 = vmul.f32 -2.0, %v1346_v58  ;;  %v2799_v35 = vmul.f32 -3.125, %v1346_v58  ;;  %4140 = vpow2.f32 %v1581_v54  ;;  %v1952_v62 = vadd.f32 %v1888_v10, %v1824_v23  ;;  %v892_v23 = vpop.f32.mrf.mxu0 }
 0x1e5   : > { %v4131_v29 = vpop.eup %4130  ;;  %v2862_v25 = vadd.f32 %v2798_v24, %v2734_v27  ;;  %4142 = vpow2.f32 %v1585_v43  ;;  %v6899_v6 = vunpack.c.h.bf16 %v5662_v21  ;;  %v6901_v22 = vunpack.c.l.bf16 %v5674_v47 }
 0x1e6   : > { %v1691_v60 = vpack.c.bf16 %v4131_v29, %v4129_v59  ;;  %v1953_v56 = vadd.f32 %v1889_v0, %v1825_v33  ;;  %v2863_v1 = vadd.f32 %v2799_v35, %v2735_v9  ;;  %v4133_v39 = vpop.eup %4132  ;;  %4144 = vpow2.f32 %v5684_v30  ;;  %v1118_v29 = vpop.f32.mrf.mxu2 }
 0x1e7   : > { %v2126_v52 = vmul.f32 1.442695, %v6899_v6  ;;  %v5746_v3 = vpack.c.bf16 %v1952_v62, %v5711_v8  ;;  %v5749_v31 = vpack.c.bf16 %v2862_v25, %v5713_v28  ;;  %v4135_v13 = vpop.eup %4134  ;;  %v2124_v45 = vmul.f32 1.442695, %v6901_v22  ;;  %v6908_v22 = vld [vmem:[#allocation60_spill] sm:$0xff] }
 0x1e8   : > { %1729 = vmatpush.bf16.msrb.mxu0 %v1691_v60  ;;  %v5754_v51 = vpack.c.bf16 %v1953_v56, %v5717_v40  ;;  %v5757_v26 = vpack.c.bf16 %v2863_v1, %v5721_v11  ;;  %v1463_v21 = vpack.c.bf16 %v5486_v5, %v5477_v63  ;;  %v4137_v30 = vpop.eup %4136  ;;  %v1933_v8 = vadd.f32 %v5603_v17, %v5599_v42 }
 0x1e9   : > { %6900 = vst [vmem:[#allocation86_spill] sm:$0xff] %v5749_v31  ;;  %4146 = vpow2.f32 %v5686_v19  ;;  %v6903_v28 = vunpack.c.l.bf16 %v5548_v44  ;;  %v1692_v32 = vpack.c.bf16 %v4135_v13, %v4133_v39  ;;  %v4139_v54 = vpop.eup %4138  ;;  %v6904_v40 = vunpack.c.l.bf16 %v5238_v46  ;;  %v6907_v13 = vld [vmem:[#allocation58_spill] sm:$0xff] }
 0x1ea   : > { %6902 = vst [vmem:[#allocation87_spill] sm:$0xff] %v5757_v26  ;;  %4148 = vpow2.f32 %v5694_v37  ;;  %v6905_v63 = vunpack.c.h.bf16 %v5548_v44  ;;  %v2039_v11 = vunpack.c.l.bf16 %v1993_v7  ;;  %v4141_v2 = vpop.eup %4140  ;;  %v2026_v42 = vunpack.c.l.bf16 %v5609_v53  ;;  %v6906_v37 = vld [vmem:[#allocation30_spill] sm:$0xff] }
 0x1eb   : > { %v2130_v55 = vmul.f32 1.442695, %v6903_v28  ;;  %v5768_v61 = vmul.f32 1.442695, %v6904_v40  ;;  %4150 = vpow2.f32 %v2126_v52  ;;  %v2041_v17 = vunpack.c.h.bf16 %v1993_v7  ;;  %1755 = vmatpush.bf16.msrb.mxu2 %v1692_v32  ;;  %v4143_v43 = vpop.eup %4142  ;;  %v6962_v26 = vld [vmem:[#allocation38_spill] sm:$0xff] }
 0x1ec   : > { %v2134_v5 = vmul.f32 1.442695, %v6905_v63  ;;  %v1689_v19 = vpack.c.bf16 %v4139_v54, %v4137_v30  ;;  %v2028_v27 = vunpack.c.h.bf16 %v5609_v53  ;;  %4152 = vpow2.f32 %v2124_v45  ;;  %v5775_v24 = vpop.eup %4144 }
 0x1ed   : > { %v1347_v58 = vmax.f32 %v892_v23, 0.0  ;;  %v1348_v10 = vmax.f32 %v1005_v49, 0.0  ;;  %v5778_v44 = vpack.c.bf16 %v1933_v8, %v6906_v37  ;;  %v2033_v33 = vunpack.c.h.bf16 %v5624_v20 }
 0x1ee   : > { %4154 = vpow2.f32 %v2130_v55  ;;  %1730 = vmatpush.bf16.msrb.mxu0 %v1689_v19  ;;  %v1690_v59 = vpack.c.bf16 %v4143_v43, %v4141_v2  ;;  %v2037_v0 = vunpack.c.h.bf16 %v5674_v47  ;;  %v2132_v9 = vmul.f32 1.442695, %v2039_v11  ;;  %v1231_v11 = vpop.f32.mrf.mxu3 }
 0x1ef   : > { %4156 = vpow2.f32 %v2134_v5  ;;  %v1499_v35 = vunpack.c.l.bf16 %v1463_v21  ;;  %v5782_v7 = vpop.eup %4146  ;;  %v5784_v62 = vmul.f32 1.442695, %v2041_v17  ;;  %v1501_v25 = vunpack.c.h.bf16 %v1463_v21 }
 0x1f0   : > { %1756 = vmatpush.bf16.msrb.mxu2 %v1690_v59  ;;  %v1464_v60 = vpack.c.bf16 %v5489_v12, %v5480_v36  ;;  %v1461_v56 = vpack.c.bf16 %v5463_v38, %v5449_v50  ;;  %v5790_v1 = vpop.eup %4148  ;;  %v5792_v39 = vmul.f32 -0.055555556, %v1347_v58  ;;  %v5794_v6 = vmul.f32 -0.125, %v1347_v58 }
 0x1f1   : > { %v5796_v52 = vmul.f32 -0.055555556, %v1348_v10  ;;  %v1462_v45 = vpack.c.bf16 %v6908_v22, %v6907_v13  ;;  %v5800_v30 = vpop.eup %4150  ;;  %v1571_v21 = vmul.f32 1.442695, %v1499_v35  ;;  %v1349_v36 = vmax.f32 %v1118_v29, 0.0 }
 0x1f2   : > { %v1500_v8 = vunpack.c.l.bf16 %v1464_v60  ;;  %v1502_v28 = vunpack.c.h.bf16 %v1464_v60  ;;  %v5802_v12 = vpop.eup %4152  ;;  %v1575_v50 = vmul.f32 1.442695, %v1501_v25  ;;  %v1495_v38 = vunpack.c.l.bf16 %v1461_v56  ;;  %v895_v60 = vpop.f32.mrf.mxu0 }
 0x1f3   : > { %v1497_v55 = vunpack.c.h.bf16 %v1461_v56  ;;  %v1496_v32 = vunpack.c.l.bf16 %v1462_v45  ;;  %v2347_v54 = vmul.f32 -0.125, %v1348_v10  ;;  %v1498_v5 = vunpack.c.h.bf16 %v1462_v45  ;;  %v1008_v56 = vpop.f32.mrf.mxu1 }
 0x1f4   : > { %v5804_v49 = vpop.eup %4154  ;;  %v1573_v40 = vmul.f32 1.442695, %v1500_v8  ;;  %v1577_v63 = vmul.f32 1.442695, %v1502_v28  ;;  %4158 = vpow2.f32 %v2132_v9  ;;  %v1563_v17 = vmul.f32 1.442695, %v1495_v38 }
 0x1f5   : > { %v5806_v2 = vpop.eup %4156  ;;  %v1567_v19 = vmul.f32 1.442695, %v1497_v55  ;;  %v1565_v23 = vmul.f32 1.442695, %v1496_v32  ;;  %4160 = vpow2.f32 %v1571_v21  ;;  %v1569_v43 = vmul.f32 1.442695, %v1498_v5 }
 0x1f6   : > { %v1826_v37 = vmul.f32 -0.0078125, %v1347_v58  ;;  %v1890_v59 = vmul.f32 -2.0, %v1349_v36  ;;  %4162 = vpow2.f32 %v1575_v50  ;;  %v2736_v35 = vmul.f32 -0.013888889, %v1347_v58  ;;  %v6909_v55 = vld [vmem:[#allocation40_spill] sm:$0xff]  ;;  %v6910_v50 = vld [vmem:[#allocation42_spill] sm:$0xff] }
 0x1f7   : > { %v2800_v29 = vmul.f32 -3.125, %v1349_v36  ;;  %v1350_v25 = vmax.f32 %v1231_v11, 0.0  ;;  %4164 = vpow2.f32 %v1573_v40  ;;  %v1827_v22 = vmul.f32 -0.0078125, %v1348_v10  ;;  %v6911_v5 = vld [vmem:[#allocation41_spill] sm:$0xff] }
 0x1f8   : > { %v5808_v13 = vadd.f32 %v1890_v59, %v1826_v37  ;;  %v2737_v45 = vmul.f32 -0.013888889, %v1348_v10  ;;  %4166 = vpow2.f32 %v1577_v63  ;;  %v1351_v21 = vmax.f32 %v895_v60, 0.0  ;;  %v6912_v10 = vld [vmem:[#allocation54_spill] sm:$0xff] }
 0x1f9   : > { %v5810_v9 = vadd.f32 %v2800_v29, %v2736_v35  ;;  %v1891_v8 = vmul.f32 -2.0, %v1350_v25  ;;  %v2801_v28 = vmul.f32 -3.125, %v1350_v25  ;;  %4168 = vpow2.f32 %v1563_v17 }
 0x1fa   : > { %v1352_v38 = vmax.f32 %v1008_v56, 0.0  ;;  %v1459_v58 = vpack.c.bf16 %v6910_v50, %v6909_v55  ;;  %v5814_v36 = vpop.eup %4158  ;;  %4170 = vpow2.f32 %v1567_v19  ;;  %v1460_v63 = vpack.c.bf16 %v6912_v10, %v6911_v5  ;;  %v1121_v5 = vpop.f32.mrf.mxu2 }
 0x1fb   : > { %v5816_v32 = vadd.f32 %v1891_v8, %v1827_v22  ;;  %v5818_v40 = vadd.f32 %v2801_v28, %v2737_v45  ;;  %v4161_v11 = vpop.eup %4160  ;;  %4172 = vpow2.f32 %v1565_v23  ;;  %v1437_v37 = vmul.f32 -0.055555556, %v1351_v21 }
 0x1fc   : > { %v2348_v59 = vmul.f32 -0.125, %v1351_v21  ;;  %v1438_v17 = vmul.f32 -0.055555556, %v1352_v38  ;;  %v4163_v35 = vpop.eup %4162  ;;  %4174 = vpow2.f32 %v1569_v43  ;;  %v2349_v29 = vmul.f32 -0.125, %v1352_v38 }
 0x1fd   : > { %v1491_v25 = vunpack.c.l.bf16 %v1459_v58  ;;  %v1493_v60 = vunpack.c.h.bf16 %v1459_v58  ;;  %v4165_v56 = vpop.eup %4164  ;;  %v1687_v55 = vpack.c.bf16 %v4163_v35, %v4161_v11  ;;  %v5823_v19 = vpack.c.bf16 %v1437_v37, %v5792_v39 }
 0x1fe   : > { %v5826_v22 = vpack.c.bf16 %v2348_v59, %v5794_v6  ;;  %v5829_v45 = vpack.c.bf16 %v1438_v17, %v5796_v52  ;;  %v4167_v23 = vpop.eup %4166  ;;  %v5831_v8 = vpack.c.bf16 %v2349_v29, %v2347_v54  ;;  %v1492_v43 = vunpack.c.l.bf16 %v1460_v63  ;;  %v1234_v6 = vpop.f32.mrf.mxu3 }
 0x1ff   : > { %6913 = vst [vmem:[#allocation30_spill] sm:$0xff] %v5823_v19  ;;  %v1555_v28 = vmul.f32 1.442695, %v1491_v25  ;;  %v1559_v50 = vmul.f32 1.442695, %v1493_v60  ;;  %v4169_v10 = vpop.eup %4168  ;;  %v2027_v58 = vunpack.c.l.bf16 %v5778_v44  ;;  %4176 = vpow2.f32 %v5784_v62  ;;  %1731 = vmatpush.bf16.msrb.mxu0 %v1687_v55  ;;  %v6982_v19 = vld [vmem:[#allocation26_spill] sm:$0xff] }
 0x200   : > { %6914 = vst [vmem:[#allocation58_spill] sm:$0xff] %v5826_v22  ;;  %v1688_v39 = vpack.c.bf16 %v4167_v23, %v4165_v56  ;;  %v1494_v11 = vunpack.c.h.bf16 %v1460_v63  ;;  %v4171_v37 = vpop.eup %4170  ;;  %v2120_v52 = vmul.f32 1.442695, %v2033_v33  ;;  %v2128_v54 = vmul.f32 1.442695, %v2037_v0 }
 0x201   : > { %6915 = vst [vmem:[#allocation60_spill] sm:$0xff] %v5829_v45  ;;  %4178 = vpow2.f32 %v1555_v28  ;;  %v1557_v59 = vmul.f32 1.442695, %v1492_v43  ;;  %v4173_v17 = vpop.eup %4172  ;;  %v1685_v35 = vpack.c.bf16 %v4171_v37, %v4169_v10  ;;  %v1353_v25 = vmax.f32 %v1121_v5, 0.0  ;;  %v898_v43 = vpop.f32.mrf.mxu0 }
 0x202   : > { %6916 = vst [vmem:[#allocation40_spill] sm:$0xff] %v5831_v8  ;;  %1757 = vmatpush.bf16.msrb.mxu2 %v1688_v39  ;;  %4180 = vpow2.f32 %v1559_v50  ;;  %v1561_v29 = vmul.f32 1.442695, %v1494_v11  ;;  %v4175_v62 = vpop.eup %4174  ;;  %v1828_v60 = vmul.f32 -0.0078125, %v1351_v21  ;;  %v2738_v63 = vmul.f32 -0.013888889, %v1351_v21  ;;  %v1011_v11 = vpop.f32.mrf.mxu1 }
 0x203   : > { %4182 = vpow2.f32 %v1557_v59  ;;  %v1354_v56 = vmax.f32 %v1234_v6, 0.0  ;;  %1732 = vmatpush.bf16.msrb.mxu0 %v1685_v35  ;;  %v1686_v55 = vpack.c.bf16 %v4175_v62, %v4173_v17  ;;  %v1892_v20 = vmul.f32 -2.0, %v1353_v25  ;;  %v6917_v35 = vld [vmem:[#allocation75_spill] sm:$0xff] }
 0x204   : > { %4184 = vpow2.f32 %v1561_v29  ;;  %v2802_v33 = vmul.f32 -3.125, %v1353_v25  ;;  %v1829_v47 = vmul.f32 -0.0078125, %v1352_v38  ;;  %v2739_v23 = vmul.f32 -0.013888889, %v1352_v38 }
 0x205   : > { %v1893_v0 = vmul.f32 -2.0, %v1354_v56  ;;  %v2803_v28 = vmul.f32 -3.125, %v1354_v56  ;;  %v4177_v39 = vpop.eup %4176  ;;  %v2029_v50 = vunpack.c.h.bf16 %v5778_v44  ;;  %4186 = vpow2.f32 %v2128_v54  ;;  %v6920_v56 = vld [vmem:[#allocation24_spill] sm:$0xff] }
 0x206   : > { %1758 = vmatpush.bf16.msrb.mxu2 %v1686_v55  ;;  %v1956_v5 = vadd.f32 %v1892_v20, %v1828_v60  ;;  %v2866_v10 = vadd.f32 %v2802_v33, %v2738_v63  ;;  %v2106_v6 = vmul.f32 1.442695, %v2026_v42  ;;  %4188 = vpow2.f32 %v2120_v52  ;;  %v1124_v60 = vpop.f32.mrf.mxu2 }
 0x207   : > { %v4179_v21 = vpop.eup %4178  ;;  %v1957_v37 = vadd.f32 %v1893_v0, %v1829_v47  ;;  %v2867_v59 = vadd.f32 %v2803_v28, %v2739_v23  ;;  %4190 = vpow2.f32 %v6917_v35  ;;  %v2110_v38 = vmul.f32 1.442695, %v2028_v27  ;;  %v6922_v0 = vld [vmem:[#allocation23_spill] sm:$0xff] }
 0x208   : > { %v4181_v17 = vpop.eup %4180  ;;  %v5846_v44 = vpack.c.bf16 %v1956_v5, %v5808_v13  ;;  %v5849_v54 = vpack.c.bf16 %v2866_v10, %v5810_v9  ;;  %v2108_v25 = vmul.f32 1.442695, %v2027_v58  ;;  %v2021_v53 = vunpack.c.h.bf16 %v6920_v56  ;;  %v1237_v9 = vpop.f32.mrf.mxu3 }
 0x209   : > { %v4183_v29 = vpop.eup %4182  ;;  %v1683_v62 = vpack.c.bf16 %v4181_v17, %v4179_v21  ;;  %v5852_v42 = vpack.c.bf16 %v1957_v37, %v5816_v32  ;;  %v5855_v52 = vpack.c.bf16 %v2867_v59, %v5818_v40  ;;  %4192 = vpow2.f32 %v5768_v61  ;;  %v901_v21 = vpop.f32.mrf.mxu0 }
 0x20a   : > { %6918 = vst [vmem:[#allocation42_spill] sm:$0xff] %v5849_v54  ;;  %v4185_v63 = vpop.eup %4184  ;;  %v2112_v27 = vmul.f32 1.442695, %v2029_v50  ;;  %v2216_v13 = vpack.c.bf16 %v5806_v2, %v5804_v49  ;;  %v6921_v58 = vunpack.c.h.bf16 %v5238_v46  ;;  %4194 = vpow2.f32 %v2106_v6  ;;  %v6924_v50 = vld [vmem:[#allocation25_spill] sm:$0xff]  ;;  %v1014_v35 = vpop.f32.mrf.mxu1 }
 0x20b   : > { %6919 = vst [vmem:[#allocation41_spill] sm:$0xff] %v5855_v52  ;;  %1733 = vmatpush.bf16.msrb.mxu0 %v1683_v62  ;;  %v1684_v32 = vpack.c.bf16 %v4185_v63, %v4183_v29  ;;  %v1355_v20 = vmax.f32 %v898_v43, 0.0  ;;  %v4187_v40 = vpop.eup %4186  ;;  %4196 = vpow2.f32 %v2110_v38  ;;  %v2217_v33 = vpack.c.bf16 %v4177_v39, %v5814_v36 }
 0x20c   : > { %v2104_v55 = vmul.f32 1.442695, %v6921_v58  ;;  %v4189_v47 = vpop.eup %4188  ;;  %v2930_v61 = vunpack.c.h.bf16 %v6922_v0  ;;  %v6923_v23 = vunpack.c.l.bf16 %v6922_v0  ;;  %4198 = vpow2.f32 %v2108_v25 }
 0x20d   : > { %1759 = vmatpush.bf16.msrb.mxu2 %v1684_v32  ;;  %v1356_v46 = vmax.f32 %v1011_v11, 0.0  ;;  %v5869_v49 = vpop.eup %4190  ;;  %v2096_v2 = vmul.f32 1.442695, %v2021_v53  ;;  %v2929_v43 = vunpack.c.l.bf16 %v6924_v50  ;;  %4200 = vpow2.f32 %v2112_v27 }
 0x20e   : > { %v5867_v28 = vmul.f32 1.442695, %v6923_v23  ;;  %v2214_v36 = vpack.c.bf16 %v5800_v30, %v5790_v1  ;;  %4202 = vpow2.f32 %v2104_v55  ;;  %v2215_v39 = vpack.c.bf16 %v4187_v40, %v5802_v12 }
 0x20f   : > { %2244 = vmatpush.bf16.msra.mxu0 %v2216_v13  ;;  %v1357_v5 = vmax.f32 %v1124_v60, 0.0  ;;  %v1830_v10 = vmul.f32 -0.0078125, %v1355_v20  ;;  %v5875_v6 = vpop.eup %4192  ;;  %v2212_v11 = vpack.c.bf16 %v5775_v24, %v5706_v41  ;;  %v2213_v37 = vpack.c.bf16 %v4189_v47, %v5782_v7  ;;  %v1127_v7 = vpop.f32.mrf.mxu2 }
 0x210   : > { %v2740_v59 = vmul.f32 -0.013888889, %v1355_v20  ;;  %v1358_v17 = vmax.f32 %v1237_v9, 0.0  ;;  %v4195_v38 = vpop.eup %4194  ;;  %v1439_v29 = vmul.f32 -0.055555556, %v1355_v20  ;;  %v1831_v25 = vmul.f32 -0.0078125, %v1356_v46 }
 0x211   : > { %2270 = vmatpush.bf16.msra.mxu2 %v2217_v33  ;;  %v1894_v1 = vmul.f32 -2.0, %v1357_v5  ;;  %v2804_v30 = vmul.f32 -3.125, %v1357_v5  ;;  %v4197_v12 = vpop.eup %4196  ;;  %v2741_v60 = vmul.f32 -0.013888889, %v1356_v46  ;;  %v1359_v56 = vmax.f32 %v901_v21, 0.0  ;;  %v1240_v33 = vpop.f32.mrf.mxu3 }
 0x212   : > { %v1895_v62 = vmul.f32 -2.0, %v1358_v17  ;;  %v2805_v63 = vmul.f32 -3.125, %v1358_v17  ;;  %v4199_v53 = vpop.eup %4198  ;;  %v2350_v27 = vmul.f32 -0.125, %v1355_v20  ;;  %v1360_v24 = vmax.f32 %v1014_v35, 0.0 }
 0x213   : > { %2245 = vmatpush.bf16.msra.mxu0 %v2214_v36  ;;  %v1958_v13 = vadd.f32 %v1894_v1, %v1830_v10  ;;  %v2868_v41 = vadd.f32 %v2804_v30, %v2740_v59  ;;  %v4201_v58 = vpop.eup %4200  ;;  %v1440_v9 = vmul.f32 -0.055555556, %v1356_v46  ;;  %v1441_v40 = vmul.f32 -0.055555556, %v1359_v56 }
 0x214   : > { %v1959_v55 = vadd.f32 %v1895_v62, %v1831_v25  ;;  %v2869_v32 = vadd.f32 %v2805_v63, %v2741_v60  ;;  %v4203_v47 = vpop.eup %4202  ;;  %v2351_v23 = vmul.f32 -0.125, %v1356_v46  ;;  %v2352_v36 = vmul.f32 -0.125, %v1359_v56 }
 0x215   : > { %2271 = vmatpush.bf16.msra.mxu2 %v2215_v39  ;;  %v1442_v39 = vmul.f32 -0.055555556, %v1360_v24  ;;  %v2353_v5 = vmul.f32 -0.125, %v1360_v24  ;;  %4204 = vpow2.f32 %v2096_v2  ;;  %v2931_v21 = vunpack.c.h.bf16 %v6924_v50 }
 0x216   : > { %v2210_v20 = vpack.c.bf16 %v4197_v12, %v4195_v38  ;;  %v5881_v10 = vpack.c.bf16 %v1441_v40, %v1439_v29  ;;  %v2211_v59 = vpack.c.bf16 %v4201_v58, %v4199_v53  ;;  %v5883_v17 = vpack.c.bf16 %v2352_v36, %v2350_v27  ;;  %v6930_v40 = vld [vmem:[#allocation28_spill] sm:$0xff]  ;;  %v6931_v36 = vld [vmem:[#allocation73_spill] sm:$0xff] }
 0x217   : > { %2246 = vmatpush.bf16.msra.mxu0 %v2212_v11  ;;  %v5885_v11 = vpack.c.bf16 %v1442_v39, %v1440_v9  ;;  %v5887_v35 = vpack.c.bf16 %v2353_v5, %v2351_v23  ;;  %v1361_v46 = vmax.f32 %v1127_v7, 0.0  ;;  %v1832_v1 = vmul.f32 -0.0078125, %v1359_v56  ;;  %v904_v9 = vpop.f32.mrf.mxu0  ;;  %v6932_v39 = vld [vmem:[#allocation77_spill] sm:$0xff] }
 0x218   : > { %6925 = vst [vmem:[#allocation54_spill] sm:$0xff] %v5881_v10  ;;  %v2742_v30 = vmul.f32 -0.013888889, %v1359_v56  ;;  %v1362_v25 = vmax.f32 %v1240_v33, 0.0  ;;  %v3004_v2 = vmul.f32 1.442695, %v2930_v61  ;;  %4206 = vpow2.f32 %v5867_v28 }
 0x219   : > { %2272 = vmatpush.bf16.msra.mxu2 %v2213_v37  ;;  %6926 = vst [vmem:[#allocation75_spill] sm:$0xff] %v5883_v17  ;;  %v6929_v37 = vld [vmem:[#allocation44_spill] sm:$0xff]  ;;  %v1833_v29 = vmul.f32 -0.0078125, %v1360_v24  ;;  %v2743_v12 = vmul.f32 -0.013888889, %v1360_v24  ;;  %v1896_v62 = vmul.f32 -2.0, %v1361_v46  ;;  %v2209_v61 = vpack.c.bf16 %v4203_v47, %v5875_v6 }
 0x21a   : > { %6927 = vst [vmem:[#allocation24_spill] sm:$0xff] %v5885_v11  ;;  %v2208_v38 = vpack.c.bf16 %v5869_v49, %v6929_v37  ;;  %v2806_v60 = vmul.f32 -3.125, %v1361_v46  ;;  %v1897_v63 = vmul.f32 -2.0, %v1362_v25  ;;  %v2807_v53 = vmul.f32 -3.125, %v1362_v25  ;;  %v6937_v46 = vld [vmem:[#allocation29_spill] sm:$0xff]  ;;  %v6985_v10 = vld [vmem:[#allocation27_spill] sm:$0xff] }
 0x21b   : > { %6928 = vst [vmem:[#allocation23_spill] sm:$0xff] %v5887_v35  ;;  %2247 = vmatpush.bf16.msra.mxu0 %v2210_v20  ;;  %v3002_v56 = vmul.f32 1.442695, %v2929_v43  ;;  %v3006_v0 = vmul.f32 1.442695, %v2931_v21  ;;  %v4205_v27 = vpop.eup %4204  ;;  %v1960_v49 = vadd.f32 %v1896_v62, %v1832_v1  ;;  %v2932_v33 = vunpack.c.l.bf16 %v6930_v40  ;;  %v1130_v43 = vpop.f32.mrf.mxu2  ;;  %v6941_v62 = vld [vmem:[#allocation62_spill] sm:$0xff] }
 0x21c   : > { %v2870_v24 = vadd.f32 %v2806_v60, %v2742_v30  ;;  %v1961_v7 = vadd.f32 %v1897_v63, %v1833_v29  ;;  %v2871_v58 = vadd.f32 %v2807_v53, %v2743_v12  ;;  %v2934_v23 = vunpack.c.h.bf16 %v6930_v40  ;;  %v1017_v20 = vpop.f32.mrf.mxu1  ;;  %v6938_v30 = vld [vmem:[#allocation78_spill] sm:$0xff]  ;;  %v6942_v60 = vld [vmem:[#allocation63_spill] sm:$0xff] }
 0x21d   : > { %2273 = vmatpush.bf16.msra.mxu2 %v2211_v59  ;;  %v2206_v28 = vpack.c.bf16 %v6932_v39, %v6931_v36  ;;  %v5905_v50 = vmax.f32 %v904_v9, 0.0  ;;  %v5907_v6 = vpack.c.bf16 %v1960_v49, %v1958_v13  ;;  %v1243_v59 = vpop.f32.mrf.mxu3  ;;  %4208 = vpow2.f32 %v3004_v2  ;;  %v1718_v13 = vld [vmem:[%s1717_s21] sm:$0xff]  ;;  %v6945_v9 = vld [vmem:[#allocation67_spill] sm:$0xff] }
 0x21e   : > { %v5909_v47 = vpack.c.bf16 %v2870_v24, %v2868_v41  ;;  %v5911_v5 = vpack.c.bf16 %v1961_v7, %v1959_v55  ;;  %v5913_v21 = vpack.c.bf16 %v2871_v58, %v2869_v32  ;;  %v2933_v1 = vunpack.c.l.bf16 %v6937_v46  ;;  %v6940_v41 = vld [vmem:[#allocation69_spill] sm:$0xff]  ;;  %v6944_v58 = vld [vmem:[#allocation66_spill] sm:$0xff] }
 0x21f   : > { %2248 = vmatpush.bf16.msra.mxu0 %v2208_v38  ;;  %6933 = vst [vmem:[#allocation25_spill] sm:$0xff] %v5907_v6  ;;  %4210 = vpow2.f32 %v3002_v56  ;;  %v2207_v25 = vpack.c.bf16 %v4205_v27, %v6938_v30  ;;  %v1365_v37 = vmax.f32 %v1130_v43, 0.0  ;;  %v5920_v38 = vpop.eup %4206  ;;  %v2430_v55 = vunpack.c.l.bf16 %v6940_v41 }
 0x220   : > { %6934 = vst [vmem:[#allocation44_spill] sm:$0xff] %v5909_v47  ;;  %4212 = vpow2.f32 %v3006_v0  ;;  %v5923_v32 = vmax.f32 %v1017_v20, 0.0  ;;  %v1366_v29 = vmax.f32 %v1243_v59, 0.0  ;;  %v3008_v12 = vmul.f32 1.442695, %v2932_v33  ;;  %v6943_v0 = vld [vmem:[#allocation71_spill] sm:$0xff] }
 0x221   : > { %2274 = vmatpush.bf16.msra.mxu2 %v2209_v61  ;;  %6935 = vst [vmem:[#allocation28_spill] sm:$0xff] %v5911_v5  ;;  %v3012_v2 = vmul.f32 1.442695, %v2934_v23  ;;  %v2204_v63 = vpack.c.bf16 %v6942_v60, %v6941_v62  ;;  %v1834_v53 = vmul.f32 -0.0078125, %v5905_v50  ;;  %v3010_v56 = vmul.f32 1.442695, %v2933_v1 }
 0x222   : > { %6936 = vst [vmem:[#allocation73_spill] sm:$0xff] %v5913_v21  ;;  %v2432_v61 = vunpack.c.h.bf16 %v6940_v41  ;;  %v2744_v27 = vmul.f32 -0.013888889, %v5905_v50  ;;  %v1720_v49 = vunpack.c.l.b16 %v1718_v13  ;;  %v2431_v24 = vunpack.c.l.bf16 %v6943_v0  ;;  %v6948_v59 = vld [vmem:[#allocation48_spill] sm:$0xff]  ;;  %v6949_v1 = vld [vmem:[#allocation50_spill] sm:$0xff] }
 0x223   : > { %2249 = vmatpush.bf16.msra.mxu0 %v2206_v28  ;;  %6939 = vst [vmem:[#allocation77_spill] sm:$0xff] %v5920_v38  ;;  %v2433_v7 = vunpack.c.h.bf16 %v6943_v0  ;;  %v2205_v40 = vpack.c.bf16 %v6945_v9, %v6944_v58  ;;  %v1898_v33 = vmul.f32 -2.0, %v1365_v37  ;;  %v5934_v23 = vpop.eup %4208  ;;  %v2522_v36 = vmul.f32 1.442695, %v2430_v55  ;;  %v6952_v0 = vld [vmem:[#allocation53_spill] sm:$0xff] }
 0x224   : > { %6946 = vst [vmem:[#allocation29_spill] sm:$0xff] %v5934_v23  ;;  %v2808_v39 = vmul.f32 -3.125, %v1365_v37  ;;  %v1835_v28 = vmul.f32 -0.0078125, %v5923_v32  ;;  %v1899_v43 = vmul.f32 -2.0, %v1366_v29  ;;  %v2202_v30 = vpack.c.bf16 %v6949_v1, %v6948_v59  ;;  %v6953_v58 = vld [vmem:[#allocation57_spill] sm:$0xff] }
 0x225   : > { %2275 = vmatpush.bf16.msra.mxu2 %v2207_v25  ;;  %v5937_v20 = vpop.eup %4210  ;;  %v5941_v25 = vadd.f32 %v1898_v33, %v1834_v53  ;;  %v2745_v13 = vmul.f32 -0.013888889, %v5923_v32  ;;  %v2809_v41 = vmul.f32 -3.125, %v1366_v29  ;;  %4214 = vpow2.f32 %v3008_v12  ;;  %v907_v29 = vpop.f32.mrf.mxu0  ;;  %v6954_v33 = vld [vmem:[#allocation47_spill] sm:$0xff] }
 0x226   : > { %6947 = vst [vmem:[#allocation78_spill] sm:$0xff] %v5937_v20  ;;  %v5944_v62 = vpop.eup %4212  ;;  %v5946_v60 = vadd.f32 %v2808_v39, %v2744_v27  ;;  %v5948_v37 = vadd.f32 %v1899_v43, %v1835_v28  ;;  %v1722_v55 = vpack.c.b16 %v1720_v49, %v1720_v49  ;;  %4216 = vpow2.f32 %v3012_v2  ;;  %v6955_v27 = vld [vmem:[#allocation49_spill] sm:$0xff]  ;;  %v1020_v2 = vpop.f32.mrf.mxu1 }
 0x227   : > { %2250 = vmatpush.bf16.msra.mxu0 %v2204_v63  ;;  %6950 = vst [vmem:[#allocation69_spill] sm:$0xff] %v5944_v62  ;;  %v2526_v63 = vmul.f32 1.442695, %v2432_v61  ;;  %v2203_v9 = vpack.c.bf16 %v6953_v58, %v6952_v0  ;;  %v2524_v53 = vmul.f32 1.442695, %v2431_v24  ;;  %v2426_v59 = vunpack.c.l.bf16 %v6954_v33  ;;  %v5957_v49 = vpop.f32.mrf.mxu2 }
 0x228   : > { %6951 = vst [vmem:[#allocation62_spill] sm:$0xff] %v5948_v37  ;;  %1734 = vmatmul.bf16.vlgmr.msrb.gmra.mxu0 %v1722_v55  ;;  %1760 = vmatmul.bf16.vlgmr.msrb.gmra.mxu2 %v1722_v55  ;;  %v2428_v12 = vunpack.c.h.bf16 %v6954_v33  ;;  %v2427_v39 = vunpack.c.l.bf16 %v6955_v27  ;;  %v2528_v28 = vmul.f32 1.442695, %v2433_v7  ;;  %4218 = vpow2.f32 %v2522_v36  ;;  %v6959_v55 = vld [vmem:[#allocation33_spill] sm:$0xff] }
 0x229   : > { %2276 = vmatpush.bf16.msra.mxu2 %v2205_v40  ;;  %v5952_v40 = vadd.f32 %v2809_v41, %v2745_v13  ;;  %4220 = vpow2.f32 %v3010_v56  ;;  %v2514_v61 = vmul.f32 1.442695, %v2426_v59  ;;  %v2935_v43 = vunpack.c.h.bf16 %v6937_v46  ;;  %v6960_v59 = vld [vmem:[#allocation34_spill] sm:$0xff] }
 0x22a   : > { %4222 = vpow2.f32 %v2526_v63  ;;  %v5960_v24 = vmax.f32 %v907_v29, 0.0  ;;  %v2518_v1 = vmul.f32 1.442695, %v2428_v12  ;;  %v5966_v41 = vmax.f32 %v1020_v2, 0.0 }
 0x22b   : > { %2251 = vmatpush.bf16.msra.mxu0 %v2202_v30  ;;  %v5962_v30 = vpop.f32.mrf.mxu3  ;;  %v5964_v13 = vpop.eup %4214  ;;  %4224 = vpow2.f32 %v2524_v53  ;;  %v2429_v7 = vunpack.c.h.bf16 %v6955_v27  ;;  %v2516_v36 = vmul.f32 1.442695, %v2427_v39  ;;  %v2936_v0 = vunpack.c.l.bf16 %v6959_v55 }
 0x22c   : > { %6956 = vst [vmem:[#allocation63_spill] sm:$0xff] %v5964_v13  ;;  %v5969_v56 = vpop.eup %4216  ;;  %4226 = vpow2.f32 %v2528_v28  ;;  %v6749_v46 = vmax.f32 %v5957_v49, 0.0  ;;  %v2746_v63 = vmul.f32 -0.013888889, %v5960_v24  ;;  %v2938_v58 = vunpack.c.h.bf16 %v6959_v55 }
 0x22d   : > { %2277 = vmatpush.bf16.msra.mxu2 %v2203_v9  ;;  %6957 = vst [vmem:[#allocation71_spill] sm:$0xff] %v5966_v41  ;;  %4228 = vpow2.f32 %v2514_v61  ;;  %v2520_v9 = vmul.f32 1.442695, %v2429_v7  ;;  %v6755_v53 = vmax.f32 %v5962_v30, 0.0  ;;  %v3014_v33 = vmul.f32 1.442695, %v2935_v43 }
 0x22e   : > { %6958 = vst [vmem:[#allocation66_spill] sm:$0xff] %v5969_v56  ;;  %v4219_v29 = vpop.eup %4218  ;;  %v2937_v12 = vunpack.c.l.bf16 %v6960_v59  ;;  %4230 = vpow2.f32 %v2518_v1  ;;  %v2810_v27 = vmul.f32 -3.125, %v6749_v46  ;;  %v2939_v28 = vunpack.c.h.bf16 %v6960_v59  ;;  %v6963_v59 = vld [vmem:[#allocation39_spill] sm:$0xff]  ;;  %v1023_v22 = vpop.f32.mrf.mxu1 }
 0x22f   : > { %v5979_v39 = vpop.eup %4220  ;;  %4232 = vpow2.f32 %v2516_v36  ;;  %v2747_v2 = vmul.f32 -0.013888889, %v5966_v41  ;;  %v2811_v61 = vmul.f32 -3.125, %v6755_v53  ;;  %v3016_v55 = vmul.f32 1.442695, %v2936_v0  ;;  %v6031_v35 = vpop.f32.mrf.mxu2 }
 0x230   : > { %6961 = vst [vmem:[#allocation67_spill] sm:$0xff] %v5979_v39  ;;  %v4223_v7 = vpop.eup %4222  ;;  %v2940_v43 = vunpack.c.l.bf16 %v6962_v26  ;;  %4234 = vpow2.f32 %v2520_v9  ;;  %v2874_v31 = vadd.f32 %v2810_v27, %v2746_v63  ;;  %v3020_v52 = vmul.f32 1.442695, %v2938_v58 }
 0x231   : > { %v4225_v1 = vpop.eup %4224  ;;  %v2942_v46 = vunpack.c.h.bf16 %v6962_v26  ;;  %v2608_v21 = vpack.c.bf16 %v4223_v7, %v4219_v29  ;;  %v2875_v47 = vadd.f32 %v2811_v61, %v2747_v2  ;;  %4236 = vpow2.f32 %v3014_v33  ;;  %v6970_v7 = vld [vmem:[#allocation36_spill] sm:$0xff] }
 0x232   : > { %v4227_v54 = vpop.eup %4226  ;;  %v3018_v36 = vmul.f32 1.442695, %v2937_v12  ;;  %v2941_v16 = vunpack.c.l.bf16 %v6963_v59  ;;  %v5989_v57 = vpack.c.bf16 %v2874_v31, %v5946_v60  ;;  %v3022_v0 = vmul.f32 1.442695, %v2939_v28  ;;  %v6966_v60 = vld [vmem:[#allocation35_spill] sm:$0xff] }
 0x233   : > { %v4229_v53 = vpop.eup %4228  ;;  %v2943_v8 = vunpack.c.h.bf16 %v6963_v59  ;;  %2636 = vmatpush.bf16.msrb.mxu0 %v2608_v21  ;;  %v2609_v63 = vpack.c.bf16 %v4227_v54, %v4225_v1  ;;  %v5993_v58 = vpack.c.bf16 %v2875_v47, %v5952_v40  ;;  %4238 = vpow2.f32 %v3016_v55  ;;  %v6968_v47 = vld [vmem:[#allocation55_spill] sm:$0xff]  ;;  %v6971_v59 = vld [vmem:[#allocation45_spill] sm:$0xff] }
 0x234   : > { %6964 = vst [vmem:[#allocation48_spill] sm:$0xff] %v5989_v57  ;;  %v4231_v26 = vpop.eup %4230  ;;  %v3024_v9 = vmul.f32 1.442695, %v2940_v43  ;;  %4240 = vpow2.f32 %v3020_v52  ;;  %v3028_v33 = vmul.f32 1.442695, %v2942_v46  ;;  %v2422_v28 = vunpack.c.l.bf16 %v6966_v60  ;;  %v6969_v46 = vld [vmem:[#allocation56_spill] sm:$0xff] }
 0x235   : > { %6965 = vst [vmem:[#allocation50_spill] sm:$0xff] %v5993_v58  ;;  %v4233_v29 = vpop.eup %4232  ;;  %2662 = vmatpush.bf16.msrb.mxu2 %v2609_v63  ;;  %v2606_v12 = vpack.c.bf16 %v4231_v26, %v4229_v53  ;;  %4242 = vpow2.f32 %v3018_v36  ;;  %v3026_v31 = vmul.f32 1.442695, %v2941_v16  ;;  %v3030_v2 = vmul.f32 1.442695, %v2943_v8  ;;  %v6972_v63 = vld [vmem:[#allocation74_spill] sm:$0xff] }
 0x236   : > { %v4235_v27 = vpop.eup %4234  ;;  %4244 = vpow2.f32 %v3022_v0  ;;  %v2944_v40 = vunpack.c.l.bf16 %v6968_v47  ;;  %v2946_v61 = vunpack.c.h.bf16 %v6968_v47  ;;  %v2424_v52 = vunpack.c.h.bf16 %v6966_v60  ;;  %v6976_v57 = vld [vmem:[#allocation72_spill] sm:$0xff] }
 0x237   : > { %2637 = vmatpush.bf16.msrb.mxu0 %v2606_v12  ;;  %v2607_v54 = vpack.c.bf16 %v4235_v27, %v4233_v29  ;;  %v5996_v21 = vpop.eup %4236  ;;  %4246 = vpow2.f32 %v3024_v9  ;;  %v2945_v53 = vunpack.c.l.bf16 %v6969_v46  ;;  %v2947_v16 = vunpack.c.h.bf16 %v6969_v46  ;;  %v6974_v29 = vld [vmem:[#allocation31_spill] sm:$0xff] }
 0x238   : > { %6967 = vst [vmem:[#allocation53_spill] sm:$0xff] %v5996_v21  ;;  %4248 = vpow2.f32 %v3028_v33  ;;  %v2423_v55 = vunpack.c.l.bf16 %v6970_v7  ;;  %v2506_v43 = vmul.f32 1.442695, %v2422_v28  ;;  %v2425_v1 = vunpack.c.h.bf16 %v6970_v7  ;;  %v910_v28 = vpop.f32.mrf.mxu0 }
 0x239   : > { %2663 = vmatpush.bf16.msrb.mxu2 %v2607_v54  ;;  %v6004_v8 = vpop.eup %4238  ;;  %4250 = vpow2.f32 %v3026_v31  ;;  %v1818_v0 = vmul.f32 -0.0078125, %v6971_v59  ;;  %v6973_v26 = vmax.f32 %v6972_v63, 0.0  ;;  %v2418_v33 = vunpack.c.l.bf16 %v6974_v29  ;;  %v6975_v63 = vld [vmem:[#allocation32_spill] sm:$0xff] }
 0x23a   : > { %v6007_v36 = vpop.eup %4240  ;;  %4252 = vpow2.f32 %v3030_v2  ;;  %v6015_v27 = vmul.f32 1.442695, %v2944_v40  ;;  %v6017_v60 = vmul.f32 1.442695, %v2946_v61  ;;  %v2510_v31 = vmul.f32 1.442695, %v2424_v52 }
 0x23b   : > { %v1882_v9 = vmul.f32 -2.0, %v6973_v26  ;;  %v6013_v12 = vpop.eup %4242  ;;  %v2420_v54 = vunpack.c.h.bf16 %v6974_v29  ;;  %v6022_v2 = vmul.f32 1.442695, %v2945_v53  ;;  %v6024_v46 = vmul.f32 1.442695, %v2947_v16  ;;  %v6977_v16 = vld [vmem:[#allocation76_spill] sm:$0xff] }
 0x23c   : > { %v6020_v47 = vpop.eup %4244  ;;  %v2508_v7 = vmul.f32 1.442695, %v2423_v55  ;;  %v2419_v26 = vunpack.c.l.bf16 %v6975_v63  ;;  %4254 = vpow2.f32 %v2506_v43  ;;  %v2512_v61 = vmul.f32 1.442695, %v2425_v1 }
 0x23d   : > { %v6027_v58 = vpop.eup %4246  ;;  %v2421_v52 = vunpack.c.h.bf16 %v6975_v63  ;;  %v6037_v55 = vadd.f32 %v1882_v9, %v1818_v0  ;;  %v2498_v5 = vmul.f32 1.442695, %v2418_v33  ;;  %v1819_v40 = vmul.f32 -0.0078125, %v5642_v4  ;;  %v6049_v9 = vpop.f32.mrf.mxu3 }
 0x23e   : > { %v6033_v29 = vpop.eup %4248  ;;  %v6978_v43 = vmax.f32 %v5588_v48, 0.0  ;;  %4256 = vpow2.f32 %v2510_v31  ;;  %v2502_v63 = vmul.f32 1.442695, %v2420_v54  ;;  %v1820_v18 = vmul.f32 -0.0078125, %v5648_v14  ;;  %6981 = vst [vmem:[#allocation57_spill] sm:$0xff] %v6049_v9 }
 0x23f   : > { %v6039_v6 = vpop.eup %4250  ;;  %v6980_v53 = vmax.f32 %v6979_v15, 0.0  ;;  %4258 = vpow2.f32 %v2508_v7  ;;  %v2500_v0 = vmul.f32 1.442695, %v2419_v26  ;;  %v1821_v33 = vmul.f32 -0.0078125, %v5653_v34 }
 0x240   : > { %v1883_v1 = vmul.f32 -2.0, %v6978_v43  ;;  %v6044_v37 = vpop.eup %4252  ;;  %4260 = vpow2.f32 %v2512_v61  ;;  %v2504_v17 = vmul.f32 1.442695, %v2421_v52  ;;  %v2414_v48 = vunpack.c.l.bf16 %v6982_v19  ;;  %v6983_v43 = vld [vmem:[#allocation79_spill] sm:$0xff] }
 0x241   : > { %v1884_v45 = vmul.f32 -2.0, %v6980_v53  ;;  %v6984_v31 = vmax.f32 %v6983_v43, 0.0  ;;  %4262 = vpow2.f32 %v2498_v5  ;;  %v2416_v11 = vunpack.c.h.bf16 %v6982_v19  ;;  %v913_v19 = vpop.f32.mrf.mxu0 }
 0x242   : > { %v2415_v62 = vunpack.c.l.bf16 %v6985_v10  ;;  %v4255_v15 = vpop.eup %4254  ;;  %v6057_v53 = vmax.f32 %v910_v28, 0.0  ;;  %4264 = vpow2.f32 %v2502_v63  ;;  %v2490_v7 = vmul.f32 1.442695, %v2414_v48 }
 0x243   : > { %v1885_v54 = vmul.f32 -2.0, %v6984_v31  ;;  %v2417_v26 = vunpack.c.h.bf16 %v6985_v10  ;;  %4266 = vpow2.f32 %v2500_v0  ;;  %v6770_v61 = vmax.f32 %v6031_v35, 0.0 }
 0x244   : > { %v2494_v52 = vmul.f32 1.442695, %v2416_v11  ;;  %v2492_v20 = vmul.f32 1.442695, %v2415_v62  ;;  %v4257_v23 = vpop.eup %4256  ;;  %v1947_v43 = vadd.f32 %v1883_v1, %v1819_v40  ;;  %v1948_v31 = vadd.f32 %v1884_v45, %v1820_v18  ;;  %v1026_v11 = vpop.f32.mrf.mxu1  ;;  %v6987_v62 = vld [vmem:[#allocation21_spill] sm:$0xff] }
 0x245   : > { %4268 = vpow2.f32 %v2504_v17  ;;  %v2496_v5 = vmul.f32 1.442695, %v2417_v26  ;;  %v4259_v38 = vpop.eup %4258  ;;  %v1949_v21 = vadd.f32 %v1885_v54, %v1821_v33  ;;  %v2604_v39 = vpack.c.bf16 %v4257_v23, %v4255_v15  ;;  %v6066_v40 = vpop.f32.mrf.mxu2  ;;  %v6989_v54 = vld [vmem:[#allocation22_spill] sm:$0xff] }
 0x246   : > { %v6061_v28 = vmax.f32 %v1023_v22, 0.0  ;;  %4270 = vpow2.f32 %v2490_v7  ;;  %v4261_v63 = vpop.eup %4260  ;;  %v2748_v10 = vmul.f32 -0.013888889, %v6057_v53  ;;  %v6773_v0 = vmax.f32 %v6049_v9, 0.0  ;;  %6988 = vst [vmem:[#allocation49_spill] sm:$0xff] %v6066_v40 }
 0x247   : > { %4272 = vpow2.f32 %v2494_v52  ;;  %v2410_v48 = vunpack.c.l.bf16 %v6987_v62  ;;  %v4263_v18 = vpop.eup %4262  ;;  %2638 = vmatpush.bf16.msrb.mxu0 %v2604_v39  ;;  %v2605_v45 = vpack.c.bf16 %v4261_v63, %v4259_v38  ;;  %v2812_v17 = vmul.f32 -3.125, %v6770_v61  ;;  %v6078_v63 = vpop.f32.mrf.mxu3 }
 0x248   : > { %6986 = vst [vmem:[#allocation47_spill] sm:$0xff] %v6061_v28  ;;  %4274 = vpow2.f32 %v2492_v20  ;;  %v6070_v22 = vmax.f32 %v913_v19, 0.0  ;;  %v4265_v23 = vpop.eup %4264  ;;  %v2412_v1 = vunpack.c.h.bf16 %v6987_v62  ;;  %v2411_v15 = vunpack.c.l.bf16 %v6989_v54 }
 0x249   : > { %4276 = vpow2.f32 %v2496_v5  ;;  %v2482_v33 = vmul.f32 1.442695, %v2410_v48  ;;  %v4267_v7 = vpop.eup %4266  ;;  %2664 = vmatpush.bf16.msrb.mxu2 %v2605_v45  ;;  %v2602_v26 = vpack.c.bf16 %v4265_v23, %v4263_v18  ;;  %v6074_v52 = vmax.f32 %v1026_v11, 0.0  ;;  %6991 = vst [vmem:[#allocation34_spill] sm:$0xff] %v6078_v63 }
 0x24a   : > { %v2413_v38 = vunpack.c.h.bf16 %v6989_v54  ;;  %v6772_v39 = vmax.f32 %v6066_v40, 0.0  ;;  %v2486_v19 = vmul.f32 1.442695, %v2412_v1  ;;  %v2484_v5 = vmul.f32 1.442695, %v2411_v15 }
 0x24b   : > { %6990 = vst [vmem:[#allocation33_spill] sm:$0xff] %v6074_v52  ;;  %v4269_v20 = vpop.eup %4268  ;;  %4278 = vpow2.f32 %v2482_v33  ;;  %v2750_v62 = vmul.f32 -0.013888889, %v6070_v22  ;;  %v1994_v61 = vpack.c.bf16 %v1948_v31, %v6037_v55  ;;  %2639 = vmatpush.bf16.msrb.mxu0 %v2602_v26  ;;  %v1995_v54 = vpack.c.bf16 %v1949_v21, %v1947_v43 }
 0x24c   : > { %v4271_v48 = vpop.eup %4270  ;;  %v2603_v45 = vpack.c.bf16 %v4269_v20, %v4267_v7  ;;  %v2488_v18 = vmul.f32 1.442695, %v2413_v38  ;;  %v2814_v11 = vmul.f32 -3.125, %v6772_v39  ;;  %v2813_v56 = vmul.f32 -3.125, %v6773_v0 }
 0x24d   : > { %v4273_v23 = vpop.eup %4272  ;;  %4280 = vpow2.f32 %v2486_v19  ;;  %v6771_v1 = vmax.f32 %v6078_v63, 0.0  ;;  %v2876_v15 = vadd.f32 %v2812_v17, %v2748_v10  ;;  %v2749_v7 = vmul.f32 -0.013888889, %v6061_v28 }
 0x24e   : > { %v4275_v33 = vpop.eup %4274  ;;  %2665 = vmatpush.bf16.msrb.mxu2 %v2603_v45  ;;  %v2600_v13 = vpack.c.bf16 %v4273_v23, %v4271_v48  ;;  %4282 = vpow2.f32 %v2484_v5  ;;  %v2878_v55 = vadd.f32 %v2814_v11, %v2750_v62  ;;  %v2751_v26 = vmul.f32 -0.013888889, %v6074_v52 }
 0x24f   : > { %v4277_v31 = vpop.eup %4276  ;;  %4284 = vpow2.f32 %v2488_v18  ;;  %v2815_v21 = vmul.f32 -3.125, %v6771_v1  ;;  %v2951_v43 = vunpack.c.h.bf16 %v6977_v16  ;;  %v6993_v17 = vunpack.c.l.bf16 %v6976_v57 }
 0x250   : > { %4286 = vpow2.f32 %v6015_v27  ;;  %2640 = vmatpush.bf16.msrb.mxu0 %v2600_v13  ;;  %v2601_v38 = vpack.c.bf16 %v4277_v31, %v4275_v33  ;;  %v6093_v20 = vpack.c.bf16 %v2878_v55, %v2876_v15  ;;  %v2042_v5 = vunpack.c.l.bf16 %v1994_v61 }
 0x251   : > { %v4279_v10 = vpop.eup %4278  ;;  %v3040_v19 = vmul.f32 1.442695, %v6993_v17  ;;  %v2877_v62 = vadd.f32 %v2813_v56, %v2749_v7  ;;  %v2879_v48 = vadd.f32 %v2815_v21, %v2751_v26  ;;  %4288 = vpow2.f32 %v6017_v60  ;;  %v6997_v60 = vld [vmem:[#allocation19_spill] sm:$0xff] }
 0x252   : > { %6992 = vst [vmem:[#allocation38_spill] sm:$0xff] %v6093_v20  ;;  %v6994_v45 = vunpack.c.h.bf16 %v6976_v57  ;;  %v2044_v11 = vunpack.c.h.bf16 %v1994_v61  ;;  %2666 = vmatpush.bf16.msrb.mxu2 %v2601_v38  ;;  %4290 = vpow2.f32 %v6022_v2  ;;  %v6995_v13 = vunpack.c.l.bf16 %v6977_v16 }
 0x253   : > { %v4281_v27 = vpop.eup %4280  ;;  %v2043_v33 = vunpack.c.l.bf16 %v1995_v54  ;;  %v6103_v15 = vpack.c.bf16 %v2879_v48, %v2877_v62  ;;  %4292 = vpow2.f32 %v6024_v46  ;;  %v3046_v56 = vmul.f32 1.442695, %v2951_v43  ;;  %v6998_v62 = vld [vmem:[#allocation20_spill] sm:$0xff] }
 0x254   : > { %v3044_v18 = vmul.f32 1.442695, %v6994_v45  ;;  %v3042_v23 = vmul.f32 1.442695, %v6995_v13  ;;  %v4283_v55 = vpop.eup %4282  ;;  %v2598_v31 = vpack.c.bf16 %v4281_v27, %v4279_v10  ;;  %v2406_v7 = vunpack.c.l.bf16 %v6997_v60  ;;  %v1029_v45 = vpop.f32.mrf.mxu1 }
 0x255   : > { %6996 = vst [vmem:[#allocation39_spill] sm:$0xff] %v6103_v15  ;;  %v4285_v57 = vpop.eup %4284  ;;  %4294 = vpow2.f32 %v3040_v19  ;;  %v2138_v61 = vmul.f32 1.442695, %v2042_v5  ;;  %v2045_v26 = vunpack.c.h.bf16 %v1995_v54  ;;  %v2142_v2 = vmul.f32 1.442695, %v2044_v11  ;;  %v916_v19 = vpop.f32.mrf.mxu0 }
 0x256   : > { %v6107_v21 = vpop.eup %4286  ;;  %4296 = vpow2.f32 %v3044_v18  ;;  %2641 = vmatpush.bf16.msrb.mxu0 %v2598_v31  ;;  %v2599_v16 = vpack.c.bf16 %v4285_v57, %v4283_v55  ;;  %v2408_v38 = vunpack.c.h.bf16 %v6997_v60  ;;  %v2140_v17 = vmul.f32 1.442695, %v2043_v33  ;;  %v6999_v18 = vld [vmem:[#allocation17_spill] sm:$0xff]  ;;  %v6117_v27 = vpop.f32.mrf.mxu2  ;;  %v2236_v55 = vld [vmem:[%s2235_s26] sm:$0xff] }
 0x257   : > { %4298 = vpow2.f32 %v3042_v23  ;;  %v2407_v46 = vunpack.c.l.bf16 %v6998_v62  ;;  %v6111_v43 = vpop.eup %4288  ;;  %v2474_v10 = vmul.f32 1.442695, %v2406_v7  ;;  %v2409_v54 = vunpack.c.h.bf16 %v6998_v62  ;;  %v7000_v60 = vld [vmem:[#allocation18_spill] sm:$0xff]  ;;  %v6128_v57 = vpop.f32.mrf.mxu3 }
 0x258   : > { %4300 = vpow2.f32 %v3046_v56  ;;  %2667 = vmatpush.bf16.msrb.mxu2 %v2599_v16  ;;  %v6114_v5 = vpop.eup %4290  ;;  %v2144_v48 = vmul.f32 1.442695, %v2045_v26  ;;  %v2402_v11 = vunpack.c.l.bf16 %v6999_v18  ;;  %v2478_v23 = vmul.f32 1.442695, %v2408_v38  ;;  %7001 = vst [vmem:[#allocation35_spill] sm:$0xff] %v6128_v57 }
 0x259   : > { %4302 = vpow2.f32 %v2138_v61  ;;  %v6119_v13 = vpop.eup %4292  ;;  %v2404_v33 = vunpack.c.h.bf16 %v6999_v18  ;;  %v2476_v31 = vmul.f32 1.442695, %v2407_v46  ;;  %v2403_v7 = vunpack.c.l.bf16 %v7000_v60 }
 0x25a   : > { %4304 = vpow2.f32 %v2142_v2  ;;  %v2480_v26 = vmul.f32 1.442695, %v2409_v54  ;;  %v2405_v2 = vunpack.c.h.bf16 %v7000_v60  ;;  %v2466_v38 = vmul.f32 1.442695, %v2402_v11 }
 0x25b   : > { %v6125_v56 = vpop.eup %4294  ;;  %4306 = vpow2.f32 %v2140_v17  ;;  %v2238_v62 = vunpack.c.l.b16 %v2236_v55  ;;  %v2470_v17 = vmul.f32 1.442695, %v2404_v33  ;;  %v2046_v1 = vunpack.c.l.bf16 %v5746_v3 }
 0x25c   : > { %v6130_v61 = vpop.eup %4296  ;;  %4308 = vpow2.f32 %v2474_v10  ;;  %v2468_v39 = vmul.f32 1.442695, %v2403_v7  ;;  %v2048_v54 = vunpack.c.h.bf16 %v5746_v3  ;;  %v2047_v60 = vunpack.c.l.bf16 %v5754_v51  ;;  %v1032_v20 = vpop.f32.mrf.mxu1 }
 0x25d   : > { %v6133_v16 = vpop.eup %4298  ;;  %4310 = vpow2.f32 %v2144_v48  ;;  %v2240_v0 = vpack.c.b16 %v2238_v62, %v2238_v62  ;;  %v2472_v48 = vmul.f32 1.442695, %v2405_v2  ;;  %v7005_v33 = vmax.f32 %v5957_v49, 0.0  ;;  %v919_v62 = vpop.f32.mrf.mxu0 }
 0x25e   : > { %v6135_v18 = vpop.eup %4300  ;;  %4312 = vpow2.f32 %v2478_v23  ;;  %v1836_v23 = vmul.f32 -0.0078125, %v5960_v24  ;;  %v6149_v7 = vmax.f32 %v916_v19, 0.0  ;;  %v2049_v2 = vunpack.c.h.bf16 %v5754_v51 }
 0x25f   : > { %v6137_v46 = vpop.eup %4302  ;;  %4314 = vpow2.f32 %v2476_v31  ;;  %v1900_v55 = vmul.f32 -2.0, %v7005_v33  ;;  %2252 = vmatmul.bf16.vlgmr.msra.gmra.mxu0 %v2240_v0  ;;  %2278 = vmatmul.bf16.vlgmr.msra.gmra.mxu2 %v2240_v0  ;;  %v2148_v33 = vmul.f32 1.442695, %v2047_v60  ;;  %v2050_v0 = vunpack.c.l.bf16 %v5846_v44 }
 0x260   : > { %7002 = vst [vmem:[#allocation55_spill] sm:$0xff] %v6137_v46  ;;  %v6140_v10 = vpop.eup %4304  ;;  %4316 = vpow2.f32 %v2480_v26  ;;  %v2146_v26 = vmul.f32 1.442695, %v2046_v1  ;;  %v6158_v3 = vmax.f32 %v1029_v45, 0.0  ;;  %v6161_v1 = vpop.f32.mrf.mxu3  ;;  %v7007_v46 = vmax.f32 %v6117_v27, 0.0 }
 0x261   : > { %7003 = vst [vmem:[#allocation56_spill] sm:$0xff] %v6140_v10  ;;  %v6144_v11 = vpop.eup %4306  ;;  %4318 = vpow2.f32 %v2466_v38  ;;  %v2150_v38 = vmul.f32 1.442695, %v2048_v54  ;;  %v6166_v54 = vmax.f32 %v919_v62, 0.0  ;;  %v2051_v40 = vunpack.c.l.bf16 %v5852_v42 }
 0x262   : > { %7004 = vst [vmem:[#allocation36_spill] sm:$0xff] %v6144_v11  ;;  %v4309_v31 = vpop.eup %4308  ;;  %4320 = vpow2.f32 %v2470_v17  ;;  %v6155_v11 = vpop.f32.mrf.mxu2  ;;  %v1964_v17 = vadd.f32 %v1900_v55, %v1836_v23  ;;  %v2816_v63 = vmul.f32 -3.125, %v7007_v46  ;;  %v2152_v23 = vmul.f32 1.442695, %v2049_v2 }
 0x263   : > { %v6152_v15 = vpop.eup %4310  ;;  %4322 = vpow2.f32 %v2468_v39  ;;  %v2752_v39 = vmul.f32 -0.013888889, %v6149_v7  ;;  %v1385_v60 = vmax.f32 %v6155_v11, 0.0  ;;  %v6169_v55 = vmax.f32 %v1032_v20, 0.0 }
 0x264   : > { %7006 = vst [vmem:[#allocation45_spill] sm:$0xff] %v6152_v15  ;;  %v4313_v49 = vpop.eup %4312  ;;  %4324 = vpow2.f32 %v2472_v48  ;;  %v2154_v15 = vmul.f32 1.442695, %v2050_v0  ;;  %v2754_v9 = vmul.f32 -0.013888889, %v6166_v54  ;;  %v7008_v11 = vmax.f32 %v6128_v57, 0.0 }
 0x265   : > { %v4315_v19 = vpop.eup %4314  ;;  %v2596_v10 = vpack.c.bf16 %v4313_v49, %v4309_v31  ;;  %4326 = vpow2.f32 %v2146_v26  ;;  %v2052_v49 = vunpack.c.h.bf16 %v5846_v44  ;;  %v2818_v26 = vmul.f32 -3.125, %v1385_v60 }
 0x266   : > { %v4317_v51 = vpop.eup %4316  ;;  %v2817_v52 = vmul.f32 -3.125, %v7008_v11  ;;  %v6178_v20 = vpack.c.bf16 %v1964_v17, %v5941_v25  ;;  %v3126_v44 = vpack.c.bf16 %v6130_v61, %v6125_v56  ;;  %v2880_v0 = vadd.f32 %v2816_v63, %v2752_v39  ;;  %v922_v56 = vpop.f32.mrf.mxu0 }
 0x267   : > { %v4319_v48 = vpop.eup %4318  ;;  %2642 = vmatpush.bf16.msrb.mxu0 %v2596_v10  ;;  %v2597_v45 = vpack.c.bf16 %v4317_v51, %v4315_v19  ;;  %v6782_v10 = vmax.f32 %v6161_v1, 0.0  ;;  %v2753_v19 = vmul.f32 -0.013888889, %v6158_v3  ;;  %4328 = vpow2.f32 %v2150_v38  ;;  %v6193_v39 = vpop.f32.mrf.mxu1 }
 0x268   : > { %v4321_v31 = vpop.eup %4320  ;;  %v2158_v11 = vmul.f32 1.442695, %v2052_v49  ;;  %v2053_v57 = vunpack.c.h.bf16 %v5852_v42  ;;  %v3127_v25 = vpack.c.bf16 %v6135_v18, %v6133_v16  ;;  %4330 = vpow2.f32 %v2148_v33 }
 0x269   : > { %v4323_v46 = vpop.eup %4322  ;;  %2668 = vmatpush.bf16.msrb.mxu2 %v2597_v45  ;;  %v2594_v62 = vpack.c.bf16 %v4321_v31, %v4319_v48  ;;  %v2882_v45 = vadd.f32 %v2818_v26, %v2754_v9  ;;  %v2755_v48 = vmul.f32 -0.013888889, %v6169_v55  ;;  %v2819_v31 = vmul.f32 -3.125, %v6782_v10 }
 0x26a   : > { %v4325_v2 = vpop.eup %4324  ;;  %v2881_v61 = vadd.f32 %v2817_v52, %v2753_v19  ;;  %4332 = vpow2.f32 %v2152_v23  ;;  %v2156_v38 = vmul.f32 1.442695, %v2051_v40  ;;  %v2058_v49 = vunpack.c.l.bf16 %v6178_v20  ;;  %v6198_v16 = vpop.f32.mrf.mxu2 }
 0x26b   : > { %2643 = vmatpush.bf16.msrb.mxu0 %v2594_v62  ;;  %v2595_v51 = vpack.c.bf16 %v4325_v2, %v4323_v46  ;;  %v6189_v63 = vpop.eup %4326  ;;  %v6191_v9 = vpack.c.bf16 %v2882_v45, %v2880_v0  ;;  %v2883_v17 = vadd.f32 %v2819_v31, %v2755_v48  ;;  %v3124_v42 = vpack.c.bf16 %v6111_v43, %v6107_v21  ;;  %v6208_v46 = vpop.f32.mrf.mxu3 }
 0x26c   : > { %7009 = vst [vmem:[#allocation74_spill] sm:$0xff] %v6189_v63  ;;  %v6201_v18 = vmul.f32 -0.055555556, %v6971_v59  ;;  %v6204_v52 = vmul.f32 -0.055555556, %v5642_v4  ;;  %4334 = vpow2.f32 %v2154_v15  ;;  %v3125_v21 = vpack.c.bf16 %v6119_v13, %v6114_v5 }
 0x26d   : > { %2669 = vmatpush.bf16.msrb.mxu2 %v2595_v51  ;;  %7010 = vst [vmem:[#allocation31_spill] sm:$0xff] %v6191_v9  ;;  %v6206_v33 = vpack.c.bf16 %v2883_v17, %v2881_v61  ;;  %4336 = vpow2.f32 %v2158_v11  ;;  %v2160_v40 = vmul.f32 1.442695, %v2053_v57  ;;  %v1445_v23 = vmul.f32 -0.055555556, %v5960_v24  ;;  %v7028_v9 = vld [vmem:[#allocation29_spill] sm:$0xff] }
 0x26e   : > { %v1446_v43 = vmul.f32 -0.055555556, %v5966_v41  ;;  %v7012_v62 = vmax.f32 %v5962_v30, 0.0  ;;  %v1844_v2 = vmul.f32 -0.0078125, %v6166_v54  ;;  %v1908_v15 = vmul.f32 -2.0, %v1385_v60 }
 0x26f   : > { %3154 = vmatpush.bf16.msra.mxu0 %v3126_v44  ;;  %7011 = vst [vmem:[#allocation32_spill] sm:$0xff] %v6206_v33  ;;  %v6217_v44 = vpop.eup %4328  ;;  %4338 = vpow2.f32 %v2156_v38  ;;  %v1443_v0 = vmul.f32 -0.055555556, %v5905_v50  ;;  %v2170_v57 = vmul.f32 1.442695, %v2058_v49  ;;  %v3122_v19 = vpack.c.bf16 %v6033_v29, %v6027_v58 }
 0x270   : > { %v1901_v26 = vmul.f32 -2.0, %v7012_v62  ;;  %7013 = vst [vmem:[#allocation72_spill] sm:$0xff] %v6217_v44  ;;  %v6222_v51 = vpop.eup %4330  ;;  %v1444_v5 = vmul.f32 -0.055555556, %v5923_v32  ;;  %v1837_v30 = vmul.f32 -0.0078125, %v5966_v41  ;;  %v1842_v13 = vmul.f32 -0.0078125, %v6149_v7  ;;  %v1038_v62 = vpop.f32.mrf.mxu1 }
 0x271   : > { %3180 = vmatpush.bf16.msra.mxu2 %v3127_v25  ;;  %7014 = vst [vmem:[#allocation76_spill] sm:$0xff] %v6222_v51  ;;  %v7015_v60 = vmax.f32 %v6117_v27, 0.0  ;;  %v6229_v48 = vpop.eup %4332  ;;  %v6232_v31 = vmul.f32 -0.055555556, %v5648_v14  ;;  %v6235_v11 = vmul.f32 -0.055555556, %v5653_v34  ;;  %4340 = vpow2.f32 %v2160_v40 }
 0x272   : > { %7016 = vst [vmem:[#allocation43_spill] sm:$0xff] %v6229_v48  ;;  %v3123_v58 = vpack.c.bf16 %v6044_v37, %v6039_v6  ;;  %v6239_v29 = vpop.eup %4334  ;;  %v6241_v25 = vpack.c.bf16 %v1445_v23, %v1443_v0  ;;  %v6243_v61 = vpack.c.bf16 %v1446_v43, %v1444_v5  ;;  %v6245_v27 = vadd.f32 %v1901_v26, %v1837_v30  ;;  %v925_v37 = vpop.f32.mrf.mxu0  ;;  %v7038_v41 = vld [vmem:[#allocation59_spill] sm:$0xff] }
 0x273   : > { %3155 = vmatpush.bf16.msra.mxu0 %v3124_v42  ;;  %v1906_v45 = vmul.f32 -2.0, %v7015_v60  ;;  %7017 = vst [vmem:[#allocation26_spill] sm:$0xff] %v6239_v29  ;;  %v1972_v17 = vadd.f32 %v1908_v15, %v1844_v2  ;;  %v6247_v38 = vpop.eup %4336  ;;  %4342 = vpow2.f32 %v2170_v57  ;;  %v3120_v49 = vpack.c.bf16 %v6007_v36, %v6004_v8  ;;  %v1151_v15 = vpop.f32.mrf.mxu2  ;;  %v7023_v60 = vld [vmem:[#allocation66_spill] sm:$0xff] }
 0x274   : > { %7018 = vst [vmem:[#allocation79_spill] sm:$0xff] %v6247_v38  ;;  %v6251_v42 = vmax.f32 %v922_v56, 0.0  ;;  %v1389_v6 = vmax.f32 %v6198_v16, 0.0  ;;  %v6255_v40 = vmul.f32 -0.055555556, %v6057_v53  ;;  %v7020_v8 = vmax.f32 %v6031_v35, 0.0  ;;  %v1264_v5 = vpop.f32.mrf.mxu3 }
 0x275   : > { %3181 = vmatpush.bf16.msra.mxu2 %v3125_v21  ;;  %v6258_v23 = vmul.f32 -0.055555556, %v6061_v28  ;;  %v6261_v21 = vmul.f32 -0.0078125, %v6057_v53  ;;  %v1970_v43 = vadd.f32 %v1906_v45, %v1842_v13  ;;  %v6263_v26 = vpop.eup %4338  ;;  %v6270_v56 = vmul.f32 -0.0078125, %v6061_v28  ;;  %v7022_v13 = vld [vmem:[#allocation63_spill] sm:$0xff] }
 0x276   : > { %7019 = vst [vmem:[#allocation27_spill] sm:$0xff] %v6263_v26  ;;  %v6267_v36 = vmul.f32 -2.0, %v7020_v8  ;;  %v3121_v16 = vpack.c.bf16 %v6020_v47, %v6013_v12  ;;  %v1390_v2 = vmax.f32 %v6208_v46, 0.0  ;;  %v6276_v0 = vmul.f32 -0.055555556, %v6070_v22  ;;  %v7026_v8 = vld [vmem:[#allocation53_spill] sm:$0xff] }
 0x277   : > { %3156 = vmatpush.bf16.msra.mxu0 %v3122_v19  ;;  %v6278_v57 = vpack.c.bf16 %v1972_v17, %v1970_v43  ;;  %v6281_v19 = vmax.f32 %v6193_v39, 0.0  ;;  %v6283_v35 = vmax.f32 %v925_v37, 0.0  ;;  %v6285_v30 = vpop.eup %4340  ;;  %v3118_v12 = vpack.c.bf16 %v7023_v60, %v7022_v13  ;;  %v7025_v43 = vld [vmem:[#allocation67_spill] sm:$0xff]  ;;  %v7029_v26 = vld [vmem:[#allocation78_spill] sm:$0xff] }
 0x278   : > { %7021 = vst [vmem:[#allocation21_spill] sm:$0xff] %v6285_v30  ;;  %v1846_v47 = vmul.f32 -0.0078125, %v6251_v42  ;;  %v1910_v46 = vmul.f32 -2.0, %v1389_v6  ;;  %v6290_v45 = vmax.f32 %v1038_v62, 0.0  ;;  %v2820_v17 = vmul.f32 -3.125, %v1389_v6  ;;  %v7027_v62 = vld [vmem:[#allocation77_spill] sm:$0xff] }
 0x279   : > { %3182 = vmatpush.bf16.msra.mxu2 %v3123_v58  ;;  %v2756_v58 = vmul.f32 -0.013888889, %v6251_v42  ;;  %v1848_v39 = vmul.f32 -0.0078125, %v6283_v35  ;;  %v6294_v37 = vpop.eup %4342  ;;  %v1911_v10 = vmul.f32 -2.0, %v1390_v2  ;;  %v2758_v13 = vmul.f32 -0.013888889, %v6283_v35 }
 0x27a   : > { %7024 = vst [vmem:[#allocation22_spill] sm:$0xff] %v6294_v37  ;;  %v1394_v60 = vmax.f32 %v1264_v5, 0.0  ;;  %v1451_v33 = vmul.f32 -0.055555556, %v6149_v7  ;;  %v3116_v34 = vpack.c.bf16 %v7028_v9, %v7027_v62  ;;  %v1847_v51 = vmul.f32 -0.0078125, %v6281_v19  ;;  %v7030_v9 = vld [vmem:[#allocation69_spill] sm:$0xff] }
 0x27b   : > { %3157 = vmatpush.bf16.msra.mxu0 %v3120_v49  ;;  %v1393_v49 = vmax.f32 %v1151_v15, 0.0  ;;  %v1974_v15 = vadd.f32 %v1910_v46, %v1846_v47  ;;  %v2884_v63 = vadd.f32 %v2820_v17, %v2756_v58  ;;  %v2066_v5 = vunpack.c.l.bf16 %v6278_v57  ;;  %v7032_v17 = vld [vmem:[#allocation64_spill] sm:$0xff]  ;;  %v7039_v37 = vld [vmem:[#allocation61_spill] sm:$0xff] }
 0x27c   : > { %v1913_v44 = vmul.f32 -2.0, %v1394_v60  ;;  %v1975_v30 = vadd.f32 %v1911_v10, %v1847_v51  ;;  %v3117_v62 = vpack.c.bf16 %v7030_v9, %v7029_v26  ;;  %v1455_v47 = vmul.f32 -0.055555556, %v6251_v42 }
 0x27d   : > { %3183 = vmatpush.bf16.msra.mxu2 %v3121_v16  ;;  %v3119_v16 = vpack.c.bf16 %v7026_v8, %v7025_v43  ;;  %v1912_v48 = vmul.f32 -2.0, %v1393_v49  ;;  %v2822_v6 = vmul.f32 -3.125, %v1393_v49  ;;  %v1457_v43 = vmul.f32 -0.055555556, %v6283_v35 }
 0x27e   : > { %v1458_v46 = vmul.f32 -0.055555556, %v6290_v45  ;;  %v2821_v58 = vmul.f32 -3.125, %v1390_v2  ;;  %v1456_v10 = vmul.f32 -0.055555556, %v6281_v19 }
 0x27f   : > { %3158 = vmatpush.bf16.msra.mxu0 %v3118_v12  ;;  %v1849_v12 = vmul.f32 -0.0078125, %v6290_v45  ;;  %v1976_v8 = vadd.f32 %v1912_v48, %v1848_v39  ;;  %v2886_v14 = vadd.f32 %v2822_v6, %v2758_v13  ;;  %v7033_v48 = vld [vmem:[#allocation65_spill] sm:$0xff]  ;;  %v2823_v6 = vmul.f32 -3.125, %v1394_v60 }
 0x280   : > { %v3114_v39 = vpack.c.bf16 %v7033_v48, %v7032_v17  ;;  %v1489_v51 = vpack.c.bf16 %v1457_v43, %v1455_v47  ;;  %v2757_v26 = vmul.f32 -0.013888889, %v6281_v19  ;;  %v2759_v2 = vmul.f32 -0.013888889, %v6290_v45  ;;  %v7036_v47 = vld [vmem:[#allocation51_spill] sm:$0xff]  ;;  %v7037_v17 = vld [vmem:[#allocation52_spill] sm:$0xff] }
 0x281   : > { %3184 = vmatpush.bf16.msra.mxu2 %v3119_v16  ;;  %v1977_v49 = vadd.f32 %v1913_v44, %v1849_v12  ;;  %v2008_v16 = vpack.c.bf16 %v1976_v8, %v1974_v15  ;;  %v6310_v38 = vpack.c.bf16 %v2886_v14, %v2884_v63  ;;  %v7034_v12 = vld [vmem:[#allocation68_spill] sm:$0xff]  ;;  %v7035_v15 = vld [vmem:[#allocation70_spill] sm:$0xff]  ;;  %v1452_v8 = vmul.f32 -0.055555556, %v6158_v3 }
 0x282   : > { %v3115_v14 = vpack.c.bf16 %v7035_v15, %v7034_v12  ;;  %v1490_v60 = vpack.c.bf16 %v1458_v46, %v1456_v10  ;;  %v2887_v43 = vadd.f32 %v2823_v6, %v2759_v2  ;;  %v3112_v48 = vpack.c.bf16 %v7037_v17, %v7036_v47  ;;  %v7040_v10 = vld [vmem:[#allocation33_spill] sm:$0xff] }
 0x283   : > { %3159 = vmatpush.bf16.msra.mxu0 %v3116_v34  ;;  %7031 = vst [vmem:[#allocation19_spill] sm:$0xff] %v6310_v38  ;;  %v2009_v13 = vpack.c.bf16 %v1977_v49, %v1975_v30  ;;  %v1453_v34 = vmul.f32 -0.055555556, %v6166_v54  ;;  %v2070_v44 = vunpack.c.l.bf16 %v2008_v16  ;;  %v2072_v63 = vunpack.c.h.bf16 %v2008_v16 }
 0x284   : > { %v1454_v30 = vmul.f32 -0.055555556, %v6169_v55  ;;  %v2885_v49 = vadd.f32 %v2821_v58, %v2757_v26  ;;  %v1551_v12 = vunpack.c.l.bf16 %v1489_v51  ;;  %v3113_v38 = vpack.c.bf16 %v7039_v37, %v7038_v41 }
 0x285   : > { %3185 = vmatpush.bf16.msra.mxu2 %v3117_v62  ;;  %v2071_v9 = vunpack.c.l.bf16 %v2009_v13  ;;  %v2186_v62 = vmul.f32 1.442695, %v2066_v5  ;;  %v2194_v29 = vmul.f32 1.442695, %v2070_v44  ;;  %v2073_v28 = vunpack.c.h.bf16 %v2009_v13 }
 0x286   : > { %v2198_v16 = vmul.f32 1.442695, %v2072_v63  ;;  %v6324_v15 = vpack.c.bf16 %v2887_v43, %v2885_v49  ;;  %v1553_v46 = vunpack.c.h.bf16 %v1489_v51  ;;  %v1450_v5 = vmul.f32 -0.055555556, %v7040_v10  ;;  %v7045_v49 = vld [vmem:[#allocation34_spill] sm:$0xff] }
 0x287   : > { %3160 = vmatpush.bf16.msra.mxu0 %v3114_v39  ;;  %v1487_v39 = vpack.c.bf16 %v1453_v34, %v1451_v33  ;;  %v1488_v58 = vpack.c.bf16 %v1454_v30, %v1452_v8  ;;  %v2196_v26 = vmul.f32 1.442695, %v2071_v9  ;;  %v1552_v6 = vunpack.c.l.bf16 %v1490_v60 }
 0x288   : > { %4344 = vpow2.f32 %v2186_v62  ;;  %v1675_v33 = vmul.f32 1.442695, %v1551_v12  ;;  %v1554_v13 = vunpack.c.h.bf16 %v1490_v60  ;;  %v1485_v34 = vpack.c.bf16 %v6276_v0, %v6255_v40 }
 0x289   : > { %3186 = vmatpush.bf16.msra.mxu2 %v3115_v14  ;;  %v7041_v14 = vld [vmem:[#allocation57_spill] sm:$0xff]  ;;  %4346 = vpow2.f32 %v2194_v29  ;;  %v2200_v44 = vmul.f32 1.442695, %v2073_v28  ;;  %v1547_v63 = vunpack.c.l.bf16 %v1487_v39  ;;  %v6335_v41 = vadd.f32 %v6267_v36, %v6261_v21 }
 0x28a   : > { %v7042_v2 = vmax.f32 %v7041_v14, 0.0  ;;  %4348 = vpow2.f32 %v2198_v16  ;;  %v1679_v37 = vmul.f32 1.442695, %v1553_v46  ;;  %v1549_v51 = vunpack.c.h.bf16 %v1487_v39  ;;  %v7043_v29 = vld [vmem:[#allocation49_spill] sm:$0xff] }
 0x28b   : > { %3161 = vmatpush.bf16.msra.mxu0 %v3112_v48  ;;  %v1486_v8 = vpack.c.bf16 %v1450_v5, %v6258_v23  ;;  %4350 = vpow2.f32 %v2196_v26  ;;  %v1677_v30 = vmul.f32 1.442695, %v1552_v6  ;;  %v1840_v60 = vmul.f32 -0.0078125, %v6070_v22 }
 0x28c   : > { %v1903_v47 = vmul.f32 -2.0, %v7042_v2  ;;  %4352 = vpow2.f32 %v1675_v33  ;;  %v1681_v9 = vmul.f32 1.442695, %v1554_v13  ;;  %v1550_v40 = vunpack.c.h.bf16 %v1488_v58 }
 0x28d   : > { %3187 = vmatpush.bf16.msra.mxu2 %v3113_v38  ;;  %v1548_v38 = vunpack.c.l.bf16 %v1488_v58  ;;  %v7044_v28 = vmax.f32 %v7043_v29, 0.0  ;;  %4354 = vpow2.f32 %v2200_v44  ;;  %v1667_v62 = vmul.f32 1.442695, %v1547_v63 }
 0x28e   : > { %v1543_v21 = vunpack.c.l.bf16 %v1485_v34  ;;  %v6341_v36 = vpop.eup %4344  ;;  %v7046_v43 = vmax.f32 %v7045_v49, 0.0  ;;  %4356 = vpow2.f32 %v1679_v37  ;;  %v1671_v23 = vmul.f32 1.442695, %v1549_v51 }
 0x28f   : > { %v1904_v0 = vmul.f32 -2.0, %v7044_v28  ;;  %v1545_v48 = vunpack.c.h.bf16 %v1485_v34  ;;  %v6345_v39 = vpop.eup %4346  ;;  %v6348_v12 = vadd.f32 %v1903_v47, %v6270_v56  ;;  %4358 = vpow2.f32 %v1677_v30 }
 0x290   : > { %v1905_v17 = vmul.f32 -2.0, %v7046_v43  ;;  %v1669_v16 = vmul.f32 1.442695, %v1548_v38  ;;  %v1544_v46 = vunpack.c.l.bf16 %v1486_v8  ;;  %v6350_v5 = vpop.eup %4348  ;;  %v1841_v58 = vmul.f32 -0.0078125, %v7040_v10  ;;  %v7047_v38 = vld [vmem:[#allocation35_spill] sm:$0xff] }
 0x291   : > { %4360 = vpow2.f32 %v1681_v9  ;;  %v1673_v26 = vmul.f32 1.442695, %v1550_v40  ;;  %v1546_v6 = vunpack.c.h.bf16 %v1486_v8  ;;  %v6353_v14 = vpop.eup %4350  ;;  %v6355_v2 = vadd.f32 %v1904_v0, %v1840_v60 }
 0x292   : > { %4362 = vpow2.f32 %v1667_v62  ;;  %v1659_v33 = vmul.f32 1.442695, %v1543_v21  ;;  %v1539_v13 = vunpack.c.l.bf16 %v6241_v25  ;;  %v4353_v56 = vpop.eup %4352  ;;  %v6358_v47 = vadd.f32 %v1905_v17, %v1841_v58  ;;  %v7049_v62 = vld [vmem:[#allocation54_spill] sm:$0xff] }
 0x293   : > { %4364 = vpow2.f32 %v1671_v23  ;;  %v1663_v34 = vmul.f32 1.442695, %v1545_v48  ;;  %v1541_v44 = vunpack.c.h.bf16 %v6241_v25  ;;  %v6361_v63 = vpop.eup %4354  ;;  %v6364_v37 = vmul.f32 -0.0078125, %v6158_v3 }
 0x294   : > { %4366 = vpow2.f32 %v1669_v16  ;;  %v1661_v51 = vmul.f32 1.442695, %v1544_v46  ;;  %v1540_v8 = vunpack.c.l.bf16 %v6243_v61  ;;  %v4357_v30 = vpop.eup %4356  ;;  %v7048_v60 = vmax.f32 %v7047_v38, 0.0 }
 0x295   : > { %4368 = vpow2.f32 %v1673_v26  ;;  %v1665_v40 = vmul.f32 1.442695, %v1546_v6  ;;  %v1542_v29 = vunpack.c.h.bf16 %v6243_v61  ;;  %v4359_v28 = vpop.eup %4358  ;;  %v1713_v25 = vpack.c.bf16 %v4357_v30, %v4353_v56  ;;  %v7051_v61 = vld [vmem:[#allocation24_spill] sm:$0xff]  ;;  %v7052_v56 = vld [vmem:[#allocation30_spill] sm:$0xff] }
 0x296   : > { %v6369_v9 = vmul.f32 -2.0, %v7048_v60  ;;  %4370 = vpow2.f32 %v1659_v33  ;;  %v1651_v0 = vmul.f32 1.442695, %v1539_v13  ;;  %v1535_v21 = vunpack.c.l.bf16 %v7049_v62 }
 0x297   : > { %v4361_v49 = vpop.eup %4360  ;;  %v7050_v43 = vmax.f32 %v6161_v1, 0.0  ;;  %4372 = vpow2.f32 %v1663_v34  ;;  %v1655_v23 = vmul.f32 1.442695, %v1541_v44  ;;  %v1537_v48 = vunpack.c.h.bf16 %v7049_v62  ;;  %1739 = vmatpush.bf16.msrb.mxu1 %v1713_v25 }
 0x298   : > { %v4363_v16 = vpop.eup %4362  ;;  %v1714_v46 = vpack.c.bf16 %v4361_v49, %v4359_v28  ;;  %4374 = vpow2.f32 %v1661_v51  ;;  %v1653_v58 = vmul.f32 1.442695, %v1540_v8  ;;  %v1536_v26 = vunpack.c.l.bf16 %v7051_v61  ;;  %v7053_v28 = vld [vmem:[#allocation60_spill] sm:$0xff] }
 0x299   : > { %v1909_v17 = vmul.f32 -2.0, %v7050_v43  ;;  %v4365_v6 = vpop.eup %4364  ;;  %4376 = vpow2.f32 %v1665_v40  ;;  %v1657_v33 = vmul.f32 1.442695, %v1542_v29  ;;  %v1538_v13 = vunpack.c.h.bf16 %v7051_v61 }
 0x29a   : > { %v1531_v30 = vunpack.c.l.bf16 %v7052_v56  ;;  %v4367_v1 = vpop.eup %4366  ;;  %v1845_v34 = vmul.f32 -0.0078125, %v6169_v55  ;;  %1765 = vmatpush.bf16.msrb.mxu3 %v1714_v46  ;;  %v1711_v44 = vpack.c.bf16 %v4365_v6, %v4363_v16  ;;  %4378 = vpow2.f32 %v1651_v0 }
 0x29b   : > { %v1643_v38 = vmul.f32 1.442695, %v1535_v21  ;;  %v4369_v60 = vpop.eup %4368  ;;  %4380 = vpow2.f32 %v1655_v23  ;;  %v1647_v51 = vmul.f32 1.442695, %v1537_v48  ;;  %v1533_v8 = vunpack.c.h.bf16 %v7052_v56  ;;  %v7054_v48 = vld [vmem:[#allocation82_spill] sm:$0xff] }
 0x29c   : > { %v1532_v25 = vunpack.c.l.bf16 %v7053_v28  ;;  %v4371_v40 = vpop.eup %4370  ;;  %v1973_v29 = vadd.f32 %v1909_v17, %v1845_v34  ;;  %1740 = vmatpush.bf16.msrb.mxu1 %v1711_v44  ;;  %v1712_v62 = vpack.c.bf16 %v4369_v60, %v4367_v1  ;;  %4382 = vpow2.f32 %v1653_v58 }
 0x29d   : > { %v1645_v49 = vmul.f32 1.442695, %v1536_v26  ;;  %v4373_v43 = vpop.eup %4372  ;;  %4384 = vpow2.f32 %v1657_v33  ;;  %v1649_v61 = vmul.f32 1.442695, %v1538_v13  ;;  %v1635_v46 = vmul.f32 1.442695, %v1531_v30 }
 0x29e   : > { %v1534_v0 = vunpack.c.h.bf16 %v7053_v28  ;;  %v4375_v21 = vpop.eup %4374  ;;  %1766 = vmatpush.bf16.msrb.mxu3 %v1712_v62  ;;  %v1709_v23 = vpack.c.bf16 %v4373_v43, %v4371_v40  ;;  %4386 = vpow2.f32 %v1643_v38  ;;  %v1527_v16 = vunpack.c.l.bf16 %v7054_v48  ;;  %v7055_v30 = vld [vmem:[#allocation84_spill] sm:$0xff] }
 0x29f   : > { %v1475_v6 = vpack.c.bf16 %v6232_v31, %v6201_v18  ;;  %v4377_v17 = vpop.eup %4376  ;;  %4388 = vpow2.f32 %v1647_v51  ;;  %v1639_v56 = vmul.f32 1.442695, %v1533_v8  ;;  %v1637_v58 = vmul.f32 1.442695, %v1532_v25 }
 0x2a0   : > { %v1529_v26 = vunpack.c.h.bf16 %v7054_v48  ;;  %v4379_v33 = vpop.eup %4378  ;;  %1741 = vmatpush.bf16.msrb.mxu1 %v1709_v23  ;;  %v1710_v13 = vpack.c.bf16 %v4377_v17, %v4375_v21  ;;  %4390 = vpow2.f32 %v1645_v49  ;;  %v1528_v1 = vunpack.c.l.bf16 %v7055_v30 }
 0x2a1   : > { %v1476_v34 = vpack.c.bf16 %v6235_v11, %v6204_v52  ;;  %v4381_v44 = vpop.eup %4380  ;;  %v1971_v38 = vadd.f32 %v6369_v9, %v6364_v37  ;;  %4392 = vpow2.f32 %v1649_v61  ;;  %v1641_v18 = vmul.f32 1.442695, %v1534_v0 }
 0x2a2   : > { %v1530_v31 = vunpack.c.h.bf16 %v7055_v30  ;;  %v4383_v60 = vpop.eup %4382  ;;  %1767 = vmatpush.bf16.msrb.mxu3 %v1710_v13  ;;  %v1707_v51 = vpack.c.bf16 %v4381_v44, %v4379_v33  ;;  %4394 = vpow2.f32 %v1635_v46  ;;  %v1627_v8 = vmul.f32 1.442695, %v1527_v16 }
 0x2a3   : > { %v1523_v28 = vunpack.c.l.bf16 %v1475_v6  ;;  %v4385_v25 = vpop.eup %4384  ;;  %v2007_v40 = vpack.c.bf16 %v1973_v29, %v1971_v38  ;;  %4396 = vpow2.f32 %v1639_v56  ;;  %v1631_v62 = vmul.f32 1.442695, %v1529_v26 }
 0x2a4   : > { %v1525_v49 = vunpack.c.h.bf16 %v1475_v6  ;;  %v4387_v52 = vpop.eup %4386  ;;  %1742 = vmatpush.bf16.msrb.mxu1 %v1707_v51  ;;  %v1708_v11 = vpack.c.bf16 %v4385_v25, %v4383_v60  ;;  %4398 = vpow2.f32 %v1637_v58  ;;  %v1629_v37 = vmul.f32 1.442695, %v1528_v1 }
 0x2a5   : > { %v1524_v9 = vunpack.c.l.bf16 %v1476_v34  ;;  %v4389_v43 = vpop.eup %4388  ;;  %v2004_v61 = vpack.c.bf16 %v6355_v2, %v6335_v41  ;;  %4400 = vpow2.f32 %v1641_v18  ;;  %v1633_v0 = vmul.f32 1.442695, %v1530_v31 }
 0x2a6   : > { %v1526_v46 = vunpack.c.h.bf16 %v1476_v34  ;;  %v4391_v21 = vpop.eup %4390  ;;  %v2068_v23 = vunpack.c.h.bf16 %v6278_v57  ;;  %1768 = vmatpush.bf16.msrb.mxu3 %v1708_v11  ;;  %v1705_v29 = vpack.c.bf16 %v4389_v43, %v4387_v52  ;;  %4402 = vpow2.f32 %v1627_v8 }
 0x2a7   : > { %v1619_v48 = vmul.f32 1.442695, %v1523_v28  ;;  %v4393_v16 = vpop.eup %4392  ;;  %v2005_v6 = vpack.c.bf16 %v6358_v47, %v6348_v12  ;;  %v2067_v17 = vunpack.c.l.bf16 %v2007_v40  ;;  %4404 = vpow2.f32 %v1631_v62  ;;  %v7056_v47 = vld [vmem:[#allocation62_spill] sm:$0xff] }
 0x2a8   : > { %v1623_v56 = vmul.f32 1.442695, %v1525_v49  ;;  %v4395_v58 = vpop.eup %4394  ;;  %v2069_v26 = vunpack.c.h.bf16 %v2007_v40  ;;  %1743 = vmatpush.bf16.msrb.mxu1 %v1705_v29  ;;  %v1706_v41 = vpack.c.bf16 %v4393_v16, %v4391_v21  ;;  %4406 = vpow2.f32 %v1629_v37  ;;  %v7057_v37 = vld [vmem:[#allocation25_spill] sm:$0xff] }
 0x2a9   : > { %v1621_v2 = vmul.f32 1.442695, %v1524_v9  ;;  %v4397_v33 = vpop.eup %4396  ;;  %v2062_v13 = vunpack.c.l.bf16 %v2004_v61  ;;  %4408 = vpow2.f32 %v1633_v0  ;;  %v1625_v57 = vmul.f32 1.442695, %v1526_v46 }
 0x2aa   : > { %v4399_v30 = vpop.eup %4398  ;;  %v2064_v1 = vunpack.c.h.bf16 %v2004_v61  ;;  %v2190_v34 = vmul.f32 1.442695, %v2068_v23  ;;  %1769 = vmatpush.bf16.msrb.mxu3 %v1706_v41  ;;  %v1703_v44 = vpack.c.bf16 %v4397_v33, %v4395_v58  ;;  %4410 = vpow2.f32 %v1619_v48  ;;  %v7058_v48 = vld [vmem:[#allocation28_spill] sm:$0xff] }
 0x2ab   : > { %v4401_v12 = vpop.eup %4400  ;;  %v2003_v38 = vpack.c.bf16 %v6245_v27, %v7056_v47  ;;  %v2063_v18 = vunpack.c.l.bf16 %v2005_v6  ;;  %v2188_v31 = vmul.f32 1.442695, %v2067_v17  ;;  %4412 = vpow2.f32 %v1623_v56 }
 0x2ac   : > { %v4403_v60 = vpop.eup %4402  ;;  %v2065_v51 = vunpack.c.h.bf16 %v2005_v6  ;;  %v2192_v8 = vmul.f32 1.442695, %v2069_v26  ;;  %1744 = vmatpush.bf16.msrb.mxu1 %v1703_v44  ;;  %v1704_v28 = vpack.c.bf16 %v4401_v12, %v4399_v30  ;;  %4414 = vpow2.f32 %v1621_v2  ;;  %v4622_v6 = vld [vmem:[%s1717_s21] sm:$0xff] }
 0x2ad   : > { %v4405_v25 = vpop.eup %4404  ;;  %v2178_v40 = vmul.f32 1.442695, %v2062_v13  ;;  %4416 = vpow2.f32 %v1625_v57  ;;  %v2060_v49 = vunpack.c.h.bf16 %v6178_v20  ;;  %v2182_v52 = vmul.f32 1.442695, %v2064_v1 }
 0x2ae   : > { %v4407_v62 = vpop.eup %4406  ;;  %4418 = vpow2.f32 %v2190_v34  ;;  %1770 = vmatpush.bf16.msrb.mxu3 %v1704_v28  ;;  %v1701_v11 = vpack.c.bf16 %v4405_v25, %v4403_v60  ;;  %v2054_v9 = vunpack.c.l.bf16 %v7057_v37  ;;  %v2059_v43 = vunpack.c.l.bf16 %v2003_v38 }
 0x2af   : > { %v4409_v27 = vpop.eup %4408  ;;  %v2180_v61 = vmul.f32 1.442695, %v2063_v18  ;;  %4420 = vpow2.f32 %v2188_v31  ;;  %v2061_v46 = vunpack.c.h.bf16 %v2003_v38  ;;  %v2184_v21 = vmul.f32 1.442695, %v2065_v51 }
 0x2b0   : > { %v4411_v0 = vpop.eup %4410  ;;  %4422 = vpow2.f32 %v2192_v8  ;;  %1745 = vmatpush.bf16.msrb.mxu1 %v1701_v11  ;;  %v1702_v23 = vpack.c.bf16 %v4409_v27, %v4407_v62  ;;  %v2056_v20 = vunpack.c.h.bf16 %v7057_v37  ;;  %v2055_v16 = vunpack.c.l.bf16 %v7058_v48 }
 0x2b1   : > { %v4413_v29 = vpop.eup %4412  ;;  %4424 = vpow2.f32 %v2178_v40  ;;  %v1721_v17 = vunpack.c.h.b16 %v4622_v6  ;;  %v2057_v58 = vunpack.c.h.bf16 %v7058_v48  ;;  %v2174_v26 = vmul.f32 1.442695, %v2060_v49  ;;  %v7059_v48 = vld [vmem:[#allocation19_spill] sm:$0xff] }
 0x2b2   : > { %v4415_v56 = vpop.eup %4414  ;;  %4426 = vpow2.f32 %v2182_v52  ;;  %1771 = vmatpush.bf16.msrb.mxu3 %v1702_v23  ;;  %v1699_v41 = vpack.c.bf16 %v4413_v29, %v4411_v0  ;;  %v2172_v33 = vmul.f32 1.442695, %v2059_v43  ;;  %v2368_v13 = vmul.f32 -0.125, %v6283_v35 }
 0x2b3   : > { %v4417_v2 = vpop.eup %4416  ;;  %4428 = vpow2.f32 %v2180_v61  ;;  %v2232_v57 = vpack.c.bf16 %v6350_v5, %v6345_v39  ;;  %v2162_v1 = vmul.f32 1.442695, %v2054_v9  ;;  %v2176_v34 = vmul.f32 1.442695, %v2061_v46 }
 0x2b4   : > { %v4419_v30 = vpop.eup %4418  ;;  %4430 = vpow2.f32 %v2184_v21  ;;  %1746 = vmatpush.bf16.msrb.mxu1 %v1699_v41  ;;  %v1700_v44 = vpack.c.bf16 %v4417_v2, %v4415_v56  ;;  %v2366_v47 = vmul.f32 -0.125, %v6251_v42  ;;  %v2369_v38 = vmul.f32 -0.125, %v6290_v45 }
 0x2b5   : > { %v4421_v12 = vpop.eup %4420  ;;  %v2233_v18 = vpack.c.bf16 %v6361_v63, %v6353_v14  ;;  %v1723_v31 = vpack.c.b16 %v1721_v17, %v1721_v17  ;;  %v2166_v60 = vmul.f32 1.442695, %v2056_v20  ;;  %v2164_v51 = vmul.f32 1.442695, %v2055_v16 }
 0x2b6   : > { %v4423_v35 = vpop.eup %4422  ;;  %4432 = vpow2.f32 %v2174_v26  ;;  %1772 = vmatpush.bf16.msrb.mxu3 %v1700_v44  ;;  %v2367_v5 = vmul.f32 -0.125, %v6281_v19  ;;  %v2400_v8 = vpack.c.bf16 %v2368_v13, %v2366_v47  ;;  %v2230_v42 = vpack.c.bf16 %v4419_v30, %v6341_v36 }
 0x2b7   : > { %v4425_v39 = vpop.eup %4424  ;;  %4434 = vpow2.f32 %v2172_v33  ;;  %1747 = vmatmul.bf16.vlgmr.msrb.gmra.mxu1 %v1723_v31  ;;  %v2168_v28 = vmul.f32 1.442695, %v2057_v58  ;;  %v2231_v63 = vpack.c.bf16 %v4423_v35, %v4421_v12  ;;  %v6417_v62 = vmul.f32 -0.125, %v6971_v59 }
 0x2b8   : > { %2257 = vmatpush.bf16.msra.mxu1 %v2232_v57  ;;  %v4427_v45 = vpop.eup %4426  ;;  %4436 = vpow2.f32 %v2176_v34  ;;  %v2401_v14 = vpack.c.bf16 %v2369_v38, %v2367_v5  ;;  %v6420_v19 = vmul.f32 -0.125, %v5642_v4  ;;  %v2364_v36 = vmul.f32 -0.125, %v6166_v54  ;;  %v7062_v57 = vld [vmem:[#allocation47_spill] sm:$0xff] }
 0x2b9   : > { %v4429_v25 = vpop.eup %4428  ;;  %4438 = vpow2.f32 %v2162_v1  ;;  %1773 = vmatmul.bf16.vlgmr.msrb.gmra.mxu3 %v1723_v31  ;;  %v2354_v49 = vmul.f32 -0.125, %v5905_v50  ;;  %v2462_v52 = vunpack.c.l.bf16 %v2400_v8  ;;  %v2228_v11 = vpack.c.bf16 %v4427_v45, %v4425_v39  ;;  %v7064_v45 = vld [vmem:[#allocation79_spill] sm:$0xff] }
 0x2ba   : > { %2283 = vmatpush.bf16.msra.mxu3 %v2233_v18  ;;  %v4431_v40 = vpop.eup %4430  ;;  %4440 = vpow2.f32 %v2166_v60  ;;  %v2362_v37 = vmul.f32 -0.125, %v6149_v7  ;;  %v2365_v9 = vmul.f32 -0.125, %v6169_v55  ;;  %v2464_v59 = vunpack.c.h.bf16 %v2400_v8 }
 0x2bb   : > { %4442 = vpow2.f32 %v2164_v51  ;;  %v2355_v4 = vmul.f32 -0.125, %v5923_v32  ;;  %v2356_v61 = vmul.f32 -0.125, %v5960_v24  ;;  %v2463_v0 = vunpack.c.l.bf16 %v2401_v14  ;;  %v7060_v32 = vld [vmem:[#allocation22_spill] sm:$0xff] }
 0x2bc   : > { %2258 = vmatpush.bf16.msra.mxu1 %v2230_v42  ;;  %v4433_v27 = vpop.eup %4432  ;;  %4444 = vpow2.f32 %v2168_v28  ;;  %v2229_v54 = vpack.c.bf16 %v4431_v40, %v4429_v25  ;;  %v2360_v50 = vmul.f32 -0.125, %v6070_v22  ;;  %v2363_v21 = vmul.f32 -0.125, %v6158_v3  ;;  %v7061_v3 = vld [vmem:[#allocation71_spill] sm:$0xff]  ;;  %v7063_v42 = vld [vmem:[#allocation26_spill] sm:$0xff] }
 0x2bd   : > { %v4435_v43 = vpop.eup %4434  ;;  %v2398_v23 = vpack.c.bf16 %v2364_v36, %v2362_v37  ;;  %v2465_v29 = vunpack.c.h.bf16 %v2401_v14  ;;  %v2358_v7 = vmul.f32 -0.125, %v6057_v53  ;;  %v2586_v55 = vmul.f32 1.442695, %v2462_v52 }
 0x2be   : > { %2284 = vmatpush.bf16.msra.mxu3 %v2231_v63  ;;  %v4437_v46 = vpop.eup %4436  ;;  %v2980_v16 = vunpack.c.l.bf16 %v7059_v48  ;;  %v2226_v6 = vpack.c.bf16 %v4433_v27, %v7060_v32  ;;  %v2361_v17 = vmul.f32 -0.125, %v7040_v10  ;;  %v2399_v56 = vpack.c.bf16 %v2365_v9, %v2363_v21  ;;  %v7066_v27 = vld [vmem:[#allocation21_spill] sm:$0xff] }
 0x2bf   : > { %v4439_v20 = vpop.eup %4438  ;;  %v2590_v58 = vmul.f32 1.442695, %v2464_v59  ;;  %v2982_v22 = vunpack.c.h.bf16 %v7059_v48  ;;  %v2357_v41 = vmul.f32 -0.125, %v7061_v3  ;;  %v2588_v2 = vmul.f32 1.442695, %v2463_v0  ;;  %v7073_v3 = vld [vmem:[#allocation56_spill] sm:$0xff] }
 0x2c0   : > { %2259 = vmatpush.bf16.msra.mxu1 %v2228_v11  ;;  %v4441_v24 = vpop.eup %4440  ;;  %v2981_v33 = vunpack.c.l.bf16 %v6324_v15  ;;  %v2227_v53 = vpack.c.bf16 %v4437_v46, %v4435_v43  ;;  %v2359_v30 = vmul.f32 -0.125, %v7062_v57  ;;  %v2396_v1 = vpack.c.bf16 %v2360_v50, %v2358_v7  ;;  %v7065_v11 = vld [vmem:[#allocation27_spill] sm:$0xff]  ;;  %v7067_v43 = vld [vmem:[#allocation37_spill] sm:$0xff]  ;;  %v7068_v46 = vld [vmem:[#allocation74_spill] sm:$0xff] }
 0x2c1   : > { %v4443_v26 = vpop.eup %4442  ;;  %v2592_v34 = vmul.f32 1.442695, %v2465_v29  ;;  %v2458_v44 = vunpack.c.l.bf16 %v2398_v23  ;;  %4446 = vpow2.f32 %v2586_v55  ;;  %v3104_v10 = vmul.f32 1.442695, %v2980_v16  ;;  %v7069_v50 = vld [vmem:[#allocation72_spill] sm:$0xff]  ;;  %v4623_v7 = vld [vmem:[%s2235_s26] sm:$0xff] }
 0x2c2   : > { %2285 = vmatpush.bf16.msra.mxu3 %v2229_v54  ;;  %v4445_v13 = vpop.eup %4444  ;;  %v2224_v12 = vpack.c.bf16 %v4441_v24, %v4439_v20  ;;  %v2460_v47 = vunpack.c.h.bf16 %v2398_v23  ;;  %v2397_v38 = vpack.c.bf16 %v2361_v17, %v2359_v30  ;;  %4448 = vpow2.f32 %v2590_v58  ;;  %v7071_v24 = vld [vmem:[#allocation43_spill] sm:$0xff] }
 0x2c3   : > { %v3108_v18 = vmul.f32 1.442695, %v2982_v22  ;;  %v2459_v31 = vunpack.c.l.bf16 %v2399_v56  ;;  %4450 = vpow2.f32 %v2588_v2  ;;  %v3106_v35 = vmul.f32 1.442695, %v2981_v33  ;;  %v7074_v33 = vld [vmem:[#allocation75_spill] sm:$0xff] }
 0x2c4   : > { %2260 = vmatpush.bf16.msra.mxu1 %v2226_v6  ;;  %v2225_v60 = vpack.c.bf16 %v4445_v13, %v4443_v26  ;;  %v2461_v51 = vunpack.c.h.bf16 %v2399_v56  ;;  %v2394_v39 = vpack.c.bf16 %v2356_v61, %v2354_v49  ;;  %4452 = vpow2.f32 %v2592_v34  ;;  %v7070_v6 = vld [vmem:[#allocation76_spill] sm:$0xff]  ;;  %v7072_v26 = vld [vmem:[#allocation55_spill] sm:$0xff] }
 0x2c5   : > { %v2578_v5 = vmul.f32 1.442695, %v2458_v44  ;;  %v2454_v8 = vunpack.c.l.bf16 %v2396_v1  ;;  %4454 = vpow2.f32 %v3104_v10  ;;  %v2222_v28 = vpack.c.bf16 %v7064_v45, %v7063_v42  ;;  %v7078_v42 = vld [vmem:[#allocation58_spill] sm:$0xff] }
 0x2c6   : > { %2286 = vmatpush.bf16.msra.mxu3 %v2227_v53  ;;  %v2582_v25 = vmul.f32 1.442695, %v2460_v47  ;;  %v2456_v14 = vunpack.c.h.bf16 %v2396_v1  ;;  %v2395_v63 = vpack.c.bf16 %v2357_v41, %v2355_v4  ;;  %4456 = vpow2.f32 %v3108_v18  ;;  %v7076_v18 = vld [vmem:[#allocation36_spill] sm:$0xff] }
 0x2c7   : > { %v2580_v40 = vmul.f32 1.442695, %v2459_v31  ;;  %v2455_v36 = vunpack.c.l.bf16 %v2397_v38  ;;  %v4447_v52 = vpop.eup %4446  ;;  %4458 = vpow2.f32 %v3106_v35  ;;  %v2223_v49 = vpack.c.bf16 %v7066_v27, %v7065_v11  ;;  %v7077_v31 = vld [vmem:[#allocation45_spill] sm:$0xff]  ;;  %v7080_v27 = vld [vmem:[#allocation40_spill] sm:$0xff] }
 0x2c8   : > { %2261 = vmatpush.bf16.msra.mxu1 %v2224_v12  ;;  %v2584_v37 = vmul.f32 1.442695, %v2461_v51  ;;  %v2457_v9 = vunpack.c.h.bf16 %v2397_v38  ;;  %v4449_v59 = vpop.eup %4448  ;;  %v6443_v61 = vmul.f32 -0.125, %v7067_v43  ;;  %4460 = vpow2.f32 %v2578_v5  ;;  %v7075_v12 = vld [vmem:[#allocation23_spill] sm:$0xff] }
 0x2c9   : > { %v2570_v0 = vmul.f32 1.442695, %v2454_v8  ;;  %v2450_v54 = vunpack.c.l.bf16 %v2394_v39  ;;  %v4451_v4 = vpop.eup %4450  ;;  %v2220_v21 = vpack.c.bf16 %v7069_v50, %v7068_v46  ;;  %4462 = vpow2.f32 %v2582_v25  ;;  %v7079_v25 = vld [vmem:[#allocation80_spill] sm:$0xff]  ;;  %v7081_v46 = vld [vmem:[#allocation83_spill] sm:$0xff] }
 0x2ca   : > { %2287 = vmatpush.bf16.msra.mxu3 %v2225_v60  ;;  %v2574_v23 = vmul.f32 1.442695, %v2456_v14  ;;  %v2452_v29 = vunpack.c.h.bf16 %v2394_v39  ;;  %v4453_v20 = vpop.eup %4452  ;;  %v2239_v55 = vunpack.c.h.b16 %v4623_v7  ;;  %4464 = vpow2.f32 %v2580_v40 }
 0x2cb   : > { %v2572_v48 = vmul.f32 1.442695, %v2455_v36  ;;  %v2451_v16 = vunpack.c.l.bf16 %v2395_v63  ;;  %v6449_v32 = vpop.eup %4454  ;;  %v2221_v17 = vpack.c.bf16 %v7071_v24, %v7070_v6  ;;  %4466 = vpow2.f32 %v2584_v37 }
 0x2cc   : > { %2262 = vmatpush.bf16.msra.mxu1 %v2222_v28  ;;  %v2576_v56 = vmul.f32 1.442695, %v2457_v9  ;;  %v2453_v58 = vunpack.c.h.bf16 %v2395_v63  ;;  %v6453_v22 = vpop.eup %4456  ;;  %v2218_v41 = vpack.c.bf16 %v7073_v3, %v7072_v26  ;;  %4468 = vpow2.f32 %v2570_v0 }
 0x2cd   : > { %v2562_v2 = vmul.f32 1.442695, %v2450_v54  ;;  %v2446_v53 = vunpack.c.l.bf16 %v7074_v33  ;;  %v6458_v13 = vpop.eup %4458  ;;  %v2624_v57 = vpack.c.bf16 %v4449_v59, %v4447_v52  ;;  %4470 = vpow2.f32 %v2574_v23 }
 0x2ce   : > { %2288 = vmatpush.bf16.msra.mxu3 %v2223_v49  ;;  %v2566_v30 = vmul.f32 1.442695, %v2452_v29  ;;  %v2448_v1 = vunpack.c.h.bf16 %v7074_v33  ;;  %v4461_v34 = vpop.eup %4460  ;;  %v2241_v44 = vpack.c.b16 %v2239_v55, %v2239_v55  ;;  %4472 = vpow2.f32 %v2572_v48  ;;  %v7082_v55 = vld [vmem:[#allocation85_spill] sm:$0xff] }
 0x2cf   : > { %v2564_v10 = vmul.f32 1.442695, %v2451_v16  ;;  %v2447_v47 = vunpack.c.l.bf16 %v7075_v12  ;;  %v4463_v38 = vpop.eup %4462  ;;  %v2219_v35 = vpack.c.bf16 %v7077_v31, %v7076_v18  ;;  %4474 = vpow2.f32 %v2576_v56  ;;  %v7083_v18 = vld [vmem:[#allocation31_spill] sm:$0xff] }
 0x2d0   : > { %2263 = vmatpush.bf16.msra.mxu1 %v2220_v21  ;;  %v2568_v60 = vmul.f32 1.442695, %v2453_v58  ;;  %v2449_v51 = vunpack.c.h.bf16 %v7075_v12  ;;  %v4465_v39 = vpop.eup %4464  ;;  %v2625_v5 = vpack.c.bf16 %v4453_v20, %v4451_v4  ;;  %4476 = vpow2.f32 %v2562_v2 }
 0x2d1   : > { %v2554_v8 = vmul.f32 1.442695, %v2446_v53  ;;  %v2442_v45 = vunpack.c.l.bf16 %v7078_v42  ;;  %v4467_v28 = vpop.eup %4466  ;;  %v2341_v14 = vmul.f32 -0.125, %v7079_v25  ;;  %4478 = vpow2.f32 %v2566_v30 }
 0x2d2   : > { %2289 = vmatpush.bf16.msra.mxu3 %v2221_v17  ;;  %v2558_v63 = vmul.f32 1.442695, %v2448_v1  ;;  %v2444_v40 = vunpack.c.h.bf16 %v7078_v42  ;;  %v4469_v36 = vpop.eup %4468  ;;  %v2622_v52 = vpack.c.bf16 %v4463_v38, %v4461_v34  ;;  %4480 = vpow2.f32 %v2564_v10  ;;  %v7084_v42 = vld [vmem:[#allocation32_spill] sm:$0xff] }
 0x2d3   : > { %v2556_v11 = vmul.f32 1.442695, %v2447_v47  ;;  %v2443_v49 = vunpack.c.l.bf16 %v7080_v27  ;;  %v4471_v37 = vpop.eup %4470  ;;  %v2386_v9 = vpack.c.bf16 %v6443_v61, %v6417_v62  ;;  %4482 = vpow2.f32 %v2568_v60 }
 0x2d4   : > { %2264 = vmatpush.bf16.msra.mxu1 %v2218_v41  ;;  %v2560_v59 = vmul.f32 1.442695, %v2449_v51  ;;  %v2445_v43 = vunpack.c.h.bf16 %v7080_v27  ;;  %v4473_v0 = vpop.eup %4472  ;;  %v2623_v54 = vpack.c.bf16 %v4467_v28, %v4465_v39  ;;  %4484 = vpow2.f32 %v2554_v8 }
 0x2d5   : > { %v2546_v4 = vmul.f32 1.442695, %v2442_v45  ;;  %v2438_v50 = vunpack.c.l.bf16 %v7081_v46  ;;  %v4475_v21 = vpop.eup %4474  ;;  %v2387_v23 = vpack.c.bf16 %v2341_v14, %v6420_v19  ;;  %4486 = vpow2.f32 %v2558_v63 }
 0x2d6   : > { %2290 = vmatpush.bf16.msra.mxu3 %v2219_v35  ;;  %v2550_v29 = vmul.f32 1.442695, %v2444_v40  ;;  %v2440_v20 = vunpack.c.h.bf16 %v7081_v46  ;;  %v4477_v62 = vpop.eup %4476  ;;  %v2620_v61 = vpack.c.bf16 %v4471_v37, %v4469_v36  ;;  %4488 = vpow2.f32 %v2556_v11  ;;  %v7085_v36 = vld [vmem:[#allocation38_spill] sm:$0xff] }
 0x2d7   : > { %2265 = vmatmul.bf16.vlgmr.msra.gmra.mxu1 %v2241_v44  ;;  %v2548_v7 = vmul.f32 1.442695, %v2443_v49  ;;  %v2439_v48 = vunpack.c.l.bf16 %v7082_v55  ;;  %v4479_v16 = vpop.eup %4478  ;;  %4490 = vpow2.f32 %v2560_v59  ;;  %v2552_v6 = vmul.f32 1.442695, %v2445_v43  ;;  %v7086_v43 = vld [vmem:[#allocation39_spill] sm:$0xff] }
 0x2d8   : > { %2649 = vmatpush.bf16.msrb.mxu1 %v2624_v57  ;;  %v2441_v24 = vunpack.c.h.bf16 %v7082_v55  ;;  %v4481_v17 = vpop.eup %4480  ;;  %v2621_v56 = vpack.c.bf16 %v4475_v21, %v4473_v0  ;;  %4492 = vpow2.f32 %v2546_v4  ;;  %v2538_v19 = vmul.f32 1.442695, %v2438_v50 }
 0x2d9   : > { %2291 = vmatmul.bf16.vlgmr.msra.gmra.mxu3 %v2241_v44  ;;  %v2434_v58 = vunpack.c.l.bf16 %v2386_v9  ;;  %v4483_v26 = vpop.eup %4482  ;;  %4494 = vpow2.f32 %v2550_v29  ;;  %v2542_v3 = vmul.f32 1.442695, %v2440_v20  ;;  %v2436_v41 = vunpack.c.h.bf16 %v2386_v9  ;;  %v7087_v29 = vld [vmem:[#allocation42_spill] sm:$0xff] }
 0x2da   : > { %2675 = vmatpush.bf16.msrb.mxu3 %v2625_v5  ;;  %v4485_v2 = vpop.eup %4484  ;;  %v2618_v33 = vpack.c.bf16 %v4479_v16, %v4477_v62  ;;  %4496 = vpow2.f32 %v2548_v7  ;;  %v2540_v53 = vmul.f32 1.442695, %v2439_v48  ;;  %v2435_v57 = vunpack.c.l.bf16 %v2387_v23  ;;  %v7088_v62 = vld [vmem:[#allocation48_spill] sm:$0xff] }
 0x2db   : > { %v4487_v30 = vpop.eup %4486  ;;  %4498 = vpow2.f32 %v2552_v6  ;;  %v2544_v1 = vmul.f32 1.442695, %v2441_v24  ;;  %v2437_v34 = vunpack.c.h.bf16 %v2387_v23  ;;  %v2983_v10 = vunpack.c.h.bf16 %v6324_v15 }
 0x2dc   : > { %2650 = vmatpush.bf16.msrb.mxu1 %v2622_v52  ;;  %v4489_v44 = vpop.eup %4488  ;;  %v2619_v12 = vpack.c.bf16 %v4483_v26, %v4481_v17  ;;  %4500 = vpow2.f32 %v2538_v19  ;;  %v2530_v47 = vmul.f32 1.442695, %v2434_v58  ;;  %v2976_v31 = vunpack.c.l.bf16 %v7083_v18  ;;  %v7089_v17 = vld [vmem:[#allocation50_spill] sm:$0xff] }
 0x2dd   : > { %v4491_v38 = vpop.eup %4490  ;;  %4502 = vpow2.f32 %v2542_v3  ;;  %v2534_v35 = vmul.f32 1.442695, %v2436_v41  ;;  %v2978_v51 = vunpack.c.h.bf16 %v7083_v18  ;;  %v2616_v39 = vpack.c.bf16 %v4487_v30, %v4485_v2  ;;  %v7090_v3 = vld [vmem:[#allocation44_spill] sm:$0xff]  ;;  %v7091_v30 = vld [vmem:[#allocation73_spill] sm:$0xff] }
 0x2de   : > { %2676 = vmatpush.bf16.msrb.mxu3 %v2623_v54  ;;  %v4493_v60 = vpop.eup %4492  ;;  %4504 = vpow2.f32 %v2540_v53  ;;  %v2532_v5 = vmul.f32 1.442695, %v2435_v57  ;;  %v2977_v45 = vunpack.c.l.bf16 %v7084_v42  ;;  %v2536_v15 = vmul.f32 1.442695, %v2437_v34 }
 0x2df   : > { %v4495_v8 = vpop.eup %4494  ;;  %4506 = vpow2.f32 %v2544_v1  ;;  %v2979_v25 = vunpack.c.h.bf16 %v7084_v42  ;;  %v3110_v14 = vmul.f32 1.442695, %v2983_v10  ;;  %v2617_v63 = vpack.c.bf16 %v4491_v38, %v4489_v44 }
 0x2e0   : > { %2651 = vmatpush.bf16.msrb.mxu1 %v2620_v61  ;;  %v4497_v28 = vpop.eup %4496  ;;  %4508 = vpow2.f32 %v2530_v47  ;;  %v2972_v52 = vunpack.c.l.bf16 %v7085_v36  ;;  %v3096_v11 = vmul.f32 1.442695, %v2976_v31  ;;  %v2974_v49 = vunpack.c.h.bf16 %v7085_v36  ;;  %v7092_v36 = vld [vmem:[#allocation41_spill] sm:$0xff] }
 0x2e1   : > { %v4499_v40 = vpop.eup %4498  ;;  %4510 = vpow2.f32 %v2534_v35  ;;  %v3100_v37 = vmul.f32 1.442695, %v2978_v51  ;;  %v2614_v9 = vpack.c.bf16 %v4495_v8, %v4493_v60  ;;  %v2973_v0 = vunpack.c.l.bf16 %v7086_v43  ;;  %v2628_v60 = vld [vmem:[%s2627_s13] sm:$0xff] }
 0x2e2   : > { %2677 = vmatpush.bf16.msrb.mxu3 %v2621_v56  ;;  %v4501_v27 = vpop.eup %4500  ;;  %4512 = vpow2.f32 %v2532_v5  ;;  %v3098_v54 = vmul.f32 1.442695, %v2977_v45  ;;  %v2975_v46 = vunpack.c.h.bf16 %v7086_v43  ;;  %v3102_v50 = vmul.f32 1.442695, %v2979_v25 }
 0x2e3   : > { %v4503_v59 = vpop.eup %4502  ;;  %4514 = vpow2.f32 %v2536_v15  ;;  %v2615_v21 = vpack.c.bf16 %v4499_v40, %v4497_v28  ;;  %v2960_v20 = vunpack.c.l.bf16 %v7087_v29  ;;  %v2968_v61 = vunpack.c.l.bf16 %v7088_v62 }
 0x2e4   : > { %2652 = vmatpush.bf16.msrb.mxu1 %v2618_v33  ;;  %v4505_v4 = vpop.eup %4504  ;;  %4516 = vpow2.f32 %v3110_v14  ;;  %v3088_v7 = vmul.f32 1.442695, %v2972_v52  ;;  %v2970_v48 = vunpack.c.h.bf16 %v7088_v62  ;;  %v3092_v16 = vmul.f32 1.442695, %v2974_v49 }
 0x2e5   : > { %v4507_v23 = vpop.eup %4506  ;;  %4518 = vpow2.f32 %v3096_v11  ;;  %v2612_v6 = vpack.c.bf16 %v4503_v59, %v4501_v27  ;;  %v2969_v56 = vunpack.c.l.bf16 %v7089_v17  ;;  %v2971_v19 = vunpack.c.h.bf16 %v7089_v17  ;;  %v7093_v59 = vld [vmem:[#allocation86_spill] sm:$0xff] }
 0x2e6   : > { %2678 = vmatpush.bf16.msrb.mxu3 %v2619_v12  ;;  %v4509_v55 = vpop.eup %4508  ;;  %4520 = vpow2.f32 %v3100_v37  ;;  %v3090_v58 = vmul.f32 1.442695, %v2973_v0  ;;  %v2964_v41 = vunpack.c.l.bf16 %v7090_v3  ;;  %v3094_v2 = vmul.f32 1.442695, %v2975_v46 }
 0x2e7   : > { %v4511_v24 = vpop.eup %4510  ;;  %4522 = vpow2.f32 %v3098_v54  ;;  %v2613_v33 = vpack.c.bf16 %v4507_v23, %v4505_v4  ;;  %v2966_v57 = vunpack.c.h.bf16 %v7090_v3  ;;  %v2965_v1 = vunpack.c.l.bf16 %v7091_v30  ;;  %v7094_v23 = vld [vmem:[#allocation87_spill] sm:$0xff] }
 0x2e8   : > { %2653 = vmatpush.bf16.msrb.mxu1 %v2616_v39  ;;  %v4513_v26 = vpop.eup %4512  ;;  %4524 = vpow2.f32 %v3102_v50  ;;  %v3080_v34 = vmul.f32 1.442695, %v2968_v61  ;;  %v2967_v10 = vunpack.c.h.bf16 %v7091_v30  ;;  %v3084_v12 = vmul.f32 1.442695, %v2970_v48 }
 0x2e9   : > { %v4515_v53 = vpop.eup %4514  ;;  %4526 = vpow2.f32 %v3088_v7  ;;  %v2610_v47 = vpack.c.bf16 %v4511_v24, %v4509_v55  ;;  %v3082_v18 = vmul.f32 1.442695, %v2969_v56  ;;  %v3086_v31 = vmul.f32 1.442695, %v2971_v19  ;;  %v6512_v56 = vld [vmem:[%s3145_s14] sm:$0xff] }
 0x2ea   : > { %2679 = vmatpush.bf16.msrb.mxu3 %v2617_v63  ;;  %v4517_v44 = vpop.eup %4516  ;;  %4528 = vpow2.f32 %v3092_v16  ;;  %v3142_v35 = vpack.c.bf16 %v6453_v22, %v6449_v32  ;;  %v2611_v39 = vpack.c.bf16 %v4515_v53, %v4513_v26  ;;  %v2630_v5 = vunpack.c.l.b16 %v2628_v60  ;;  %v6500_v63 = vpop.f32.mrf.mxu0  ;;  %v7095_v16 = vld [vmem:[#allocation46_spill] sm:$0xff] }
 0x2eb   : > { %v4519_v38 = vpop.eup %4518  ;;  %4530 = vpow2.f32 %v3090_v58  ;;  %v2631_v8 = vunpack.c.h.b16 %v2628_v60  ;;  %v2962_v45 = vunpack.c.h.bf16 %v7087_v29  ;;  %v3072_v15 = vmul.f32 1.442695, %v2964_v41 }
 0x2ec   : > { %2654 = vmatpush.bf16.msrb.mxu1 %v2614_v9  ;;  %v4521_v51 = vpop.eup %4520  ;;  %4532 = vpow2.f32 %v3094_v2  ;;  %v3143_v28 = vpack.c.bf16 %v4517_v44, %v6458_v13  ;;  %v3076_v14 = vmul.f32 1.442695, %v2966_v57  ;;  %v2632_v32 = vpack.c.b16 %v2630_v5, %v2630_v5  ;;  %v7096_v2 = vld [vmem:[#allocation81_spill] sm:$0xff] }
 0x2ed   : > { %v4523_v42 = vpop.eup %4522  ;;  %4534 = vpow2.f32 %v3080_v34  ;;  %v2633_v22 = vpack.c.b16 %v2631_v8, %v2631_v8  ;;  %v2961_v52 = vunpack.c.l.bf16 %v7092_v36  ;;  %v3074_v11 = vmul.f32 1.442695, %v2965_v1 }
 0x2ee   : > { %2680 = vmatpush.bf16.msrb.mxu3 %v2615_v21  ;;  %v4525_v25 = vpop.eup %4524  ;;  %4536 = vpow2.f32 %v3084_v12  ;;  %v3140_v27 = vpack.c.bf16 %v4521_v51, %v4519_v38  ;;  %v2963_v37 = vunpack.c.h.bf16 %v7092_v36  ;;  %v3078_v9 = vmul.f32 1.442695, %v2967_v10  ;;  %2670 = vmatmul.bf16.vlgmr.msrb.gmra.mxu2 %v2632_v32 }
 0x2ef   : > { %v4527_v40 = vpop.eup %4526  ;;  %4538 = vpow2.f32 %v3082_v18  ;;  %2644 = vmatmul.bf16.vlgmr.msrb.gmra.mxu0 %v2632_v32  ;;  %v2956_v43 = vunpack.c.l.bf16 %v7093_v59  ;;  %v3064_v0 = vmul.f32 1.442695, %v2960_v20  ;;  %v3141_v54 = vpack.c.bf16 %v4525_v25, %v4523_v42 }
 0x2f0   : > { %2655 = vmatpush.bf16.msrb.mxu1 %v2612_v6  ;;  %v4529_v49 = vpop.eup %4528  ;;  %4540 = vpow2.f32 %v3086_v31  ;;  %v2958_v46 = vunpack.c.h.bf16 %v7093_v59  ;;  %v3068_v50 = vmul.f32 1.442695, %v2962_v45  ;;  %v2957_v62 = vunpack.c.l.bf16 %v7094_v23 }
 0x2f1   : > { %v4531_v13 = vpop.eup %4530  ;;  %4542 = vpow2.f32 %v3072_v15  ;;  %v3066_v61 = vmul.f32 1.442695, %v2961_v52  ;;  %v3138_v7 = vpack.c.bf16 %v4529_v49, %v4527_v40  ;;  %v2959_v20 = vunpack.c.h.bf16 %v7094_v23 }
 0x2f2   : > { %2681 = vmatpush.bf16.msrb.mxu3 %v2613_v33  ;;  %v4533_v4 = vpop.eup %4532  ;;  %4544 = vpow2.f32 %v3076_v14  ;;  %v3070_v55 = vmul.f32 1.442695, %v2963_v37  ;;  %v2952_v6 = vunpack.c.l.bf16 %v7095_v16  ;;  %v3056_v24 = vmul.f32 1.442695, %v2956_v43  ;;  %v1737_v3 = vpop.f32.mrf.mxu0 }
 0x2f3   : > { %v4535_v21 = vpop.eup %4534  ;;  %4546 = vpow2.f32 %v3074_v11  ;;  %v3139_v17 = vpack.c.bf16 %v4533_v4, %v4531_v13  ;;  %v2954_v58 = vunpack.c.h.bf16 %v7095_v16  ;;  %v3060_v26 = vmul.f32 1.442695, %v2958_v46  ;;  %v1761_v43 = vpop.f32.mrf.mxu2 }
 0x2f4   : > { %2656 = vmatpush.bf16.msrb.mxu1 %v2610_v47  ;;  %v4537_v29 = vpop.eup %4536  ;;  %4548 = vpow2.f32 %v3078_v9  ;;  %v2953_v33 = vunpack.c.l.bf16 %v7096_v2  ;;  %v3058_v53 = vmul.f32 1.442695, %v2957_v62  ;;  %v2955_v1 = vunpack.c.h.bf16 %v7096_v2 }
 0x2f5   : > { %v4539_v48 = vpop.eup %4538  ;;  %4550 = vpow2.f32 %v3064_v0  ;;  %v3136_v57 = vpack.c.bf16 %v4537_v29, %v4535_v21  ;;  %v3062_v34 = vmul.f32 1.442695, %v2959_v20  ;;  %v3148_v44 = vunpack.c.l.b16 %v6512_v56 }
 0x2f6   : > { %2682 = vmatpush.bf16.msrb.mxu3 %v2611_v39  ;;  %v4541_v19 = vpop.eup %4540  ;;  %4552 = vpow2.f32 %v3068_v50  ;;  %v3048_v12 = vmul.f32 1.442695, %v2952_v6  ;;  %v3052_v18 = vmul.f32 1.442695, %v2954_v58  ;;  %v3054_v39 = vmul.f32 1.442695, %v2955_v1 }
 0x2f7   : > { %2657 = vmatmul.bf16.vlgmr.msrb.gmra.mxu1 %v2633_v22  ;;  %v4543_v41 = vpop.eup %4542  ;;  %4554 = vpow2.f32 %v3066_v61  ;;  %v3137_v47 = vpack.c.bf16 %v4541_v19, %v4539_v48  ;;  %v3150_v5 = vpack.c.b16 %v3148_v44, %v3148_v44  ;;  %v3149_v11 = vunpack.c.h.b16 %v6512_v56 }
 0x2f8   : > { %3167 = vmatpush.bf16.msra.mxu1 %v3142_v35  ;;  %v4545_v30 = vpop.eup %4544  ;;  %4556 = vpow2.f32 %v3070_v55  ;;  %v3050_v35 = vmul.f32 1.442695, %v2953_v33 }
 0x2f9   : > { %2683 = vmatmul.bf16.vlgmr.msrb.gmra.mxu3 %v2633_v22  ;;  %v4547_v10 = vpop.eup %4546  ;;  %4558 = vpow2.f32 %v3056_v24  ;;  %v3134_v60 = vpack.c.bf16 %v4545_v30, %v4543_v41  ;;  %v3151_v13 = vpack.c.b16 %v3149_v11, %v3149_v11 }
 0x2fa   : > { %3193 = vmatpush.bf16.msra.mxu3 %v3143_v28  ;;  %v4549_v38 = vpop.eup %4548  ;;  %4560 = vpow2.f32 %v3060_v26 }
 0x2fb   : > { %v4551_v31 = vpop.eup %4550  ;;  %4562 = vpow2.f32 %v3058_v53  ;;  %v3135_v42 = vpack.c.bf16 %v4549_v38, %v4547_v10  ;;  %v1763_v0 = vpop.f32.mrf.mxu2 }
 0x2fc   : > { %3168 = vmatpush.bf16.msra.mxu1 %v3140_v27  ;;  %v4553_v51 = vpop.eup %4552  ;;  %4564 = vpow2.f32 %v3062_v34 }
 0x2fd   : > { %v4555_v8 = vpop.eup %4554  ;;  %4566 = vpow2.f32 %v3048_v12  ;;  %v3132_v28 = vpack.c.bf16 %v4553_v51, %v4551_v31 }
 0x2fe   : > { %3194 = vmatpush.bf16.msra.mxu3 %v3141_v54  ;;  %v4557_v45 = vpop.eup %4556  ;;  %4568 = vpow2.f32 %v3052_v18  ;;  %3188 = vmatmul.bf16.vlgmr.msra.gmra.mxu2 %v3150_v5  ;;  %v2253_v54 = vpop.f32.mrf.mxu0 }
 0x2ff   : > { %v4559_v15 = vpop.eup %4558  ;;  %4570 = vpow2.f32 %v3050_v35  ;;  %3162 = vmatmul.bf16.vlgmr.msra.gmra.mxu0 %v3150_v5  ;;  %v3133_v32 = vpack.c.bf16 %v4557_v45, %v4555_v8 }
 0x300   : > { %3169 = vmatpush.bf16.msra.mxu1 %v3138_v7  ;;  %v4561_v25 = vpop.eup %4560  ;;  %4572 = vpow2.f32 %v3054_v39 }
 0x301   : > { %v4563_v14 = vpop.eup %4562  ;;  %v3130_v36 = vpack.c.bf16 %v4561_v25, %v4559_v15 }
 0x302   : > { %3195 = vmatpush.bf16.msra.mxu3 %v3139_v17  ;;  %v4565_v22 = vpop.eup %4564 }
 0x303   : > { %v4567_v40 = vpop.eup %4566  ;;  %v3131_v49 = vpack.c.bf16 %v4565_v22, %v4563_v14  ;;  %v2279_v23 = vpop.f32.mrf.mxu2 }
 0x304   : > { %3170 = vmatpush.bf16.msra.mxu1 %v3136_v57  ;;  %v4569_v52 = vpop.eup %4568  ;;  %v3220_v57 = vld [vmem:[%s6678_s8] sm:$0xff] }
 0x305   : > { %v4571_v27 = vpop.eup %4570  ;;  %v3128_v9 = vpack.c.bf16 %v4569_v52, %v4567_v40 }
 0x306   : > { %3196 = vmatpush.bf16.msra.mxu3 %v3137_v47  ;;  %v4573_v37 = vpop.eup %4572  ;;  %v2255_v4 = vpop.f32.mrf.mxu0 }
 0x307   : > { %v3129_v59 = vpack.c.bf16 %v4573_v37, %v4571_v27 }
 0x308   : > { %3171 = vmatpush.bf16.msra.mxu1 %v3134_v60 }
 0x30a   : > { %3197 = vmatpush.bf16.msra.mxu3 %v3135_v42 }
 0x30b   : > { %v2281_v61 = vpop.f32.mrf.mxu2 }
 0x30c   : > { %3172 = vmatpush.bf16.msra.mxu1 %v3132_v28 }
 0x30e   : > { %3198 = vmatpush.bf16.msra.mxu3 %v3133_v32 }
 0x310   : > { %3173 = vmatpush.bf16.msra.mxu1 %v3130_v36 }
 0x312   : > { %3199 = vmatpush.bf16.msra.mxu3 %v3131_v49 }
 0x314   : > { %3174 = vmatpush.bf16.msra.mxu1 %v3128_v9 }
 0x316   : > { %3200 = vmatpush.bf16.msra.mxu3 %v3129_v59 }
 0x317   : > { %3175 = vmatmul.bf16.vlgmr.msra.gmra.mxu1 %v3151_v13 }
 0x319   : > { %3201 = vmatmul.bf16.vlgmr.msra.gmra.mxu3 %v3151_v13 }
 0x334   : > { %v1748_v46 = vpop.f32.mrf.mxu1 }
 0x335   : > { %v1749_v7 = vadd.f32 %v1748_v46, %v6500_v63 }
 0x337   : > { %v1778_v29 = vadd.f32 1e-08, %v1749_v7 }
 0x339   : > { %4574 = vrcp.f32 %v1778_v29 }
 0x33c   : > { %v1774_v50 = vpop.f32.mrf.mxu3  ;;  %v1750_v21 = vpop.f32.mrf.mxu1 }
 0x33d   : > { %v1775_v55 = vadd.f32 %v1774_v50, %v1761_v43 }
 0x33f   : > { %v1779_v6 = vadd.f32 1e-08, %v1775_v55  ;;  %v4575_v24 = vpop.eup %4574 }
 0x340   : > { %v1782_v58 = vperm.slane %v4575_v24, 7 }
 0x342   : > { %v1784_v2 = vmul.f32 %v1782_v58, %v1749_v7  ;;  %v3218_v7 = vld [vmem:[%s6671_s1] sm:$0xff] }
 0x344   : > { %v1776_v62 = vpop.f32.mrf.mxu3 }
 0x354   : > { %v2266_v20 = vpop.f32.mrf.mxu1 }
 0x355   : > { %v2267_v48 = vadd.f32 %v2266_v20, %v2253_v54  ;;  %v3219_v20 = vld [vmem:[%s6671_s1 + $0x8] sm:$0xff] }
 0x357   : > { %v2296_v16 = vadd.f32 1e-08, %v2267_v48 }
 0x359   : > { %4576 = vrcp.f32 %v2296_v16 }
 0x35a   : > { %4578 = vrcp.f32 %v1779_v6 }
 0x35c   : > { %v2292_v17 = vpop.f32.mrf.mxu3  ;;  %v2268_v56 = vpop.f32.mrf.mxu1 }
 0x35d   : > { %v2293_v19 = vadd.f32 %v2292_v17, %v2279_v23 }
 0x35f   : > { %v4577_v26 = vpop.eup %4576  ;;  %v2297_v3 = vadd.f32 1e-08, %v2293_v19 }
 0x360   : > { %v2300_v41 = vperm.slane %v4577_v26, 7  ;;  %v4579_v33 = vpop.eup %4578 }
 0x361   : > { %4580 = vrcp.f32 %v2297_v3  ;;  %v1783_v1 = vperm.slane %v4579_v33, 7 }
 0x362   : > { %v2302_v63 = vmul.f32 %v2300_v41, %v2267_v48 }
 0x363   : > { %v1785_v10 = vmul.f32 %v1783_v1, %v1775_v55  ;;  %v3216_v1 = vld [vmem:[%s6670_s0] sm:$0xff] }
 0x364   : > { %v2304_v53 = vadd.f32 %v2302_v63, %v1784_v2  ;;  %v2294_v30 = vpop.f32.mrf.mxu3 }
 0x366   : > { %3240 = vmatpush.msrb.mxu0 %v2304_v53 }
 0x367   : > { %v4581_v34 = vpop.eup %4580  ;;  %3972 = vmatmul.msk.f32.vlgmr.msrb.gmra.mxu0 %vm3221_vm2, %v3220_v57 }
 0x368   : > { %v2301_v44 = vperm.slane %v4581_v34, 7 }
 0x36a   : > { %v2303_v12 = vmul.f32 %v2301_v44, %v2293_v19 }
 0x36c   : > { %v2305_v47 = vadd.f32 %v2303_v12, %v1785_v10  ;;  %v2645_v38 = vpop.f32.mrf.mxu0 }
 0x36e   : > { %3260 = vmatpush.msrb.mxu1 %v2305_v47 }
 0x36f   : > { %3973 = vmatmul.msk.f32.vlgmr.msrb.gmra.mxu1 %vm3221_vm2, %v3220_v57 }
 0x371   : > { %v2671_v35 = vpop.f32.mrf.mxu2 }
 0x374   : > { %v2658_v18 = vpop.f32.mrf.mxu1  ;;  %v2647_v39 = vpop.f32.mrf.mxu0 }
 0x375   : > { %v2659_v31 = vadd.f32 %v2658_v18, %v2645_v38  ;;  %v3217_v18 = vld [vmem:[%s6670_s0 + $0x8] sm:$0xff] }
 0x377   : > { %v2688_v11 = vadd.f32 1e-08, %v2659_v31 }
 0x379   : > { %v2673_v8 = vpop.f32.mrf.mxu2  ;;  %4582 = vrcp.f32 %v2688_v11 }
 0x37c   : > { %v2684_v60 = vpop.f32.mrf.mxu3  ;;  %v2660_v5 = vpop.f32.mrf.mxu1 }
 0x37d   : > { %v2685_v51 = vadd.f32 %v2684_v60, %v2671_v35  ;;  %v3163_v45 = vpop.f32.mrf.mxu0 }
 0x37f   : > { %v2689_v27 = vadd.f32 1e-08, %v2685_v51  ;;  %v4583_v9 = vpop.eup %4582 }
 0x380   : > { %v2692_v0 = vperm.slane %v4583_v9, 7 }
 0x381   : > { %v3189_v25 = vpop.f32.mrf.mxu2  ;;  %4584 = vrcp.f32 %v2689_v27 }
 0x382   : > { %v2694_v50 = vmul.f32 %v2692_v0, %v2659_v31 }
 0x384   : > { %v2686_v42 = vpop.f32.mrf.mxu3 }
 0x385   : > { %v3165_v15 = vpop.f32.mrf.mxu0 }
 0x387   : > { %v4585_v13 = vpop.eup %4584 }
 0x388   : > { %v2693_v4 = vperm.slane %v4585_v13, 7 }
 0x389   : > { %v3191_v22 = vpop.f32.mrf.mxu2 }
 0x38a   : > { %v2695_v23 = vmul.f32 %v2693_v4, %v2685_v51 }
 0x394   : > { %v3176_v28 = vpop.f32.mrf.mxu1 }
 0x395   : > { %v3177_v36 = vadd.f32 %v3176_v28, %v3163_v45 }
 0x397   : > { %v3206_v49 = vadd.f32 1e-08, %v3177_v36 }
 0x399   : > { %4586 = vrcp.f32 %v3206_v49 }
 0x39c   : > { %v3202_v14 = vpop.f32.mrf.mxu3  ;;  %v3178_v32 = vpop.f32.mrf.mxu1 }
 0x39d   : > { %v3203_v52 = vadd.f32 %v3202_v14, %v3189_v25 }
 0x39f   : > { %v3207_v37 = vadd.f32 1e-08, %v3203_v52  ;;  %v4587_v59 = vpop.eup %4586 }
 0x3a0   : > { %v3210_v54 = vperm.slane %v4587_v59, 7 }
 0x3a1   : > { %4588 = vrcp.f32 %v3207_v37 }
 0x3a2   : > { %v3212_v21 = vmul.f32 %v3210_v54, %v3177_v36 }
 0x3a4   : > { %v3204_v40 = vpop.f32.mrf.mxu3  ;;  %v3214_v61 = vadd.f32 %v3212_v21, %v2694_v50 }
 0x3a6   : > { %v6531_v55 = vadd.f32 %v3218_v7, %v3214_v61 }
 0x3a7   : > { %v4589_v43 = vpop.eup %4588 }
 0x3a8   : > { %v3211_v46 = vperm.slane %v4589_v43, 7  ;;  %v3270_v16 = vrot.slane %v6531_v55, 4 }
 0x3aa   : > { %v3213_v62 = vmul.f32 %v3211_v46, %v3203_v52  ;;  %v3271_v24 = vmax.f32 %v6531_v55, %v3270_v16 }
 0x3ac   : > { %v3215_v29 = vadd.f32 %v3213_v62, %v2695_v23  ;;  %v3272_v56 = vrot.slane %v3271_v24, 2 }
 0x3ae   : > { %v6533_v48 = vadd.f32 %v3219_v20, %v3215_v29  ;;  %v3273_v58 = vmax.f32 %v3271_v24, %v3272_v56 }
 0x3b0   : > { %v3276_v6 = vrot.slane %v6533_v48, 4  ;;  %v3274_v3 = vrot.slane %v3273_v58, 1 }
 0x3b2   : > { %v3277_v17 = vmax.f32 %v6533_v48, %v3276_v6  ;;  %v3275_v2 = vmax.f32 %v3273_v58, %v3274_v3 }
 0x3b4   : > { %v3278_v19 = vrot.slane %v3277_v17, 2  ;;  %v3282_v33 = vsub.f32 %v6531_v55, %v3275_v2 }
 0x3b6   : > { %v3279_v26 = vmax.f32 %v3277_v17, %v3278_v19  ;;  %v3284_v57 = vmul.f32 1.442695, %v3282_v33 }
 0x3b8   : > { %v3280_v41 = vrot.slane %v3279_v26, 1  ;;  %4590 = vpow2.f32 %v3284_v57 }
 0x3ba   : > { %v3281_v63 = vmax.f32 %v3279_v26, %v3280_v41 }
 0x3bc   : > { %v3283_v53 = vsub.f32 %v6533_v48, %v3281_v63 }
 0x3be   : > { %v3286_v30 = vmul.f32 1.442695, %v3283_v53  ;;  %v6546_v10 = vpop.eup %4590 }
 0x3bf   : > { %v3288_v31 = vrot.slane %v6546_v10, 4 }
 0x3c0   : > { %4592 = vpow2.f32 %v3286_v30 }
 0x3c1   : > { %v3289_v39 = vadd.f32 %v6546_v10, %v3288_v31 }
 0x3c3   : > { %v3290_v45 = vrot.slane %v3289_v39, 2 }
 0x3c5   : > { %v3291_v14 = vadd.f32 %v3290_v45, %v3289_v39  ;;  %v7100_v39 = vld [vmem:[#allocation14_spill] sm:$0xff] }
 0x3c6   : > { %v6548_v12 = vpop.eup %4592 }
 0x3c7   : > { %v3294_v35 = vrot.slane %v6548_v12, 4  ;;  %v3292_v36 = vrot.slane %v3291_v14, 1 }
 0x3c9   : > { %v3295_v5 = vadd.f32 %v6548_v12, %v3294_v35  ;;  %v3293_v49 = vadd.f32 %v3292_v36, %v3291_v14  ;;  %v7102_v14 = vld [vmem:[#allocation15_spill] sm:$0xff] }
 0x3cb   : > { %v3296_v15 = vrot.slane %v3295_v5, 2  ;;  %4594 = vrcp.f32 %v3293_v49  ;;  %vm3305_vm3 = vweird.f32 %v3293_v49  ;;  %v3309_v62 = vand.u32 2147483647, %v3293_v49 }
 0x3cc   : > { %v3311_v61 = vand.u32 2147483648, %v3293_v49 }
 0x3cd   : > { %v3297_v32 = vadd.f32 %v3296_v15, %v3295_v5  ;;  %vm3310_vm8 = vcmp.eq.f32.partialorder %v3309_v62, 8.507059e+37 }
 0x3ce   : > { %v3312_v19 = vor.u32 1.1754944e-38, %v3311_v61 }
 0x3cf   : > { %v3298_v52 = vrot.slane %v3297_v32, 1 }
 0x3d1   : > { %v3299_v37 = vadd.f32 %v3298_v52, %v3297_v32  ;;  %v4595_v54 = vpop.eup %4594 }
 0x3d2   : > { %v3301_v50 = vmul.f32 %v4595_v54, %v3293_v49  ;;  %vm3306_vm4 = vweird.f32 %v4595_v54 }
 0x3d3   : > { %vm3320_vm5 = vweird.f32 %v3299_v37  ;;  %v3326_v16 = vand.u32 2147483648, %v3299_v37  ;;  %v3324_v17 = vand.u32 2147483647, %v3299_v37  ;;  %vm3307_vm7 = vmor %vm3305_vm3, %vm3306_vm4 }
 0x3d4   : > { %v3302_v7 = vsub.f32 1.0, %v3301_v50 }
 0x3d5   : > { %v3327_v41 = vor.u32 1.1754944e-38, %v3326_v16  ;;  %vm3325_vm10 = vcmp.eq.f32.partialorder %v3324_v17, 8.507059e+37 }
 0x3d6   : > { %v3303_v6 = vmul.f32 %v4595_v54, %v3302_v7 }
 0x3d8   : > { %v3304_v58 = vadd.f32 %v4595_v54, %v3303_v6 }
 0x3da   : > { %v3308_v33 = vsel %vm3307_vm7, %v4595_v54, %v3304_v58 }
 0x3db   : > { %v3313_v30 = vsel %vm3310_vm8, %v3312_v19, %v3308_v33 }
 0x3e4   : > { %v3242_v34 = vpop.f32.mrf.mxu0 }
 0x3e5   : > { %v6544_v44 = vadd.f32 %v3242_v34, %v3216_v1  ;;  %v3314_v34 = vmul.f32 %v6546_v10, %v3313_v30 }
 0x3e7   : > { %v3376_v47 = vrot.slane %v6544_v44, 4  ;;  %3348 = vmatpush.msrb.mxu2 %v3314_v34 }
 0x3e9   : > { %v3377_v38 = vmax.f32 %v6544_v44, %v3376_v47 }
 0x3eb   : > { %v3378_v60 = vrot.slane %v3377_v38, 2 }
 0x3ec   : > { %v3262_v51 = vpop.f32.mrf.mxu1 }
 0x3ed   : > { %v3379_v8 = vmax.f32 %v3377_v38, %v3378_v60  ;;  %v6559_v42 = vadd.f32 %v3262_v51, %v3217_v18  ;;  %v3269_v38 = vld [vmem:[%s6679_s9] sm:$0xff]  ;;  %v4714_v18 = vmov 0  }
 0x3ee   : > { %4060 = vset.pattern.permute.xlu0 %v4714_v18  ;;  %4061 = vset.pattern.permute.xlu1 %v4714_v18  ;;  %v7099_v51 = vld [vmem:[#allocation12_spill] sm:$0xff] }
 0x3ef   : > { %v3380_v28 = vrot.slane %v3379_v8, 1  ;;  %v3382_v25 = vrot.slane %v6559_v42, 4  ;;  %3607 = vperm.xlu0 %4060, %v7099_v51   ;;  %3637 = vperm.xlu1 %4061, %v7100_v39  }
 0x3f0   : > { %3974 = vmatmul.msk.f32.vlgmr.msrb.gmra.mxu2 %vm3221_vm2, %v3269_v38 }
 0x3f1   : > { %v3381_v22 = vmax.f32 %v3379_v8, %v3380_v28  ;;  %v3383_v40 = vmax.f32 %v6559_v42, %v3382_v25  ;;  %v7101_v25 = vld [vmem:[#allocation13_spill] sm:$0xff] }
 0x3f3   : > { %v3388_v11 = vsub.f32 %v6544_v44, %v3381_v22  ;;  %v3384_v27 = vrot.slane %v3383_v40, 2 }
 0x3f5   : > { %v3390_v9 = vmul.f32 1.442695, %v3388_v11  ;;  %v3385_v13 = vmax.f32 %v3383_v40, %v3384_v27 }
 0x3f7   : > { %4596 = vpow2.f32 %v3390_v9  ;;  %v3386_v59 = vrot.slane %v3385_v13, 1  ;;  %3624 = vperm.xlu0 %4060, %v7101_v25   ;;  %3650 = vperm.xlu1 %4061, %v7102_v14  }
 0x3f8   : > { %4598 = vrcp.f32 %v3299_v37 }
 0x3f9   : > { %v3387_v43 = vmax.f32 %v3385_v13, %v3386_v59  ;;  %v3375_v59 = vld [vmem:[%s6680_s10] sm:$0xff] }
 0x3fb   : > { %v3389_v0 = vsub.f32 %v6559_v42, %v3387_v43 }
 0x3fd   : > { %v6565_v4 = vpop.eup %4596  ;;  %v3392_v46 = vmul.f32 1.442695, %v3389_v0 }
 0x3fe   : > { %v4599_v21 = vpop.eup %4598  ;;  %v3394_v23 = vrot.slane %v6565_v4, 4 }
 0x3ff   : > { %4600 = vpow2.f32 %v3392_v46  ;;  %v3316_v29 = vmul.f32 %v4599_v21, %v3299_v37  ;;  %vm3321_vm6 = vweird.f32 %v4599_v21 }
 0x400   : > { %v3395_v20 = vadd.f32 %v6565_v4, %v3394_v23  ;;  %vm6570_vm9 = vmor %vm3320_vm5, %vm3321_vm6 }
 0x401   : > { %v3317_v24 = vsub.f32 1.0, %v3316_v29 }
 0x402   : > { %v3396_v56 = vrot.slane %v3395_v20, 2 }
 0x403   : > { %v3318_v26 = vmul.f32 %v4599_v21, %v3317_v24 }
 0x404   : > { %v3397_v2 = vadd.f32 %v3396_v56, %v3395_v20 }
 0x405   : > { %v6574_v63 = vpop.eup %4600  ;;  %v3319_v53 = vadd.f32 %v4599_v21, %v3318_v26 }
 0x406   : > { %v3400_v57 = vrot.slane %v6574_v63, 4  ;;  %v3398_v1 = vrot.slane %v3397_v2, 1 }
 0x407   : > { %v3323_v47 = vsel %vm6570_vm9, %v4599_v21, %v3319_v53 }
 0x408   : > { %v3401_v31 = vadd.f32 %v6574_v63, %v3400_v57  ;;  %v3328_v35 = vsel %vm3325_vm10, %v3327_v41, %v3323_v47  ;;  %v3399_v60 = vadd.f32 %v3398_v1, %v3397_v2 }
 0x409   : > { %v3329_v10 = vmul.f32 %v6548_v12, %v3328_v35 }
 0x40a   : > { %v3402_v5 = vrot.slane %v3401_v31, 2  ;;  %4602 = vrcp.f32 %v3399_v60  ;;  %v3417_v40 = vand.u32 2147483648, %v3399_v60  ;;  %v3415_v36 = vand.u32 2147483647, %v3399_v60 }
 0x40b   : > { %3368 = vmatpush.msrb.mxu3 %v3329_v10  ;;  %vm3411_vm12 = vweird.f32 %v3399_v60 }
 0x40c   : > { %3975 = vmatmul.msk.f32.vlgmr.msrb.gmra.mxu3 %vm3221_vm2, %v3269_v38  ;;  %v3403_v8 = vadd.f32 %v3402_v5, %v3401_v31  ;;  %v3418_v27 = vor.u32 1.1754944e-38, %v3417_v40  ;;  %vm3416_vm14 = vcmp.eq.f32.partialorder %v3415_v36, 8.507059e+37 }
 0x40e   : > { %v3404_v45 = vrot.slane %v3403_v8, 1 }
 0x410   : > { %v4603_v15 = vpop.eup %4602  ;;  %v3405_v28 = vadd.f32 %v3404_v45, %v3403_v8 }
 0x411   : > { %v3407_v32 = vmul.f32 %v4603_v15, %v3399_v60  ;;  %vm3412_vm11 = vweird.f32 %v4603_v15 }
 0x412   : > { %4604 = vrcp.f32 %v3405_v28  ;;  %vm3413_vm13 = vmor %vm3411_vm12, %vm3412_vm11  ;;  %v3432_v0 = vand.u32 2147483648, %v3405_v28  ;;  %v3430_v46 = vand.u32 2147483647, %v3405_v28  ;;  %vm3426_vm0 = vweird.f32 %v3405_v28 }
 0x413   : > { %v3408_v22 = vsub.f32 1.0, %v3407_v32 }
 0x414   : > { %v3433_v21 = vor.u32 1.1754944e-38, %v3432_v0  ;;  %vm3431_vm3 = vcmp.eq.f32.partialorder %v3430_v46, 8.507059e+37 }
 0x415   : > { %v3409_v12 = vmul.f32 %v4603_v15, %v3408_v22 }
 0x417   : > { %v3410_v52 = vadd.f32 %v4603_v15, %v3409_v12 }
 0x418   : > { %v4605_v11 = vpop.eup %4604 }
 0x419   : > { %v3414_v49 = vsel %vm3413_vm13, %v4603_v15, %v3410_v52  ;;  %v3422_v37 = vmul.f32 %v4605_v11, %v3405_v28  ;;  %vm3427_vm15 = vweird.f32 %v4605_v11 }
 0x41a   : > { %v3419_v9 = vsel %vm3416_vm14, %v3418_v27, %v3414_v49  ;;  %vm3428_vm1 = vmor %vm3426_vm0, %vm3427_vm15 }
 0x41b   : > { %v3420_v13 = vmul.f32 %v6565_v4, %v3419_v9  ;;  %v3423_v43 = vsub.f32 1.0, %v3422_v37 }
 0x41d   : > { %3454 = vmatpush.msra.mxu0 %v3420_v13  ;;  %v3424_v54 = vmul.f32 %v4605_v11, %v3423_v43 }
 0x41e   : > { %3976 = vmatmul.msk.f32.vlgmr.msra.gmra.mxu0 %vm3221_vm2, %v3375_v59 }
 0x41f   : > { %v3425_v50 = vadd.f32 %v4605_v11, %v3424_v54 }
 0x421   : > { %v3429_v23 = vsel %vm3428_vm1, %v4605_v11, %v3425_v50 }
 0x422   : > { %v3434_v62 = vsel %vm3431_vm3, %v3433_v21, %v3429_v23 }
 0x423   : > { %v3435_v4 = vmul.f32 %v6574_v63, %v3434_v62 }
 0x425   : > { %3474 = vmatpush.msra.mxu1 %v3435_v4 }
 0x426   : > { %3977 = vmatmul.msk.f32.vlgmr.msra.gmra.mxu1 %vm3221_vm2, %v3375_v59 }
 0x461   : > { %v3608_v46 = vpop.permute.xlu0 %3607 }
 0x473   : > { %v3350_v61 = vpop.f32.mrf.mxu2 }
 0x474   : > { %v3373_v7 = vadd.f32 %v3350_v61, %v6544_v44 }
 0x476   : > { %3481 = vst [vmem:[#allocation6] sm:$0xff] %v3373_v7  ;;  %v3485_v20 = vrot.slane %v3373_v7, 4 }
 0x478   : > { %v3486_v6 = vmax.f32 %v3373_v7, %v3485_v20 }
 0x47a   : > { %v3487_v17 = vrot.slane %v3486_v6, 2 }
 0x47c   : > { %v3488_v19 = vmax.f32 %v3486_v6, %v3487_v17 }
 0x47e   : > { %v3489_v26 = vrot.slane %v3488_v19, 1 }
 0x480   : > { %v3490_v41 = vmax.f32 %v3488_v19, %v3489_v26 }
 0x482   : > { %v3497_v33 = vsub.f32 %v3373_v7, %v3490_v41 }
 0x484   : > { %v3499_v57 = vmul.f32 1.442695, %v3497_v33 }
 0x486   : > { %4606 = vpow2.f32 %v3499_v57 }
 0x48c   : > { %v6602_v35 = vpop.eup %4606 }
 0x48f   : > { %v3370_v29 = vpop.f32.mrf.mxu3 }
 0x490   : > { %v3374_v16 = vadd.f32 %v3370_v29, %v6559_v42 }
 0x492   : > { %3482 = vst [vmem:[#allocation6 + $0x8] sm:$0xff] %v3374_v16  ;;  %v3491_v24 = vrot.slane %v3374_v16, 4 }
 0x494   : > { %v3492_v56 = vmax.f32 %v3374_v16, %v3491_v24 }
 0x496   : > { %v3493_v58 = vrot.slane %v3492_v56, 2 }
 0x498   : > { %v3494_v3 = vmax.f32 %v3492_v56, %v3493_v58 }
 0x49a   : > { %v3495_v2 = vrot.slane %v3494_v3, 1 }
 0x49b   : > { %v3456_v63 = vpop.f32.mrf.mxu0 }
 0x49c   : > { %v3496_v53 = vmax.f32 %v3494_v3, %v3495_v2  ;;  %v3479_v44 = vadd.f32 %v3456_v63, %v6531_v55  ;;  %v3503_v55 = vrot.slane %v6602_v35, 4 }
 0x49e   : > { %v3498_v30 = vsub.f32 %v3374_v16, %v3496_v53  ;;  %3483 = vst [vmem:[#allocation8] sm:$0xff] %v3479_v44  ;;  %v3545_v42 = vrot.slane %v3479_v44, 4  ;;  %v3504_v45 = vadd.f32 %v6602_v35, %v3503_v55 }
 0x4a0   : > { %v3501_v1 = vmul.f32 1.442695, %v3498_v30  ;;  %v3546_v34 = vmax.f32 %v3479_v44, %v3545_v42  ;;  %v3505_v25 = vrot.slane %v3504_v45, 2  ;;  %v3625_v30 = vpop.permute.xlu0 %3624 }
 0x4a2   : > { %4608 = vpow2.f32 %v3501_v1  ;;  %v3547_v47 = vrot.slane %v3546_v34, 2  ;;  %v3506_v22 = vadd.f32 %v3505_v25, %v3504_v45  ;;  %v7103_v45 = vld [vmem:[#allocation16_spill] sm:$0xff] }
 0x4a3   : > { %v3476_v38 = vpop.f32.mrf.mxu1 }
 0x4a4   : > { %v3548_v18 = vmax.f32 %v3546_v34, %v3547_v47  ;;  %v3480_v31 = vadd.f32 %v3476_v38, %v6533_v48  ;;  %v3507_v36 = vrot.slane %v3506_v22, 1 }
 0x4a6   : > { %v3549_v60 = vrot.slane %v3548_v18, 1  ;;  %3484 = vst [vmem:[#allocation8 + $0x8] sm:$0xff] %v3480_v31  ;;  %v3551_v51 = vrot.slane %v3480_v31, 4  ;;  %v3508_v27 = vadd.f32 %v3507_v36, %v3506_v22  ;;  %v3638_v36 = vpop.permute.xlu1 %3637 }
 0x4a8   : > { %v6605_v39 = vpop.eup %4608  ;;  %v3550_v10 = vmax.f32 %v3548_v18, %v3549_v60  ;;  %v3552_v5 = vmax.f32 %v3480_v31, %v3551_v51  ;;  %v3526_v20 = vand.u32 2147483648, %v3508_v27  ;;  %v3524_v24 = vand.u32 2147483647, %v3508_v27 }
 0x4a9   : > { %v3509_v8 = vrot.slane %v6605_v39, 4  ;;  %vm3520_vm4 = vweird.f32 %v3508_v27 }
 0x4aa   : > { %v3557_v15 = vsub.f32 %v3479_v44, %v3550_v10  ;;  %v3553_v28 = vrot.slane %v3552_v5, 2  ;;  %v3527_v2 = vor.u32 1.1754944e-38, %v3526_v20  ;;  %vm3525_vm7 = vcmp.eq.f32.partialorder %v3524_v24, 8.507059e+37 }
 0x4ab   : > { %v3510_v48 = vadd.f32 %v6605_v39, %v3509_v8 }
 0x4ac   : > { %v3559_v14 = vmul.f32 1.442695, %v3557_v15  ;;  %v3554_v32 = vmax.f32 %v3552_v5, %v3553_v28 }
 0x4ad   : > { %v3511_v40 = vrot.slane %v3510_v48, 2 }
 0x4ae   : > { %4610 = vpow2.f32 %v3559_v14  ;;  %v3555_v12 = vrot.slane %v3554_v32, 1 }
 0x4af   : > { %v3512_v52 = vadd.f32 %v3511_v40, %v3510_v48  ;;  %4612 = vrcp.f32 %v3508_v27 }
 0x4b0   : > { %v3556_v11 = vmax.f32 %v3554_v32, %v3555_v12 }
 0x4b1   : > { %v3513_v49 = vrot.slane %v3512_v52, 1 }
 0x4b2   : > { %v3558_v37 = vsub.f32 %v3480_v31, %v3556_v11 }
 0x4b3   : > { %v3514_v9 = vadd.f32 %v3513_v49, %v3512_v52 }
 0x4b4   : > { %v6610_v13 = vpop.eup %4610  ;;  %v3561_v59 = vmul.f32 1.442695, %v3558_v37 }
 0x4b5   : > { %v3563_v43 = vrot.slane %v6610_v13, 4  ;;  %4614 = vrcp.f32 %v3514_v9  ;;  %v4613_v54 = vpop.eup %4612  ;;  %v3541_v56 = vand.u32 2147483648, %v3514_v9  ;;  %v3539_v41 = vand.u32 2147483647, %v3514_v9 }
 0x4b6   : > { %4616 = vpow2.f32 %v3561_v59  ;;  %v3516_v21 = vmul.f32 %v4613_v54, %v3508_v27  ;;  %vm3521_vm2 = vweird.f32 %v4613_v54  ;;  %vm3535_vm8 = vweird.f32 %v3514_v9 }
 0x4b7   : > { %v3564_v0 = vadd.f32 %v6610_v13, %v3563_v43  ;;  %vm3522_vm6 = vmor %vm3520_vm4, %vm3521_vm2  ;;  %v3542_v57 = vor.u32 1.1754944e-38, %v3541_v56  ;;  %vm3540_vm10 = vcmp.eq.f32.partialorder %v3539_v41, 8.507059e+37 }
 0x4b8   : > { %v3517_v61 = vsub.f32 1.0, %v3516_v21 }
 0x4b9   : > { %v3565_v50 = vrot.slane %v3564_v0, 2 }
 0x4ba   : > { %v3518_v6 = vmul.f32 %v4613_v54, %v3517_v61 }
 0x4bb   : > { %v4615_v23 = vpop.eup %4614  ;;  %v3566_v62 = vadd.f32 %v3565_v50, %v3564_v0 }
 0x4bc   : > { %v6614_v4 = vpop.eup %4616  ;;  %v3531_v7 = vmul.f32 %v4615_v23, %v3514_v9  ;;  %v3519_v26 = vadd.f32 %v4613_v54, %v3518_v6  ;;  %vm3536_vm5 = vweird.f32 %v4615_v23 }
 0x4bd   : > { %v3569_v29 = vrot.slane %v6614_v4, 4  ;;  %v3567_v16 = vrot.slane %v3566_v62, 1  ;;  %vm3537_vm9 = vmor %vm3535_vm8, %vm3536_vm5 }
 0x4be   : > { %v3532_v17 = vsub.f32 1.0, %v3531_v7  ;;  %v3523_v33 = vsel %vm3522_vm6, %v4613_v54, %v3519_v26 }
 0x4bf   : > { %v3568_v19 = vadd.f32 %v3567_v16, %v3566_v62  ;;  %v3570_v58 = vadd.f32 %v6614_v4, %v3569_v29  ;;  %v3528_v44 = vsel %vm3525_vm7, %v3527_v2, %v3523_v33  ;;  %v3651_v62 = vpop.permute.xlu1 %3650 }
 0x4c0   : > { %v3533_v3 = vmul.f32 %v4615_v23, %v3532_v17  ;;  %v3529_v1 = vmul.f32 %v6602_v35, %v3528_v44 }
 0x4c1   : > { %v3571_v63 = vrot.slane %v3570_v58, 2  ;;  %4618 = vrcp.f32 %v3568_v19  ;;  %v3586_v22 = vand.u32 2147483648, %v3568_v19  ;;  %v3584_v40 = vand.u32 2147483647, %v3568_v19 }
 0x4c2   : > { %v3534_v53 = vadd.f32 %v4615_v23, %v3533_v3  ;;  %v3610_v31 = vmul.f32 %v3608_v46, %v3529_v1  ;;  %v3627_v60 = vmul.f32 %v3625_v30, %v3529_v1  ;;  %vm3580_vm12 = vweird.f32 %v3568_v19 }
 0x4c3   : > { %v3572_v42 = vadd.f32 %v3571_v63, %v3570_v58  ;;  %v3587_v49 = vor.u32 1.1754944e-38, %v3586_v22  ;;  %vm3585_vm14 = vcmp.eq.f32.partialorder %v3584_v40, 8.507059e+37 }
 0x4c4   : > { %v3538_v34 = vsel %vm3537_vm9, %v4615_v23, %v3534_v53  ;;  %v3612_v35 = vadd.f32 %v7103_v45, %v3610_v31  ;;  %v3629_v28 = vadd.f32 %v7103_v45, %v3627_v60 }
 0x4c5   : > { %v3543_v47 = vsel %vm3540_vm10, %v3542_v57, %v3538_v34  ;;  %v3573_v38 = vrot.slane %v3572_v42, 1 }
 0x4c6   : > { %v3544_v18 = vmul.f32 %v6605_v39, %v3543_v47 }
 0x4c7   : > { %v4619_v51 = vpop.eup %4618  ;;  %v3574_v55 = vadd.f32 %v3573_v38, %v3572_v42 }
 0x4c8   : > { %v3611_v10 = vmul.f32 %v3608_v46, %v3544_v18  ;;  %v3628_v5 = vmul.f32 %v3625_v30, %v3544_v18  ;;  %v3576_v8 = vmul.f32 %v4619_v51, %v3568_v19  ;;  %vm3581_vm11 = vweird.f32 %v4619_v51 }
 0x4c9   : > { %4620 = vrcp.f32 %v3574_v55  ;;  %vm3582_vm13 = vmor %vm3580_vm12, %vm3581_vm11  ;;  %v3601_v59 = vand.u32 2147483648, %v3574_v55  ;;  %v3599_v0 = vand.u32 2147483647, %v3574_v55  ;;  %vm3595_vm0 = vweird.f32 %v3574_v55 }
 0x4ca   : > { %v3613_v15 = vadd.f32 %v7103_v45, %v3611_v10  ;;  %v3630_v39 = vadd.f32 %v7103_v45, %v3628_v5  ;;  %v3577_v25 = vsub.f32 1.0, %v3576_v8 }
 0x4cb   : > { %v3602_v50 = vor.u32 1.1754944e-38, %v3601_v59  ;;  %vm3600_vm3 = vcmp.eq.f32.partialorder %v3599_v0, 8.507059e+37 }
 0x4cc   : > { %v3614_v48 = vpack.c.bf16 %v3613_v15, %v3612_v35  ;;  %v3631_v14 = vpack.c.bf16 %v3630_v39, %v3629_v28  ;;  %v3578_v32 = vmul.f32 %v4619_v51, %v3577_v25 }
 0x4ce   : > { %3621 = vst [vmem:[%s3620_s16] sm:$0xff] %v3614_v48  ;;  %v3579_v52 = vadd.f32 %v4619_v51, %v3578_v32 }
 0x4cf   : > { %v4621_v12 = vpop.eup %4620  ;;  %3634 = vst [vmem:[%s3633_s18] sm:$0xff] %v3631_v14 }
 0x4d0   : > { %v3591_v11 = vmul.f32 %v4621_v12, %v3574_v55  ;;  %v3583_v27 = vsel %vm3582_vm13, %v4619_v51, %v3579_v52  ;;  %vm3596_vm15 = vweird.f32 %v4621_v12 }
 0x4d1   : > { %v3588_v9 = vsel %vm3585_vm14, %v3587_v49, %v3583_v27  ;;  %vm3597_vm1 = vmor %vm3595_vm0, %vm3596_vm15 }
 0x4d2   : > { %v3592_v37 = vsub.f32 1.0, %v3591_v11  ;;  %v3589_v54 = vmul.f32 %v6610_v13, %v3588_v9 }
 0x4d4   : > { %v3593_v43 = vmul.f32 %v4621_v12, %v3592_v37  ;;  %v3640_v7 = vmul.f32 %v3638_v36, %v3589_v54  ;;  %v3653_v29 = vmul.f32 %v3651_v62, %v3589_v54 }
 0x4d6   : > { %v3594_v46 = vadd.f32 %v4621_v12, %v3593_v43  ;;  %v3642_v6 = vadd.f32 %v7103_v45, %v3640_v7  ;;  %v3655_v24 = vadd.f32 %v7103_v45, %v3653_v29 }
 0x4d8   : > { %v3598_v21 = vsel %vm3597_vm1, %v4621_v12, %v3594_v46 }
 0x4d9   : > { %v3603_v23 = vsel %vm3600_vm3, %v3602_v50, %v3598_v21 }
 0x4da   : > { %v3604_v61 = vmul.f32 %v6614_v4, %v3603_v23 }
 0x4dc   : > { %v3641_v20 = vmul.f32 %v3638_v36, %v3604_v61  ;;  %v3654_v16 = vmul.f32 %v3651_v62, %v3604_v61 }
 0x4de   : > { %v3643_v13 = vadd.f32 %v7103_v45, %v3641_v20  ;;  %v3656_v17 = vadd.f32 %v7103_v45, %v3654_v16 }
 0x4e0   : > { %v3644_v56 = vpack.c.bf16 %v3643_v13, %v3642_v6  ;;  %v3657_v19 = vpack.c.bf16 %v3656_v17, %v3655_v24 }
 0x4e2   : > { %3647 = vst [vmem:[%s3646_s19] sm:$0xff] %v3644_v56 }
 0x4e3   : > { %3660 = vst [vmem:[%s3659_s20] sm:$0xff] %v3657_v19 }
 0x4e4 PF: > { %p6639_p6 = scmp.eq.s32.totalorder %s3825_s24, 3  ;;  %s3672_s30 = sshll.u32 %s6681_s11, 4  ;;  %s3673_s30 = int_to_ptr.hbm [resolvable:$true] %s3672_s30 }
 0x4e5   : > { %s4715_s21 = smov [#allocation6]   ;;  %s4716_s13 = smov [#allocation8]  }
 0x4e6   : > { %s3670_s26 = sshll.u32 %s4715_s21, 4  ;;  %s3685_s14 = sshll.u32 %s4716_s13, 4  ;;  %s3671_s26 = int_to_ptr.vmem [resolvable:$true] %s3670_s26  ;;  %s3686_s14 = int_to_ptr.vmem [resolvable:$true] %s3685_s14 }
 0x4e7   : > { %4002 = dma.vmem_to_hbm [thread:$0]  (%p6639_p6), %s3671_s26, 256, %s3673_s30, [#allocation7]  }
 0x4e8   : > { %s3687_s17 = sshll.u32 %s6682_s12, 4  ;;  %s3688_s17 = int_to_ptr.hbm [resolvable:$true] %s3687_s17 }
 0x4e9   : > { %4004 = dma.vmem_to_hbm [thread:$0]  (%p6639_p6), %s3686_s14, 256, %s3688_s17, [#allocation9]  }
 0x4ea   : > { %4693 = dma.done.wait (%p6639_p6), [#allocation7], 256  }
 0x4eb   : > { %4695 = vsyncadd (%p6639_p6), [#allocation7], 4294967040 }
 0x4ec   : > { %4697 = dma.done.wait (%p6639_p6), [#allocation9], 256  }
 0x4ed   : > { %4699 = vsyncadd (%p6639_p6), [#allocation9], 4294967040 }
 0x4ee PF: > { %s25_s23 = sadd.s32 1, %s4710_s23   ;;  %s7105_s21 = smov %s4706_s22 }
 0x4ef   : > { %p22_p7 = scmp.ge.s32.totalorder %s25_s23, 6   ;;  %s7106_s22 = smov %s7108_s25 }
 0x4f1   :  { %24 = sbr.rel (!%p22_p7) target bundleno = 3 (0x3), region = 127 }
 0x4f6   :  { %3706 = vsyncpa [#allocation7], 1 }
 0x4f7   :  { %3708 = vsyncpa [#allocation7 + $0x1], 1 }
 0x4f8   :  { %3709 = vsyncpa [#allocation9], 1 }

// kernel: tpu_custom_call.1
= control target key start
LH: loop header
LB: loop body
LE: loop exit
PB: predicated region body
PF: predicated region fallthrough
CT: control target
= control target key end

     0   :  { %18 = vsyncpa [#allocation7], 0  ;;  %s6520_s0 = inlined_call_operand.vmem [shape: f32[8,256], index: 0, kind: input, shape index: {}]   ;;  %s6521_s1 = inlined_call_operand.vmem [shape: f32[8,256], index: 1, kind: input, shape index: {}]   ;;  %s6522_s2 = inlined_call_operand.vmem [shape: f32[256,16], index: 2, kind: input, shape index: {}]   ;;  %s6523_s3 = inlined_call_operand.vmem [shape: f32[16,512], index: 3, kind: input, shape index: {}]   ;;  %s6524_s4 = inlined_call_operand.vmem [shape: f32[8,1], index: 4, kind: input, shape index: {}]   ;;  %s6525_s5 = inlined_call_operand.vmem [shape: f32[8,1], index: 5, kind: input, shape index: {}]   ;;  %s6526_s6 = inlined_call_operand.vmem [shape: f32[8,1], index: 6, kind: input, shape index: {}]   ;;  %s6527_s7 = inlined_call_operand.vmem [shape: f32[8,1], index: 7, kind: input, shape index: {}]   ;;  %s6528_s8 = inlined_call_operand.vmem [shape: f32[8,8], index: 8, kind: input, shape index: {}]   ;;  %s6529_s9 = inlined_call_operand.vmem [shape: f32[8,8], index: 9, kind: input, shape index: {}]   ;;  %s6530_s10 = inlined_call_operand.vmem [shape: f32[8,8], index: 10, kind: input, shape index: {}]   ;;  %s6531_s11 = inlined_call_operand.hbm [shape: f32[8,256], index: 11, kind: output, shape index: {0}]   ;;  %s6532_s12 = inlined_call_operand.hbm [shape: f32[8,256], index: 12, kind: output, shape index: {1}]  }
   0x1   :  { %19 = vsyncpa [#allocation9], 0  ;;  %s4398_s21 = smov 0   ;;  %s4400_s22 = smov 0  }
   0x2   :  { %s4402_s23 = smov 0  }
   0x3 LB: > { %s3441_s24 = sadd.s32 4294967295, %s4326_s23   ;;  %s37_s25 = sadd.s32 1, %s4322_s22  ;;  %s4326_s23 = sphi %s4402_s23, %s25_s23   ;;  %s4322_s22 = sphi %s4400_s22, %s7019_s22   ;;  %s4318_s21 = sphi %s4398_s21, %s7018_s21  }
   0x4   : > { %p39_p0 = scmp.ge.s32.totalorder %s37_s25, 4  ;;  %p3446_p1 = scmp.ge.s32.totalorder %s4326_s23, 1 }
   0x5   : > { %p402_p2 = scmp.lt.s32.totalorder %s4326_s23, 5 }
   0x6   : > { %s7021_s25 = smov (%p39_p0, %s37_s25), 0 }
   0x7   : > { %p403_p3 = pnand %p3446_p1, %p402_p2 }
   0x9   : > { %406 = sbr.rel (%p403_p3) target bundleno = 1205 (0x4b5), region = 64 }
   0xe   : > { %s469_s26 = sand.u32 1, %s4318_s21  ;;  %s470_s27 = sadd.s32 1, %s4318_s21  ;;  %v4424_v0 = vld [vmem:[%s6524_s4] sm:$0xff]  ;;  %v477_v3 = vlaneseq  ;;  %v4328_v6 = vmov 0.0  }
   0xf   : > { %6630 = vst [vmem:[#allocation12_spill] sm:$0xff] %v4424_v0  ;;  %v4429_v1 = vld [vmem:[%s6525_s5] sm:$0xff]  ;;  %s4436_s16 = sand.u32 1, %s470_s27  ;;  %p3448_p4 = scmp.ne.s32.totalorder %s4318_s21, 0 }
  0x10   : > { %6631 = vst [vmem:[#allocation13_spill] sm:$0xff] %v4429_v1  ;;  %v4434_v2 = vld [vmem:[%s6526_s6] sm:$0xff]  ;;  %v478_v5 = vshrl.u32 %v477_v3, 7  ;;  %s4507_s15 = sshll.u32 (!%p3448_p4), %s4436_s16, 3 }
  0x11   : > { %6632 = vst [vmem:[#allocation14_spill] sm:$0xff] %v4434_v2  ;;  %v4441_v4 = vld [vmem:[%s6527_s7] sm:$0xff]  ;;  %485 = sbr.rel (%p3448_p4) target bundleno = 155 (0x9b), region = 68  ;;  %s651_s17 = scalar_lea.vmem (!%p3448_p4), [#allocation4], %s4507_s15 }
  0x12   : > { %6633 = vst [vmem:[#allocation15_spill] sm:$0xff] %v4441_v4  ;;  %vm479_vm0 = vcmp.eq.s32.totalorder %v478_v5, 7  ;;  %s625_s18 = scalar_lea.vmem (!%p3448_p4), [#allocation2], %s4507_s15  ;;  %s664_s19 = scalar_lea.vmem (!%p3448_p4), [#allocation5], %s4507_s15 }
  0x13   : > { %v4443_v7 = vsel %vm479_vm0, 1.0, %v4328_v6  ;;  %s638_s20 = scalar_lea.vmem (!%p3448_p4), [#allocation3], %s4507_s15 }
  0x14   : > { %6634 = vst [vmem:[#allocation16_spill] sm:$0xff] %v4443_v7 }
  0x16   : > { %v4329_v8 = vmov 0   ;;  %v548_v9 = vld [vmem:[%s6521_s1] sm:$0xff]  ;;  %v549_v10 = vld [vmem:[%s6521_s1 + $0x8] sm:$0xff] }
  0x17   : > { %3659 = vset.pattern.permute.xlu1 %v4329_v8  ;;  %3658 = vset.pattern.permute.xlu0 %v4329_v8  ;;  %v486_v11 = vld [vmem:[%s6520_s0] sm:$0xff]  ;;  %v550_v12 = vrot.slane %v548_v9, 4  ;;  %v556_v13 = vrot.slane %v549_v10, 4  ;;  %v487_v14 = vld [vmem:[%s6520_s0 + $0x8] sm:$0xff]  ;;  %672 = vst [vmem:[#allocation8] sm:$0xff] %v548_v9 }
  0x18   : > { %642 = vperm.xlu1 %3659, %v4434_v2   ;;  %612 = vperm.xlu0 %3658, %v4424_v0   ;;  %v488_v15 = vrot.slane %v486_v11, 4  ;;  %668 = vst [vmem:[#allocation6] sm:$0xff] %v486_v11  ;;  %v494_v16 = vrot.slane %v487_v14, 4 }
  0x19   : > { %669 = vst [vmem:[#allocation6 + $0x8] sm:$0xff] %v487_v14  ;;  %v551_v17 = vmax.f32 %v548_v9, %v550_v12  ;;  %v557_v18 = vmax.f32 %v549_v10, %v556_v13 }
  0x1a   : > { %v489_v19 = vmax.f32 %v486_v11, %v488_v15  ;;  %v495_v20 = vmax.f32 %v487_v14, %v494_v16  ;;  %673 = vst [vmem:[#allocation8 + $0x8] sm:$0xff] %v549_v10 }
  0x1b   : > { %v552_v21 = vrot.slane %v551_v17, 2  ;;  %v558_v22 = vrot.slane %v557_v18, 2 }
  0x1c   : > { %v490_v23 = vrot.slane %v489_v19, 2  ;;  %v496_v24 = vrot.slane %v495_v20, 2 }
  0x1d   : > { %v553_v25 = vmax.f32 %v551_v17, %v552_v21  ;;  %v559_v26 = vmax.f32 %v557_v18, %v558_v22 }
  0x1e   : > { %v491_v27 = vmax.f32 %v489_v19, %v490_v23  ;;  %v497_v28 = vmax.f32 %v495_v20, %v496_v24 }
  0x1f   : > { %v554_v29 = vrot.slane %v553_v25, 1  ;;  %v560_v30 = vrot.slane %v559_v26, 1 }
  0x20   : > { %655 = vperm.xlu1 %3659, %v4441_v4   ;;  %629 = vperm.xlu0 %3658, %v4429_v1   ;;  %v492_v31 = vrot.slane %v491_v27, 1  ;;  %v498_v32 = vrot.slane %v497_v28, 1 }
  0x21   : > { %v555_v33 = vmax.f32 %v553_v25, %v554_v29  ;;  %v561_v34 = vmax.f32 %v559_v26, %v560_v30 }
  0x22   : > { %v493_v35 = vmax.f32 %v491_v27, %v492_v31  ;;  %v499_v36 = vmax.f32 %v497_v28, %v498_v32 }
  0x23   : > { %v562_v37 = vsub.f32 %v548_v9, %v555_v33  ;;  %v563_v38 = vsub.f32 %v549_v10, %v561_v34 }
  0x24   : > { %v500_v39 = vsub.f32 %v486_v11, %v493_v35  ;;  %v501_v40 = vsub.f32 %v487_v14, %v499_v36 }
  0x25   : > { %v564_v41 = vmul.f32 1.442695, %v562_v37  ;;  %v566_v42 = vmul.f32 1.442695, %v563_v38 }
  0x26   : > { %v502_v43 = vmul.f32 1.442695, %v500_v39  ;;  %v504_v44 = vmul.f32 1.442695, %v501_v40 }
  0x27   : > { %3660 = vpow2.f32 %v564_v41 }
  0x28   : > { %3662 = vpow2.f32 %v566_v42 }
  0x29   : > { %3664 = vpow2.f32 %v502_v43 }
  0x2a   : > { %3666 = vpow2.f32 %v504_v44 }
  0x2d   : > { %v4462_v45 = vpop.eup %3660 }
  0x2e   : > { %v4464_v46 = vpop.eup %3662  ;;  %v568_v48 = vrot.slane %v4462_v45, 4 }
  0x2f   : > { %v4466_v47 = vpop.eup %3664  ;;  %v574_v50 = vrot.slane %v4464_v46, 4 }
  0x30   : > { %v4469_v49 = vpop.eup %3666  ;;  %v506_v51 = vrot.slane %v4466_v47, 4  ;;  %v569_v53 = vadd.f32 %v4462_v45, %v568_v48 }
  0x31   : > { %v512_v52 = vrot.slane %v4469_v49, 4  ;;  %v575_v54 = vadd.f32 %v4464_v46, %v574_v50 }
  0x32   : > { %v507_v55 = vadd.f32 %v4466_v47, %v506_v51  ;;  %v570_v57 = vrot.slane %v569_v53, 2 }
  0x33   : > { %v513_v56 = vadd.f32 %v4469_v49, %v512_v52  ;;  %v576_v58 = vrot.slane %v575_v54, 2 }
  0x34   : > { %v508_v59 = vrot.slane %v507_v55, 2  ;;  %v571_v61 = vadd.f32 %v570_v57, %v569_v53 }
  0x35   : > { %v514_v60 = vrot.slane %v513_v56, 2  ;;  %v577_v62 = vadd.f32 %v576_v58, %v575_v54 }
  0x36   : > { %v509_v63 = vadd.f32 %v508_v59, %v507_v55  ;;  %v572_v5 = vrot.slane %v571_v61, 1 }
  0x37   : > { %v515_v3 = vadd.f32 %v514_v60, %v513_v56  ;;  %v578_v6 = vrot.slane %v577_v62, 1 }
  0x38   : > { %v510_v8 = vrot.slane %v509_v63, 1  ;;  %v573_v10 = vadd.f32 %v572_v5, %v571_v61 }
  0x39   : > { %v516_v9 = vrot.slane %v515_v3, 1  ;;  %v579_v11 = vadd.f32 %v578_v6, %v577_v62 }
  0x3a   : > { %v511_v12 = vadd.f32 %v510_v8, %v509_v63  ;;  %3668 = vrcp.f32 %v573_v10  ;;  %vm585_vm1 = vweird.f32 %v573_v10  ;;  %v591_v30 = vand.u32 2147483648, %v573_v10 }
  0x3b   : > { %v517_v13 = vadd.f32 %v516_v9, %v515_v3  ;;  %3670 = vrcp.f32 %v579_v11  ;;  %vm600_vm3 = vweird.f32 %v579_v11  ;;  %v606_v31 = vand.u32 2147483648, %v579_v11 }
  0x3c   : > { %3672 = vrcp.f32 %v511_v12  ;;  %vm523_vm5 = vweird.f32 %v511_v12  ;;  %v589_v34 = vand.u32 2147483647, %v573_v10  ;;  %v604_v37 = vand.u32 2147483647, %v579_v11 }
  0x3d   : > { %3674 = vrcp.f32 %v517_v13  ;;  %vm538_vm8 = vweird.f32 %v517_v13  ;;  %v529_v38 = vand.u32 2147483648, %v511_v12  ;;  %v544_v39 = vand.u32 2147483648, %v517_v13 }
  0x3e   : > { %v527_v42 = vand.u32 2147483647, %v511_v12  ;;  %v542_v44 = vand.u32 2147483647, %v517_v13  ;;  %vm590_vm13 = vcmp.eq.f32.partialorder %v589_v34, 8.507059e+37  ;;  %v592_v51 = vor.u32 1.1754944e-38, %v591_v30 }
  0x3f   : > { %v607_v52 = vor.u32 1.1754944e-38, %v606_v31  ;;  %vm605_vm14 = vcmp.eq.f32.partialorder %v604_v37, 8.507059e+37  ;;  %v530_v54 = vor.u32 1.1754944e-38, %v529_v38  ;;  %v545_v55 = vor.u32 1.1754944e-38, %v544_v39 }
  0x40   : > { %v3669_v14 = vpop.eup %3668  ;;  %vm528_vm15 = vcmp.eq.f32.partialorder %v527_v42, 8.507059e+37  ;;  %vm543_vm0 = vcmp.eq.f32.partialorder %v542_v44, 8.507059e+37 }
  0x41   : > { %v3671_v15 = vpop.eup %3670  ;;  %v581_v18 = vmul.f32 %v3669_v14, %v573_v10  ;;  %vm586_vm2 = vweird.f32 %v3669_v14 }
  0x42   : > { %v3673_v16 = vpop.eup %3672  ;;  %v596_v19 = vmul.f32 %v3671_v15, %v579_v11  ;;  %vm601_vm4 = vweird.f32 %v3671_v15  ;;  %vm4478_vm7 = vmor %vm585_vm1, %vm586_vm2 }
  0x43   : > { %v3675_v17 = vpop.eup %3674  ;;  %v519_v20 = vmul.f32 %v3673_v16, %v511_v12  ;;  %v582_v22 = vsub.f32 1.0, %v581_v18  ;;  %vm524_vm6 = vweird.f32 %v3673_v16  ;;  %vm4482_vm10 = vmor %vm600_vm3, %vm601_vm4 }
  0x44   : > { %v534_v21 = vmul.f32 %v3675_v17, %v517_v13  ;;  %v597_v23 = vsub.f32 1.0, %v596_v19  ;;  %vm539_vm9 = vweird.f32 %v3675_v17  ;;  %vm4486_vm11 = vmor %vm523_vm5, %vm524_vm6 }
  0x45   : > { %v520_v24 = vsub.f32 1.0, %v519_v20  ;;  %v583_v26 = vmul.f32 %v3669_v14, %v582_v22  ;;  %vm4490_vm12 = vmor %vm538_vm8, %vm539_vm9 }
  0x46   : > { %v535_v25 = vsub.f32 1.0, %v534_v21  ;;  %v598_v27 = vmul.f32 %v3671_v15, %v597_v23 }
  0x47   : > { %v521_v28 = vmul.f32 %v3673_v16, %v520_v24  ;;  %v584_v32 = vadd.f32 %v3669_v14, %v583_v26 }
  0x48   : > { %v536_v29 = vmul.f32 %v3675_v17, %v535_v25  ;;  %v599_v35 = vadd.f32 %v3671_v15, %v598_v27 }
  0x49   : > { %v522_v40 = vadd.f32 %v3673_v16, %v521_v28  ;;  %v588_v50 = vsel %vm4478_vm7, %v3669_v14, %v584_v32 }
  0x4a   : > { %v537_v43 = vadd.f32 %v3675_v17, %v536_v29  ;;  %v603_v53 = vsel %vm4482_vm10, %v3671_v15, %v599_v35  ;;  %v593_v58 = vsel %vm590_vm13, %v592_v51, %v588_v50 }
  0x4b   : > { %v526_v56 = vsel %vm4486_vm11, %v3673_v16, %v522_v40  ;;  %v608_v59 = vsel %vm605_vm14, %v607_v52, %v603_v53  ;;  %v594_v62 = vmul.f32 %v4462_v45, %v593_v58 }
  0x4c   : > { %v541_v57 = vsel %vm4490_vm12, %v3675_v17, %v537_v43  ;;  %v531_v60 = vsel %vm528_vm15, %v530_v54, %v526_v56  ;;  %v609_v63 = vmul.f32 %v4464_v46, %v608_v59 }
  0x4d   : > { %v546_v61 = vsel %vm543_vm0, %v545_v55, %v541_v57  ;;  %v532_v3 = vmul.f32 %v4466_v47, %v531_v60 }
  0x4e   : > { %v547_v5 = vmul.f32 %v4469_v49, %v546_v61 }
  0x8a   : > { %v643_v6 = vpop.permute.xlu1 %642  ;;  %v613_v8 = vpop.permute.xlu0 %612 }
  0x8b   : > { %v645_v9 = vmul.f32 %v643_v6, %v594_v62  ;;  %v646_v10 = vmul.f32 %v643_v6, %v609_v63  ;;  %v615_v11 = vmul.f32 %v613_v8, %v532_v3  ;;  %v616_v12 = vmul.f32 %v613_v8, %v547_v5 }
  0x8d   : > { %v647_v13 = vadd.f32 %v4443_v7, %v645_v9  ;;  %v648_v45 = vadd.f32 %v4443_v7, %v646_v10  ;;  %v617_v46 = vadd.f32 %v4443_v7, %v615_v11  ;;  %v618_v47 = vadd.f32 %v4443_v7, %v616_v12 }
  0x8f   : > { %v649_v14 = vpack.c.bf16 %v648_v45, %v647_v13  ;;  %v619_v49 = vpack.c.bf16 %v618_v47, %v617_v46 }
  0x91   : > { %652 = vst [vmem:[%s651_s17] sm:$0xff] %v649_v14 }
  0x92   : > { %626 = vst [vmem:[%s625_s18] sm:$0xff] %v619_v49  ;;  %v656_v15 = vpop.permute.xlu1 %655  ;;  %v630_v16 = vpop.permute.xlu0 %629 }
  0x93   : > { %v658_v17 = vmul.f32 %v656_v15, %v594_v62  ;;  %v659_v18 = vmul.f32 %v656_v15, %v609_v63  ;;  %v632_v19 = vmul.f32 %v630_v16, %v532_v3  ;;  %v633_v20 = vmul.f32 %v630_v16, %v547_v5 }
  0x95   : > { %v660_v21 = vadd.f32 %v4443_v7, %v658_v17  ;;  %v661_v22 = vadd.f32 %v4443_v7, %v659_v18  ;;  %v634_v23 = vadd.f32 %v4443_v7, %v632_v19  ;;  %v635_v24 = vadd.f32 %v4443_v7, %v633_v20 }
  0x97   : > { %v662_v25 = vpack.c.bf16 %v661_v22, %v660_v21  ;;  %v636_v26 = vpack.c.bf16 %v635_v24, %v634_v23 }
  0x99   : > { %665 = vst [vmem:[%s664_s19] sm:$0xff] %v662_v25 }
  0x9a   : > { %639 = vst [vmem:[%s638_s20] sm:$0xff] %v636_v26 }
  0x9b PF: > { %p3454_p5 = scmp.le.s32.totalorder %s4318_s21, 0 }
  0x9d   : > { %677 = sbr.rel (%p3454_p5) target bundleno = 1195 (0x4ab), region = 72 }
  0xa2   : > { %v714_v27 = vld [vmem:[%s6523_s3 + $0x20] sm:$0xff]  ;;  %v715_v28 = vld [vmem:[%s6523_s3 + $0x28] sm:$0xff]  ;;  %v716_v29 = vld [vmem:[%s6523_s3 + $0x30] sm:$0xff]  ;;  %vm718_vm1 = vcmask 130048   ;;  %s5514_s30 = sshll.u32 %s469_s26, 3  ;;  %vm2837_vm2 = vcmask 64512  }
  0xa3   : > { %829 = vmatpush.msra.mxu0 %v714_v27  ;;  %942 = vmatpush.msra.mxu1 %v715_v28  ;;  %v717_v30 = vld [vmem:[%s6523_s3 + $0x38] sm:$0xff]  ;;  %v710_v31 = vld [vmem:[%s6523_s3] sm:$0xff]  ;;  %v711_v32 = vld [vmem:[%s6523_s3 + $0x8] sm:$0xff]  ;;  %s1621_s21 = scalar_lea.vmem [#allocation2], %s5514_s30  ;;  %s2043_s26 = scalar_lea.vmem [#allocation3], %s5514_s30 }
  0xa4   : > { %1055 = vmatpush.msra.mxu2 %v716_v29  ;;  %1168 = vmatpush.msra.mxu3 %v717_v30  ;;  %v712_v33 = vld [vmem:[%s6523_s3 + $0x10] sm:$0xff]  ;;  %v713_v34 = vld [vmem:[%s6523_s3 + $0x18] sm:$0xff]  ;;  %v678_v35 = vld [vmem:[%s6522_s2] sm:$0xff]  ;;  %s2339_s13 = scalar_lea.vmem [#allocation4], %s5514_s30  ;;  %s2761_s14 = scalar_lea.vmem [#allocation5], %s5514_s30 }
  0xa5   : > { %830 = vmatpush.msra.mxu0 %v710_v31  ;;  %943 = vmatpush.msra.mxu1 %v711_v32  ;;  %v679_v36 = vld [vmem:[%s6522_s2 + $0x8] sm:$0xff]  ;;  %v680_v37 = vld [vmem:[%s6522_s2 + $0x10] sm:$0xff]  ;;  %v681_v38 = vld [vmem:[%s6522_s2 + $0x18] sm:$0xff]  ;;  %s6471_s17 = sshll.u32 %s4436_s16, 3 }
  0xa6   : > { %1056 = vmatpush.msra.mxu2 %v712_v33  ;;  %1169 = vmatpush.msra.mxu3 %v713_v34  ;;  %v682_v39 = vld [vmem:[%s6522_s2 + $0x20] sm:$0xff]  ;;  %v683_v40 = vld [vmem:[%s6522_s2 + $0x28] sm:$0xff]  ;;  %v684_v41 = vld [vmem:[%s6522_s2 + $0x30] sm:$0xff]  ;;  %s3236_s16 = scalar_lea.vmem [#allocation2], %s6471_s17  ;;  %s3249_s18 = scalar_lea.vmem [#allocation3], %s6471_s17 }
  0xa7   : > { %3455 = vmatmul.msk.f32.vlgmr.msra.gmra.mxu0 %vm718_vm1, %v678_v35  ;;  %3487 = vmatmul.msk.f32.vlgmr.msra.gmra.mxu1 %vm718_vm1, %v678_v35  ;;  %v685_v42 = vld [vmem:[%s6522_s2 + $0x38] sm:$0xff]  ;;  %v686_v43 = vld [vmem:[%s6522_s2 + $0x40] sm:$0xff]  ;;  %v687_v44 = vld [vmem:[%s6522_s2 + $0x48] sm:$0xff]  ;;  %s3262_s19 = scalar_lea.vmem [#allocation4], %s6471_s17  ;;  %s3275_s20 = scalar_lea.vmem [#allocation5], %s6471_s17 }
  0xa8   : > { %3519 = vmatmul.msk.f32.vlgmr.msra.gmra.mxu2 %vm718_vm1, %v678_v35  ;;  %3551 = vmatmul.msk.f32.vlgmr.msra.gmra.mxu3 %vm718_vm1, %v678_v35  ;;  %v688_v48 = vld [vmem:[%s6522_s2 + $0x50] sm:$0xff]  ;;  %v689_v50 = vld [vmem:[%s6522_s2 + $0x58] sm:$0xff]  ;;  %v690_v51 = vld [vmem:[%s6522_s2 + $0x60] sm:$0xff] }
  0xa9   : > { %v691_v52 = vld [vmem:[%s6522_s2 + $0x68] sm:$0xff]  ;;  %v692_v53 = vld [vmem:[%s6522_s2 + $0x70] sm:$0xff]  ;;  %v693_v54 = vld [vmem:[%s6522_s2 + $0x78] sm:$0xff] }
  0xaa   : > { %v694_v57 = vld [vmem:[%s6522_s2 + $0x80] sm:$0xff]  ;;  %v695_v62 = vld [vmem:[%s6522_s2 + $0x88] sm:$0xff]  ;;  %v696_v8 = vld [vmem:[%s6522_s2 + $0x90] sm:$0xff] }
  0xab   : > { %v697_v13 = vld [vmem:[%s6522_s2 + $0x98] sm:$0xff]  ;;  %v698_v49 = vld [vmem:[%s6522_s2 + $0xa0] sm:$0xff]  ;;  %v699_v19 = vld [vmem:[%s6522_s2 + $0xa8] sm:$0xff] }
  0xac   : > { %v700_v26 = vld [vmem:[%s6522_s2 + $0xb0] sm:$0xff] }
  0xaf   : > { %3456 = vmatmul.msk.f32.gmra.mxu0 %vm718_vm1, %v679_v36  ;;  %3488 = vmatmul.msk.f32.gmra.mxu1 %vm718_vm1, %v679_v36 }
  0xb0   : > { %3520 = vmatmul.msk.f32.gmra.mxu2 %vm718_vm1, %v679_v36  ;;  %3552 = vmatmul.msk.f32.gmra.mxu3 %vm718_vm1, %v679_v36 }
  0xb7   : > { %3457 = vmatmul.msk.f32.gmra.mxu0 %vm718_vm1, %v680_v37  ;;  %3489 = vmatmul.msk.f32.gmra.mxu1 %vm718_vm1, %v680_v37 }
  0xb8   : > { %3521 = vmatmul.msk.f32.gmra.mxu2 %vm718_vm1, %v680_v37  ;;  %3553 = vmatmul.msk.f32.gmra.mxu3 %vm718_vm1, %v680_v37 }
  0xbf   : > { %3458 = vmatmul.msk.f32.gmra.mxu0 %vm718_vm1, %v681_v38  ;;  %3490 = vmatmul.msk.f32.gmra.mxu1 %vm718_vm1, %v681_v38 }
  0xc0   : > { %3522 = vmatmul.msk.f32.gmra.mxu2 %vm718_vm1, %v681_v38  ;;  %3554 = vmatmul.msk.f32.gmra.mxu3 %vm718_vm1, %v681_v38 }
  0xc7   : > { %3459 = vmatmul.msk.f32.gmra.mxu0 %vm718_vm1, %v682_v39  ;;  %3491 = vmatmul.msk.f32.gmra.mxu1 %vm718_vm1, %v682_v39 }
  0xc8   : > { %3523 = vmatmul.msk.f32.gmra.mxu2 %vm718_vm1, %v682_v39  ;;  %3555 = vmatmul.msk.f32.gmra.mxu3 %vm718_vm1, %v682_v39 }
  0xcf   : > { %3460 = vmatmul.msk.f32.gmra.mxu0 %vm718_vm1, %v683_v40  ;;  %3492 = vmatmul.msk.f32.gmra.mxu1 %vm718_vm1, %v683_v40 }
  0xd0   : > { %3524 = vmatmul.msk.f32.gmra.mxu2 %vm718_vm1, %v683_v40  ;;  %3556 = vmatmul.msk.f32.gmra.mxu3 %vm718_vm1, %v683_v40 }
  0xd7   : > { %3461 = vmatmul.msk.f32.gmra.mxu0 %vm718_vm1, %v684_v41  ;;  %3493 = vmatmul.msk.f32.gmra.mxu1 %vm718_vm1, %v684_v41 }
  0xd8   : > { %3525 = vmatmul.msk.f32.gmra.mxu2 %vm718_vm1, %v684_v41  ;;  %3557 = vmatmul.msk.f32.gmra.mxu3 %vm718_vm1, %v684_v41 }
  0xdf   : > { %3462 = vmatmul.msk.f32.gmra.mxu0 %vm718_vm1, %v685_v42  ;;  %3494 = vmatmul.msk.f32.gmra.mxu1 %vm718_vm1, %v685_v42 }
  0xe0   : > { %3526 = vmatmul.msk.f32.gmra.mxu2 %vm718_vm1, %v685_v42  ;;  %3558 = vmatmul.msk.f32.gmra.mxu3 %vm718_vm1, %v685_v42 }
  0xe7   : > { %3463 = vmatmul.msk.f32.gmra.mxu0 %vm718_vm1, %v686_v43  ;;  %3495 = vmatmul.msk.f32.gmra.mxu1 %vm718_vm1, %v686_v43 }
  0xe8   : > { %3527 = vmatmul.msk.f32.gmra.mxu2 %vm718_vm1, %v686_v43  ;;  %3559 = vmatmul.msk.f32.gmra.mxu3 %vm718_vm1, %v686_v43 }
  0xef   : > { %3464 = vmatmul.msk.f32.gmra.mxu0 %vm718_vm1, %v687_v44  ;;  %3496 = vmatmul.msk.f32.gmra.mxu1 %vm718_vm1, %v687_v44 }
  0xf0   : > { %3528 = vmatmul.msk.f32.gmra.mxu2 %vm718_vm1, %v687_v44  ;;  %3560 = vmatmul.msk.f32.gmra.mxu3 %vm718_vm1, %v687_v44 }
  0xf7   : > { %3465 = vmatmul.msk.f32.gmra.mxu0 %vm718_vm1, %v688_v48  ;;  %3497 = vmatmul.msk.f32.gmra.mxu1 %vm718_vm1, %v688_v48 }
  0xf8   : > { %3529 = vmatmul.msk.f32.gmra.mxu2 %vm718_vm1, %v688_v48  ;;  %3561 = vmatmul.msk.f32.gmra.mxu3 %vm718_vm1, %v688_v48 }
  0xff   : > { %3466 = vmatmul.msk.f32.gmra.mxu0 %vm718_vm1, %v689_v50  ;;  %3498 = vmatmul.msk.f32.gmra.mxu1 %vm718_vm1, %v689_v50 }
 0x100   : > { %3530 = vmatmul.msk.f32.gmra.mxu2 %vm718_vm1, %v689_v50  ;;  %3562 = vmatmul.msk.f32.gmra.mxu3 %vm718_vm1, %v689_v50 }
 0x107   : > { %3467 = vmatmul.msk.f32.gmra.mxu0 %vm718_vm1, %v690_v51  ;;  %3499 = vmatmul.msk.f32.gmra.mxu1 %vm718_vm1, %v690_v51 }
 0x108   : > { %3531 = vmatmul.msk.f32.gmra.mxu2 %vm718_vm1, %v690_v51  ;;  %3563 = vmatmul.msk.f32.gmra.mxu3 %vm718_vm1, %v690_v51 }
 0x10f   : > { %3468 = vmatmul.msk.f32.gmra.mxu0 %vm718_vm1, %v691_v52  ;;  %3500 = vmatmul.msk.f32.gmra.mxu1 %vm718_vm1, %v691_v52 }
 0x110   : > { %3532 = vmatmul.msk.f32.gmra.mxu2 %vm718_vm1, %v691_v52  ;;  %3564 = vmatmul.msk.f32.gmra.mxu3 %vm718_vm1, %v691_v52  ;;  %v701_v52 = vld [vmem:[%s6522_s2 + $0xb8] sm:$0xff] }
 0x117   : > { %3469 = vmatmul.msk.f32.gmra.mxu0 %vm718_vm1, %v692_v53  ;;  %3501 = vmatmul.msk.f32.gmra.mxu1 %vm718_vm1, %v692_v53 }
 0x118   : > { %3533 = vmatmul.msk.f32.gmra.mxu2 %vm718_vm1, %v692_v53  ;;  %3565 = vmatmul.msk.f32.gmra.mxu3 %vm718_vm1, %v692_v53 }
 0x11f   : > { %3470 = vmatmul.msk.f32.gmra.mxu0 %vm718_vm1, %v693_v54  ;;  %3502 = vmatmul.msk.f32.gmra.mxu1 %vm718_vm1, %v693_v54 }
 0x120   : > { %3534 = vmatmul.msk.f32.gmra.mxu2 %vm718_vm1, %v693_v54  ;;  %3566 = vmatmul.msk.f32.gmra.mxu3 %vm718_vm1, %v693_v54 }
 0x124   : > { %v832_v55 = vpop.f32.mrf.mxu0  ;;  %v945_v56 = vpop.f32.mrf.mxu1 }
 0x125   : > { %v4740_v22 = vmax.f32 %v832_v55, 0.0  ;;  %v4749_v27 = vmax.f32 %v945_v56, 0.0 }
 0x127   : > { %3471 = vmatmul.msk.f32.gmra.mxu0 %vm718_vm1, %v694_v57  ;;  %3503 = vmatmul.msk.f32.gmra.mxu1 %vm718_vm1, %v694_v57  ;;  %6643 = vst [vmem:[#allocation17_spill] sm:$0xff] %v4740_v22  ;;  %v2114_v30 = vmul.f32 -0.125, %v4740_v22  ;;  %v1690_v31 = vmul.f32 -0.0078125, %v4740_v22  ;;  %v2408_v33 = vmul.f32 -0.013888889, %v4740_v22  ;;  %v2115_v35 = vmul.f32 -0.125, %v4749_v27 }
 0x128   : > { %3535 = vmatmul.msk.f32.gmra.mxu2 %vm718_vm1, %v694_v57  ;;  %3567 = vmatmul.msk.f32.gmra.mxu3 %vm718_vm1, %v694_v57  ;;  %6644 = vst [vmem:[#allocation18_spill] sm:$0xff] %v4749_v27  ;;  %v1691_v44 = vmul.f32 -0.0078125, %v4749_v27  ;;  %v2409_v54 = vmul.f32 -0.013888889, %v4749_v27 }
 0x129   : > { %v2178_v42 = vmul.f32 1.442695, %v2114_v30  ;;  %v2180_v56 = vmul.f32 1.442695, %v2115_v35 }
 0x12b   : > { %v1058_v58 = vpop.f32.mrf.mxu2  ;;  %v4665_v59 = vpop.f32.mrf.mxu3  ;;  %3678 = vpow2.f32 %v2178_v42 }
 0x12c   : > { %v835_v60 = vpop.f32.mrf.mxu0  ;;  %v4667_v61 = vpop.f32.mrf.mxu1  ;;  %v1269_v23 = vmax.f32 %v1058_v58, 0.0  ;;  %v1270_v28 = vmax.f32 %v4665_v59, 0.0  ;;  %3680 = vpow2.f32 %v2180_v56 }
 0x12d   : > { %v4752_v29 = vmax.f32 %v835_v60, 0.0  ;;  %v4770_v48 = vmax.f32 %v4667_v61, 0.0 }
 0x12e   : > { %v1754_v32 = vmul.f32 -2.0, %v1269_v23  ;;  %v2472_v34 = vmul.f32 -3.125, %v1269_v23  ;;  %v1755_v36 = vmul.f32 -2.0, %v1270_v28  ;;  %v2473_v37 = vmul.f32 -3.125, %v1270_v28 }
 0x12f   : > { %3472 = vmatmul.msk.f32.gmra.mxu0 %vm718_vm1, %v695_v62  ;;  %3504 = vmatmul.msk.f32.gmra.mxu1 %vm718_vm1, %v695_v62  ;;  %6645 = vst [vmem:[#allocation19_spill] sm:$0xff] %v4752_v29  ;;  %v2116_v38 = vmul.f32 -0.125, %v4752_v29  ;;  %v1692_v61 = vmul.f32 -0.0078125, %v4752_v29  ;;  %v2411_v35 = vmul.f32 -0.013888889, %v4770_v48 }
 0x130   : > { %3536 = vmatmul.msk.f32.gmra.mxu2 %vm718_vm1, %v695_v62  ;;  %3568 = vmatmul.msk.f32.gmra.mxu3 %vm718_vm1, %v695_v62  ;;  %v1818_v43 = vadd.f32 %v1754_v32, %v1690_v31  ;;  %6646 = vst [vmem:[#allocation20_spill] sm:$0xff] %v4770_v48  ;;  %v2536_v53 = vadd.f32 %v2472_v34, %v2408_v33 }
 0x131   : > { %v1819_v57 = vadd.f32 %v1755_v36, %v1691_v44  ;;  %v2537_v59 = vadd.f32 %v2473_v37, %v2409_v54  ;;  %v2182_v60 = vmul.f32 1.442695, %v2116_v38  ;;  %v4805_v44 = vpop.eup %3678 }
 0x132   : > { %6647 = vst [vmem:[#allocation21_spill] sm:$0xff] %v4805_v44  ;;  %v4810_v56 = vpop.eup %3680 }
 0x133   : > { %v4676_v63 = vpop.f32.mrf.mxu2  ;;  %v4678_v3 = vpop.f32.mrf.mxu3  ;;  %v1884_v23 = vmul.f32 1.442695, %v1819_v57  ;;  %v2602_v30 = vmul.f32 1.442695, %v2537_v59  ;;  %3682 = vpow2.f32 %v2182_v60  ;;  %6648 = vst [vmem:[#allocation22_spill] sm:$0xff] %v4810_v56 }
 0x134   : > { %v4680_v5 = vpop.f32.mrf.mxu0  ;;  %v4682_v6 = vpop.f32.mrf.mxu1  ;;  %v1273_v39 = vmax.f32 %v4676_v63, 0.0  ;;  %v1274_v55 = vmax.f32 %v4678_v3, 0.0  ;;  %v1882_v63 = vmul.f32 1.442695, %v1818_v43 }
 0x135   : > { %v4782_v58 = vmax.f32 %v4680_v5, 0.0  ;;  %v4789_v3 = vmax.f32 %v4682_v6, 0.0  ;;  %v2600_v5 = vmul.f32 1.442695, %v2536_v53  ;;  %v1693_v6 = vmul.f32 -0.0078125, %v4770_v48 }
 0x136   : > { %v1756_v62 = vmul.f32 -2.0, %v1273_v39  ;;  %3684 = vpow2.f32 %v1882_v63 }
 0x137   : > { %3473 = vmatmul.msk.f32.gmra.mxu0 %vm718_vm1, %v696_v8  ;;  %3505 = vmatmul.msk.f32.gmra.mxu1 %vm718_vm1, %v696_v8  ;;  %v2118_v28 = vmul.f32 -0.125, %v4782_v58  ;;  %v2119_v36 = vmul.f32 -0.125, %v4789_v3  ;;  %3686 = vpow2.f32 %v2600_v5  ;;  %v1694_v59 = vmul.f32 -0.0078125, %v4782_v58 }
 0x138   : > { %3537 = vmatmul.msk.f32.gmra.mxu2 %vm718_vm1, %v696_v8  ;;  %3569 = vmatmul.msk.f32.gmra.mxu3 %vm718_vm1, %v696_v8  ;;  %v2117_v8 = vmul.f32 -0.125, %v4770_v48  ;;  %v1820_v31 = vadd.f32 %v1756_v62, %v1692_v61  ;;  %3688 = vpow2.f32 %v1884_v23 }
 0x139   : > { %v2186_v53 = vmul.f32 1.442695, %v2118_v28  ;;  %3690 = vpow2.f32 %v2602_v30  ;;  %v4812_v57 = vmul.f32 1.442695, %v2119_v36  ;;  %v4818_v61 = vpop.eup %3682  ;;  %v1695_v28 = vmul.f32 -0.0078125, %v4789_v3 }
 0x13a   : > { %v2184_v34 = vmul.f32 1.442695, %v2117_v8  ;;  %v1886_v54 = vmul.f32 1.442695, %v1820_v31  ;;  %6649 = vst [vmem:[#allocation23_spill] sm:$0xff] %v4818_v61 }
 0x13b   : > { %v4691_v9 = vpop.f32.mrf.mxu2  ;;  %v4693_v10 = vpop.f32.mrf.mxu3 }
 0x13c   : > { %v4695_v11 = vpop.f32.mrf.mxu0  ;;  %v4697_v12 = vpop.f32.mrf.mxu1  ;;  %3692 = vpow2.f32 %v2184_v34 }
 0x13d   : > { %v4822_v8 = vmax.f32 %v4695_v11, 0.0  ;;  %v4825_v5 = vpop.eup %3684  ;;  %3694 = vpow2.f32 %v2186_v53 }
 0x13e   : > { %6650 = vst [vmem:[#allocation24_spill] sm:$0xff] %v4825_v5  ;;  %v4830_v23 = vpop.eup %3686  ;;  %3696 = vpow2.f32 %v1886_v54 }
 0x13f   : > { %3474 = vmatmul.msk.f32.gmra.mxu0 %vm718_vm1, %v697_v13  ;;  %3506 = vmatmul.msk.f32.gmra.mxu1 %vm718_vm1, %v697_v13  ;;  %6651 = vst [vmem:[#allocation25_spill] sm:$0xff] %v4830_v23  ;;  %v4834_v31 = vpop.eup %3688  ;;  %v2120_v53 = vmul.f32 -0.125, %v4822_v8 }
 0x140   : > { %3538 = vmatmul.msk.f32.gmra.mxu2 %vm718_vm1, %v697_v13  ;;  %3570 = vmatmul.msk.f32.gmra.mxu3 %vm718_vm1, %v697_v13  ;;  %v2410_v13 = vmul.f32 -0.013888889, %v4752_v29  ;;  %6652 = vst [vmem:[#allocation26_spill] sm:$0xff] %v4834_v31 }
 0x143   : > { %v4706_v45 = vpop.f32.mrf.mxu2  ;;  %v4708_v46 = vpop.f32.mrf.mxu3 }
 0x144   : > { %v4710_v47 = vpop.f32.mrf.mxu0  ;;  %v4712_v14 = vpop.f32.mrf.mxu1  ;;  %v1281_v2 = vmax.f32 %v4706_v45, 0.0  ;;  %v1282_v56 = vmax.f32 %v4708_v46, 0.0 }
 0x147   : > { %3475 = vmatmul.msk.f32.gmra.mxu0 %vm718_vm1, %v698_v49  ;;  %3507 = vmatmul.msk.f32.gmra.mxu1 %vm718_vm1, %v698_v49 }
 0x148   : > { %3539 = vmatmul.msk.f32.gmra.mxu2 %vm718_vm1, %v698_v49  ;;  %3571 = vmatmul.msk.f32.gmra.mxu3 %vm718_vm1, %v698_v49  ;;  %v2474_v49 = vmul.f32 -3.125, %v1273_v39  ;;  %v702_v39 = vld [vmem:[%s6522_s2 + $0xc0] sm:$0xff] }
 0x14a   : > { %v2538_v42 = vadd.f32 %v2474_v49, %v2410_v13  ;;  %v2412_v49 = vmul.f32 -0.013888889, %v4782_v58 }
 0x14b   : > { %v4721_v15 = vpop.f32.mrf.mxu2  ;;  %v4723_v16 = vpop.f32.mrf.mxu3 }
 0x14c   : > { %v4725_v17 = vpop.f32.mrf.mxu0  ;;  %v4727_v18 = vpop.f32.mrf.mxu1  ;;  %v2604_v62 = vmul.f32 1.442695, %v2538_v42 }
 0x14d   : > { %v4845_v42 = vpop.eup %3690  ;;  %v4931_v44 = vmax.f32 %v4727_v18, 0.0 }
 0x14e   : > { %6653 = vst [vmem:[#allocation27_spill] sm:$0xff] %v4845_v42  ;;  %3698 = vpow2.f32 %v2604_v62  ;;  %v4848_v54 = vpop.eup %3692 }
 0x14f   : > { %3476 = vmatmul.msk.f32.gmra.mxu0 %vm718_vm1, %v699_v19  ;;  %3508 = vmatmul.msk.f32.gmra.mxu1 %vm718_vm1, %v699_v19  ;;  %6654 = vst [vmem:[#allocation28_spill] sm:$0xff] %v4848_v54 }
 0x150   : > { %3540 = vmatmul.msk.f32.gmra.mxu2 %vm718_vm1, %v699_v19  ;;  %3572 = vmatmul.msk.f32.gmra.mxu3 %vm718_vm1, %v699_v19  ;;  %v1757_v19 = vmul.f32 -2.0, %v1274_v55 }
 0x152   : > { %v1821_v43 = vadd.f32 %v1757_v19, %v1693_v6 }
 0x153   : > { %v4736_v20 = vpop.f32.mrf.mxu2  ;;  %v4738_v21 = vpop.f32.mrf.mxu3 }
 0x154   : > { %v4742_v24 = vpop.f32.mrf.mxu0  ;;  %v4744_v25 = vpop.f32.mrf.mxu1  ;;  %v1888_v63 = vmul.f32 1.442695, %v1821_v43 }
 0x156   : > { %3700 = vpow2.f32 %v1888_v63  ;;  %v2478_v63 = vmul.f32 -3.125, %v1281_v2 }
 0x157   : > { %3477 = vmatmul.msk.f32.gmra.mxu0 %vm718_vm1, %v700_v26  ;;  %3509 = vmatmul.msk.f32.gmra.mxu1 %vm718_vm1, %v700_v26 }
 0x158   : > { %3541 = vmatmul.msk.f32.gmra.mxu2 %vm718_vm1, %v700_v26  ;;  %3573 = vmatmul.msk.f32.gmra.mxu3 %vm718_vm1, %v700_v26  ;;  %v2475_v26 = vmul.f32 -3.125, %v1274_v55  ;;  %v1277_v55 = vmax.f32 %v4691_v9, 0.0  ;;  %v1278_v9 = vmax.f32 %v4693_v10, 0.0  ;;  %v2413_v10 = vmul.f32 -0.013888889, %v4789_v3 }
 0x15a   : > { %v2476_v43 = vmul.f32 -3.125, %v1277_v55  ;;  %v2477_v1 = vmul.f32 -3.125, %v1278_v9 }
 0x15b   : > { %v4764_v40 = vpop.f32.mrf.mxu2  ;;  %v4766_v41 = vpop.f32.mrf.mxu3 }
 0x15c   : > { %v4772_v50 = vpop.f32.mrf.mxu0  ;;  %v4774_v51 = vpop.f32.mrf.mxu1  ;;  %v2540_v45 = vadd.f32 %v2476_v43, %v2412_v49  ;;  %v1696_v49 = vmul.f32 -0.0078125, %v4822_v8  ;;  %v2541_v46 = vadd.f32 %v2477_v1, %v2413_v10  ;;  %v2479_v1 = vmul.f32 -3.125, %v1282_v56 }
 0x15f   : > { %3478 = vmatmul.msk.f32.gmra.mxu0 %vm718_vm1, %v701_v52  ;;  %3510 = vmatmul.msk.f32.gmra.mxu1 %vm718_vm1, %v701_v52 }
 0x160   : > { %3542 = vmatmul.msk.f32.gmra.mxu2 %vm718_vm1, %v701_v52  ;;  %3574 = vmatmul.msk.f32.gmra.mxu3 %vm718_vm1, %v701_v52  ;;  %v2539_v52 = vadd.f32 %v2475_v26, %v2411_v35  ;;  %v1758_v26 = vmul.f32 -2.0, %v1277_v55  ;;  %v4855_v55 = vpop.eup %3694 }
 0x161   : > { %6655 = vst [vmem:[#allocation29_spill] sm:$0xff] %v4855_v55 }
 0x162   : > { %v2606_v13 = vmul.f32 1.442695, %v2539_v52  ;;  %v1759_v52 = vmul.f32 -2.0, %v1278_v9  ;;  %v1822_v62 = vadd.f32 %v1758_v26, %v1694_v59  ;;  %v4864_v9 = vpop.eup %3696 }
 0x163   : > { %v4796_v32 = vpop.f32.mrf.mxu2  ;;  %v4798_v33 = vpop.f32.mrf.mxu3  ;;  %6656 = vst [vmem:[#allocation30_spill] sm:$0xff] %v4864_v9  ;;  %v1293_v9 = vmax.f32 %v4764_v40, 0.0 }
 0x164   : > { %v856_v37 = vpop.f32.mrf.mxu0  ;;  %v969_v38 = vpop.f32.mrf.mxu1  ;;  %v1823_v59 = vadd.f32 %v1759_v52, %v1695_v28  ;;  %3702 = vpow2.f32 %v2606_v13  ;;  %v2608_v13 = vmul.f32 1.442695, %v2540_v45  ;;  %v1761_v52 = vmul.f32 -2.0, %v1282_v56 }
 0x165   : > { %v4815_v60 = vmax.f32 %v856_v37, 0.0  ;;  %v4828_v19 = vmax.f32 %v969_v38, 0.0  ;;  %v4876_v26 = vpop.eup %3698  ;;  %3704 = vpow2.f32 %v4812_v57  ;;  %v2610_v45 = vmul.f32 1.442695, %v2541_v46 }
 0x166   : > { %6657 = vst [vmem:[#allocation31_spill] sm:$0xff] %v4876_v26  ;;  %v4901_v57 = vpop.eup %3700 }
 0x167   : > { %3479 = vmatmul.msk.f32.gmra.mxu0 %vm718_vm1, %v702_v39  ;;  %3511 = vmatmul.msk.f32.gmra.mxu1 %vm718_vm1, %v702_v39  ;;  %v1706_v34 = vmul.f32 -0.0078125, %v4815_v60  ;;  %v2424_v35 = vmul.f32 -0.013888889, %v4815_v60  ;;  %v2425_v0 = vmul.f32 -0.013888889, %v4828_v19  ;;  %6658 = vst [vmem:[#allocation32_spill] sm:$0xff] %v4901_v57 }
 0x168   : > { %3543 = vmatmul.msk.f32.gmra.mxu2 %vm718_vm1, %v702_v39  ;;  %3575 = vmatmul.msk.f32.gmra.mxu3 %vm718_vm1, %v702_v39  ;;  %v703_v39 = vld [vmem:[%s6522_s2 + $0xc8] sm:$0xff] }
 0x16b   : > { %v1082_v11 = vpop.f32.mrf.mxu2  ;;  %v1195_v30 = vpop.f32.mrf.mxu3 }
 0x16c   : > { %v1301_v6 = vmax.f32 %v1082_v11, 0.0  ;;  %v1302_v36 = vmax.f32 %v1195_v30, 0.0  ;;  %v4838_v37 = vpop.f32.mrf.mxu0  ;;  %v4840_v38 = vpop.f32.mrf.mxu1  ;;  %v1707_v30 = vmul.f32 -0.0078125, %v4828_v19 }
 0x16e   : > { %v1770_v11 = vmul.f32 -2.0, %v1301_v6  ;;  %v2488_v7 = vmul.f32 -3.125, %v1301_v6  ;;  %v1771_v4 = vmul.f32 -2.0, %v1302_v36  ;;  %v2489_v23 = vmul.f32 -3.125, %v1302_v36 }
 0x16f   : > { %3480 = vmatmul.msk.f32.gmra.mxu0 %vm718_vm1, %v703_v39  ;;  %3512 = vmatmul.msk.f32.gmra.mxu1 %vm718_vm1, %v703_v39  ;;  %v4867_v36 = vmax.f32 %v4697_v12, 0.0 }
 0x170   : > { %v4857_v42 = vadd.f32 %v1770_v11, %v1706_v34  ;;  %v4859_v54 = vadd.f32 %v2488_v7, %v2424_v35  ;;  %v4861_v6 = vadd.f32 %v1771_v4, %v1707_v30  ;;  %3544 = vmatmul.msk.f32.gmra.mxu2 %vm718_vm1, %v703_v39  ;;  %v4870_v61 = vadd.f32 %v2489_v23, %v2425_v0 }
 0x171   : > { %3576 = vmatmul.msk.f32.gmra.mxu3 %vm718_vm1, %v703_v39  ;;  %v2190_v7 = vmul.f32 1.442695, %v2120_v53  ;;  %v4874_v4 = vmax.f32 %v4710_v47, 0.0  ;;  %v1760_v34 = vmul.f32 -2.0, %v1281_v2  ;;  %v1890_v0 = vmul.f32 1.442695, %v1822_v62 }
 0x172   : > { %v2414_v23 = vmul.f32 -0.013888889, %v4822_v8  ;;  %v704_v47 = vld [vmem:[%s6522_s2 + $0xd0] sm:$0xff]  ;;  %v2121_v43 = vmul.f32 -0.125, %v4867_v36  ;;  %v1892_v53 = vmul.f32 1.442695, %v1823_v59 }
 0x173   : > { %v4879_v12 = vpop.f32.mrf.mxu2  ;;  %v4881_v35 = vpop.f32.mrf.mxu3  ;;  %3706 = vpow2.f32 %v2190_v7  ;;  %v2122_v10 = vmul.f32 -0.125, %v4874_v4  ;;  %v1824_v2 = vadd.f32 %v1760_v34, %v1696_v49  ;;  %v1697_v11 = vmul.f32 -0.0078125, %v4867_v36 }
 0x174   : > { %v4884_v28 = vpop.f32.mrf.mxu0  ;;  %v4886_v39 = vpop.f32.mrf.mxu1  ;;  %v4896_v30 = vmax.f32 %v4712_v14, 0.0  ;;  %v1285_v62 = vmax.f32 %v4721_v15, 0.0  ;;  %3708 = vpow2.f32 %v1890_v0  ;;  %v2542_v59 = vadd.f32 %v2478_v63, %v2414_v23 }
 0x175   : > { %v2415_v56 = vmul.f32 -0.013888889, %v4867_v36  ;;  %v4905_v7 = vpop.eup %3702  ;;  %3710 = vpow2.f32 %v2608_v13  ;;  %v2192_v14 = vmul.f32 1.442695, %v2121_v43  ;;  %v1825_v49 = vadd.f32 %v1761_v52, %v1697_v11 }
 0x176   : > { %6659 = vst [vmem:[#allocation33_spill] sm:$0xff] %v4905_v7  ;;  %v1286_v15 = vmax.f32 %v4723_v16, 0.0  ;;  %3712 = vpow2.f32 %v1892_v53  ;;  %v2194_v26 = vmul.f32 1.442695, %v2122_v10  ;;  %v4910_v0 = vmax.f32 %v4725_v17, 0.0  ;;  %v4912_v46 = vpop.eup %3704 }
 0x177   : > { %3481 = vmatmul.msk.f32.gmra.mxu0 %vm718_vm1, %v704_v47  ;;  %3513 = vmatmul.msk.f32.gmra.mxu1 %vm718_vm1, %v704_v47  ;;  %v2543_v34 = vadd.f32 %v2479_v1, %v2415_v56  ;;  %6660 = vst [vmem:[#allocation34_spill] sm:$0xff] %v4912_v46  ;;  %v1894_v23 = vmul.f32 1.442695, %v1824_v2  ;;  %v2123_v63 = vmul.f32 -0.125, %v4896_v30  ;;  %v1698_v7 = vmul.f32 -0.0078125, %v4874_v4  ;;  %v705_v2 = vld [vmem:[%s6522_s2 + $0xd8] sm:$0xff] }
 0x178   : > { %3545 = vmatmul.msk.f32.gmra.mxu2 %vm718_vm1, %v704_v47  ;;  %v1762_v13 = vmul.f32 -2.0, %v1285_v62  ;;  %3714 = vpow2.f32 %v2610_v45  ;;  %v2416_v53 = vmul.f32 -0.013888889, %v4874_v4  ;;  %v2480_v17 = vmul.f32 -3.125, %v1285_v62 }
 0x179   : > { %3577 = vmatmul.msk.f32.gmra.mxu3 %vm718_vm1, %v704_v47  ;;  %v4920_v16 = vpop.eup %3706  ;;  %v2612_v47 = vmul.f32 1.442695, %v2542_v59  ;;  %3716 = vpow2.f32 %v2192_v14  ;;  %v1896_v11 = vmul.f32 1.442695, %v1825_v49  ;;  %v1763_v56 = vmul.f32 -2.0, %v1286_v15 }
 0x17a   : > { %6661 = vst [vmem:[#allocation35_spill] sm:$0xff] %v4920_v16  ;;  %v4933_v46 = vpop.eup %3708  ;;  %v2614_v45 = vmul.f32 1.442695, %v2543_v34  ;;  %3718 = vpow2.f32 %v2194_v26  ;;  %v2481_v59 = vmul.f32 -3.125, %v1286_v15  ;;  %v2124_v62 = vmul.f32 -0.125, %v4910_v0 }
 0x17b   : > { %v4916_v43 = vpop.f32.mrf.mxu2  ;;  %v4918_v52 = vpop.f32.mrf.mxu3  ;;  %6662 = vst [vmem:[#allocation36_spill] sm:$0xff] %v4933_v46  ;;  %3720 = vpow2.f32 %v1894_v23  ;;  %v1826_v55 = vadd.f32 %v1762_v13, %v1698_v7  ;;  %v1699_v57 = vmul.f32 -0.0078125, %v4896_v30  ;;  %v1289_v14 = vmax.f32 %v4736_v20, 0.0 }
 0x17c   : > { %v4923_v1 = vpop.f32.mrf.mxu0  ;;  %v4925_v10 = vpop.f32.mrf.mxu1  ;;  %3722 = vpow2.f32 %v2612_v47  ;;  %v2196_v49 = vmul.f32 1.442695, %v2123_v63  ;;  %v2544_v26 = vadd.f32 %v2480_v17, %v2416_v53  ;;  %v2417_v15 = vmul.f32 -0.013888889, %v4896_v30 }
 0x17d   : > { %v4936_v16 = vpop.eup %3710  ;;  %v1827_v34 = vadd.f32 %v1763_v56, %v1699_v57  ;;  %v2125_v7 = vmul.f32 -0.125, %v4931_v44  ;;  %v1290_v23 = vmax.f32 %v4738_v21, 0.0  ;;  %v4949_v20 = vmax.f32 %v4742_v24, 0.0 }
 0x17e   : > { %6663 = vst [vmem:[#allocation37_spill] sm:$0xff] %v4936_v16  ;;  %v4942_v18 = vpop.eup %3712  ;;  %3724 = vpow2.f32 %v1896_v11  ;;  %v2545_v47 = vadd.f32 %v2481_v59, %v2417_v15  ;;  %v2198_v63 = vmul.f32 1.442695, %v2124_v62  ;;  %v4955_v53 = vmax.f32 %v4744_v25, 0.0 }
 0x17f   : > { %3482 = vmatmul.msk.f32.gmra.mxu0 %vm718_vm1, %v705_v2  ;;  %3514 = vmatmul.msk.f32.gmra.mxu1 %vm718_vm1, %v705_v2  ;;  %6664 = vst [vmem:[#allocation38_spill] sm:$0xff] %v4942_v18  ;;  %v4952_v13 = vpop.eup %3714  ;;  %3726 = vpow2.f32 %v2614_v45  ;;  %v1898_v57 = vmul.f32 1.442695, %v1826_v55  ;;  %v1700_v56 = vmul.f32 -0.0078125, %v4910_v0  ;;  %v1764_v21 = vmul.f32 -2.0, %v1289_v14  ;;  %v706_v55 = vld [vmem:[%s6522_s2 + $0xe0] sm:$0xff] }
 0x180   : > { %3546 = vmatmul.msk.f32.gmra.mxu2 %vm718_vm1, %v705_v2  ;;  %6665 = vst [vmem:[#allocation39_spill] sm:$0xff] %v4952_v13  ;;  %v4957_v17 = vpop.eup %3716  ;;  %3728 = vpow2.f32 %v2196_v49  ;;  %v2616_v11 = vmul.f32 1.442695, %v2544_v26  ;;  %v2418_v59 = vmul.f32 -0.013888889, %v4910_v0  ;;  %v2482_v62 = vmul.f32 -3.125, %v1289_v14 }
 0x181   : > { %3578 = vmatmul.msk.f32.gmra.mxu3 %vm718_vm1, %v705_v2  ;;  %6666 = vst [vmem:[#allocation40_spill] sm:$0xff] %v4957_v17  ;;  %v4964_v2 = vpop.eup %3718  ;;  %v1900_v13 = vmul.f32 1.442695, %v1827_v34  ;;  %v2200_v17 = vmul.f32 1.442695, %v2125_v7  ;;  %v1765_v31 = vmul.f32 -2.0, %v1290_v23  ;;  %3730 = vpow2.f32 %v2198_v63 }
 0x182   : > { %6667 = vst [vmem:[#allocation41_spill] sm:$0xff] %v4964_v2  ;;  %v4974_v45 = vpop.eup %3720  ;;  %v2126_v2 = vmul.f32 -0.125, %v4949_v20  ;;  %v2618_v26 = vmul.f32 1.442695, %v2545_v47  ;;  %v2127_v14 = vmul.f32 -0.125, %v4955_v53  ;;  %3732 = vpow2.f32 %v1898_v57 }
 0x183   : > { %v4960_v16 = vpop.f32.mrf.mxu2  ;;  %v4962_v24 = vpop.f32.mrf.mxu3  ;;  %6668 = vst [vmem:[#allocation42_spill] sm:$0xff] %v4974_v45  ;;  %v1828_v5 = vadd.f32 %v1764_v21, %v1700_v56  ;;  %v1701_v18 = vmul.f32 -0.0078125, %v4931_v44  ;;  %v2483_v46 = vmul.f32 -3.125, %v1290_v23  ;;  %3734 = vpow2.f32 %v2616_v11 }
 0x184   : > { %v4967_v25 = vpop.f32.mrf.mxu0  ;;  %v4969_v15 = vpop.f32.mrf.mxu1  ;;  %v2546_v7 = vadd.f32 %v2482_v62, %v2418_v59  ;;  %v2419_v47 = vmul.f32 -0.013888889, %v4931_v44  ;;  %v1294_v63 = vmax.f32 %v4766_v41, 0.0  ;;  %3736 = vpow2.f32 %v1900_v13 }
 0x185   : > { %v4977_v49 = vpop.eup %3722  ;;  %v1829_v57 = vadd.f32 %v1765_v31, %v1701_v18  ;;  %v2202_v56 = vmul.f32 1.442695, %v2126_v2  ;;  %v4992_v23 = vmax.f32 %v4772_v50, 0.0  ;;  %3738 = vpow2.f32 %v2618_v26  ;;  %v707_v26 = vld [vmem:[%s6522_s2 + $0xe8] sm:$0xff] }
 0x186   : > { %6669 = vst [vmem:[#allocation43_spill] sm:$0xff] %v4977_v49  ;;  %v4984_v34 = vpop.eup %3724  ;;  %v2204_v11 = vmul.f32 1.442695, %v2127_v14  ;;  %v1702_v59 = vmul.f32 -0.0078125, %v4949_v20  ;;  %v1766_v62 = vmul.f32 -2.0, %v1293_v9  ;;  %v2547_v49 = vadd.f32 %v2483_v46, %v2419_v47 }
 0x187   : > { %3483 = vmatmul.msk.f32.gmra.mxu0 %vm718_vm1, %v706_v55  ;;  %3515 = vmatmul.msk.f32.gmra.mxu1 %vm718_vm1, %v706_v55  ;;  %6670 = vst [vmem:[#allocation44_spill] sm:$0xff] %v4984_v34  ;;  %v4989_v40 = vpop.eup %3726  ;;  %v1902_v41 = vmul.f32 1.442695, %v1828_v5  ;;  %v2420_v34 = vmul.f32 -0.013888889, %v4949_v20  ;;  %3740 = vpow2.f32 %v2200_v17  ;;  %v1767_v2 = vmul.f32 -2.0, %v1294_v63 }
 0x188   : > { %3547 = vmatmul.msk.f32.gmra.mxu2 %vm718_vm1, %v706_v55  ;;  %6671 = vst [vmem:[#allocation45_spill] sm:$0xff] %v4989_v40  ;;  %v4995_v21 = vpop.eup %3728  ;;  %v2484_v40 = vmul.f32 -3.125, %v1293_v9  ;;  %v2620_v18 = vmul.f32 1.442695, %v2546_v7  ;;  %v1904_v46 = vmul.f32 1.442695, %v1829_v57  ;;  %3742 = vpow2.f32 %v2202_v56 }
 0x189   : > { %3579 = vmatmul.msk.f32.gmra.mxu3 %vm718_vm1, %v706_v55  ;;  %6672 = vst [vmem:[#allocation46_spill] sm:$0xff] %v4995_v21  ;;  %v5003_v50 = vpop.eup %3730  ;;  %v1297_v55 = vmax.f32 %v4796_v32, 0.0  ;;  %v2485_v9 = vmul.f32 -3.125, %v1294_v63  ;;  %v2128_v14 = vmul.f32 -0.125, %v4992_v23  ;;  %v1830_v7 = vadd.f32 %v1766_v62, %v1702_v59 }
 0x18a   : > { %6674 = vst [vmem:[#allocation48_spill] sm:$0xff] %v5003_v50  ;;  %v5009_v5 = vpop.eup %3732  ;;  %v1703_v32 = vmul.f32 -0.0078125, %v4955_v53  ;;  %v5020_v50 = vmax.f32 %v4774_v51, 0.0  ;;  %v1298_v45 = vmax.f32 %v4798_v33, 0.0  ;;  %3744 = vpow2.f32 %v1902_v41 }
 0x18b   : > { %v4999_v13 = vpop.f32.mrf.mxu2  ;;  %v5001_v31 = vpop.f32.mrf.mxu3  ;;  %6675 = vst [vmem:[#allocation49_spill] sm:$0xff] %v5009_v5  ;;  %v2622_v63 = vmul.f32 1.442695, %v2547_v49  ;;  %v2548_v57 = vadd.f32 %v2484_v40, %v2420_v34  ;;  %v2421_v56 = vmul.f32 -0.013888889, %v4955_v53  ;;  %3746 = vpow2.f32 %v2620_v18 }
 0x18c   : > { %6673 = vst [vmem:[#allocation47_spill] sm:$0xff] %v4999_v13  ;;  %v5012_v47 = vpop.f32.mrf.mxu0  ;;  %v5014_v21 = vpop.f32.mrf.mxu1  ;;  %v1831_v59 = vadd.f32 %v1767_v2, %v1703_v32  ;;  %v1704_v51 = vmul.f32 -0.0078125, %v4992_v23  ;;  %v1768_v62 = vmul.f32 -2.0, %v1297_v55  ;;  %v2422_v49 = vmul.f32 -0.013888889, %v4992_v23 }
 0x18d   : > { %v5016_v17 = vpop.eup %3734  ;;  %v2549_v33 = vadd.f32 %v2485_v9, %v2421_v56  ;;  %v2486_v34 = vmul.f32 -3.125, %v1297_v55  ;;  %3748 = vpow2.f32 %v1904_v46  ;;  %v1906_v41 = vmul.f32 1.442695, %v1830_v7  ;;  %v708_v7 = vld [vmem:[%s6522_s2 + $0xf0] sm:$0xff] }
 0x18e   : > { %6676 = vst [vmem:[#allocation50_spill] sm:$0xff] %v5016_v17  ;;  %v5023_v5 = vpop.eup %3736  ;;  %v1769_v18 = vmul.f32 -2.0, %v1298_v45  ;;  %3750 = vpow2.f32 %v2622_v63  ;;  %v2624_v32 = vmul.f32 1.442695, %v2548_v57  ;;  %v2487_v48 = vmul.f32 -3.125, %v1298_v45 }
 0x18f   : > { %6677 = vst [vmem:[#allocation51_spill] sm:$0xff] %v5023_v5  ;;  %3484 = vmatmul.msk.f32.gmra.mxu0 %vm718_vm1, %v707_v26  ;;  %3516 = vmatmul.msk.f32.gmra.mxu1 %vm718_vm1, %v707_v26  ;;  %v5028_v17 = vpop.eup %3738  ;;  %v2206_v5 = vmul.f32 1.442695, %v2128_v14  ;;  %v2130_v9 = vmul.f32 -0.125, %v4815_v60  ;;  %3752 = vpow2.f32 %v2204_v11  ;;  %v1908_v55 = vmul.f32 1.442695, %v1831_v59 }
 0x190   : > { %6678 = vst [vmem:[#allocation52_spill] sm:$0xff] %v5028_v17  ;;  %3548 = vmatmul.msk.f32.gmra.mxu2 %vm718_vm1, %v707_v26  ;;  %v5034_v40 = vpop.eup %3740  ;;  %v2129_v17 = vmul.f32 -0.125, %v5020_v50  ;;  %v1705_v46 = vmul.f32 -0.0078125, %v5020_v50  ;;  %v2626_v63 = vmul.f32 1.442695, %v2549_v33  ;;  %v2550_v45 = vadd.f32 %v2486_v34, %v2422_v49 }
 0x191   : > { %3580 = vmatmul.msk.f32.gmra.mxu3 %vm718_vm1, %v707_v26  ;;  %6679 = vst [vmem:[#allocation53_spill] sm:$0xff] %v5034_v40  ;;  %v5037_v2 = vpop.eup %3742  ;;  %v1832_v26 = vadd.f32 %v1768_v62, %v1704_v51  ;;  %3754 = vpow2.f32 %v2206_v5  ;;  %v2423_v57 = vmul.f32 -0.013888889, %v5020_v50  ;;  %v5054_v59 = vmax.f32 %v4838_v37, 0.0 }
 0x192   : > { %6680 = vst [vmem:[#allocation54_spill] sm:$0xff] %v5037_v2  ;;  %v5048_v40 = vpop.eup %3744  ;;  %3756 = vpow2.f32 %v1906_v41  ;;  %v2208_v27 = vmul.f32 1.442695, %v2129_v17  ;;  %v1833_v11 = vadd.f32 %v1769_v18, %v1705_v46  ;;  %v2210_v62 = vmul.f32 1.442695, %v2130_v9 }
 0x193   : > { %v5040_v14 = vpop.f32.mrf.mxu2  ;;  %v5042_v56 = vpop.f32.mrf.mxu3  ;;  %6681 = vst [vmem:[#allocation55_spill] sm:$0xff] %v5048_v40  ;;  %3758 = vpow2.f32 %v2624_v32  ;;  %v2551_v51 = vadd.f32 %v2487_v48, %v2423_v57  ;;  %v1910_v33 = vmul.f32 1.442695, %v1832_v26  ;;  %v2131_v17 = vmul.f32 -0.125, %v4828_v19 }
 0x194   : > { %v5051_v2 = vpop.eup %3746  ;;  %v5056_v29 = vpop.f32.mrf.mxu0  ;;  %3760 = vpow2.f32 %v1908_v55  ;;  %v2628_v48 = vmul.f32 1.442695, %v2550_v45  ;;  %v1912_v34 = vmul.f32 1.442695, %v1833_v11  ;;  %v2132_v41 = vmul.f32 -0.125, %v5054_v59 }
 0x195   : > { %6682 = vst [vmem:[#allocation56_spill] sm:$0xff] %v5051_v2  ;;  %v5058_v22 = vpop.f32.mrf.mxu1  ;;  %v5062_v5 = vpop.eup %3748  ;;  %3762 = vpow2.f32 %v2626_v63  ;;  %v2630_v32 = vmul.f32 1.442695, %v2551_v51  ;;  %v2212_v46 = vmul.f32 1.442695, %v2131_v17  ;;  %v1305_v45 = vmax.f32 %v4879_v12, 0.0 }
 0x196   : > { %6683 = vst [vmem:[#allocation57_spill] sm:$0xff] %v5062_v5  ;;  %v5066_v37 = vpop.eup %3750  ;;  %3764 = vpow2.f32 %v2208_v27  ;;  %v709_v27 = vld [vmem:[%s6522_s2 + $0xf8] sm:$0xff]  ;;  %v2214_v11 = vmul.f32 1.442695, %v2132_v41  ;;  %v1306_v51 = vmax.f32 %v4881_v35, 0.0  ;;  %v1310_v5 = vmax.f32 %v4918_v52, 0.0 }
 0x197   : > { %3485 = vmatmul.msk.f32.gmra.mxu0 %vm718_vm1, %v708_v7  ;;  %3517 = vmatmul.msk.f32.gmra.mxu1 %vm718_vm1, %v708_v7  ;;  %6684 = vst [vmem:[#allocation58_spill] sm:$0xff] %v5066_v37  ;;  %v5069_v49 = vpop.eup %3752  ;;  %3766 = vpow2.f32 %v2210_v62  ;;  %v2632_v12 = vmul.f32 1.442695, %v4859_v54  ;;  %v2490_v41 = vmul.f32 -3.125, %v1305_v45  ;;  %v1916_v54 = vmul.f32 1.442695, %v4861_v6 }
 0x198   : > { %3549 = vmatmul.msk.f32.gmra.mxu2 %vm718_vm1, %v708_v7  ;;  %6685 = vst [vmem:[#allocation59_spill] sm:$0xff] %v5069_v49  ;;  %v5072_v18 = vpop.eup %3754  ;;  %3768 = vpow2.f32 %v1910_v33  ;;  %v5096_v33 = vmax.f32 %v4884_v28, 0.0  ;;  %v2426_v28 = vmul.f32 -0.013888889, %v5054_v59  ;;  %v1773_v2 = vmul.f32 -2.0, %v1306_v51 }
 0x199   : > { %3581 = vmatmul.msk.f32.gmra.mxu3 %vm718_vm1, %v708_v7  ;;  %6686 = vst [vmem:[#allocation60_spill] sm:$0xff] %v5072_v18  ;;  %v5078_v26 = vpop.eup %3756  ;;  %v5081_v7 = vmax.f32 %v4840_v38, 0.0  ;;  %3770 = vpow2.f32 %v2628_v48  ;;  %v1914_v38 = vmul.f32 1.442695, %v4857_v42  ;;  %v1708_v42 = vmul.f32 -0.0078125, %v5054_v59 }
 0x19a   : > { %6687 = vst [vmem:[#allocation61_spill] sm:$0xff] %v5078_v26  ;;  %v5086_v63 = vpop.eup %3758  ;;  %3772 = vpow2.f32 %v1912_v34  ;;  %v1772_v34 = vmul.f32 -2.0, %v1305_v45  ;;  %v2134_v45 = vmul.f32 -0.125, %v5096_v33  ;;  %v1309_v49 = vmax.f32 %v4916_v43, 0.0 }
 0x19b   : > { %v5074_v9 = vpop.f32.mrf.mxu2  ;;  %v5076_v55 = vpop.f32.mrf.mxu3  ;;  %6688 = vst [vmem:[#allocation62_spill] sm:$0xff] %v5086_v63  ;;  %3774 = vpow2.f32 %v2630_v32  ;;  %v2133_v48 = vmul.f32 -0.125, %v5081_v7  ;;  %v1709_v6 = vmul.f32 -0.0078125, %v5081_v7 }
 0x19c   : > { %v5089_v57 = vpop.eup %3760  ;;  %3776 = vpow2.f32 %v2212_v46  ;;  %v5109_v32 = vpop.f32.mrf.mxu0  ;;  %v2492_v52 = vmul.f32 -3.125, %v1309_v49 }
 0x19d   : > { %6689 = vst [vmem:[#allocation63_spill] sm:$0xff] %v5089_v57  ;;  %v5092_v62 = vpop.eup %3762  ;;  %v5111_v37 = vpop.f32.mrf.mxu1  ;;  %3778 = vpow2.f32 %v2214_v11  ;;  %v2427_v11 = vmul.f32 -0.013888889, %v5081_v7  ;;  %v2218_v57 = vmul.f32 1.442695, %v2134_v45 }
 0x19e   : > { %6690 = vst [vmem:[#allocation64_spill] sm:$0xff] %v5092_v62  ;;  %v5100_v17 = vpop.eup %3764  ;;  %v2491_v62 = vmul.f32 -3.125, %v1306_v51  ;;  %3780 = vpow2.f32 %v1914_v38  ;;  %v2554_v38 = vadd.f32 %v2490_v41, %v2426_v28  ;;  %v5154_v41 = vmax.f32 %v4925_v10, 0.0 }
 0x19f   : > { %3486 = vmatmul.msk.f32.gmra.mxu0 %vm718_vm1, %v709_v27  ;;  %3518 = vmatmul.msk.f32.gmra.mxu1 %vm718_vm1, %v709_v27  ;;  %6691 = vst [vmem:[#allocation65_spill] sm:$0xff] %v5100_v17  ;;  %v5105_v35 = vpop.eup %3766  ;;  %v2634_v17 = vmul.f32 1.442695, %v4870_v61  ;;  %3782 = vpow2.f32 %v2632_v12  ;;  %v5131_v61 = vmax.f32 %v4886_v39, 0.0  ;;  %v1837_v12 = vadd.f32 %v1773_v2, %v1709_v6 }
 0x1a0   : > { %3550 = vmatmul.msk.f32.gmra.mxu2 %vm718_vm1, %v709_v27  ;;  %6692 = vst [vmem:[#allocation66_spill] sm:$0xff] %v5105_v35  ;;  %v5114_v46 = vpop.eup %3768  ;;  %3784 = vpow2.f32 %v1916_v54  ;;  %v2428_v39 = vmul.f32 -0.013888889, %v5096_v33  ;;  %v1775_v54 = vmul.f32 -2.0, %v1310_v5 }
 0x1a1   : > { %3582 = vmatmul.msk.f32.gmra.mxu3 %vm718_vm1, %v709_v27  ;;  %6693 = vst [vmem:[#allocation67_spill] sm:$0xff] %v5114_v46  ;;  %v5117_v63 = vpop.eup %3770  ;;  %v2216_v27 = vmul.f32 1.442695, %v2133_v48  ;;  %v2555_v48 = vadd.f32 %v2491_v62, %v2427_v11  ;;  %3786 = vpow2.f32 %v2634_v17  ;;  %v2636_v62 = vmul.f32 1.442695, %v2554_v38 }
 0x1a2   : > { %6694 = vst [vmem:[#allocation68_spill] sm:$0xff] %v5117_v63  ;;  %v5124_v35 = vpop.eup %3772  ;;  %v1836_v63 = vadd.f32 %v1772_v34, %v1708_v42  ;;  %v1710_v42 = vmul.f32 -0.0078125, %v5096_v33  ;;  %v1774_v34 = vmul.f32 -2.0, %v1309_v49  ;;  %v1920_v45 = vmul.f32 1.442695, %v1837_v12 }
 0x1a3   : > { %v5122_v18 = vpop.f32.mrf.mxu2  ;;  %6695 = vst [vmem:[#allocation69_spill] sm:$0xff] %v5124_v35  ;;  %v5128_v51 = vpop.eup %3774  ;;  %v5139_v35 = vmax.f32 %v4923_v1, 0.0  ;;  %3788 = vpow2.f32 %v2216_v27  ;;  %v2135_v1 = vmul.f32 -0.125, %v5131_v61  ;;  %v2638_v6 = vmul.f32 1.442695, %v2555_v48 }
 0x1a4   : > { %6696 = vst [vmem:[#allocation70_spill] sm:$0xff] %v5128_v51  ;;  %v5134_v43 = vpop.f32.mrf.mxu3  ;;  %v5136_v40 = vpop.eup %3776  ;;  %v1918_v2 = vmul.f32 1.442695, %v1836_v63  ;;  %v2493_v11 = vmul.f32 -3.125, %v1310_v5  ;;  %3790 = vpow2.f32 %v2218_v57  ;;  %v1838_v27 = vadd.f32 %v1774_v34, %v1710_v42 }
 0x1a5   : > { %6697 = vst [vmem:[#allocation71_spill] sm:$0xff] %v5136_v40  ;;  %v5142_v28 = vpop.eup %3778  ;;  %v2136_v40 = vmul.f32 -0.125, %v5139_v35  ;;  %v1711_v49 = vmul.f32 -0.0078125, %v5131_v61  ;;  %v5158_v63 = vpop.f32.mrf.mxu1  ;;  %v2429_v12 = vmul.f32 -0.013888889, %v5131_v61  ;;  %v1712_v5 = vmul.f32 -0.0078125, %v5139_v35 }
 0x1a6   : > { %6698 = vst [vmem:[#allocation72_spill] sm:$0xff] %v5142_v28  ;;  %v5146_v51 = vpop.eup %3780  ;;  %v5156_v28 = vpop.f32.mrf.mxu0  ;;  %v6704_v48 = vmax.f32 %v4960_v16, 0.0  ;;  %3792 = vpow2.f32 %v1918_v2  ;;  %v2220_v10 = vmul.f32 1.442695, %v2135_v1 }
 0x1a7   : > { %6699 = vst [vmem:[#allocation73_spill] sm:$0xff] %v5146_v51  ;;  %v5149_v17 = vpop.eup %3782  ;;  %v2556_v51 = vadd.f32 %v2492_v52, %v2428_v39  ;;  %3794 = vpow2.f32 %v2636_v62  ;;  %v2557_v39 = vadd.f32 %v2493_v11, %v2429_v12  ;;  %v2222_v52 = vmul.f32 1.442695, %v2136_v40 }
 0x1a8   : > { %6700 = vst [vmem:[#allocation74_spill] sm:$0xff] %v5149_v17  ;;  %v5160_v38 = vpop.eup %3784  ;;  %v1776_v57 = vmul.f32 -2.0, %v6704_v48  ;;  %v1839_v17 = vadd.f32 %v1775_v54, %v1711_v49  ;;  %3796 = vpow2.f32 %v1920_v45  ;;  %v1922_v48 = vmul.f32 1.442695, %v1838_v27 }
 0x1a9   : > { %6701 = vst [vmem:[#allocation75_spill] sm:$0xff] %v5156_v28  ;;  %v5168_v34 = vpop.eup %3786  ;;  %v5171_v28 = vmax.f32 %v5056_v29, 0.0  ;;  %3798 = vpow2.f32 %v2638_v6  ;;  %v2640_v29 = vmul.f32 1.442695, %v2556_v51  ;;  %v5185_v54 = vmax.f32 %v5111_v37, 0.0 }
 0x1aa   : > { %6702 = vst [vmem:[#allocation76_spill] sm:$0xff] %v5158_v63  ;;  %v5173_v63 = vpop.eup %3788  ;;  %v1840_v1 = vadd.f32 %v1776_v57, %v1712_v5  ;;  %3800 = vpow2.f32 %v2220_v10  ;;  %v1924_v40 = vmul.f32 1.442695, %v1839_v17  ;;  %v2642_v11 = vmul.f32 1.442695, %v2557_v39 }
 0x1ab   : > { %6703 = vst [vmem:[#allocation77_spill] sm:$0xff] %v5160_v38  ;;  %v5166_v42 = vpop.f32.mrf.mxu2  ;;  %v5176_v38 = vmax.f32 %v5109_v32, 0.0  ;;  %v5187_v62 = vpop.eup %3790  ;;  %v5190_v32 = vmax.f32 %v4967_v25, 0.0  ;;  %v1423_v45 = vmul.f32 -0.055555556, %v5171_v28  ;;  %3802 = vpow2.f32 %v2222_v52 }
 0x1ac   : > { %6705 = vst [vmem:[#allocation78_spill] sm:$0xff] %v5166_v42  ;;  %v2137_v42 = vmul.f32 -0.125, %v5154_v41  ;;  %v5182_v2 = vpop.f32.mrf.mxu3  ;;  %v5197_v6 = vpop.eup %3792  ;;  %3804 = vpow2.f32 %v1922_v48  ;;  %v5200_v27 = vmax.f32 %v4969_v15, 0.0  ;;  %v1926_v49 = vmul.f32 1.442695, %v1840_v1 }
 0x1ad   : > { %6706 = vst [vmem:[#allocation79_spill] sm:$0xff] %v5168_v34  ;;  %v5180_v34 = vmax.f32 %v5058_v22, 0.0  ;;  %v5194_v22 = vmax.f32 %v5012_v47, 0.0  ;;  %v1425_v51 = vmul.f32 -0.055555556, %v5176_v38  ;;  %v5203_v25 = vpop.eup %3794  ;;  %3806 = vpow2.f32 %v2640_v29  ;;  %v5214_v15 = vpop.f32.mrf.mxu1 }
 0x1ae   : > { %6707 = vst [vmem:[#allocation80_spill] sm:$0xff] %v5171_v28  ;;  %v2224_v37 = vmul.f32 1.442695, %v2137_v42  ;;  %v5206_v12 = vmax.f32 %v5014_v21, 0.0  ;;  %v1426_v47 = vmul.f32 -0.055555556, %v5185_v54  ;;  %v5209_v5 = vpop.eup %3796  ;;  %3808 = vpow2.f32 %v1924_v40  ;;  %v5212_v42 = vpop.f32.mrf.mxu0 }
 0x1af   : > { %6708 = vst [vmem:[#allocation81_spill] sm:$0xff] %v5173_v63  ;;  %v1424_v17 = vmul.f32 -0.055555556, %v5180_v34  ;;  %v1419_v57 = vmul.f32 -0.055555556, %v5190_v32  ;;  %v5216_v39 = vpop.eup %3798  ;;  %3810 = vpow2.f32 %v2642_v11  ;;  %v1314_v1 = vmax.f32 %v4962_v24, 0.0 }
 0x1b0   : > { %6709 = vst [vmem:[#allocation82_spill] sm:$0xff] %v5182_v2  ;;  %v1515_v10 = vmul.f32 1.442695, %v1423_v45  ;;  %v1519_v52 = vmul.f32 1.442695, %v1425_v51  ;;  %v5221_v29 = vpop.eup %3800  ;;  %3812 = vpow2.f32 %v2224_v37  ;;  %v1718_v2 = vmul.f32 -0.0078125, %v5171_v28 }
 0x1b1   : > { %6710 = vst [vmem:[#allocation83_spill] sm:$0xff] %v5187_v62  ;;  %v1421_v48 = vmul.f32 -0.055555556, %v5194_v22  ;;  %v1420_v40 = vmul.f32 -0.055555556, %v5200_v27  ;;  %v5225_v63 = vpop.eup %3802  ;;  %3814 = vpow2.f32 %v1926_v49 }
 0x1b2   : > { %6711 = vst [vmem:[#allocation84_spill] sm:$0xff] %v5197_v6  ;;  %v1521_v45 = vmul.f32 1.442695, %v1426_v47  ;;  %v5228_v11 = vpop.eup %3804  ;;  %v5231_v51 = vmul.f32 -0.055555556, %v4815_v60  ;;  %3816 = vpow2.f32 %v1515_v10  ;;  %v1777_v60 = vmul.f32 -2.0, %v1314_v1 }
 0x1b3   : > { %6712 = vst [vmem:[#allocation85_spill] sm:$0xff] %v5203_v25  ;;  %v5219_v21 = vpop.f32.mrf.mxu2  ;;  %v1517_v25 = vmul.f32 1.442695, %v1424_v17  ;;  %v5235_v37 = vpop.eup %3806  ;;  %v2430_v24 = vmul.f32 -0.013888889, %v5139_v35  ;;  %v6723_v17 = vmax.f32 %v4960_v16, 0.0  ;;  %3818 = vpow2.f32 %v1519_v52 }
 0x1b4   : > { %6713 = vst [vmem:[#allocation86_spill] sm:$0xff] %v5209_v5  ;;  %v1511_v49 = vmul.f32 1.442695, %v1421_v48  ;;  %v5240_v47 = vpop.eup %3808  ;;  %v1509_v10 = vmul.f32 1.442695, %v1420_v40  ;;  %v1713_v52 = vmul.f32 -0.0078125, %v5154_v41 }
 0x1b5   : > { %6714 = vst [vmem:[#allocation87_spill] sm:$0xff] %v5212_v42  ;;  %v5233_v42 = vpop.f32.mrf.mxu3  ;;  %3820 = vpow2.f32 %v1517_v25  ;;  %v5253_v48 = vmul.f32 -0.013888889, %v5154_v41 }
 0x1b6   : > { %6715 = vst [vmem:[#allocation88_spill] sm:$0xff] %v5214_v15  ;;  %v1507_v15 = vmul.f32 1.442695, %v1419_v57  ;;  %v5245_v57 = vpop.eup %3810  ;;  %3822 = vpow2.f32 %v1521_v45  ;;  %v5268_v45 = vmul.f32 -0.0078125, %v5190_v32 }
 0x1b7   : > { %6716 = vst [vmem:[#allocation89_spill] sm:$0xff] %v5216_v39  ;;  %v1422_v39 = vmul.f32 -0.055555556, %v5206_v12  ;;  %v5249_v16 = vpop.eup %3812 }
 0x1b8   : > { %6717 = vst [vmem:[#allocation90_spill] sm:$0xff] %v5219_v21  ;;  %v5243_v21 = vmul.f32 -0.055555556, %v4828_v19  ;;  %3824 = vpow2.f32 %v1507_v15  ;;  %v5256_v25 = vpop.eup %3814  ;;  %v999_v19 = vpop.f32.mrf.mxu1  ;;  %v1417_v15 = vmul.f32 -0.055555556, %v5139_v35 }
 0x1b9   : > { %6718 = vst [vmem:[#allocation91_spill] sm:$0xff] %v5221_v29  ;;  %v2494_v29 = vmul.f32 -3.125, %v6723_v17  ;;  %v5260_v17 = vmul.f32 -3.125, %v1314_v1  ;;  %3826 = vpow2.f32 %v1511_v49 }
 0x1ba   : > { %6719 = vst [vmem:[#allocation92_spill] sm:$0xff] %v5225_v63  ;;  %v1513_v63 = vmul.f32 1.442695, %v1422_v39  ;;  %v5265_v39 = vadd.f32 %v1777_v60, %v1713_v52  ;;  %3828 = vpow2.f32 %v1509_v10  ;;  %v6729_v60 = vmax.f32 %v4999_v13, 0.0 }
 0x1bb   : > { %6720 = vst [vmem:[#allocation93_spill] sm:$0xff] %v5228_v11  ;;  %v5258_v40 = vadd.f32 %v2494_v29, %v2430_v24  ;;  %v1418_v24 = vmul.f32 -0.055555556, %v5154_v41  ;;  %v1112_v49 = vpop.f32.mrf.mxu2  ;;  %v5280_v10 = vmul.f32 -0.0078125, %v5200_v27  ;;  %v1413_v41 = vmul.f32 -0.055555556, %v5054_v59 }
 0x1bc   : > { %6721 = vst [vmem:[#allocation94_spill] sm:$0xff] %v5233_v42  ;;  %v1415_v42 = vmul.f32 -0.055555556, %v5096_v33  ;;  %v5263_v33 = vmul.f32 -0.125, %v5190_v32  ;;  %3830 = vpow2.f32 %v1513_v63  ;;  %v5277_v52 = vmul.f32 -2.0, %v6729_v60 }
 0x1bd   : > { %6722 = vst [vmem:[#allocation95_spill] sm:$0xff] %v5235_v37  ;;  %v1416_v37 = vmul.f32 -0.055555556, %v5131_v61  ;;  %v3817_v61 = vpop.eup %3816  ;;  %v5284_v63 = vmax.f32 %v999_v19, 0.0  ;;  %v1341_v11 = vmax.f32 %v1112_v49, 0.0  ;;  %v1225_v46 = vpop.f32.mrf.mxu3 }
 0x1be   : > { %6724 = vst [vmem:[#allocation96_spill] sm:$0xff] %v5240_v47  ;;  %v1505_v28 = vmul.f32 1.442695, %v1418_v24  ;;  %v1491_v59 = vmul.f32 1.442695, %v5231_v51 }
 0x1bf   : > { %6725 = vst [vmem:[#allocation97_spill] sm:$0xff] %v5245_v57  ;;  %v886_v57 = vpop.f32.mrf.mxu0  ;;  %v1501_v60 = vmul.f32 1.442695, %v1416_v37  ;;  %v1790_v29 = vmul.f32 -2.0, %v1341_v11  ;;  %v1414_v37 = vmul.f32 -0.055555556, %v5081_v7 }
 0x1c0   : > { %6726 = vst [vmem:[#allocation98_spill] sm:$0xff] %v5249_v16  ;;  %v3819_v16 = vpop.eup %3818  ;;  %v5272_v1 = vmax.f32 %v886_v57, 0.0  ;;  %v1499_v57 = vmul.f32 1.442695, %v1415_v42  ;;  %v1727_v49 = vmul.f32 -0.0078125, %v5284_v63  ;;  %v6732_v7 = vmax.f32 %v5076_v55, 0.0 }
 0x1c1   : > { %6727 = vst [vmem:[#allocation99_spill] sm:$0xff] %v5256_v25  ;;  %v3821_v62 = vpop.eup %3820  ;;  %v1601_v35 = vpack.c.bf16 %v3819_v16, %v3817_v61  ;;  %v1503_v25 = vmul.f32 1.442695, %v1417_v15  ;;  %v1342_v15 = vmax.f32 %v1225_v46, 0.0 }
 0x1c2   : > { %6728 = vst [vmem:[#allocation100_spill] sm:$0xff] %v5272_v1  ;;  %v3823_v5 = vpop.eup %3822  ;;  %v1726_v16 = vmul.f32 -0.0078125, %v5272_v1  ;;  %v2444_v61 = vmul.f32 -0.013888889, %v5272_v1  ;;  %3832 = vpow2.f32 %v1499_v57  ;;  %v1783_v46 = vmul.f32 -2.0, %v6732_v7 }
 0x1c3   : > { %v3825_v6 = vpop.eup %3824  ;;  %1630 = vmatpush.bf16.msrb.mxu0 %v1601_v35  ;;  %v1602_v47 = vpack.c.bf16 %v3823_v5, %v3821_v62  ;;  %v2508_v35 = vmul.f32 -3.125, %v1341_v11  ;;  %v1495_v5 = vmul.f32 1.442695, %v1413_v41  ;;  %3834 = vpow2.f32 %v1503_v25 }
 0x1c4   : > { %v3827_v26 = vpop.eup %3826  ;;  %v5293_v13 = vadd.f32 %v1790_v29, %v1726_v16  ;;  %v2509_v51 = vmul.f32 -3.125, %v1342_v15  ;;  %v6731_v11 = vmax.f32 %v5074_v9, 0.0  ;;  %3836 = vpow2.f32 %v1501_v60 }
 0x1c5   : > { %v3829_v19 = vpop.eup %3828  ;;  %1656 = vmatpush.bf16.msrb.mxu2 %v1602_v47  ;;  %v1599_v42 = vpack.c.bf16 %v3827_v26, %v3825_v6  ;;  %v5295_v1 = vadd.f32 %v2508_v35, %v2444_v61  ;;  %v1791_v26 = vmul.f32 -2.0, %v1342_v15  ;;  %v2445_v6 = vmul.f32 -0.013888889, %v5284_v63 }
 0x1c6   : > { %v3831_v62 = vpop.eup %3830  ;;  %v1782_v47 = vmul.f32 -2.0, %v6731_v11  ;;  %v1493_v41 = vmul.f32 1.442695, %v5243_v21  ;;  %3838 = vpow2.f32 %v1505_v28  ;;  %v1497_v29 = vmul.f32 1.442695, %v1414_v37 }
 0x1c7   : > { %1631 = vmatpush.bf16.msrb.mxu0 %v1599_v42  ;;  %v1600_v24 = vpack.c.bf16 %v3831_v62, %v3829_v19  ;;  %6730 = vst [vmem:[#allocation101_spill] sm:$0xff] %v5295_v1  ;;  %v5303_v57 = vadd.f32 %v1791_v26, %v1727_v49  ;;  %v5305_v16 = vadd.f32 %v2509_v51, %v2445_v6  ;;  %v6735_v25 = vmax.f32 %v5001_v31, 0.0  ;;  %v889_v35 = vpop.f32.mrf.mxu0 }
 0x1c8   : > { %v5313_v42 = vmul.f32 -0.0078125, %v5194_v22  ;;  %3840 = vpow2.f32 %v1491_v59  ;;  %v1719_v60 = vmul.f32 -0.0078125, %v5180_v34  ;;  %v6556_v28 = vmax.f32 %v5122_v18, 0.0  ;;  %v3833_v62 = vpop.eup %3832  ;;  %v1002_v59 = vpop.f32.mrf.mxu1 }
 0x1c9   : > { %1657 = vmatpush.bf16.msrb.mxu2 %v1600_v24  ;;  %6733 = vst [vmem:[#allocation102_spill] sm:$0xff] %v5303_v57  ;;  %v5309_v61 = vmul.f32 -2.0, %v6735_v25  ;;  %3842 = vpow2.f32 %v1495_v5  ;;  %v1407_v21 = vmul.f32 -0.055555556, %v4949_v20  ;;  %v5319_v15 = vadd.f32 %v1782_v47, %v1718_v2  ;;  %v3835_v24 = vpop.eup %3834  ;;  %v1115_v5 = vpop.f32.mrf.mxu2 }
 0x1ca   : > { %6734 = vst [vmem:[#allocation103_spill] sm:$0xff] %v5305_v16  ;;  %3844 = vpow2.f32 %v1493_v41  ;;  %v1409_v49 = vmul.f32 -0.055555556, %v4992_v23  ;;  %v5322_v26 = vadd.f32 %v1783_v46, %v1719_v60  ;;  %v1408_v6 = vmul.f32 -0.055555556, %v4955_v53  ;;  %v3837_v11 = vpop.eup %3836  ;;  %v1228_v25 = vpop.f32.mrf.mxu3 }
 0x1cb   : > { %3846 = vpow2.f32 %v1497_v29  ;;  %v1410_v51 = vmul.f32 -0.055555556, %v5020_v50  ;;  %v1720_v20 = vmul.f32 -0.0078125, %v5176_v38  ;;  %v1597_v2 = vpack.c.bf16 %v3835_v24, %v3833_v62 }
 0x1cc   : > { %v1403_v47 = vmul.f32 -0.055555556, %v4874_v4  ;;  %v3839_v41 = vpop.eup %3838  ;;  %v1784_v23 = vmul.f32 -2.0, %v6556_v28  ;;  %v5331_v46 = vmax.f32 %v889_v35, 0.0  ;;  %v1483_v29 = vmul.f32 1.442695, %v1407_v21 }
 0x1cd   : > { %v1405_v53 = vmul.f32 -0.055555556, %v4910_v0  ;;  %1632 = vmatpush.bf16.msrb.mxu0 %v1597_v2  ;;  %v1598_v60 = vpack.c.bf16 %v3839_v41, %v3837_v11  ;;  %v1487_v37 = vmul.f32 1.442695, %v1409_v49  ;;  %v1485_v19 = vmul.f32 1.442695, %v1408_v6 }
 0x1ce   : > { %v3841_v50 = vpop.eup %3840  ;;  %v1404_v7 = vmul.f32 -0.055555556, %v4896_v30  ;;  %v5335_v24 = vmax.f32 %v1002_v59, 0.0  ;;  %v1489_v4 = vmul.f32 1.442695, %v1410_v51  ;;  %v1345_v1 = vmax.f32 %v1115_v5, 0.0 }
 0x1cf   : > { %v3843_v62 = vpop.eup %3842  ;;  %v1475_v16 = vmul.f32 1.442695, %v1403_v47  ;;  %1658 = vmatpush.bf16.msrb.mxu2 %v1598_v60  ;;  %v1479_v21 = vmul.f32 1.442695, %v1405_v53  ;;  %v1406_v0 = vmul.f32 -0.055555556, %v4931_v44  ;;  %3848 = vpow2.f32 %v1483_v29  ;;  %v892_v41 = vpop.f32.mrf.mxu0 }
 0x1d0   : > { %v3845_v28 = vpop.eup %3844  ;;  %v1595_v35 = vpack.c.bf16 %v3843_v62, %v3841_v50  ;;  %v1728_v57 = vmul.f32 -0.0078125, %v5331_v46  ;;  %v6736_v49 = vmax.f32 %v5134_v43, 0.0  ;;  %v1477_v11 = vmul.f32 1.442695, %v1404_v7  ;;  %v1005_v29 = vpop.f32.mrf.mxu1 }
 0x1d1   : > { %v3847_v2 = vpop.eup %3846  ;;  %v1792_v30 = vmul.f32 -2.0, %v1345_v1  ;;  %v2446_v59 = vmul.f32 -0.013888889, %v5331_v46  ;;  %v2510_v5 = vmul.f32 -3.125, %v1345_v1  ;;  %v1346_v47 = vmax.f32 %v1228_v25, 0.0  ;;  %v5349_v25 = vpop.f32.mrf.mxu2 }
 0x1d2   : > { %v1785_v6 = vmul.f32 -2.0, %v6736_v49  ;;  %1633 = vmatpush.bf16.msrb.mxu0 %v1595_v35  ;;  %v1596_v51 = vpack.c.bf16 %v3847_v2, %v3845_v28  ;;  %3850 = vpow2.f32 %v1487_v37  ;;  %v1729_v44 = vmul.f32 -0.0078125, %v5335_v24 }
 0x1d3   : > { %v5342_v53 = vadd.f32 %v1792_v30, %v1728_v57  ;;  %v2447_v50 = vmul.f32 -0.013888889, %v5335_v24  ;;  %3852 = vpow2.f32 %v1485_v19  ;;  %v5346_v60 = vadd.f32 %v2510_v5, %v2446_v59 }
 0x1d4   : > { %1659 = vmatpush.bf16.msrb.mxu2 %v1596_v51  ;;  %v1793_v7 = vmul.f32 -2.0, %v1346_v47  ;;  %v2511_v62 = vmul.f32 -3.125, %v1346_v47  ;;  %v1848_v49 = vadd.f32 %v1784_v23, %v1720_v20  ;;  %v1721_v28 = vmul.f32 -0.0078125, %v5185_v54 }
 0x1d5   : > { %6737 = vst [vmem:[#allocation104_spill] sm:$0xff] %v5346_v60  ;;  %3854 = vpow2.f32 %v1489_v4  ;;  %v1481_v1 = vmul.f32 1.442695, %v1406_v0  ;;  %v6738_v57 = vmax.f32 %v5040_v14, 0.0  ;;  %v6740_v19 = vmax.f32 %v5042_v56, 0.0  ;;  %v5360_v4 = vpop.f32.mrf.mxu3  ;;  %v3849_v0 = vpop.eup %3848 }
 0x1d6   : > { %3856 = vpow2.f32 %v1475_v16  ;;  %v5353_v35 = vadd.f32 %v1793_v7, %v1729_v44  ;;  %v5355_v2 = vadd.f32 %v2511_v62, %v2447_v50  ;;  %v1938_v20 = vmul.f32 1.442695, %v5319_v15 }
 0x1d7   : > { %v1780_v37 = vmul.f32 -2.0, %v6738_v57  ;;  %v1781_v30 = vmul.f32 -2.0, %v6740_v19  ;;  %v1849_v23 = vadd.f32 %v1785_v6, %v1721_v28  ;;  %3858 = vpow2.f32 %v1479_v21  ;;  %v6741_v28 = vld [vmem:[#allocation17_spill] sm:$0xff]  ;;  %v6742_v57 = vld [vmem:[#allocation19_spill] sm:$0xff] }
 0x1d8   : > { %6739 = vst [vmem:[#allocation105_spill] sm:$0xff] %v5355_v2  ;;  %v5364_v59 = vadd.f32 %v5277_v52, %v5268_v45  ;;  %v1717_v16 = vmul.f32 -0.0078125, %v5206_v12  ;;  %v1940_v51 = vmul.f32 1.442695, %v5322_v26  ;;  %3860 = vpow2.f32 %v1477_v11  ;;  %v3851_v5 = vpop.eup %3850 }
 0x1d9   : > { %v1942_v47 = vmul.f32 1.442695, %v1848_v49  ;;  %3862 = vpow2.f32 %v1481_v1  ;;  %v1399_v44 = vmul.f32 -0.055555556, %v4782_v58  ;;  %v1401_v15 = vmul.f32 -0.055555556, %v4822_v8  ;;  %v3853_v21 = vpop.eup %3852 }
 0x1da   : > { %v5372_v6 = vadd.f32 %v5309_v61, %v5280_v10  ;;  %v1844_v45 = vadd.f32 %v1780_v37, %v5313_v42  ;;  %v1593_v52 = vpack.c.bf16 %v3851_v5, %v3849_v0  ;;  %v1400_v50 = vmul.f32 -0.055555556, %v4789_v3  ;;  %v5378_v10 = vpop.f32.mrf.mxu0  ;;  %v6744_v0 = vld [vmem:[#allocation20_spill] sm:$0xff] }
 0x1db   : > { %v3855_v7 = vpop.eup %3854  ;;  %v1845_v26 = vadd.f32 %v1781_v30, %v1717_v16  ;;  %3864 = vpow2.f32 %v1938_v20  ;;  %v1944_v11 = vmul.f32 1.442695, %v1849_v23  ;;  %v1402_v62 = vmul.f32 -0.055555556, %v4867_v36  ;;  %v6743_v20 = vld [vmem:[#allocation18_spill] sm:$0xff] }
 0x1dc   : > { %v3857_v49 = vpop.eup %3856  ;;  %3866 = vpow2.f32 %v1940_v51  ;;  %1634 = vmatpush.bf16.msrb.mxu0 %v1593_v52  ;;  %v1594_v58 = vpack.c.bf16 %v3855_v7, %v3853_v21  ;;  %v1467_v8 = vmul.f32 1.442695, %v1399_v44  ;;  %v1395_v1 = vmul.f32 -0.055555556, %v6741_v28 }
 0x1dd   : > { %v3859_v61 = vpop.eup %3858  ;;  %3868 = vpow2.f32 %v1942_v47  ;;  %v5380_v42 = vmax.f32 %v892_v41, 0.0  ;;  %v1471_v3 = vmul.f32 1.442695, %v1401_v15  ;;  %v1397_v37 = vmul.f32 -0.055555556, %v6742_v57  ;;  %v1008_v47 = vpop.f32.mrf.mxu1 }
 0x1de   : > { %v3861_v19 = vpop.eup %3860  ;;  %1660 = vmatpush.bf16.msrb.mxu2 %v1594_v58  ;;  %v1591_v30 = vpack.c.bf16 %v3859_v61, %v3857_v49  ;;  %v1469_v36 = vmul.f32 1.442695, %v1400_v50  ;;  %v1396_v23 = vmul.f32 -0.055555556, %v6743_v20  ;;  %v1398_v16 = vmul.f32 -0.055555556, %v6744_v0  ;;  %v5387_v41 = vpop.f32.mrf.mxu2 }
 0x1df   : > { %v3863_v51 = vpop.eup %3862  ;;  %v1934_v5 = vmul.f32 1.442695, %v1844_v45  ;;  %3870 = vpow2.f32 %v1944_v11  ;;  %v5385_v44 = vmax.f32 %v1005_v29, 0.0  ;;  %v1473_v21 = vmul.f32 1.442695, %v1402_v62  ;;  %v5394_v29 = vpop.f32.mrf.mxu3 }
 0x1e0   : > { %1635 = vmatpush.bf16.msrb.mxu0 %v1591_v30  ;;  %v1592_v15 = vpack.c.bf16 %v3863_v51, %v3861_v19  ;;  %3872 = vpow2.f32 %v1467_v8  ;;  %v1459_v52 = vmul.f32 1.442695, %v1395_v1  ;;  %v1463_v7 = vmul.f32 1.442695, %v1397_v37 }
 0x1e1   : > { %v5389_v49 = vpop.eup %3864  ;;  %3874 = vpow2.f32 %v1471_v3  ;;  %v1349_v50 = vmax.f32 %v5349_v25, 0.0  ;;  %v1730_v58 = vmul.f32 -0.0078125, %v5380_v42  ;;  %v2448_v45 = vmul.f32 -0.013888889, %v5380_v42 }
 0x1e2   : > { %v5396_v11 = vpop.eup %3866  ;;  %1661 = vmatpush.bf16.msrb.mxu2 %v1592_v15  ;;  %3876 = vpow2.f32 %v1469_v36  ;;  %v1461_v62 = vmul.f32 1.442695, %v1396_v23  ;;  %v1465_v28 = vmul.f32 1.442695, %v1398_v16  ;;  %v1350_v8 = vmax.f32 %v5360_v4, 0.0 }
 0x1e3   : > { %v5399_v1 = vpop.eup %3868  ;;  %3878 = vpow2.f32 %v1473_v21  ;;  %v1794_v61 = vmul.f32 -2.0, %v1349_v50  ;;  %v2512_v3 = vmul.f32 -3.125, %v1349_v50  ;;  %v1731_v25 = vmul.f32 -0.0078125, %v5385_v44  ;;  %v5414_v21 = vpop.f32.mrf.mxu0 }
 0x1e4   : > { %3880 = vpow2.f32 %v1459_v52  ;;  %v1795_v57 = vmul.f32 -2.0, %v1350_v8  ;;  %v2449_v37 = vmul.f32 -0.013888889, %v5385_v44  ;;  %v2513_v19 = vmul.f32 -3.125, %v1350_v8 }
 0x1e5   : > { %v5403_v30 = vpop.eup %3870  ;;  %v1930_v36 = vmul.f32 1.442695, %v5364_v59  ;;  %3882 = vpow2.f32 %v1463_v7  ;;  %v5406_v20 = vadd.f32 %v1794_v61, %v1730_v58  ;;  %v5408_v4 = vadd.f32 %v2512_v3, %v2448_v45  ;;  %v1011_v61 = vpop.f32.mrf.mxu1 }
 0x1e6   : > { %v3873_v23 = vpop.eup %3872  ;;  %v1936_v0 = vmul.f32 1.442695, %v1845_v26  ;;  %3884 = vpow2.f32 %v1461_v62  ;;  %v5410_v16 = vadd.f32 %v1795_v57, %v1731_v25  ;;  %v5412_v51 = vadd.f32 %v2513_v19, %v2449_v37 }
 0x1e7   : > { %6745 = vst [vmem:[#allocation17_spill] sm:$0xff] %v5408_v4  ;;  %v3875_v15 = vpop.eup %3874  ;;  %v1928_v52 = vmul.f32 1.442695, %v5265_v39  ;;  %v2559_v59 = vadd.f32 %v5260_v17, %v5253_v48  ;;  %3886 = vpow2.f32 %v1465_v28  ;;  %v1932_v50 = vmul.f32 1.442695, %v5372_v6  ;;  %v5425_v39 = vpop.f32.mrf.mxu2 }
 0x1e8   : > { %6746 = vst [vmem:[#allocation19_spill] sm:$0xff] %v5410_v16  ;;  %v3877_v7 = vpop.eup %3876  ;;  %3888 = vpow2.f32 %v1934_v5  ;;  %v1589_v58 = vpack.c.bf16 %v3875_v15, %v3873_v23  ;;  %v2226_v45 = vmul.f32 1.442695, %v5263_v33  ;;  %v2139_v62 = vmul.f32 -0.125, %v5200_v27  ;;  %v5434_v25 = vpop.f32.mrf.mxu3  ;;  %v6772_v16 = vld [vmem:[#allocation55_spill] sm:$0xff] }
 0x1e9   : > { %6747 = vst [vmem:[#allocation18_spill] sm:$0xff] %v5412_v51  ;;  %v3879_v26 = vpop.eup %3878  ;;  %3890 = vpow2.f32 %v1930_v36  ;;  %v5423_v8 = vmax.f32 %v5378_v10, 0.0  ;;  %v2644_v48 = vmul.f32 1.442695, %v5258_v40  ;;  %v5428_v6 = vmax.f32 %v1008_v47, 0.0  ;;  %v6764_v51 = vld [vmem:[#allocation96_spill] sm:$0xff] }
 0x1ea   : > { %v3881_v3 = vpop.eup %3880  ;;  %3892 = vpow2.f32 %v1936_v0  ;;  %1636 = vmatpush.bf16.msrb.mxu0 %v1589_v58  ;;  %v1590_v17 = vpack.c.bf16 %v3879_v26, %v3877_v7  ;;  %v5430_v33 = vmul.f32 1.442695, %v2559_v59  ;;  %v1353_v28 = vmax.f32 %v5387_v41, 0.0 }
 0x1eb   : > { %v3883_v5 = vpop.eup %3882  ;;  %3894 = vpow2.f32 %v1928_v52  ;;  %v1732_v10 = vmul.f32 -0.0078125, %v5423_v8  ;;  %v2450_v40 = vmul.f32 -0.013888889, %v5423_v8  ;;  %v1354_v19 = vmax.f32 %v5394_v29, 0.0 }
 0x1ec   : > { %v3885_v57 = vpop.eup %3884  ;;  %3896 = vpow2.f32 %v1932_v50  ;;  %1662 = vmatpush.bf16.msrb.mxu2 %v1590_v17  ;;  %v1587_v37 = vpack.c.bf16 %v3883_v5, %v3881_v3  ;;  %v2140_v36 = vmul.f32 -0.125, %v5194_v22  ;;  %v2024_v23 = vpack.c.bf16 %v5399_v1, %v5389_v49 }
 0x1ed   : > { %v3887_v47 = vpop.eup %3886  ;;  %v1796_v0 = vmul.f32 -2.0, %v1353_v28  ;;  %v2514_v41 = vmul.f32 -3.125, %v1353_v28  ;;  %v2025_v59 = vpack.c.bf16 %v5403_v30, %v5396_v11  ;;  %v1733_v7 = vmul.f32 -0.0078125, %v5428_v6  ;;  %v901_v30 = vpop.f32.mrf.mxu0 }
 0x1ee   : > { %v3889_v15 = vpop.eup %3888  ;;  %1637 = vmatpush.bf16.msrb.mxu0 %v1587_v37  ;;  %v1588_v52 = vpack.c.bf16 %v3887_v47, %v3885_v57  ;;  %v1797_v50 = vmul.f32 -2.0, %v1354_v19  ;;  %v2451_v3 = vmul.f32 -0.013888889, %v5428_v6  ;;  %v2515_v49 = vmul.f32 -3.125, %v1354_v19  ;;  %v6753_v19 = vld [vmem:[#allocation47_spill] sm:$0xff] }
 0x1ef   : > { %v3891_v58 = vpop.eup %3890  ;;  %v5444_v29 = vadd.f32 %v1796_v0, %v1732_v10  ;;  %v5446_v26 = vadd.f32 %v2514_v41, %v2450_v40  ;;  %3898 = vpow2.f32 %v2226_v45  ;;  %v5449_v17 = vmul.f32 1.442695, %v2139_v62 }
 0x1f0   : > { %v3893_v1 = vpop.eup %3892  ;;  %v2432_v5 = vmul.f32 -0.013888889, %v5190_v32  ;;  %1663 = vmatpush.bf16.msrb.mxu2 %v1588_v52  ;;  %v5452_v11 = vadd.f32 %v1797_v50, %v1733_v7  ;;  %3900 = vpow2.f32 %v2644_v48  ;;  %v2022_v10 = vpack.c.bf16 %v3889_v15, %v3891_v58  ;;  %v6757_v15 = vld [vmem:[#allocation61_spill] sm:$0xff]  ;;  %v6758_v52 = vld [vmem:[#allocation67_spill] sm:$0xff]  ;;  %v1014_v58 = vpop.f32.mrf.mxu1 }
 0x1f1   : > { %6748 = vst [vmem:[#allocation20_spill] sm:$0xff] %v5444_v29  ;;  %v3895_v28 = vpop.eup %3894  ;;  %v5454_v57 = vadd.f32 %v2515_v49, %v2451_v3  ;;  %v5457_v37 = vmax.f32 %v5414_v21, 0.0  ;;  %v6754_v45 = vmax.f32 %v6753_v19, 0.0  ;;  %v6755_v47 = vmax.f32 %v5001_v31, 0.0  ;;  %v6759_v7 = vld [vmem:[#allocation63_spill] sm:$0xff]  ;;  %v6760_v21 = vld [vmem:[#allocation69_spill] sm:$0xff]  ;;  %v1127_v3 = vpop.f32.mrf.mxu2 }
 0x1f2   : > { %2052 = vmatpush.bf16.msra.mxu0 %v2024_v23  ;;  %6749 = vst [vmem:[#allocation106_spill] sm:$0xff] %v5446_v26  ;;  %v3897_v40 = vpop.eup %3896  ;;  %v2230_v23 = vmul.f32 1.442695, %v2140_v36  ;;  %v2144_v0 = vmul.f32 -0.125, %v5176_v38  ;;  %v5464_v48 = vmax.f32 %v1011_v61, 0.0  ;;  %v6761_v49 = vld [vmem:[#allocation80_spill] sm:$0xff]  ;;  %v2021_v60 = vpack.c.bf16 %v3895_v28, %v6764_v51 }
 0x1f3   : > { %6750 = vst [vmem:[#allocation107_spill] sm:$0xff] %v5452_v11  ;;  %v2496_v62 = vmul.f32 -3.125, %v6754_v45  ;;  %v2497_v32 = vmul.f32 -3.125, %v6755_v47  ;;  %v2023_v41 = vpack.c.bf16 %v3893_v1, %v3897_v40  ;;  %v2142_v19 = vmul.f32 -0.125, %v6761_v49  ;;  %v6762_v1 = vld [vmem:[#allocation93_spill] sm:$0xff]  ;;  %v6763_v61 = vld [vmem:[#allocation99_spill] sm:$0xff] }
 0x1f4   : > { %2078 = vmatpush.bf16.msra.mxu2 %v2025_v59  ;;  %6751 = vst [vmem:[#allocation108_spill] sm:$0xff] %v5454_v57  ;;  %v2016_v59 = vpack.c.bf16 %v6758_v52, %v6757_v15  ;;  %v2143_v31 = vmul.f32 -0.125, %v5180_v34  ;;  %v2145_v36 = vmul.f32 -0.125, %v5185_v54  ;;  %v1357_v45 = vmax.f32 %v5425_v39, 0.0  ;;  %v1240_v52 = vpop.f32.mrf.mxu3  ;;  %v6767_v51 = vld [vmem:[#allocation73_spill] sm:$0xff]  ;;  %v6768_v28 = vld [vmem:[#allocation84_spill] sm:$0xff] }
 0x1f5   : > { %6752 = vst [vmem:[#allocation109_spill] sm:$0xff] %v5457_v37  ;;  %v1734_v40 = vmul.f32 -0.0078125, %v5457_v37  ;;  %v2452_v47 = vmul.f32 -0.013888889, %v5457_v37  ;;  %v1358_v15 = vmax.f32 %v5434_v25, 0.0  ;;  %v5479_v50 = vpop.eup %3898  ;;  %v1735_v39 = vmul.f32 -0.0078125, %v5464_v48 }
 0x1f6   : > { %2053 = vmatpush.bf16.msra.mxu0 %v2022_v10  ;;  %6756 = vst [vmem:[#allocation47_spill] sm:$0xff] %v5464_v48  ;;  %v2020_v10 = vpack.c.bf16 %v6763_v61, %v6762_v1  ;;  %v2238_v2 = vmul.f32 1.442695, %v2144_v0  ;;  %v1798_v57 = vmul.f32 -2.0, %v1357_v45  ;;  %v2516_v4 = vmul.f32 -3.125, %v1357_v45  ;;  %v5482_v11 = vpop.eup %3900 }
 0x1f7   : > { %6765 = vst [vmem:[#allocation61_spill] sm:$0xff] %v5482_v11  ;;  %v2453_v1 = vmul.f32 -0.013888889, %v5464_v48  ;;  %v2517_v61 = vmul.f32 -3.125, %v1358_v15  ;;  %v2141_v26 = vmul.f32 -0.125, %v5206_v12  ;;  %v2018_v0 = vpack.c.bf16 %v6768_v28, %v6767_v51  ;;  %v6771_v11 = vld [vmem:[#allocation49_spill] sm:$0xff] }
 0x1f8   : > { %2079 = vmatpush.bf16.msra.mxu2 %v2023_v41  ;;  %v1799_v41 = vmul.f32 -2.0, %v1358_v15  ;;  %v2240_v25 = vmul.f32 1.442695, %v2145_v36  ;;  %v5487_v29 = vadd.f32 %v1798_v57, %v1734_v40  ;;  %v5489_v37 = vadd.f32 %v2516_v4, %v2452_v47  ;;  %v6773_v57 = vld [vmem:[#allocation51_spill] sm:$0xff]  ;;  %v6774_v40 = vld [vmem:[#allocation57_spill] sm:$0xff]  ;;  %v904_v47 = vpop.f32.mrf.mxu0 }
 0x1f9   : > { %v2014_v48 = vpack.c.bf16 %v6772_v16, %v6771_v11  ;;  %v2433_v15 = vmul.f32 -0.013888889, %v5200_v27  ;;  %3902 = vpow2.f32 %v2230_v23  ;;  %v2234_v36 = vmul.f32 1.442695, %v2142_v19  ;;  %v6777_v16 = vld [vmem:[#allocation36_spill] sm:$0xff]  ;;  %v6778_v11 = vld [vmem:[#allocation42_spill] sm:$0xff] }
 0x1fa   : > { %2054 = vmatpush.bf16.msra.mxu0 %v2020_v10  ;;  %6766 = vst [vmem:[#allocation67_spill] sm:$0xff] %v5489_v37  ;;  %v5493_v45 = vadd.f32 %v1799_v41, %v1735_v39  ;;  %v5495_v10 = vadd.f32 %v2517_v61, %v2453_v1  ;;  %v2015_v4 = vpack.c.bf16 %v6774_v40, %v6773_v57  ;;  %v2236_v37 = vmul.f32 1.442695, %v2143_v31  ;;  %v6775_v39 = vld [vmem:[#allocation77_spill] sm:$0xff]  ;;  %v6776_v41 = vld [vmem:[#allocation86_spill] sm:$0xff]  ;;  %v6780_v19 = vld [vmem:[#allocation44_spill] sm:$0xff]  ;;  %v1017_v31 = vpop.f32.mrf.mxu1 }
 0x1fb   : > { %3904 = vpow2.f32 %v2238_v2  ;;  %v2019_v1 = vpack.c.bf16 %v6776_v41, %v6775_v39  ;;  %v5504_v61 = vmax.f32 %v901_v30, 0.0  ;;  %v5506_v51 = vmax.f32 %v1014_v58, 0.0  ;;  %v6779_v23 = vld [vmem:[#allocation38_spill] sm:$0xff] }
 0x1fc   : > { %2080 = vmatpush.bf16.msra.mxu2 %v2021_v60  ;;  %6769 = vst [vmem:[#allocation63_spill] sm:$0xff] %v5493_v45  ;;  %v2560_v60 = vadd.f32 %v2496_v62, %v2432_v5  ;;  %v2012_v27 = vpack.c.bf16 %v6778_v11, %v6777_v16  ;;  %v2561_v5 = vadd.f32 %v2497_v32, %v2433_v15  ;;  %v2232_v62 = vmul.f32 1.442695, %v2141_v26  ;;  %v1243_v32 = vpop.f32.mrf.mxu3  ;;  %v6786_v45 = vld [vmem:[#allocation30_spill] sm:$0xff] }
 0x1fd   : > { %6770 = vst [vmem:[#allocation69_spill] sm:$0xff] %v5495_v10  ;;  %3906 = vpow2.f32 %v2240_v25  ;;  %v1361_v2 = vmax.f32 %v1127_v3, 0.0  ;;  %v1736_v30 = vmul.f32 -0.0078125, %v5504_v61  ;;  %v2454_v58 = vmul.f32 -0.013888889, %v5504_v61  ;;  %v6785_v10 = vld [vmem:[#allocation24_spill] sm:$0xff] }
 0x1fe   : > { %2055 = vmatpush.bf16.msra.mxu0 %v2018_v0  ;;  %v5516_v0 = vpop.f32.mrf.mxu2  ;;  %3908 = vpow2.f32 %v2234_v36  ;;  %v1362_v57 = vmax.f32 %v1240_v52, 0.0  ;;  %v2434_v40 = vmul.f32 -0.013888889, %v5194_v22  ;;  %v1737_v3 = vmul.f32 -0.0078125, %v5506_v51 }
 0x1ff   : > { %3910 = vpow2.f32 %v2236_v37  ;;  %v1800_v39 = vmul.f32 -2.0, %v1361_v2  ;;  %v2518_v41 = vmul.f32 -3.125, %v1361_v2  ;;  %v5521_v26 = vpop.eup %3902  ;;  %v2455_v15 = vmul.f32 -0.013888889, %v5506_v51 }
 0x200   : > { %2081 = vmatpush.bf16.msra.mxu2 %v2019_v1  ;;  %v1801_v25 = vmul.f32 -2.0, %v1362_v57  ;;  %v2519_v36 = vmul.f32 -3.125, %v1362_v57  ;;  %v6781_v52 = vmax.f32 %v5040_v14, 0.0  ;;  %v6782_v37 = vmax.f32 %v5042_v56, 0.0  ;;  %v1622_v56 = vld [vmem:[%s1621_s21] sm:$0xff] }
 0x201   : > { %v5525_v1 = vpop.eup %3904  ;;  %v6783_v16 = vpack.c.bf16 %v6760_v21, %v6759_v7  ;;  %v5534_v11 = vadd.f32 %v1800_v39, %v1736_v30  ;;  %v5536_v2 = vadd.f32 %v2518_v41, %v2454_v58  ;;  %3912 = vpow2.f32 %v2232_v62  ;;  %v6787_v21 = vld [vmem:[#allocation26_spill] sm:$0xff]  ;;  %v6788_v30 = vld [vmem:[#allocation32_spill] sm:$0xff]  ;;  %v5556_v41 = vpop.f32.mrf.mxu0 }
 0x202   : > { %2056 = vmatpush.bf16.msra.mxu0 %v2016_v59  ;;  %v2498_v22 = vmul.f32 -3.125, %v6781_v52  ;;  %v2499_v59 = vmul.f32 -3.125, %v6782_v37  ;;  %v5538_v28 = vadd.f32 %v1801_v25, %v1737_v3  ;;  %v5540_v57 = vadd.f32 %v2519_v36, %v2455_v15 }
 0x203   : > { %v2010_v14 = vpack.c.bf16 %v6786_v45, %v6785_v10  ;;  %v5547_v52 = vpop.eup %3906  ;;  %3914 = vpow2.f32 %v5430_v33  ;;  %v5550_v7 = vmax.f32 %v904_v47, 0.0  ;;  %v2011_v62 = vpack.c.bf16 %v6788_v30, %v6787_v21 }
 0x204   : > { %2082 = vmatpush.bf16.msra.mxu2 %v6783_v16  ;;  %6784 = vst [vmem:[#allocation80_spill] sm:$0xff] %v5540_v57  ;;  %v3909_v58 = vpop.eup %3908  ;;  %3916 = vpow2.f32 %v5449_v17  ;;  %v2435_v39 = vmul.f32 -0.013888889, %v5206_v12  ;;  %v5558_v10 = vmul.f32 1.442695, %v2560_v60  ;;  %v5560_v3 = vmax.f32 %v1017_v31, 0.0  ;;  %v5571_v31 = vpop.f32.mrf.mxu1 }
 0x205   : > { %v3911_v45 = vpop.eup %3910  ;;  %v1624_v33 = vunpack.c.l.b16 %v1622_v56  ;;  %v5563_v47 = vmul.f32 1.442695, %v2561_v5  ;;  %v2562_v25 = vadd.f32 %v2498_v22, %v2434_v40  ;;  %v2436_v12 = vmul.f32 -0.013888889, %v6761_v49  ;;  %6790 = vst [vmem:[#allocation99_spill] sm:$0xff] %v5571_v31  ;;  %v6793_v56 = vld [vmem:[#allocation75_spill] sm:$0xff] }
 0x206   : > { %2057 = vmatpush.bf16.msra.mxu0 %v2014_v48  ;;  %6789 = vst [vmem:[#allocation93_spill] sm:$0xff] %v5560_v3  ;;  %v2320_v48 = vpack.c.bf16 %v5525_v1, %v3909_v58  ;;  %v5565_v15 = vadd.f32 %v2499_v59, %v2435_v39  ;;  %v2321_v17 = vpack.c.bf16 %v5547_v52, %v3911_v45  ;;  %v1365_v60 = vmax.f32 %v5516_v0, 0.0  ;;  %v5573_v37 = vpop.f32.mrf.mxu2  ;;  %v5589_v58 = vpop.f32.mrf.mxu3 }
 0x207   : > { %v1626_v36 = vpack.c.b16 %v1624_v33, %v1624_v33  ;;  %v3913_v1 = vpop.eup %3912  ;;  %v6791_v5 = vmax.f32 %v5074_v9, 0.0  ;;  %v6792_v22 = vmax.f32 %v5076_v55, 0.0  ;;  %v2456_v16 = vmul.f32 -0.013888889, %v5550_v7  ;;  %6796 = vst [vmem:[#allocation73_spill] sm:$0xff] %v5589_v58 }
 0x208   : > { %2083 = vmatpush.bf16.msra.mxu2 %v2015_v4  ;;  %v1738_v4 = vmul.f32 -0.0078125, %v5550_v7  ;;  %v1366_v49 = vmax.f32 %v1243_v32, 0.0  ;;  %v5583_v0 = vmax.f32 %v6793_v56, 0.0  ;;  %v6795_v52 = vpack.c.bf16 %v6780_v19, %v6779_v23  ;;  %v6798_v56 = vld [vmem:[#allocation82_spill] sm:$0xff] }
 0x209   : > { %v2500_v40 = vmul.f32 -3.125, %v6791_v5  ;;  %v2501_v59 = vmul.f32 -3.125, %v6792_v22  ;;  %1638 = vmatmul.bf16.vlgmr.msrb.gmra.mxu0 %v1626_v36  ;;  %v1802_v21 = vmul.f32 -2.0, %v1365_v60  ;;  %v2520_v30 = vmul.f32 -3.125, %v1365_v60  ;;  %1664 = vmatmul.bf16.vlgmr.msrb.gmra.mxu2 %v1626_v36  ;;  %v6797_v5 = vld [vmem:[#allocation78_spill] sm:$0xff] }
 0x20a   : > { %2058 = vmatpush.bf16.msra.mxu0 %v2012_v27  ;;  %v5580_v27 = vpop.eup %3914  ;;  %6794 = vst [vmem:[#allocation96_spill] sm:$0xff] %v5583_v0  ;;  %v1739_v9 = vmul.f32 -0.0078125, %v5560_v3  ;;  %v1803_v39 = vmul.f32 -2.0, %v1366_v49  ;;  %v2457_v32 = vmul.f32 -0.013888889, %v5560_v3  ;;  %v2521_v45 = vmul.f32 -3.125, %v1366_v49 }
 0x20b   : > { %v3917_v55 = vpop.eup %3916  ;;  %v2318_v33 = vpack.c.bf16 %v5521_v26, %v5479_v50  ;;  %v6563_v22 = vmax.f32 %v6797_v5, 0.0  ;;  %v5595_v23 = vadd.f32 %v1802_v21, %v1738_v4  ;;  %v5597_v19 = vadd.f32 %v2520_v30, %v2456_v16  ;;  %v6800_v3 = vld [vmem:[#allocation83_spill] sm:$0xff]  ;;  %v6801_v49 = vld [vmem:[#allocation92_spill] sm:$0xff]  ;;  %v6803_v4 = vld [vmem:[#allocation90_spill] sm:$0xff] }
 0x20c   : > { %2084 = vmatpush.bf16.msra.mxu2 %v6795_v52  ;;  %v2319_v60 = vpack.c.bf16 %v3913_v1, %v3917_v55  ;;  %v6564_v52 = vmax.f32 %v6798_v56, 0.0  ;;  %v5600_v57 = vadd.f32 %v1803_v39, %v1739_v9  ;;  %v5602_v36 = vadd.f32 %v2521_v45, %v2457_v32  ;;  %v6804_v16 = vld [vmem:[#allocation91_spill] sm:$0xff]  ;;  %v6805_v1 = vld [vmem:[#allocation98_spill] sm:$0xff]  ;;  %v6807_v39 = vld [vmem:[#allocation76_spill] sm:$0xff]  ;;  %v5636_v45 = vpop.f32.mrf.mxu1 }
 0x20d   : > { %v2316_v31 = vpack.c.bf16 %v6801_v49, %v6800_v3  ;;  %v2438_v50 = vmul.f32 -0.013888889, %v5176_v38  ;;  %v6802_v26 = vmax.f32 %v5122_v18, 0.0  ;;  %v6565_v21 = vmax.f32 %v6803_v4, 0.0  ;;  %v6809_v3 = vld [vmem:[#allocation94_spill] sm:$0xff]  ;;  %v5619_v38 = vpop.f32.mrf.mxu0 }
 0x20e   : > { %2059 = vmatpush.bf16.msra.mxu0 %v2010_v14  ;;  %6799 = vst [vmem:[#allocation84_spill] sm:$0xff] %v5602_v36  ;;  %v2317_v30 = vpack.c.bf16 %v6805_v1, %v6804_v16  ;;  %v6806_v9 = vmax.f32 %v5134_v43, 0.0  ;;  %v5616_v32 = vmax.f32 %v6807_v39, 0.0  ;;  %v2564_v18 = vadd.f32 %v2500_v40, %v2436_v12 }
 0x20f   : > { %v2502_v14 = vmul.f32 -3.125, %v6802_v26  ;;  %v1722_v49 = vmul.f32 -0.0078125, %v5583_v0  ;;  %v6810_v26 = vld [vmem:[#allocation87_spill] sm:$0xff]  ;;  %v2439_v43 = vmul.f32 -0.013888889, %v5185_v54  ;;  %v1787_v1 = vmul.f32 -2.0, %v6564_v52 }
 0x210   : > { %2085 = vmatpush.bf16.msra.mxu2 %v2011_v62  ;;  %v2503_v55 = vmul.f32 -3.125, %v6806_v9  ;;  %6808 = vst [vmem:[#allocation49_spill] sm:$0xff] %v5616_v32  ;;  %v1786_v62 = vmul.f32 -2.0, %v6563_v22  ;;  %v5625_v16 = vmax.f32 %v6810_v26, 0.0  ;;  %v6812_v9 = vld [vmem:[#allocation88_spill] sm:$0xff]  ;;  %v1788_v22 = vmul.f32 -2.0, %v6565_v21  ;;  %v5638_v26 = vpop.f32.mrf.mxu2 }
 0x211   : > { %v5631_v39 = vmax.f32 %v6812_v9, 0.0  ;;  %v2566_v12 = vadd.f32 %v2502_v14, %v2438_v50  ;;  %v2654_v54 = vmul.f32 1.442695, %v5565_v15  ;;  %v6814_v9 = vmax.f32 %v6809_v3, 0.0  ;;  %v5645_v50 = vpop.f32.mrf.mxu3 }
 0x212   : > { %2348 = vmatpush.bf16.msrb.mxu0 %v2320_v48  ;;  %v2437_v48 = vmul.f32 -0.013888889, %v5180_v34  ;;  %6811 = vst [vmem:[#allocation55_spill] sm:$0xff] %v5625_v16  ;;  %v1724_v40 = vmul.f32 -0.0078125, %v5625_v16  ;;  %3918 = vpow2.f32 %v5558_v10  ;;  %v6816_v10 = vld [vmem:[#allocation72_spill] sm:$0xff] }
 0x213   : > { %6813 = vst [vmem:[#allocation51_spill] sm:$0xff] %v5631_v39  ;;  %v1789_v52 = vmul.f32 -2.0, %v6814_v9  ;;  %3920 = vpow2.f32 %v5563_v47  ;;  %v1725_v56 = vmul.f32 -0.0078125, %v5631_v39  ;;  %v2660_v15 = vmul.f32 1.442695, %v2566_v12  ;;  %v6845_v39 = vld [vmem:[#allocation28_spill] sm:$0xff] }
 0x214   : > { %2374 = vmatpush.bf16.msrb.mxu2 %v2321_v17  ;;  %v2565_v34 = vadd.f32 %v2501_v59, %v2437_v48  ;;  %v2652_v17 = vmul.f32 1.442695, %v2562_v25  ;;  %v2567_v59 = vadd.f32 %v2503_v55, %v2439_v43  ;;  %v1723_v48 = vmul.f32 -0.0078125, %v5616_v32 }
 0x215   : > { %v2656_v25 = vmul.f32 1.442695, %v2564_v18  ;;  %v1852_v55 = vadd.f32 %v1788_v22, %v1724_v40  ;;  %v1853_v9 = vadd.f32 %v1789_v52, %v1725_v56  ;;  %v5655_v22 = vpop.f32.mrf.mxu0  ;;  %v6820_v40 = vld [vmem:[#allocation54_spill] sm:$0xff] }
 0x216   : > { %2349 = vmatpush.bf16.msrb.mxu0 %v2318_v33  ;;  %v1850_v33 = vadd.f32 %v1786_v62, %v1722_v49  ;;  %v2658_v14 = vmul.f32 1.442695, %v2565_v34  ;;  %v1851_v21 = vadd.f32 %v1787_v1, %v1723_v48  ;;  %3922 = vpow2.f32 %v2652_v17  ;;  %v6817_v62 = vld [vmem:[#allocation100_spill] sm:$0xff]  ;;  %v6819_v1 = vld [vmem:[#allocation81_spill] sm:$0xff] }
 0x217   : > { %3924 = vpow2.f32 %v2654_v54  ;;  %v2662_v43 = vmul.f32 1.442695, %v2567_v59  ;;  %v2150_v3 = vmul.f32 -0.125, %v6817_v62  ;;  %v2151_v34 = vmul.f32 -0.125, %v5284_v63  ;;  %v6821_v54 = vld [vmem:[#allocation60_spill] sm:$0xff] }
 0x218   : > { %2375 = vmatpush.bf16.msrb.mxu2 %v2319_v60  ;;  %v6815_v60 = vld [vmem:[#allocation66_spill] sm:$0xff]  ;;  %3926 = vpow2.f32 %v2656_v25  ;;  %v1946_v49 = vmul.f32 1.442695, %v1850_v33  ;;  %v1948_v47 = vmul.f32 1.442695, %v1851_v21  ;;  %v5657_v12 = vpop.eup %3918  ;;  %v2312_v21 = vpack.c.bf16 %v6821_v54, %v6820_v40  ;;  %v5666_v33 = vpop.f32.mrf.mxu1 }
 0x219   : > { %v2314_v18 = vpack.c.bf16 %v6816_v10, %v6815_v60  ;;  %3928 = vpow2.f32 %v2658_v14  ;;  %v1950_v56 = vmul.f32 1.442695, %v1852_v55  ;;  %v5659_v52 = vpop.eup %3920  ;;  %v2250_v48 = vmul.f32 1.442695, %v2150_v3  ;;  %v5668_v14 = vpop.f32.mrf.mxu2  ;;  %v6823_v60 = vld [vmem:[#allocation65_spill] sm:$0xff] }
 0x21a   : > { %2350 = vmatpush.bf16.msrb.mxu0 %v2316_v31  ;;  %v6818_v31 = vld [vmem:[#allocation71_spill] sm:$0xff]  ;;  %3930 = vpow2.f32 %v2660_v15  ;;  %v2152_v25 = vmul.f32 -0.125, %v5331_v46  ;;  %v2252_v55 = vmul.f32 1.442695, %v2151_v34  ;;  %v1954_v3 = vmul.f32 1.442695, %v5293_v13 }
 0x21b   : > { %v2315_v17 = vpack.c.bf16 %v6819_v1, %v6818_v31  ;;  %3932 = vpow2.f32 %v2662_v43  ;;  %v2153_v43 = vmul.f32 -0.125, %v5335_v24  ;;  %v6824_v1 = vld [vmem:[#allocation102_spill] sm:$0xff]  ;;  %v6826_v34 = vld [vmem:[#allocation48_spill] sm:$0xff] }
 0x21c   : > { %2376 = vmatpush.bf16.msrb.mxu2 %v2317_v30  ;;  %v1952_v30 = vmul.f32 1.442695, %v1853_v9  ;;  %v5663_v59 = vpop.eup %3922  ;;  %3934 = vpow2.f32 %v1946_v49  ;;  %v6822_v9 = vld [vmem:[#allocation59_spill] sm:$0xff]  ;;  %v5678_v49 = vpop.f32.mrf.mxu3  ;;  %v6827_v13 = vld [vmem:[#allocation46_spill] sm:$0xff] }
 0x21d   : > { %v5670_v15 = vpop.eup %3924  ;;  %3936 = vpow2.f32 %v1948_v47  ;;  %v2313_v10 = vpack.c.bf16 %v6823_v60, %v6822_v9  ;;  %v6825_v47 = vld [vmem:[#allocation41_spill] sm:$0xff] }
 0x21e   : > { %2351 = vmatpush.bf16.msrb.mxu0 %v2314_v18  ;;  %v5675_v18 = vpop.eup %3926  ;;  %3938 = vpow2.f32 %v1950_v56  ;;  %v2310_v40 = vpack.c.bf16 %v6826_v34, %v6825_v47  ;;  %v2256_v56 = vmul.f32 1.442695, %v2153_v43  ;;  %v6828_v60 = vld [vmem:[#allocation53_spill] sm:$0xff]  ;;  %v5700_v34 = vpop.f32.mrf.mxu0 }
 0x21f   : > { %v5680_v31 = vpop.eup %3928  ;;  %3940 = vpow2.f32 %v1952_v30  ;;  %v2311_v30 = vpack.c.bf16 %v6828_v60, %v6827_v13  ;;  %v6836_v60 = vld [vmem:[#allocation40_spill] sm:$0xff] }
 0x220   : > { %2377 = vmatpush.bf16.msrb.mxu2 %v2315_v17  ;;  %v1956_v17 = vmul.f32 1.442695, %v6824_v1  ;;  %v5685_v54 = vpop.eup %3930  ;;  %3942 = vpow2.f32 %v2250_v48  ;;  %v2154_v1 = vmul.f32 -0.125, %v5380_v42  ;;  %v2155_v48 = vmul.f32 -0.125, %v5385_v44 }
 0x221   : > { %v5687_v9 = vpop.eup %3932  ;;  %3944 = vpow2.f32 %v2252_v55  ;;  %v6832_v55 = vld [vmem:[#allocation35_spill] sm:$0xff] }
 0x222   : > { %2352 = vmatpush.bf16.msrb.mxu0 %v2312_v21  ;;  %v2254_v21 = vmul.f32 1.442695, %v2152_v25  ;;  %v5691_v5 = vpop.eup %3934  ;;  %3946 = vpow2.f32 %v1954_v3  ;;  %v6831_v25 = vld [vmem:[#allocation29_spill] sm:$0xff]  ;;  %v1960_v3 = vmul.f32 1.442695, %v5353_v35 }
 0x223   : > { %6829 = vst [vmem:[#allocation57_spill] sm:$0xff] %v5691_v5  ;;  %v5695_v47 = vpop.eup %3936  ;;  %3948 = vpow2.f32 %v1956_v17  ;;  %v2308_v43 = vpack.c.bf16 %v6832_v55, %v6831_v25  ;;  %v6835_v17 = vld [vmem:[#allocation34_spill] sm:$0xff]  ;;  %v2258_v25 = vmul.f32 1.442695, %v2154_v1  ;;  %v2156_v55 = vmul.f32 -0.125, %v5423_v8 }
 0x224   : > { %2378 = vmatpush.bf16.msrb.mxu2 %v2313_v10  ;;  %v1958_v10 = vmul.f32 1.442695, %v5342_v53  ;;  %6830 = vst [vmem:[#allocation77_spill] sm:$0xff] %v5695_v47  ;;  %3950 = vpow2.f32 %v2254_v21  ;;  %v2044_v53 = vld [vmem:[%s2043_s26] sm:$0xff]  ;;  %v5715_v47 = vpop.f32.mrf.mxu1  ;;  %v5717_v21 = vpop.f32.mrf.mxu2  ;;  %v2742_v1 = vpack.c.bf16 %v5685_v54, %v5675_v18  ;;  %v2740_v18 = vpack.c.bf16 %v5663_v59, %v5657_v12 }
 0x225   : > { %3952 = vpow2.f32 %v2256_v56  ;;  %v6839_v56 = vld [vmem:[#allocation21_spill] sm:$0xff]  ;;  %v5729_v36 = vpop.f32.mrf.mxu3  ;;  %v2741_v12 = vpack.c.bf16 %v5670_v15, %v5659_v52  ;;  %v6852_v59 = vld [vmem:[#allocation106_spill] sm:$0xff]  ;;  %v5767_v52 = vmul.f32 -0.055555556, %v5335_v24  ;;  %v1970_v24 = vmul.f32 1.442695, %v5487_v29 }
 0x226   : > { %2353 = vmatpush.bf16.msrb.mxu0 %v2310_v40  ;;  %v5702_v40 = vpop.eup %3938  ;;  %3954 = vpow2.f32 %v1958_v10  ;;  %v1962_v10 = vmul.f32 1.442695, %v5406_v20  ;;  %v2262_v20 = vmul.f32 1.442695, %v2156_v55  ;;  %v5760_v55 = vmul.f32 -0.055555556, %v5284_v63 }
 0x227   : > { %6833 = vst [vmem:[#allocation86_spill] sm:$0xff] %v5702_v40  ;;  %v5708_v13 = vpop.eup %3940  ;;  %v2260_v40 = vmul.f32 1.442695, %v2155_v48  ;;  %3956 = vpow2.f32 %v1960_v3  ;;  %v6843_v48 = vld [vmem:[#allocation19_spill] sm:$0xff] }
 0x228   : > { %2379 = vmatpush.bf16.msrb.mxu2 %v2311_v30  ;;  %6834 = vst [vmem:[#allocation36_spill] sm:$0xff] %v5708_v13  ;;  %v2309_v30 = vpack.c.bf16 %v6836_v60, %v6835_v17  ;;  %v5712_v4 = vpop.eup %3942  ;;  %v2157_v13 = vmul.f32 -0.125, %v5428_v6  ;;  %v2046_v17 = vunpack.c.l.b16 %v2044_v53  ;;  %v2743_v53 = vpack.c.bf16 %v5687_v9, %v5680_v31  ;;  %v6851_v9 = vld [vmem:[#allocation47_spill] sm:$0xff] }
 0x229   : > { %6837 = vst [vmem:[#allocation42_spill] sm:$0xff] %v5712_v4  ;;  %v5719_v35 = vpop.eup %3944  ;;  %3958 = vpow2.f32 %v2258_v25  ;;  %v5757_v25 = vmul.f32 -0.055555556, %v6817_v62  ;;  %v2160_v62 = vmul.f32 -0.125, %v5504_v61  ;;  %v6856_v63 = vld [vmem:[#allocation95_spill] sm:$0xff] }
 0x22a   : > { %2354 = vmatpush.bf16.msrb.mxu0 %v2308_v43  ;;  %6838 = vst [vmem:[#allocation38_spill] sm:$0xff] %v5719_v35  ;;  %v6840_v43 = vld [vmem:[#allocation23_spill] sm:$0xff]  ;;  %v5724_v60 = vpop.eup %3946  ;;  %v1964_v35 = vmul.f32 1.442695, %v6843_v48  ;;  %3960 = vpow2.f32 %v2260_v40  ;;  %v6848_v48 = vld [vmem:[#allocation109_spill] sm:$0xff] }
 0x22b   : > { %v2306_v5 = vpack.c.bf16 %v6840_v43, %v6839_v56  ;;  %6841 = vst [vmem:[#allocation44_spill] sm:$0xff] %v5724_v60  ;;  %v5731_v4 = vpop.eup %3948  ;;  %v2048_v56 = vpack.c.b16 %v2046_v17, %v2046_v17  ;;  %v2264_v43 = vmul.f32 1.442695, %v2157_v13  ;;  %3962 = vpow2.f32 %v1962_v10  ;;  %v6850_v17 = vld [vmem:[#allocation20_spill] sm:$0xff]  ;;  %v5752_v13 = vpop.f32.mrf.mxu0  ;;  %v6854_v10 = vld [vmem:[#allocation107_spill] sm:$0xff] }
 0x22c   : > { %2380 = vmatpush.bf16.msrb.mxu2 %v2309_v30  ;;  %6842 = vst [vmem:[#allocation24_spill] sm:$0xff] %v5731_v4  ;;  %v6844_v30 = vld [vmem:[#allocation22_spill] sm:$0xff]  ;;  %v5738_v3 = vpop.eup %3950  ;;  %v1966_v31 = vmul.f32 1.442695, %v6850_v17  ;;  %3964 = vpow2.f32 %v1964_v35  ;;  %v2684_v40 = vmul.f32 1.442695, %v6852_v59  ;;  %v5774_v59 = vpop.f32.mrf.mxu1 }
 0x22d   : > { %v2307_v32 = vpack.c.bf16 %v6845_v39, %v6844_v30  ;;  %6846 = vst [vmem:[#allocation30_spill] sm:$0xff] %v5738_v3  ;;  %v5742_v54 = vpop.eup %3952  ;;  %2060 = vmatmul.bf16.vlgmr.msra.gmra.mxu0 %v2048_v56  ;;  %v2159_v30 = vmul.f32 -0.125, %v6851_v9  ;;  %2086 = vmatmul.bf16.vlgmr.msra.gmra.mxu2 %v2048_v56  ;;  %3966 = vpow2.f32 %v2262_v20  ;;  %v5764_v56 = vmul.f32 -0.055555556, %v5331_v46  ;;  %v6857_v17 = vld [vmem:[#allocation61_spill] sm:$0xff] }
 0x22e   : > { %2355 = vmatpush.bf16.msrb.mxu0 %v2306_v5  ;;  %6847 = vst [vmem:[#allocation26_spill] sm:$0xff] %v5742_v54  ;;  %v2158_v5 = vmul.f32 -0.125, %v6848_v48  ;;  %v5745_v39 = vpop.eup %3954  ;;  %3968 = vpow2.f32 %v2264_v43  ;;  %v2738_v20 = vpack.c.bf16 %v6857_v17, %v6856_v63  ;;  %v2161_v43 = vmul.f32 -0.125, %v5506_v51  ;;  %v6862_v17 = vld [vmem:[#allocation67_spill] sm:$0xff] }
 0x22f   : > { %6849 = vst [vmem:[#allocation32_spill] sm:$0xff] %v5745_v39  ;;  %3970 = vpow2.f32 %v1966_v31  ;;  %v5790_v63 = vmul.f32 -0.055555556, %v5385_v44  ;;  %v2688_v54 = vmul.f32 1.442695, %v6862_v17 }
 0x230   : > { %2381 = vmatpush.bf16.msrb.mxu2 %v2307_v32  ;;  %v5754_v32 = vpop.eup %3956  ;;  %v2266_v15 = vmul.f32 1.442695, %v2158_v5  ;;  %3972 = vpow2.f32 %v2684_v40  ;;  %v6860_v5 = vld [vmem:[#allocation97_spill] sm:$0xff]  ;;  %v5793_v40 = vpop.f32.mrf.mxu3  ;;  %v5807_v44 = vmul.f32 -0.055555556, %v6848_v48 }
 0x231   : > { %6853 = vst [vmem:[#allocation75_spill] sm:$0xff] %v5754_v32  ;;  %v5769_v35 = vpop.eup %3958  ;;  %v2739_v31 = vpack.c.bf16 %v5580_v27, %v6860_v5  ;;  %v5801_v27 = vmul.f32 -0.055555556, %v5428_v6  ;;  %v6864_v5 = vld [vmem:[#allocation63_spill] sm:$0xff]  ;;  %v2270_v17 = vmul.f32 1.442695, %v2160_v62 }
 0x232   : > { %2770 = vmatpush.bf16.msra.mxu0 %v2742_v1  ;;  %v1968_v1 = vmul.f32 1.442695, %v6854_v10  ;;  %6855 = vst [vmem:[#allocation83_spill] sm:$0xff] %v5769_v35  ;;  %v5776_v10 = vpop.f32.mrf.mxu2  ;;  %v5778_v46 = vpop.eup %3960  ;;  %v2272_v6 = vmul.f32 1.442695, %v2161_v43  ;;  %v6869_v62 = vld [vmem:[#allocation85_spill] sm:$0xff] }
 0x233   : > { %6858 = vst [vmem:[#allocation92_spill] sm:$0xff] %v5776_v10  ;;  %v1974_v48 = vmul.f32 1.442695, %v5534_v11  ;;  %v6871_v43 = vld [vmem:[#allocation79_spill] sm:$0xff]  ;;  %v922_v35 = vpop.f32.mrf.mxu0  ;;  %v1976_v11 = vmul.f32 1.442695, %v5538_v28 }
 0x234   : > { %2796 = vmatpush.bf16.msra.mxu2 %v2743_v53  ;;  %v2268_v53 = vmul.f32 1.442695, %v2159_v30  ;;  %6859 = vst [vmem:[#allocation91_spill] sm:$0xff] %v5778_v46  ;;  %v5784_v30 = vpop.eup %3962  ;;  %3974 = vpow2.f32 %v1968_v1  ;;  %v5810_v1 = vmul.f32 -0.055555556, %v6851_v9  ;;  %v1369_v9 = vmax.f32 %v5573_v37, 0.0  ;;  %v5848_v4 = vpop.f32.mrf.mxu1 }
 0x235   : > { %6861 = vst [vmem:[#allocation98_spill] sm:$0xff] %v5784_v30  ;;  %v5795_v29 = vpop.eup %3964  ;;  %3976 = vpow2.f32 %v2266_v15  ;;  %v2162_v15 = vmul.f32 -0.125, %v5550_v7  ;;  %v1367_v37 = vmax.f32 %v5556_v41, 0.0  ;;  %v6878_v41 = vld [vmem:[#allocation64_spill] sm:$0xff] }
 0x236   : > { %2771 = vmatpush.bf16.msra.mxu0 %v2740_v18  ;;  %v5787_v18 = vmul.f32 -0.055555556, %v5380_v42  ;;  %6863 = vst [vmem:[#allocation76_spill] sm:$0xff] %v5795_v29  ;;  %v1972_v42 = vmul.f32 1.442695, %v6864_v5  ;;  %v5804_v3 = vpop.eup %3966  ;;  %3978 = vpow2.f32 %v2268_v53  ;;  %v6868_v53 = vld [vmem:[#allocation74_spill] sm:$0xff] }
 0x237   : > { %6865 = vst [vmem:[#allocation87_spill] sm:$0xff] %v5804_v3  ;;  %v5812_v46 = vpop.eup %3968  ;;  %3980 = vpow2.f32 %v1970_v24  ;;  %v2692_v24 = vmul.f32 1.442695, %v5536_v2  ;;  %v2274_v2 = vmul.f32 1.442695, %v2162_v15  ;;  %v1740_v28 = vmul.f32 -0.0078125, %v1367_v37 }
 0x238   : > { %2797 = vmatpush.bf16.msra.mxu2 %v2741_v12  ;;  %v5798_v12 = vmul.f32 -0.055555556, %v5423_v8  ;;  %6866 = vst [vmem:[#allocation88_spill] sm:$0xff] %v5812_v46  ;;  %v5815_v8 = vmul.f32 -0.055555556, %v5504_v61  ;;  %v5818_v5 = vpop.eup %3970  ;;  %3982 = vpow2.f32 %v2688_v54  ;;  %v5865_v60 = vpop.f32.mrf.mxu3 }
 0x239   : > { %6867 = vst [vmem:[#allocation66_spill] sm:$0xff] %v5818_v5  ;;  %v5824_v3 = vpop.eup %3972  ;;  %3984 = vpow2.f32 %v1972_v42  ;;  %v5827_v61 = vmul.f32 -0.055555556, %v5506_v51  ;;  %v5841_v51 = vmul.f32 -0.055555556, %v5550_v7  ;;  %v6882_v7 = vld [vmem:[#allocation99_spill] sm:$0xff] }
 0x23a   : > { %2772 = vmatpush.bf16.msra.mxu0 %v2738_v20  ;;  %v2736_v20 = vpack.c.bf16 %v6869_v62, %v6868_v53  ;;  %6870 = vst [vmem:[#allocation72_spill] sm:$0xff] %v5824_v3  ;;  %v5832_v54 = vpop.eup %3974  ;;  %3986 = vpow2.f32 %v2270_v17  ;;  %v6874_v53 = vld [vmem:[#allocation62_spill] sm:$0xff]  ;;  %v6875_v62 = vld [vmem:[#allocation68_spill] sm:$0xff]  ;;  %v1804_v17 = vmul.f32 -2.0, %v1369_v9  ;;  %v5855_v15 = vmax.f32 %v6882_v7, 0.0 }
 0x23b   : > { %6873 = vst [vmem:[#allocation100_spill] sm:$0xff] %v5832_v54  ;;  %v2734_v42 = vpack.c.bf16 %v6875_v62, %v6874_v53  ;;  %v5838_v3 = vpop.eup %3976  ;;  %3988 = vpow2.f32 %v2272_v6  ;;  %v5850_v53 = vpop.f32.mrf.mxu2  ;;  %v2458_v62 = vmul.f32 -0.013888889, %v1367_v37  ;;  %v2696_v7 = vmul.f32 1.442695, %v5597_v19 }
 0x23c   : > { %2798 = vmatpush.bf16.msra.mxu2 %v2739_v31  ;;  %v6872_v31 = vld [vmem:[#allocation89_spill] sm:$0xff]  ;;  %6876 = vst [vmem:[#allocation71_spill] sm:$0xff] %v5838_v3  ;;  %3990 = vpow2.f32 %v1974_v48  ;;  %v6887_v3 = vld [vmem:[#allocation56_spill] sm:$0xff]  ;;  %v5874_v54 = vmul.f32 -0.055555556, %v1367_v37  ;;  %v1741_v30 = vmul.f32 -0.0078125, %v5855_v15 }
 0x23d   : > { %v2737_v46 = vpack.c.bf16 %v6872_v31, %v6871_v43  ;;  %v5844_v31 = vpop.eup %3978  ;;  %6880 = vst [vmem:[#allocation54_spill] sm:$0xff] %v5850_v53  ;;  %3992 = vpow2.f32 %v2692_v24  ;;  %v6885_v48 = vld [vmem:[#allocation93_spill] sm:$0xff] }
 0x23e   : > { %2773 = vmatpush.bf16.msra.mxu0 %v2736_v20  ;;  %6877 = vst [vmem:[#allocation81_spill] sm:$0xff] %v5844_v31  ;;  %v6879_v20 = vld [vmem:[#allocation70_spill] sm:$0xff]  ;;  %v5852_v6 = vpop.eup %3980  ;;  %3994 = vpow2.f32 %v1976_v11  ;;  %v5860_v31 = vmul.f32 -0.055555556, %v6885_v48 }
 0x23f   : > { %v2735_v32 = vpack.c.bf16 %v6879_v20, %v6878_v41  ;;  %6881 = vst [vmem:[#allocation60_spill] sm:$0xff] %v5852_v6  ;;  %v5857_v43 = vpop.eup %3982  ;;  %v1978_v41 = vmul.f32 1.442695, %v5595_v23  ;;  %v6886_v20 = vld [vmem:[#allocation50_spill] sm:$0xff]  ;;  %3996 = vpow2.f32 %v2274_v2  ;;  %v1868_v23 = vadd.f32 %v1804_v17, %v1740_v28  ;;  %v6898_v17 = vld [vmem:[#allocation43_spill] sm:$0xff] }
 0x240   : > { %2799 = vmatpush.bf16.msra.mxu2 %v2737_v46  ;;  %6883 = vst [vmem:[#allocation59_spill] sm:$0xff] %v5855_v15  ;;  %v2522_v46 = vmul.f32 -3.125, %v1369_v9  ;;  %v2732_v39 = vpack.c.bf16 %v6887_v3, %v6886_v20  ;;  %v5867_v24 = vpop.eup %3984  ;;  %v2164_v9 = vmul.f32 -0.125, %v1367_v37  ;;  %v6891_v3 = vld [vmem:[#allocation52_spill] sm:$0xff]  ;;  %v6892_v20 = vld [vmem:[#allocation58_spill] sm:$0xff]  ;;  %v5889_v37 = vmax.f32 %v5752_v13, 0.0 }
 0x241   : > { %6884 = vst [vmem:[#allocation65_spill] sm:$0xff] %v5857_v43  ;;  %v6889_v43 = vmax.f32 %v5589_v58, 0.0  ;;  %v5872_v48 = vpop.eup %3986  ;;  %v2733_v29 = vpack.c.bf16 %v6892_v20, %v6891_v3  ;;  %v1980_v2 = vmul.f32 1.442695, %v5600_v57  ;;  %3998 = vpow2.f32 %v1978_v41 }
 0x242   : > { %2774 = vmatpush.bf16.msra.mxu0 %v2734_v42  ;;  %6888 = vst [vmem:[#allocation102_spill] sm:$0xff] %v5867_v24  ;;  %v6600_v42 = vmax.f32 %v5776_v10, 0.0  ;;  %v5879_v5 = vpop.eup %3988  ;;  %v2586_v19 = vadd.f32 %v2522_v46, %v2458_v62  ;;  %v5891_v28 = vmax.f32 %v922_v35, 0.0  ;;  %4000 = vpow2.f32 %v2696_v7  ;;  %v925_v46 = vpop.f32.mrf.mxu0  ;;  %v6897_v35 = vld [vmem:[#allocation37_spill] sm:$0xff] }
 0x243   : > { %v1805_v11 = vmul.f32 -2.0, %v6889_v43  ;;  %6890 = vst [vmem:[#allocation41_spill] sm:$0xff] %v5872_v48  ;;  %v5884_v43 = vmax.f32 %v5619_v38, 0.0  ;;  %v2278_v57 = vmul.f32 1.442695, %v2164_v9  ;;  %v1748_v13 = vmul.f32 -0.0078125, %v5889_v37 }
 0x244   : > { %2800 = vmatpush.bf16.msra.mxu2 %v2735_v32  ;;  %6893 = vst [vmem:[#allocation48_spill] sm:$0xff] %v5879_v5  ;;  %v5886_v32 = vpop.eup %3990  ;;  %v5897_v62 = vmul.f32 -0.055555556, %v5855_v15  ;;  %v1982_v41 = vmul.f32 1.442695, %v1868_v23  ;;  %v2730_v58 = vpack.c.bf16 %v6898_v17, %v6897_v35  ;;  %4002 = vpow2.f32 %v1980_v2  ;;  %v6904_v10 = vld [vmem:[#allocation25_spill] sm:$0xff] }
 0x245   : > { %6894 = vst [vmem:[#allocation46_spill] sm:$0xff] %v5891_v28  ;;  %v5894_v3 = vpop.eup %3992  ;;  %v1869_v38 = vadd.f32 %v1805_v11, %v1741_v30  ;;  %v2700_v7 = vmul.f32 1.442695, %v2586_v19  ;;  %v2166_v9 = vmul.f32 -0.125, %v5884_v43  ;;  %v6900_v30 = vld [vmem:[#allocation39_spill] sm:$0xff]  ;;  %v1750_v15 = vmul.f32 -0.0078125, %v5891_v28 }
 0x246   : > { %2775 = vmatpush.bf16.msra.mxu0 %v2732_v39  ;;  %6895 = vst [vmem:[#allocation53_spill] sm:$0xff] %v5894_v3  ;;  %v5899_v20 = vpop.eup %3994  ;;  %v1812_v39 = vmul.f32 -2.0, %v6600_v42  ;;  %v6902_v23 = vmax.f32 %v5850_v53, 0.0  ;;  %v5914_v48 = vmax.f32 %v925_v46, 0.0  ;;  %v1038_v42 = vpop.f32.mrf.mxu1  ;;  %v6905_v17 = vld [vmem:[#allocation31_spill] sm:$0xff]  ;;  %4004 = vpow2.f32 %v2278_v57 }
 0x247   : > { %6896 = vst [vmem:[#allocation29_spill] sm:$0xff] %v5899_v20  ;;  %v5906_v3 = vpop.eup %3996  ;;  %v2728_v35 = vpack.c.bf16 %v6905_v17, %v6904_v10  ;;  %v1984_v2 = vmul.f32 1.442695, %v1869_v38  ;;  %v5921_v19 = vmax.f32 %v5636_v45, 0.0  ;;  %4006 = vpow2.f32 %v1982_v41 }
 0x248   : > { %2801 = vmatpush.bf16.msra.mxu2 %v2733_v29  ;;  %6899 = vst [vmem:[#allocation35_spill] sm:$0xff] %v5906_v3  ;;  %v6901_v29 = vld [vmem:[#allocation45_spill] sm:$0xff]  ;;  %v1814_v5 = vmul.f32 -2.0, %v6902_v23  ;;  %v5918_v3 = vpop.f32.mrf.mxu2  ;;  %v5925_v53 = vpop.eup %3998  ;;  %v1876_v46 = vadd.f32 %v1812_v39, %v1748_v13  ;;  %v1455_v10 = vmul.f32 -0.055555556, %v5891_v28  ;;  %v5936_v45 = vmax.f32 %v5848_v4, 0.0 }
 0x249   : > { %v2731_v11 = vpack.c.bf16 %v6901_v29, %v6900_v30  ;;  %6903 = vst [vmem:[#allocation34_spill] sm:$0xff] %v5914_v48  ;;  %v6908_v30 = vld [vmem:[#allocation27_spill] sm:$0xff]  ;;  %v6909_v29 = vld [vmem:[#allocation33_spill] sm:$0xff]  ;;  %v5931_v23 = vpop.f32.mrf.mxu3  ;;  %v5933_v57 = vpop.eup %4000  ;;  %v5938_v38 = vmax.f32 %v1038_v42, 0.0  ;;  %v1752_v17 = vmul.f32 -0.0078125, %v5914_v48  ;;  %4008 = vpow2.f32 %v2700_v7 }
 0x24a   : > { %2776 = vmatpush.bf16.msra.mxu0 %v2730_v58  ;;  %6906 = vst [vmem:[#allocation40_spill] sm:$0xff] %v5918_v3  ;;  %v2729_v20 = vpack.c.bf16 %v6909_v29, %v6908_v30  ;;  %v5928_v58 = vmul.f32 -0.055555556, %v5884_v43  ;;  %v2282_v41 = vmul.f32 1.442695, %v2166_v9  ;;  %v1878_v30 = vadd.f32 %v1814_v5, %v1750_v15  ;;  %v5943_v39 = vpop.eup %4002 }
 0x24b   : > { %6907 = vst [vmem:[#allocation21_spill] sm:$0xff] %v5921_v19  ;;  %v1457_v13 = vmul.f32 -0.055555556, %v5914_v48  ;;  %4010 = vpow2.f32 %v1984_v2  ;;  %v5946_v29 = vmax.f32 %v5700_v34, 0.0  ;;  %v6609_v42 = vmax.f32 %v5931_v23, 0.0 }
 0x24c   : > { %2802 = vmatpush.bf16.msra.mxu2 %v2731_v11  ;;  %6910 = vst [vmem:[#allocation23_spill] sm:$0xff] %v5931_v23  ;;  %v6606_v11 = vmax.f32 %v5918_v3, 0.0  ;;  %v5955_v5 = vmax.f32 %v5774_v59, 0.0  ;;  %v1998_v15 = vmul.f32 1.442695, %v1876_v46  ;;  %v5957_v9 = vpop.eup %4004  ;;  %4012 = vpow2.f32 %v2282_v41 }
 0x24d   : > { %6911 = vst [vmem:[#allocation19_spill] sm:$0xff] %v5933_v57  ;;  %v5952_v57 = vmax.f32 %v5715_v47, 0.0  ;;  %v1579_v7 = vmul.f32 1.442695, %v1455_v10  ;;  %v1817_v2 = vmul.f32 -2.0, %v6609_v42  ;;  %v1743_v28 = vmul.f32 -0.0078125, %v5921_v19 }
 0x24e   : > { %6912 = vst [vmem:[#allocation22_spill] sm:$0xff] %v5938_v38  ;;  %2777 = vmatpush.bf16.msra.mxu0 %v2728_v35  ;;  %v1816_v4 = vmul.f32 -2.0, %v6606_v11  ;;  %v1456_v35 = vmul.f32 -0.055555556, %v5936_v45  ;;  %v5963_v11 = vpop.eup %4006  ;;  %v2002_v47 = vmul.f32 1.442695, %v1878_v30 }
 0x24f   : > { %6913 = vst [vmem:[#allocation28_spill] sm:$0xff] %v5943_v39  ;;  %v1458_v39 = vmul.f32 -0.055555556, %v5938_v38  ;;  %v1583_v59 = vmul.f32 1.442695, %v1457_v13  ;;  %4014 = vpow2.f32 %v1579_v7 }
 0x250   : > { %2803 = vmatpush.bf16.msra.mxu2 %v2729_v20  ;;  %6914 = vst [vmem:[#allocation109_spill] sm:$0xff] %v5957_v9  ;;  %v1880_v34 = vadd.f32 %v1816_v4, %v1752_v17  ;;  %v1753_v20 = vmul.f32 -0.0078125, %v5938_v38  ;;  %v1451_v46 = vmul.f32 -0.055555556, %v5946_v29  ;;  %v5967_v9 = vpop.eup %4008  ;;  %v1373_v17 = vmax.f32 %v5638_v26, 0.0 }
 0x251   : > { %6915 = vst [vmem:[#allocation20_spill] sm:$0xff] %v5967_v9  ;;  %v5971_v4 = vmax.f32 %v5655_v22, 0.0  ;;  %v1453_v42 = vmul.f32 -0.055555556, %v5889_v37  ;;  %4016 = vpow2.f32 %v1583_v59  ;;  %v5974_v41 = vpop.eup %4010  ;;  %v1452_v30 = vmul.f32 -0.055555556, %v5952_v57 }
 0x252   : > { %v2006_v10 = vmul.f32 1.442695, %v1880_v34  ;;  %v1881_v3 = vadd.f32 %v1817_v2, %v1753_v20  ;;  %6916 = vst [vmem:[#allocation47_spill] sm:$0xff] %v5974_v41  ;;  %4018 = vpow2.f32 %v1998_v15  ;;  %v1581_v38 = vmul.f32 1.442695, %v1456_v35  ;;  %v5983_v59 = vpop.eup %4012 }
 0x253   : > { %v5978_v34 = vmax.f32 %v5666_v33, 0.0  ;;  %v1454_v7 = vmul.f32 -0.055555556, %v5955_v5  ;;  %4020 = vpow2.f32 %v2002_v47  ;;  %v1585_v26 = vmul.f32 1.442695, %v1458_v39  ;;  %6917 = vst [vmem:[#allocation106_spill] sm:$0xff] %v5983_v59 }
 0x254   : > { %v2008_v13 = vmul.f32 1.442695, %v1881_v3  ;;  %v1448_v22 = vmul.f32 -0.055555556, %v5921_v19  ;;  %v1374_v20 = vmax.f32 %v5645_v50, 0.0  ;;  %4022 = vpow2.f32 %v2006_v10 }
 0x255   : > { %v1571_v2 = vmul.f32 1.442695, %v1451_v46  ;;  %v1742_v9 = vmul.f32 -0.0078125, %v5884_v43  ;;  %v1449_v3 = vmul.f32 -0.055555556, %v5971_v4  ;;  %v4015_v33 = vpop.eup %4014  ;;  %v1806_v35 = vmul.f32 -2.0, %v1373_v17 }
 0x256   : > { %4024 = vpow2.f32 %v2008_v13  ;;  %v1575_v15 = vmul.f32 1.442695, %v1453_v42  ;;  %v2460_v41 = vmul.f32 -0.013888889, %v5884_v43  ;;  %v1573_v39 = vmul.f32 1.442695, %v1452_v30 }
 0x257   : > { %4026 = vpow2.f32 %v1581_v38  ;;  %v4017_v47 = vpop.eup %4016  ;;  %v2524_v23 = vmul.f32 -3.125, %v1373_v17  ;;  %v1450_v50 = vmul.f32 -0.055555556, %v5978_v34  ;;  %v1577_v46 = vmul.f32 1.442695, %v1454_v7 }
 0x258   : > { %4028 = vpow2.f32 %v1585_v26  ;;  %v5989_v10 = vpop.eup %4018  ;;  %v1807_v59 = vmul.f32 -2.0, %v1374_v20  ;;  %v1617_v48 = vpack.c.bf16 %v4017_v47, %v4015_v33  ;;  %v1563_v13 = vmul.f32 1.442695, %v5928_v58 }
 0x259   : > { %4030 = vpow2.f32 %v1571_v2  ;;  %v5992_v42 = vpop.eup %4020  ;;  %v1567_v38 = vmul.f32 1.442695, %v1449_v3  ;;  %v5999_v30 = vmul.f32 -0.013888889, %v5921_v19  ;;  %v6001_v7 = vmul.f32 -3.125, %v1374_v20 }
 0x25a   : > { %4032 = vpow2.f32 %v1575_v15  ;;  %v5996_v17 = vpop.eup %4022  ;;  %1643 = vmatpush.bf16.msrb.mxu1 %v1617_v48  ;;  %v1565_v26 = vmul.f32 1.442695, %v1448_v22  ;;  %v6005_v58 = vadd.f32 %v1806_v35, %v1742_v9  ;;  %v6619_v33 = vmax.f32 %v5678_v49, 0.0 }
 0x25b   : > { %4034 = vpow2.f32 %v1573_v39  ;;  %v1569_v47 = vmul.f32 1.442695, %v1450_v50  ;;  %v6008_v3 = vadd.f32 %v2524_v23, %v2460_v41  ;;  %v6010_v43 = vadd.f32 %v1807_v59, %v1743_v28 }
 0x25c   : > { %v6003_v2 = vpop.eup %4024  ;;  %4036 = vpow2.f32 %v1577_v46  ;;  %v1555_v20 = vmul.f32 1.442695, %v5841_v51  ;;  %v6014_v48 = vmul.f32 -0.0078125, %v5971_v4  ;;  %v6918_v22 = vmax.f32 %v5668_v14, 0.0 }
 0x25d   : > { %v4027_v15 = vpop.eup %4026  ;;  %4038 = vpow2.f32 %v1563_v13  ;;  %v1559_v35 = vmul.f32 1.442695, %v5874_v54  ;;  %v6022_v23 = vmul.f32 -0.0078125, %v5978_v34  ;;  %v1557_v41 = vmul.f32 1.442695, %v5860_v31 }
 0x25e   : > { %v4029_v19 = vpop.eup %4028  ;;  %v6018_v9 = vmul.f32 -2.0, %v6918_v22  ;;  %4040 = vpow2.f32 %v1567_v38  ;;  %v6027_v59 = vmul.f32 -2.0, %v6619_v33  ;;  %v6620_v50 = vmax.f32 %v5717_v21, 0.0 }
 0x25f   : > { %v4031_v39 = vpop.eup %4030  ;;  %v1618_v28 = vpack.c.bf16 %v4029_v19, %v4027_v15  ;;  %4042 = vpow2.f32 %v1565_v26  ;;  %v1561_v46 = vmul.f32 1.442695, %v5897_v62  ;;  %v6621_v54 = vmax.f32 %v5729_v36, 0.0 }
 0x260   : > { %v4033_v51 = vpop.eup %4032  ;;  %4044 = vpow2.f32 %v1569_v47  ;;  %v1547_v19 = vmul.f32 1.442695, %v5807_v44  ;;  %v6034_v31 = vmul.f32 -0.0078125, %v5946_v29  ;;  %v6037_v15 = vmul.f32 -0.0078125, %v5952_v57 }
 0x261   : > { %v4035_v13 = vpop.eup %4034  ;;  %1669 = vmatpush.bf16.msrb.mxu3 %v1618_v28  ;;  %v1615_v38 = vpack.c.bf16 %v4033_v51, %v4031_v39  ;;  %4046 = vpow2.f32 %v1555_v20  ;;  %v1551_v47 = vmul.f32 1.442695, %v5815_v8  ;;  %v6622_v62 = vmax.f32 %v5793_v40, 0.0 }
 0x262   : > { %v4037_v26 = vpop.eup %4036  ;;  %4048 = vpow2.f32 %v1559_v35  ;;  %v1549_v20 = vmul.f32 1.442695, %v5810_v1  ;;  %v1810_v44 = vmul.f32 -2.0, %v6620_v50  ;;  %v6623_v28 = vmax.f32 %v5865_v60, 0.0 }
 0x263   : > { %v4039_v22 = vpop.eup %4038  ;;  %1644 = vmatpush.bf16.msrb.mxu1 %v1615_v38  ;;  %v1616_v33 = vpack.c.bf16 %v4037_v26, %v4035_v13  ;;  %4050 = vpow2.f32 %v1557_v41  ;;  %v1553_v51 = vmul.f32 1.442695, %v5827_v61  ;;  %v6048_v8 = vmul.f32 -2.0, %v6621_v54 }
 0x264   : > { %v4041_v39 = vpop.eup %4040  ;;  %4052 = vpow2.f32 %v1561_v46  ;;  %v1539_v41 = vmul.f32 1.442695, %v5787_v18  ;;  %v1749_v13 = vmul.f32 -0.0078125, %v5955_v5  ;;  %v1543_v26 = vmul.f32 1.442695, %v5798_v12 }
 0x265   : > { %v4043_v35 = vpop.eup %4042  ;;  %1670 = vmatpush.bf16.msrb.mxu3 %v1616_v33  ;;  %v1613_v38 = vpack.c.bf16 %v4041_v39, %v4039_v22  ;;  %4054 = vpow2.f32 %v1547_v19  ;;  %v1813_v50 = vmul.f32 -2.0, %v6622_v62  ;;  %v1541_v33 = vmul.f32 1.442695, %v5790_v63 }
 0x266   : > { %v4045_v1 = vpop.eup %4044  ;;  %4056 = vpow2.f32 %v1551_v47  ;;  %v1751_v18 = vmul.f32 -0.0078125, %v5936_v45  ;;  %v1815_v47 = vmul.f32 -2.0, %v6623_v28  ;;  %v1545_v12 = vmul.f32 1.442695, %v5801_v27 }
 0x267   : > { %v4047_v61 = vpop.eup %4046  ;;  %1645 = vmatpush.bf16.msrb.mxu1 %v1613_v38  ;;  %v1614_v54 = vpack.c.bf16 %v4045_v1, %v4043_v35  ;;  %4058 = vpow2.f32 %v1549_v20  ;;  %v1531_v46 = vmul.f32 1.442695, %v5757_v25  ;;  %v1427_v35 = vmul.f32 -0.055555556, %v5583_v0 }
 0x268   : > { %v4049_v19 = vpop.eup %4048  ;;  %4060 = vpow2.f32 %v1553_v51  ;;  %v1535_v63 = vmul.f32 1.442695, %v5764_v56  ;;  %v1429_v38 = vmul.f32 -0.055555556, %v5625_v16  ;;  %v6921_v56 = vld [vmem:[#allocation29_spill] sm:$0xff]  ;;  %v1879_v16 = vadd.f32 %v1815_v47, %v1751_v18  ;;  %v6924_v47 = vld [vmem:[#allocation76_spill] sm:$0xff] }
 0x269   : > { %v4051_v22 = vpop.eup %4050  ;;  %1671 = vmatpush.bf16.msrb.mxu3 %v1614_v54  ;;  %v1611_v39 = vpack.c.bf16 %v4049_v19, %v4047_v61  ;;  %4062 = vpow2.f32 %v1539_v41  ;;  %v1533_v54 = vmul.f32 1.442695, %v5760_v55  ;;  %v6919_v41 = vld [vmem:[#allocation49_spill] sm:$0xff]  ;;  %v1537_v19 = vmul.f32 1.442695, %v5767_v52 }
 0x26a   : > { %v4053_v20 = vpop.eup %4052  ;;  %4064 = vpow2.f32 %v1543_v26  ;;  %v1428_v61 = vmul.f32 -0.055555556, %v6919_v41  ;;  %v6920_v26 = vld [vmem:[#allocation51_spill] sm:$0xff]  ;;  %v1874_v55 = vadd.f32 %v1810_v44, %v6034_v31  ;;  %v1877_v6 = vadd.f32 %v1813_v50, %v1749_v13 }
 0x26b   : > { %v4055_v51 = vpop.eup %4054  ;;  %1646 = vmatpush.bf16.msrb.mxu1 %v1611_v39  ;;  %v1612_v27 = vpack.c.bf16 %v4053_v20, %v4051_v22  ;;  %4066 = vpow2.f32 %v1541_v33  ;;  %v1430_v62 = vmul.f32 -0.055555556, %v6920_v26  ;;  %v1523_v22 = vmul.f32 1.442695, %v1427_v35  ;;  %v6922_v20 = vld [vmem:[#allocation98_spill] sm:$0xff]  ;;  %v6925_v35 = vld [vmem:[#allocation100_spill] sm:$0xff] }
 0x26c   : > { %v4057_v25 = vpop.eup %4056  ;;  %4068 = vpow2.f32 %v1545_v12  ;;  %v1527_v39 = vmul.f32 1.442695, %v1429_v38  ;;  %v6923_v12 = vld [vmem:[#allocation66_spill] sm:$0xff]  ;;  %v1525_v28 = vmul.f32 1.442695, %v1428_v61  ;;  %v1872_v18 = vadd.f32 %v6018_v9, %v6014_v48  ;;  %v6927_v48 = vld [vmem:[#allocation32_spill] sm:$0xff] }
 0x26d   : > { %v4059_v0 = vpop.eup %4058  ;;  %1672 = vmatpush.bf16.msrb.mxu3 %v1612_v27  ;;  %v1609_v1 = vpack.c.bf16 %v4057_v25, %v4055_v51  ;;  %4070 = vpow2.f32 %v1531_v46  ;;  %v2030_v41 = vpack.c.bf16 %v6923_v12, %v6922_v20  ;;  %v1529_v46 = vmul.f32 1.442695, %v1430_v62  ;;  %v6926_v51 = vld [vmem:[#allocation44_spill] sm:$0xff] }
 0x26e   : > { %v4061_v33 = vpop.eup %4060  ;;  %4072 = vpow2.f32 %v1535_v63  ;;  %v2031_v31 = vpack.c.bf16 %v6925_v35, %v6924_v47  ;;  %v1875_v63 = vadd.f32 %v6048_v8, %v6037_v15  ;;  %v2004_v38 = vmul.f32 1.442695, %v1879_v16  ;;  %v6929_v25 = vld [vmem:[#allocation24_spill] sm:$0xff]  ;;  %v6972_v47 = vld [vmem:[#allocation93_spill] sm:$0xff] }
 0x26f   : > { %v4063_v52 = vpop.eup %4062  ;;  %1647 = vmatpush.bf16.msrb.mxu1 %v1609_v1  ;;  %v1610_v26 = vpack.c.bf16 %v4061_v33, %v4059_v0  ;;  %4074 = vpow2.f32 %v1533_v54  ;;  %v2462_v13 = vmul.f32 -0.013888889, %v5971_v4  ;;  %v1994_v1 = vmul.f32 1.442695, %v1874_v55 }
 0x270   : > { %v4065_v24 = vpop.eup %4064  ;;  %4076 = vpow2.f32 %v1537_v19  ;;  %v2028_v9 = vpack.c.bf16 %v6927_v48, %v6926_v51  ;;  %v1873_v27 = vadd.f32 %v6027_v59, %v6022_v23  ;;  %v2000_v54 = vmul.f32 1.442695, %v1877_v6  ;;  %v6930_v19 = vld [vmem:[#allocation75_spill] sm:$0xff] }
 0x271   : > { %v4067_v44 = vpop.eup %4066  ;;  %1673 = vmatpush.bf16.msrb.mxu3 %v1610_v26  ;;  %v1607_v50 = vpack.c.bf16 %v4065_v24, %v4063_v52  ;;  %4078 = vpow2.f32 %v1523_v22  ;;  %v1990_v15 = vmul.f32 1.442695, %v1872_v18  ;;  %v6928_v24 = vmax.f32 %v5668_v14, 0.0 }
 0x272   : > { %v4069_v0 = vpop.eup %4068  ;;  %4080 = vpow2.f32 %v1527_v39  ;;  %v2029_v26 = vpack.c.bf16 %v6930_v19, %v6929_v25  ;;  %v2589_v33 = vadd.f32 %v6001_v7, %v5999_v30  ;;  %v1996_v55 = vmul.f32 1.442695, %v1875_v63  ;;  %v6977_v25 = vld [vmem:[#allocation36_spill] sm:$0xff] }
 0x273   : > { %v4071_v62 = vpop.eup %4070  ;;  %1648 = vmatpush.bf16.msrb.mxu1 %v1607_v50  ;;  %v1608_v61 = vpack.c.bf16 %v4069_v0, %v4067_v44  ;;  %4082 = vpow2.f32 %v1525_v28  ;;  %v2526_v8 = vmul.f32 -3.125, %v6928_v24  ;;  %v1986_v59 = vmul.f32 1.442695, %v6005_v58  ;;  %v4238_v44 = vld [vmem:[%s1621_s21] sm:$0xff] }
 0x274   : > { %v4073_v16 = vpop.eup %4072  ;;  %4084 = vpow2.f32 %v1529_v46  ;;  %v2704_v28 = vmul.f32 1.442695, %v6008_v3  ;;  %v2168_v39 = vmul.f32 -0.125, %v5971_v4  ;;  %v1992_v52 = vmul.f32 1.442695, %v1873_v27 }
 0x275   : > { %v4075_v22 = vpop.eup %4074  ;;  %4086 = vpow2.f32 %v2004_v38  ;;  %1674 = vmatpush.bf16.msrb.mxu3 %v1608_v61  ;;  %v1605_v6 = vpack.c.bf16 %v4073_v16, %v4071_v62  ;;  %v1988_v30 = vmul.f32 1.442695, %v6010_v43  ;;  %v2590_v7 = vadd.f32 %v2526_v8, %v2462_v13 }
 0x276   : > { %v4077_v23 = vpop.eup %4076  ;;  %4088 = vpow2.f32 %v1994_v1  ;;  %v1625_v63 = vunpack.c.h.b16 %v4238_v44  ;;  %v2706_v58 = vmul.f32 1.442695, %v2589_v33  ;;  %v2170_v3 = vmul.f32 -0.125, %v5946_v29 }
 0x277   : > { %v4079_v14 = vpop.eup %4078  ;;  %4090 = vpow2.f32 %v2000_v54  ;;  %1649 = vmatpush.bf16.msrb.mxu1 %v1605_v6  ;;  %v1606_v18 = vpack.c.bf16 %v4077_v23, %v4075_v22  ;;  %v2464_v0 = vmul.f32 -0.013888889, %v5946_v29  ;;  %v6931_v1 = vmax.f32 %v5717_v21, 0.0  ;;  %v6932_v22 = vld [vmem:[#allocation92_spill] sm:$0xff] }
 0x278   : > { %v4081_v46 = vpop.eup %4080  ;;  %4092 = vpow2.f32 %v1990_v15  ;;  %v2040_v43 = vpack.c.bf16 %v5996_v17, %v5992_v42  ;;  %v2286_v27 = vmul.f32 1.442695, %v2168_v39  ;;  %v2708_v16 = vmul.f32 1.442695, %v2590_v7 }
 0x279   : > { %v4083_v38 = vpop.eup %4082  ;;  %4094 = vpow2.f32 %v1996_v55  ;;  %1675 = vmatpush.bf16.msrb.mxu3 %v1606_v18  ;;  %v1603_v50 = vpack.c.bf16 %v4081_v46, %v4079_v14  ;;  %v2528_v62 = vmul.f32 -3.125, %v6931_v1  ;;  %v1627_v24 = vpack.c.b16 %v1625_v63, %v1625_v63  ;;  %v6938_v63 = vld [vmem:[#allocation34_spill] sm:$0xff]  ;;  %v6941_v1 = vld [vmem:[#allocation23_spill] sm:$0xff] }
 0x27a   : > { %v4085_v4 = vpop.eup %4084  ;;  %4096 = vpow2.f32 %v1986_v59  ;;  %v2290_v29 = vmul.f32 1.442695, %v2170_v3  ;;  %v2466_v21 = vmul.f32 -0.013888889, %v5889_v37  ;;  %v6933_v33 = vmax.f32 %v6932_v22, 0.0 }
 0x27b   : > { %v4087_v13 = vpop.eup %4086  ;;  %4098 = vpow2.f32 %v1992_v52  ;;  %1650 = vmatpush.bf16.msrb.mxu1 %v1603_v50  ;;  %v1604_v54 = vpack.c.bf16 %v4085_v4, %v4083_v38  ;;  %v2592_v55 = vadd.f32 %v2528_v62, %v2464_v0  ;;  %v6937_v18 = vmax.f32 %v5678_v49, 0.0 }
 0x27c   : > { %v4089_v61 = vpop.eup %4088  ;;  %4100 = vpow2.f32 %v2704_v28  ;;  %v2041_v15 = vpack.c.bf16 %v6003_v2, %v4087_v13  ;;  %v2530_v42 = vmul.f32 -3.125, %v6933_v33  ;;  %v6934_v2 = vld [vmem:[#allocation46_spill] sm:$0xff]  ;;  %v2470_v38 = vmul.f32 -0.013888889, %v6938_v63 }
 0x27d   : > { %v4091_v8 = vpop.eup %4090  ;;  %4102 = vpow2.f32 %v1988_v30  ;;  %1676 = vmatpush.bf16.msrb.mxu3 %v1604_v54  ;;  %v2038_v6 = vpack.c.bf16 %v5989_v10, %v4089_v61  ;;  %v2468_v59 = vmul.f32 -0.013888889, %v6934_v2  ;;  %v6935_v28 = vld [vmem:[#allocation54_spill] sm:$0xff]  ;;  %v6116_v46 = vmul.f32 -3.125, %v6937_v18 }
 0x27e   : > { %v4093_v17 = vpop.eup %4092  ;;  %4104 = vpow2.f32 %v2706_v58  ;;  %1651 = vmatmul.bf16.vlgmr.msrb.gmra.mxu1 %v1627_v24  ;;  %v6936_v14 = vmax.f32 %v6935_v28, 0.0  ;;  %v2172_v30 = vmul.f32 -0.125, %v5889_v37  ;;  %v2594_v44 = vadd.f32 %v2530_v42, %v2466_v21  ;;  %v6939_v58 = vld [vmem:[#allocation40_spill] sm:$0xff]  ;;  %v6946_v33 = vld [vmem:[#allocation22_spill] sm:$0xff] }
 0x27f   : > { %2065 = vmatpush.bf16.msra.mxu1 %v2040_v43  ;;  %v4095_v23 = vpop.eup %4094  ;;  %4106 = vpow2.f32 %v2286_v27  ;;  %v6940_v3 = vmax.f32 %v6939_v58, 0.0  ;;  %v2712_v0 = vmul.f32 1.442695, %v2592_v55  ;;  %v2174_v49 = vmul.f32 -0.125, %v6934_v2 }
 0x280   : > { %v2532_v39 = vmul.f32 -3.125, %v6936_v14  ;;  %v4097_v52 = vpop.eup %4096  ;;  %4108 = vpow2.f32 %v2708_v16  ;;  %v2039_v7 = vpack.c.bf16 %v4091_v8, %v4095_v23  ;;  %1677 = vmatmul.bf16.vlgmr.msrb.gmra.mxu3 %v1627_v24  ;;  %v6942_v62 = vmax.f32 %v6941_v1, 0.0  ;;  %v6945_v24 = vld [vmem:[#allocation109_spill] sm:$0xff] }
 0x281   : > { %2091 = vmatpush.bf16.msra.mxu3 %v2041_v15  ;;  %v4099_v10 = vpop.eup %4098  ;;  %4110 = vpow2.f32 %v2290_v29  ;;  %v2534_v50 = vmul.f32 -3.125, %v6940_v3  ;;  %v2036_v37 = vpack.c.bf16 %v4093_v17, %v4097_v52  ;;  %v2465_v27 = vmul.f32 -0.013888889, %v5952_v57  ;;  %v6944_v15 = vld [vmem:[#allocation35_spill] sm:$0xff] }
 0x282   : > { %v6122_v4 = vpop.eup %4100  ;;  %v2535_v43 = vmul.f32 -3.125, %v6942_v62  ;;  %v2596_v54 = vadd.f32 %v2532_v39, %v2468_v59  ;;  %v6943_v61 = vmax.f32 %v5865_v60, 0.0  ;;  %v2330_v8 = vpack.c.bf16 %v6945_v24, %v6944_v15  ;;  %v6996_v15 = vld [vmem:[#allocation72_spill] sm:$0xff] }
 0x283   : > { %2066 = vmatpush.bf16.msra.mxu1 %v2038_v6  ;;  %v4103_v13 = vpop.eup %4102  ;;  %v2294_v21 = vmul.f32 1.442695, %v2172_v30  ;;  %v2176_v22 = vmul.f32 -0.125, %v6938_v63  ;;  %v2471_v42 = vmul.f32 -0.013888889, %v6946_v33  ;;  %v6947_v23 = vmax.f32 %v5793_v40, 0.0 }
 0x284   : > { %v2533_v16 = vmul.f32 -3.125, %v6943_v61  ;;  %v6132_v29 = vpop.eup %4104  ;;  %v2037_v55 = vpack.c.bf16 %v4099_v10, %v4103_v13  ;;  %v2716_v6 = vmul.f32 1.442695, %v2594_v44  ;;  %v2469_v60 = vmul.f32 -0.013888889, %v5936_v45  ;;  %v6949_v40 = vld [vmem:[#allocation71_spill] sm:$0xff] }
 0x285   : > { %2092 = vmatpush.bf16.msra.mxu3 %v2039_v7  ;;  %v6136_v17 = vpop.eup %4106  ;;  %v2531_v2 = vmul.f32 -3.125, %v6947_v23  ;;  %v2598_v59 = vadd.f32 %v2534_v50, %v2470_v38  ;;  %4112 = vpow2.f32 %v2712_v0  ;;  %v6948_v14 = vmax.f32 %v5729_v36, 0.0  ;;  %v6950_v63 = vld [vmem:[#allocation41_spill] sm:$0xff]  ;;  %v6952_v50 = vld [vmem:[#allocation28_spill] sm:$0xff]  ;;  %v6953_v0 = vld [vmem:[#allocation47_spill] sm:$0xff] }
 0x286   : > { %v6141_v28 = vpop.eup %4108  ;;  %v2298_v52 = vmul.f32 1.442695, %v2174_v49  ;;  %v2599_v18 = vadd.f32 %v2535_v43, %v2471_v42  ;;  %v2467_v7 = vmul.f32 -0.013888889, %v5955_v5  ;;  %v2720_v10 = vmul.f32 1.442695, %v2596_v54 }
 0x287   : > { %2067 = vmatpush.bf16.msra.mxu1 %v2036_v37  ;;  %v2529_v39 = vmul.f32 -3.125, %v6948_v14  ;;  %v6145_v30 = vpop.eup %4110  ;;  %v2597_v44 = vadd.f32 %v2533_v16, %v2469_v60  ;;  %v2328_v58 = vpack.c.bf16 %v6950_v63, %v6949_v40  ;;  %4114 = vpow2.f32 %v2294_v21  ;;  %v6954_v43 = vld [vmem:[#allocation81_spill] sm:$0xff]  ;;  %v6955_v37 = vld [vmem:[#allocation48_spill] sm:$0xff] }
 0x288   : > { %v2302_v38 = vmul.f32 1.442695, %v2176_v22  ;;  %v2177_v3 = vmul.f32 -0.125, %v6946_v33  ;;  %v6951_v36 = vpack.c.bf16 %v5963_v11, %v5925_v53  ;;  %v2035_v49 = vpack.c.bf16 %v6953_v0, %v6952_v50  ;;  %v6956_v11 = vld [vmem:[#allocation83_spill] sm:$0xff]  ;;  %v6967_v50 = vld [vmem:[#allocation42_spill] sm:$0xff] }
 0x289   : > { %2093 = vmatpush.bf16.msra.mxu3 %v2037_v55  ;;  %4116 = vpow2.f32 %v2716_v6  ;;  %v2595_v1 = vadd.f32 %v2531_v2, %v2467_v7  ;;  %v2724_v62 = vmul.f32 1.442695, %v2598_v59  ;;  %v2329_v13 = vpack.c.bf16 %v6955_v37, %v6954_v43  ;;  %v6957_v22 = vld [vmem:[#allocation87_spill] sm:$0xff]  ;;  %v6958_v55 = vld [vmem:[#allocation73_spill] sm:$0xff]  ;;  %v6960_v59 = vld [vmem:[#allocation60_spill] sm:$0xff] }
 0x28a   : > { %v2463_v54 = vmul.f32 -0.013888889, %v5978_v34  ;;  %4118 = vpow2.f32 %v2298_v52  ;;  %v2175_v61 = vmul.f32 -0.125, %v5936_v45  ;;  %v2726_v16 = vmul.f32 1.442695, %v2599_v18  ;;  %v6963_v52 = vld [vmem:[#allocation88_spill] sm:$0xff] }
 0x28b   : > { %2068 = vmatpush.bf16.msra.mxu1 %v6951_v36  ;;  %v2593_v21 = vadd.f32 %v2529_v39, %v2465_v27  ;;  %4120 = vpow2.f32 %v2720_v10  ;;  %v2722_v53 = vmul.f32 1.442695, %v2597_v44  ;;  %v2326_v33 = vpack.c.bf16 %v6957_v22, %v6956_v11  ;;  %v6162_v42 = vpop.eup %4112  ;;  %v6962_v39 = vld [vmem:[#allocation91_spill] sm:$0xff]  ;;  %v6968_v0 = vld [vmem:[#allocation30_spill] sm:$0xff] }
 0x28c   : > { %v6959_v6 = vmax.f32 %v6958_v55, 0.0  ;;  %v2173_v2 = vmul.f32 -0.125, %v5955_v5  ;;  %4122 = vpow2.f32 %v2302_v38  ;;  %v2304_v60 = vmul.f32 1.442695, %v2177_v3  ;;  %v6964_v5 = vld [vmem:[#allocation102_spill] sm:$0xff] }
 0x28d   : > { %2094 = vmatpush.bf16.msra.mxu3 %v2035_v49  ;;  %v6961_v45 = vpack.c.bf16 %v5886_v32, %v6960_v59  ;;  %v2591_v27 = vadd.f32 %v6116_v46, %v2463_v54  ;;  %v2718_v14 = vmul.f32 1.442695, %v2595_v1  ;;  %4124 = vpow2.f32 %v2724_v62  ;;  %v6173_v7 = vpop.eup %4114  ;;  %v6966_v32 = vld [vmem:[#allocation59_spill] sm:$0xff] }
 0x28e   : > { %v2523_v23 = vmul.f32 -3.125, %v6959_v6  ;;  %v2327_v18 = vpack.c.bf16 %v6963_v52, %v6962_v39  ;;  %v2171_v10 = vmul.f32 -0.125, %v5952_v57  ;;  %v2300_v44 = vmul.f32 1.442695, %v2175_v61  ;;  %v6971_v6 = vld [vmem:[#allocation21_spill] sm:$0xff] }
 0x28f   : > { %2069 = vmatpush.bf16.msra.mxu1 %v6961_v45  ;;  %4126 = vpow2.f32 %v2726_v16  ;;  %v6965_v38 = vpack.c.bf16 %v6921_v56, %v6964_v5  ;;  %v6179_v3 = vpop.eup %4116  ;;  %v2459_v36 = vmul.f32 -0.013888889, %v6966_v32  ;;  %v2714_v46 = vmul.f32 1.442695, %v2593_v21  ;;  %v6969_v16 = vld [vmem:[#allocation38_spill] sm:$0xff]  ;;  %v6974_v5 = vld [vmem:[#allocation57_spill] sm:$0xff] }
 0x290   : > { %4128 = vpow2.f32 %v2722_v53  ;;  %v2324_v49 = vpack.c.bf16 %v6968_v0, %v6967_v50  ;;  %v4119_v1 = vpop.eup %4118  ;;  %v2169_v62 = vmul.f32 -0.125, %v5978_v34  ;;  %v2296_v57 = vmul.f32 1.442695, %v2173_v2  ;;  %v6970_v21 = vld [vmem:[#allocation26_spill] sm:$0xff]  ;;  %v6315_v50 = vpop.f32.mrf.mxu0 }
 0x291   : > { %2095 = vmatpush.bf16.msra.mxu3 %v6965_v38  ;;  %4130 = vpow2.f32 %v2304_v60  ;;  %v6188_v56 = vpop.eup %4120  ;;  %v2587_v54 = vadd.f32 %v2523_v23, %v2459_v36  ;;  %v2710_v61 = vmul.f32 1.442695, %v2591_v27  ;;  %v2325_v53 = vpack.c.bf16 %v6970_v21, %v6969_v16  ;;  %v6975_v38 = vld [vmem:[#allocation86_spill] sm:$0xff] }
 0x292   : > { %4132 = vpow2.f32 %v2718_v14  ;;  %v4123_v55 = vpop.eup %4122  ;;  %v2167_v59 = vmul.f32 -0.125, %v6971_v6  ;;  %v2292_v45 = vmul.f32 1.442695, %v2171_v10  ;;  %v2165_v23 = vmul.f32 -0.125, %v6966_v32  ;;  %v6973_v14 = vld [vmem:[#allocation84_spill] sm:$0xff] }
 0x293   : > { %2070 = vmatpush.bf16.msra.mxu1 %v2030_v41  ;;  %4134 = vpow2.f32 %v2300_v44  ;;  %v6196_v34 = vpop.eup %4124  ;;  %v4239_v41 = vld [vmem:[%s2043_s26] sm:$0xff]  ;;  %v2288_v2 = vmul.f32 1.442695, %v2169_v62  ;;  %v2163_v35 = vmul.f32 -0.125, %v6972_v47  ;;  %v2698_v10 = vmul.f32 1.442695, %v6973_v14 }
 0x294   : > { %4136 = vpow2.f32 %v2714_v46  ;;  %v2047_v20 = vunpack.c.h.b16 %v4239_v41  ;;  %v2284_v44 = vmul.f32 1.442695, %v2167_v59  ;;  %v2026_v32 = vpack.c.bf16 %v6975_v38, %v6974_v5  ;;  %v6980_v14 = vld [vmem:[#allocation17_spill] sm:$0xff] }
 0x295   : > { %2096 = vmatpush.bf16.msra.mxu3 %v2031_v31  ;;  %v6200_v12 = vpop.eup %4126  ;;  %4138 = vpow2.f32 %v2296_v57  ;;  %v2702_v31 = vmul.f32 1.442695, %v2587_v54  ;;  %v2336_v48 = vpack.c.bf16 %v4123_v55, %v4119_v1  ;;  %v2758_v36 = vpack.c.bf16 %v6196_v34, %v6188_v56  ;;  %v6976_v54 = vld [vmem:[#allocation77_spill] sm:$0xff]  ;;  %v6978_v1 = vld [vmem:[#allocation80_spill] sm:$0xff] }
 0x296   : > { %v6206_v60 = vpop.eup %4128  ;;  %4140 = vpow2.f32 %v2710_v61  ;;  %v2280_v57 = vmul.f32 1.442695, %v2165_v23  ;;  %v2027_v19 = vpack.c.bf16 %v6977_v25, %v6976_v54  ;;  %v2694_v55 = vmul.f32 1.442695, %v6978_v1  ;;  %v6979_v23 = vld [vmem:[#allocation69_spill] sm:$0xff]  ;;  %v6984_v54 = vld [vmem:[#allocation106_spill] sm:$0xff] }
 0x297   : > { %2071 = vmatpush.bf16.msra.mxu1 %v2028_v9  ;;  %v4131_v27 = vpop.eup %4130  ;;  %4142 = vpow2.f32 %v2292_v45  ;;  %v2049_v9 = vpack.c.b16 %v2047_v20, %v2047_v20  ;;  %v2759_v46 = vpack.c.bf16 %v6200_v12, %v6206_v60  ;;  %v2276_v45 = vmul.f32 1.442695, %v2163_v35  ;;  %v7001_v12 = vld [vmem:[#allocation94_spill] sm:$0xff] }
 0x298   : > { %v6215_v51 = vpop.eup %4132  ;;  %4144 = vpow2.f32 %v2288_v2  ;;  %v2690_v2 = vmul.f32 1.442695, %v6979_v23  ;;  %v2334_v47 = vpack.c.bf16 %v6173_v7, %v6145_v30  ;;  %v2332_v25 = vpack.c.bf16 %v6136_v17, %v6984_v54  ;;  %v6988_v23 = vld [vmem:[#allocation105_spill] sm:$0xff] }
 0x299   : > { %2097 = vmatpush.bf16.msra.mxu3 %v2029_v26  ;;  %v4135_v62 = vpop.eup %4134  ;;  %v2756_v26 = vpack.c.bf16 %v6179_v3, %v6162_v42  ;;  %4146 = vpow2.f32 %v2702_v31  ;;  %v7002_v60 = vmax.f32 %v7001_v12, 0.0  ;;  %v7003_v3 = vpack.c.bf16 %v6141_v28, %v6122_v4 }
 0x29a   : > { %v6225_v61 = vpop.eup %4136  ;;  %v2337_v6 = vpack.c.bf16 %v4131_v27, %v4135_v62  ;;  %4148 = vpow2.f32 %v2284_v44  ;;  %v2680_v27 = vmul.f32 1.442695, %v6980_v14  ;;  %v6981_v44 = vld [vmem:[#allocation108_spill] sm:$0xff]  ;;  %v6983_v62 = vld [vmem:[#allocation18_spill] sm:$0xff] }
 0x29b   : > { %2072 = vmatpush.bf16.msra.mxu1 %v2026_v32  ;;  %v4139_v59 = vpop.eup %4138  ;;  %v2757_v41 = vpack.c.bf16 %v6215_v51, %v6225_v61  ;;  %4150 = vpow2.f32 %v2698_v10  ;;  %v2686_v5 = vmul.f32 1.442695, %v6981_v44  ;;  %v6982_v10 = vld [vmem:[#allocation104_spill] sm:$0xff]  ;;  %v2507_v42 = vmul.f32 -3.125, %v7002_v60 }
 0x29c   : > { %v6230_v20 = vpop.eup %4140  ;;  %4152 = vpow2.f32 %v2280_v57  ;;  %v2682_v57 = vmul.f32 1.442695, %v6983_v62  ;;  %v6991_v62 = vld [vmem:[#allocation103_spill] sm:$0xff] }
 0x29d   : > { %2098 = vmatpush.bf16.msra.mxu3 %v2027_v19  ;;  %v4143_v31 = vpop.eup %4142  ;;  %4154 = vpow2.f32 %v2694_v55  ;;  %v6986_v55 = vld [vmem:[#allocation19_spill] sm:$0xff]  ;;  %v2674_v54 = vmul.f32 1.442695, %v6991_v62  ;;  %v6995_v62 = vld [vmem:[#allocation49_spill] sm:$0xff]  ;;  %v7006_v51 = vpack.c.bf16 %v6230_v20, %v6132_v29 }
 0x29e   : > { %2073 = vmatmul.bf16.vlgmr.msra.gmra.mxu1 %v2049_v9  ;;  %v2335_v38 = vpack.c.bf16 %v4139_v59, %v4143_v31  ;;  %v4145_v32 = vpop.eup %4144  ;;  %4156 = vpow2.f32 %v2276_v45  ;;  %v2441_v61 = vmul.f32 -0.013888889, %v6995_v62 }
 0x29f   : > { %2361 = vmatpush.bf16.msrb.mxu1 %v2336_v48  ;;  %v2676_v48 = vmul.f32 1.442695, %v6982_v10  ;;  %v6242_v7 = vpop.eup %4146  ;;  %4158 = vpow2.f32 %v2690_v2  ;;  %v6989_v2 = vld [vmem:[#allocation55_spill] sm:$0xff] }
 0x2a0   : > { %2099 = vmatmul.bf16.vlgmr.msra.gmra.mxu3 %v2049_v9  ;;  %v4149_v19 = vpop.eup %4148  ;;  %v6985_v9 = vld [vmem:[#allocation101_spill] sm:$0xff]  ;;  %4160 = vpow2.f32 %v2680_v27  ;;  %v2148_v44 = vmul.f32 -0.125, %v6989_v2  ;;  %v6990_v27 = vld [vmem:[#allocation96_spill] sm:$0xff]  ;;  %v2442_v0 = vmul.f32 -0.013888889, %v6989_v2 }
 0x2a1   : > { %2387 = vmatpush.bf16.msrb.mxu3 %v2337_v6  ;;  %v2672_v1 = vmul.f32 1.442695, %v6985_v9  ;;  %v6987_v6 = vld [vmem:[#allocation20_spill] sm:$0xff]  ;;  %v6250_v45 = vpop.eup %4150  ;;  %4162 = vpow2.f32 %v2686_v5  ;;  %v2333_v31 = vpack.c.bf16 %v4145_v32, %v4149_v19  ;;  %v2146_v10 = vmul.f32 -0.125, %v6990_v27  ;;  %v6993_v32 = vld [vmem:[#allocation65_spill] sm:$0xff] }
 0x2a2   : > { %v4153_v14 = vpop.eup %4152  ;;  %4164 = vpow2.f32 %v2676_v48  ;;  %v2440_v21 = vmul.f32 -0.013888889, %v6990_v27  ;;  %v7007_v4 = vpack.c.bf16 %v6987_v6, %v6986_v55 }
 0x2a3   : > { %2362 = vmatpush.bf16.msrb.mxu1 %v2334_v47  ;;  %v2678_v47 = vmul.f32 1.442695, %v6988_v23  ;;  %4166 = vpow2.f32 %v2682_v57  ;;  %v6992_v23 = vld [vmem:[#allocation51_spill] sm:$0xff]  ;;  %v2147_v57 = vmul.f32 -0.125, %v6995_v62  ;;  %v2242_v35 = vmul.f32 1.442695, %v2146_v10 }
 0x2a4   : > { %v2149_v5 = vmul.f32 -0.125, %v6992_v23  ;;  %4168 = vpow2.f32 %v2672_v1 }
 0x2a5   : > { %2388 = vmatpush.bf16.msrb.mxu3 %v2335_v38  ;;  %v6256_v38 = vpop.eup %4154  ;;  %4170 = vpow2.f32 %v2678_v47 }
 0x2a6   : > { %v4157_v9 = vpop.eup %4156  ;;  %4172 = vpow2.f32 %v2674_v54  ;;  %v2248_v47 = vmul.f32 1.442695, %v2149_v5 }
 0x2a7   : > { %2363 = vmatpush.bf16.msrb.mxu1 %v2332_v25  ;;  %v6994_v25 = vld [vmem:[#allocation53_spill] sm:$0xff]  ;;  %v6263_v59 = vpop.eup %4158  ;;  %v2331_v48 = vpack.c.bf16 %v4153_v14, %v4157_v9 }
 0x2a8   : > { %v6268_v17 = vpop.eup %4160  ;;  %v2751_v30 = vpack.c.bf16 %v6256_v38, %v6263_v59  ;;  %v7009_v29 = vpack.c.bf16 %v6994_v25, %v6993_v32  ;;  %v1665_v32 = vpop.f32.mrf.mxu2 }
 0x2a9   : > { %2389 = vmatpush.bf16.msrb.mxu3 %v2333_v31  ;;  %v2246_v31 = vmul.f32 1.442695, %v2148_v44  ;;  %v6273_v1 = vpop.eup %4162  ;;  %v2748_v24 = vpack.c.bf16 %v6996_v15, %v6268_v17  ;;  %v2244_v44 = vmul.f32 1.442695, %v2147_v57  ;;  %v1641_v57 = vpop.f32.mrf.mxu0 }
 0x2aa   : > { %v6275_v19 = vpop.eup %4164 }
 0x2ab   : > { %2364 = vmatpush.bf16.msrb.mxu1 %v2330_v8  ;;  %v6279_v8 = vpop.eup %4166  ;;  %4174 = vpow2.f32 %v2246_v31 }
 0x2ac   : > { %v6284_v14 = vpop.eup %4168  ;;  %v2749_v10 = vpack.c.bf16 %v6273_v1, %v6279_v8  ;;  %4176 = vpow2.f32 %v2242_v35 }
 0x2ad   : > { %2390 = vmatpush.bf16.msrb.mxu3 %v2331_v48  ;;  %v6288_v54 = vpop.eup %4170  ;;  %4178 = vpow2.f32 %v2248_v47  ;;  %v2746_v40 = vpack.c.bf16 %v6275_v19, %v6284_v14  ;;  %v2443_v48 = vmul.f32 -0.013888889, %v6992_v23  ;;  %v7008_v23 = vpack.c.bf16 %v6242_v7, %v6250_v45 }
 0x2ae   : > { %v6295_v63 = vpop.eup %4172  ;;  %4180 = vpow2.f32 %v2244_v44 }
 0x2af   : > { %2365 = vmatpush.bf16.msrb.mxu1 %v2328_v58  ;;  %v2747_v58 = vpack.c.bf16 %v6288_v54, %v6295_v63 }
 0x2b0   : > { %v1667_v25 = vpop.f32.mrf.mxu2 }
 0x2b1   : > { %2391 = vmatpush.bf16.msrb.mxu3 %v2329_v13  ;;  %v4175_v43 = vpop.eup %4174  ;;  %v2061_v62 = vpop.f32.mrf.mxu0 }
 0x2b2   : > { %v4177_v37 = vpop.eup %4176 }
 0x2b3   : > { %2366 = vmatpush.bf16.msrb.mxu1 %v2326_v33  ;;  %v4179_v13 = vpop.eup %4178  ;;  %v2322_v11 = vpack.c.bf16 %v4175_v43, %v4177_v37  ;;  %v2340_v33 = vld [vmem:[%s2339_s13] sm:$0xff] }
 0x2b4   : > { %v4181_v22 = vpop.eup %4180  ;;  %v2342_v9 = vunpack.c.l.b16 %v2340_v33  ;;  %v2343_v39 = vunpack.c.h.b16 %v2340_v33 }
 0x2b5   : > { %2392 = vmatpush.bf16.msrb.mxu3 %v2327_v18  ;;  %v2323_v35 = vpack.c.bf16 %v4179_v13, %v4181_v22 }
 0x2b6   : > { %v2344_v52 = vpack.c.b16 %v2342_v9, %v2342_v9  ;;  %v2345_v18 = vpack.c.b16 %v2343_v39, %v2343_v39 }
 0x2b7   : > { %2367 = vmatpush.bf16.msrb.mxu1 %v2324_v49  ;;  %v6997_v49 = vld [vmem:[#allocation90_spill] sm:$0xff] }
 0x2b8   : > { %2382 = vmatmul.bf16.vlgmr.msrb.gmra.mxu2 %v2344_v52  ;;  %2356 = vmatmul.bf16.vlgmr.msrb.gmra.mxu0 %v2344_v52  ;;  %v6998_v56 = vmax.f32 %v6997_v49, 0.0  ;;  %v2087_v8 = vpop.f32.mrf.mxu2 }
 0x2b9   : > { %2393 = vmatpush.bf16.msrb.mxu3 %v2325_v53  ;;  %v6999_v53 = vld [vmem:[#allocation78_spill] sm:$0xff]  ;;  %v2063_v1 = vpop.f32.mrf.mxu0 }
 0x2ba   : > { %v2506_v16 = vmul.f32 -3.125, %v6998_v56  ;;  %v7000_v34 = vmax.f32 %v6999_v53, 0.0 }
 0x2bb   : > { %2368 = vmatpush.bf16.msrb.mxu1 %v2322_v11 }
 0x2bc   : > { %v2570_v27 = vadd.f32 %v2506_v16, %v2442_v0 }
 0x2bd   : > { %2394 = vmatpush.bf16.msrb.mxu3 %v2323_v35 }
 0x2be   : > { %2369 = vmatmul.bf16.vlgmr.msrb.gmra.mxu1 %v2345_v18  ;;  %v2668_v44 = vmul.f32 1.442695, %v2570_v27 }
 0x2bf   : > { %2783 = vmatpush.bf16.msra.mxu1 %v2758_v36  ;;  %v2504_v36 = vmul.f32 -3.125, %v7000_v34  ;;  %v2836_v34 = vld [vmem:[%s6528_s8] sm:$0xff] }
 0x2c0   : > { %2395 = vmatmul.bf16.vlgmr.msrb.gmra.mxu3 %v2345_v18  ;;  %4182 = vpow2.f32 %v2668_v44 }
 0x2c1   : > { %2809 = vmatpush.bf16.msra.mxu3 %v2759_v46  ;;  %v2762_v46 = vld [vmem:[%s2761_s14] sm:$0xff]  ;;  %v2568_v31 = vadd.f32 %v2504_v36, %v2440_v21 }
 0x2c2   : > { %v2764_v47 = vunpack.c.l.b16 %v2762_v46  ;;  %v2765_v55 = vunpack.c.h.b16 %v2762_v46 }
 0x2c3   : > { %2784 = vmatpush.bf16.msra.mxu1 %v2756_v26  ;;  %v7004_v26 = vld [vmem:[#allocation82_spill] sm:$0xff]  ;;  %v2664_v43 = vmul.f32 1.442695, %v2568_v31 }
 0x2c4   : > { %v7005_v2 = vmax.f32 %v7004_v26, 0.0  ;;  %v2766_v13 = vpack.c.b16 %v2764_v47, %v2764_v47  ;;  %v2767_v17 = vpack.c.b16 %v2765_v55, %v2765_v55 }
 0x2c5   : > { %2810 = vmatpush.bf16.msra.mxu3 %v2757_v41  ;;  %v2571_v41 = vadd.f32 %v2507_v42, %v2443_v48  ;;  %4184 = vpow2.f32 %v2664_v43 }
 0x2c6   : > { %v2505_v5 = vmul.f32 -3.125, %v7005_v2  ;;  %v4183_v7 = vpop.eup %4182 }
 0x2c7   : > { %2785 = vmatpush.bf16.msra.mxu1 %v7003_v3  ;;  %v2670_v37 = vmul.f32 1.442695, %v2571_v41 }
 0x2c8   : > { %v2569_v28 = vadd.f32 %v2505_v5, %v2441_v61  ;;  %2804 = vmatmul.bf16.vlgmr.msra.gmra.mxu2 %v2766_v13  ;;  %2778 = vmatmul.bf16.vlgmr.msra.gmra.mxu0 %v2766_v13 }
 0x2c9   : > { %2811 = vmatpush.bf16.msra.mxu3 %v7006_v51  ;;  %4186 = vpow2.f32 %v2670_v37 }
 0x2ca   : > { %v2666_v20 = vmul.f32 1.442695, %v2569_v28 }
 0x2cb   : > { %2786 = vmatpush.bf16.msra.mxu1 %v7007_v4  ;;  %v4185_v6 = vpop.eup %4184 }
 0x2cc   : > { %4188 = vpow2.f32 %v2666_v20  ;;  %v2744_v59 = vpack.c.bf16 %v4183_v7, %v4185_v6 }
 0x2cd   : > { %2812 = vmatpush.bf16.msra.mxu3 %v7008_v23 }
 0x2cf   : > { %2787 = vmatpush.bf16.msra.mxu1 %v7009_v29 }
 0x2d1   : > { %2813 = vmatpush.bf16.msra.mxu3 %v2751_v30  ;;  %v4187_v30 = vpop.eup %4186 }
 0x2d2   : > { %v4189_v45 = vpop.eup %4188 }
 0x2d3   : > { %2788 = vmatpush.bf16.msra.mxu1 %v2748_v24  ;;  %v2745_v38 = vpack.c.bf16 %v4187_v30, %v4189_v45 }
 0x2d5   : > { %2814 = vmatpush.bf16.msra.mxu3 %v2749_v10  ;;  %v2089_v10 = vpop.f32.mrf.mxu2 }
 0x2d7   : > { %2789 = vmatpush.bf16.msra.mxu1 %v2746_v40 }
 0x2d9   : > { %2815 = vmatpush.bf16.msra.mxu3 %v2747_v58 }
 0x2db   : > { %2790 = vmatpush.bf16.msra.mxu1 %v2744_v59 }
 0x2dd   : > { %2816 = vmatpush.bf16.msra.mxu3 %v2745_v38 }
 0x2de   : > { %2791 = vmatmul.bf16.vlgmr.msra.gmra.mxu1 %v2767_v17 }
 0x2e0   : > { %2817 = vmatmul.bf16.vlgmr.msra.gmra.mxu3 %v2767_v17 }
 0x2fb   : > { %v1652_v15 = vpop.f32.mrf.mxu1 }
 0x2fc   : > { %v1653_v54 = vadd.f32 %v1652_v15, %v6315_v50 }
 0x2fe   : > { %v1682_v40 = vadd.f32 1e-08, %v1653_v54 }
 0x300   : > { %4190 = vrcp.f32 %v1682_v40 }
 0x303   : > { %v1678_v19 = vpop.f32.mrf.mxu3  ;;  %v1654_v24 = vpop.f32.mrf.mxu1 }
 0x304   : > { %v1679_v58 = vadd.f32 %v1678_v19, %v1665_v32 }
 0x306   : > { %v1683_v33 = vadd.f32 1e-08, %v1679_v58  ;;  %v4191_v35 = vpop.eup %4190 }
 0x307   : > { %v1686_v18 = vperm.slane %v4191_v35, 7 }
 0x309   : > { %v1688_v16 = vmul.f32 %v1686_v18, %v1653_v54  ;;  %v2834_v54 = vld [vmem:[%s6521_s1] sm:$0xff] }
 0x30b   : > { %v1680_v14 = vpop.f32.mrf.mxu3 }
 0x31b   : > { %v2074_v63 = vpop.f32.mrf.mxu1 }
 0x31c   : > { %v2075_v11 = vadd.f32 %v2074_v63, %v2061_v62  ;;  %v2835_v63 = vld [vmem:[%s6521_s1 + $0x8] sm:$0xff] }
 0x31e   : > { %v2104_v22 = vadd.f32 1e-08, %v2075_v11 }
 0x320   : > { %4192 = vrcp.f32 %v2104_v22 }
 0x321   : > { %4194 = vrcp.f32 %v1683_v33 }
 0x323   : > { %v2100_v9 = vpop.f32.mrf.mxu3  ;;  %v2076_v39 = vpop.f32.mrf.mxu1 }
 0x324   : > { %v2101_v52 = vadd.f32 %v2100_v9, %v2087_v8 }
 0x326   : > { %v4193_v0 = vpop.eup %4192  ;;  %v2105_v49 = vadd.f32 1e-08, %v2101_v52 }
 0x327   : > { %v2108_v56 = vperm.slane %v4193_v0, 7  ;;  %v4195_v21 = vpop.eup %4194 }
 0x328   : > { %4196 = vrcp.f32 %v2105_v49  ;;  %v1687_v12 = vperm.slane %v4195_v21, 7 }
 0x329   : > { %v2110_v50 = vmul.f32 %v2108_v56, %v2075_v11 }
 0x32a   : > { %v1689_v3 = vmul.f32 %v1687_v12, %v1679_v58  ;;  %v2832_v12 = vld [vmem:[%s6520_s0] sm:$0xff] }
 0x32b   : > { %v2112_v53 = vadd.f32 %v2110_v50, %v1688_v16  ;;  %v2102_v36 = vpop.f32.mrf.mxu3 }
 0x32d   : > { %2856 = vmatpush.msrb.mxu0 %v2112_v53 }
 0x32e   : > { %v4197_v60 = vpop.eup %4196  ;;  %3588 = vmatmul.msk.f32.vlgmr.msrb.gmra.mxu0 %vm2837_vm2, %v2836_v34 }
 0x32f   : > { %v2109_v42 = vperm.slane %v4197_v60, 7 }
 0x331   : > { %v2111_v46 = vmul.f32 %v2109_v42, %v2101_v52 }
 0x333   : > { %v2113_v26 = vadd.f32 %v2111_v46, %v1689_v3 }
 0x335   : > { %2876 = vmatpush.msrb.mxu1 %v2113_v26  ;;  %v2357_v2 = vpop.f32.mrf.mxu0 }
 0x336   : > { %3589 = vmatmul.msk.f32.vlgmr.msrb.gmra.mxu1 %vm2837_vm2, %v2836_v34 }
 0x33b   : > { %v2370_v5 = vpop.f32.mrf.mxu1  ;;  %v2383_v48 = vpop.f32.mrf.mxu2 }
 0x33c   : > { %v2371_v27 = vadd.f32 %v2370_v5, %v2357_v2  ;;  %v2833_v5 = vld [vmem:[%s6520_s0 + $0x8] sm:$0xff] }
 0x33d   : > { %v2359_v51 = vpop.f32.mrf.mxu0 }
 0x33e   : > { %v2400_v55 = vadd.f32 1e-08, %v2371_v27 }
 0x340   : > { %4198 = vrcp.f32 %v2400_v55 }
 0x343   : > { %v2396_v57 = vpop.f32.mrf.mxu3  ;;  %v2372_v61 = vpop.f32.mrf.mxu1 }
 0x344   : > { %v2397_v31 = vadd.f32 %v2396_v57, %v2383_v48  ;;  %v2385_v41 = vpop.f32.mrf.mxu2 }
 0x345   : > { %v2779_v4 = vpop.f32.mrf.mxu0 }
 0x346   : > { %v2401_v6 = vadd.f32 1e-08, %v2397_v31  ;;  %v4199_v45 = vpop.eup %4198 }
 0x347   : > { %v2404_v25 = vperm.slane %v4199_v45, 7 }
 0x348   : > { %4200 = vrcp.f32 %v2401_v6 }
 0x349   : > { %v2406_v19 = vmul.f32 %v2404_v25, %v2371_v27 }
 0x34b   : > { %v2398_v47 = vpop.f32.mrf.mxu3 }
 0x34c   : > { %v2805_v43 = vpop.f32.mrf.mxu2 }
 0x34d   : > { %v2781_v28 = vpop.f32.mrf.mxu0 }
 0x34e   : > { %v4201_v17 = vpop.eup %4200 }
 0x34f   : > { %v2405_v1 = vperm.slane %v4201_v17, 7 }
 0x351   : > { %v2407_v8 = vmul.f32 %v2405_v1, %v2397_v31 }
 0x354   : > { %v2807_v13 = vpop.f32.mrf.mxu2 }
 0x35b   : > { %v2792_v44 = vpop.f32.mrf.mxu1 }
 0x35c   : > { %v2793_v20 = vadd.f32 %v2792_v44, %v2779_v4 }
 0x35e   : > { %v2822_v30 = vadd.f32 1e-08, %v2793_v20 }
 0x360   : > { %4202 = vrcp.f32 %v2822_v30 }
 0x363   : > { %v2818_v23 = vpop.f32.mrf.mxu3  ;;  %v2794_v37 = vpop.f32.mrf.mxu1 }
 0x364   : > { %v2819_v7 = vadd.f32 %v2818_v23, %v2805_v43 }
 0x366   : > { %v2823_v59 = vadd.f32 1e-08, %v2819_v7  ;;  %v4203_v38 = vpop.eup %4202 }
 0x367   : > { %v2826_v62 = vperm.slane %v4203_v38, 7 }
 0x368   : > { %4204 = vrcp.f32 %v2823_v59 }
 0x369   : > { %v2828_v24 = vmul.f32 %v2826_v62, %v2793_v20 }
 0x36b   : > { %v2820_v29 = vpop.f32.mrf.mxu3  ;;  %v2830_v10 = vadd.f32 %v2828_v24, %v2406_v19 }
 0x36d   : > { %v6381_v58 = vadd.f32 %v2834_v54, %v2830_v10 }
 0x36e   : > { %v4205_v32 = vpop.eup %4204 }
 0x36f   : > { %v2827_v15 = vperm.slane %v4205_v32, 7  ;;  %v2886_v22 = vrot.slane %v6381_v58, 4 }
 0x371   : > { %v2829_v14 = vmul.f32 %v2827_v15, %v2819_v7  ;;  %v2887_v35 = vmax.f32 %v6381_v58, %v2886_v22 }
 0x373   : > { %v2831_v40 = vadd.f32 %v2829_v14, %v2407_v8  ;;  %v2888_v39 = vrot.slane %v2887_v35, 2 }
 0x375   : > { %v6383_v11 = vadd.f32 %v2835_v63, %v2831_v40  ;;  %v2889_v18 = vmax.f32 %v2887_v35, %v2888_v39 }
 0x377   : > { %v2892_v33 = vrot.slane %v6383_v11, 4  ;;  %v2890_v49 = vrot.slane %v2889_v18, 1 }
 0x379   : > { %v2893_v9 = vmax.f32 %v6383_v11, %v2892_v33  ;;  %v2891_v16 = vmax.f32 %v2889_v18, %v2890_v49 }
 0x37b   : > { %v2894_v52 = vrot.slane %v2893_v9, 2  ;;  %v2898_v21 = vsub.f32 %v6381_v58, %v2891_v16 }
 0x37d   : > { %v2895_v0 = vmax.f32 %v2893_v9, %v2894_v52  ;;  %v2900_v34 = vmul.f32 1.442695, %v2898_v21 }
 0x37f   : > { %v2896_v56 = vrot.slane %v2895_v0, 1  ;;  %4206 = vpow2.f32 %v2900_v34 }
 0x381   : > { %v2897_v50 = vmax.f32 %v2895_v0, %v2896_v56 }
 0x383   : > { %v2899_v53 = vsub.f32 %v6383_v11, %v2897_v50 }
 0x385   : > { %v2902_v36 = vmul.f32 1.442695, %v2899_v53  ;;  %v6396_v3 = vpop.eup %4206 }
 0x386   : > { %v2904_v27 = vrot.slane %v6396_v3, 4 }
 0x387   : > { %4208 = vpow2.f32 %v2902_v36 }
 0x388   : > { %v2905_v51 = vadd.f32 %v6396_v3, %v2904_v27 }
 0x38a   : > { %v2906_v4 = vrot.slane %v2905_v51, 2 }
 0x38c   : > { %v2907_v23 = vadd.f32 %v2906_v4, %v2905_v51  ;;  %v7013_v51 = vld [vmem:[#allocation14_spill] sm:$0xff] }
 0x38d   : > { %v6398_v46 = vpop.eup %4208 }
 0x38e   : > { %v2910_v48 = vrot.slane %v6398_v46, 4  ;;  %v2908_v20 = vrot.slane %v2907_v23, 1 }
 0x390   : > { %v2911_v61 = vadd.f32 %v6398_v46, %v2910_v48  ;;  %v2909_v30 = vadd.f32 %v2908_v20, %v2907_v23  ;;  %v7015_v23 = vld [vmem:[#allocation15_spill] sm:$0xff] }
 0x392   : > { %v2912_v28 = vrot.slane %v2911_v61, 2  ;;  %4210 = vrcp.f32 %v2909_v30  ;;  %vm2921_vm3 = vweird.f32 %v2909_v30  ;;  %v2925_v14 = vand.u32 2147483647, %v2909_v30 }
 0x393   : > { %v2927_v10 = vand.u32 2147483648, %v2909_v30 }
 0x394   : > { %v2913_v37 = vadd.f32 %v2912_v28, %v2911_v61  ;;  %vm2926_vm8 = vcmp.eq.f32.partialorder %v2925_v14, 8.507059e+37 }
 0x395   : > { %v2928_v52 = vor.u32 1.1754944e-38, %v2927_v10 }
 0x396   : > { %v2914_v7 = vrot.slane %v2913_v37, 1 }
 0x398   : > { %v2915_v59 = vadd.f32 %v2914_v7, %v2913_v37  ;;  %v4211_v62 = vpop.eup %4210 }
 0x399   : > { %v2917_v19 = vmul.f32 %v4211_v62, %v2909_v30  ;;  %vm2922_vm4 = vweird.f32 %v4211_v62 }
 0x39a   : > { %vm2936_vm5 = vweird.f32 %v2915_v59  ;;  %v2942_v22 = vand.u32 2147483648, %v2915_v59  ;;  %v2940_v9 = vand.u32 2147483647, %v2915_v59  ;;  %vm2923_vm7 = vmor %vm2921_vm3, %vm2922_vm4 }
 0x39b   : > { %v2918_v54 = vsub.f32 1.0, %v2917_v19 }
 0x39c   : > { %v2943_v56 = vor.u32 1.1754944e-38, %v2942_v22  ;;  %vm2941_vm10 = vcmp.eq.f32.partialorder %v2940_v9, 8.507059e+37 }
 0x39d   : > { %v2919_v33 = vmul.f32 %v4211_v62, %v2918_v54 }
 0x39f   : > { %v2920_v18 = vadd.f32 %v4211_v62, %v2919_v33 }
 0x3a1   : > { %v2924_v21 = vsel %vm2923_vm7, %v4211_v62, %v2920_v18 }
 0x3a2   : > { %v2929_v36 = vsel %vm2926_vm8, %v2928_v52, %v2924_v21 }
 0x3ab   : > { %v2858_v60 = vpop.f32.mrf.mxu0 }
 0x3ac   : > { %v6394_v42 = vadd.f32 %v2858_v60, %v2832_v12  ;;  %v2930_v60 = vmul.f32 %v6396_v3, %v2929_v36 }
 0x3ae   : > { %v2992_v26 = vrot.slane %v6394_v42, 4  ;;  %2964 = vmatpush.msrb.mxu2 %v2930_v60 }
 0x3b0   : > { %v2993_v2 = vmax.f32 %v6394_v42, %v2992_v26 }
 0x3b2   : > { %v2994_v57 = vrot.slane %v2993_v2, 2 }
 0x3b3   : > { %v2878_v31 = vpop.f32.mrf.mxu1 }
 0x3b4   : > { %v2995_v41 = vmax.f32 %v2993_v2, %v2994_v57  ;;  %v6409_v47 = vadd.f32 %v2878_v31, %v2833_v5  ;;  %v2885_v2 = vld [vmem:[%s6529_s9] sm:$0xff]  ;;  %v4330_v5 = vmov 0  }
 0x3b5   : > { %3676 = vset.pattern.permute.xlu0 %v4330_v5  ;;  %3677 = vset.pattern.permute.xlu1 %v4330_v5  ;;  %v7012_v31 = vld [vmem:[#allocation12_spill] sm:$0xff] }
 0x3b6   : > { %v2996_v44 = vrot.slane %v2995_v41, 1  ;;  %v2998_v43 = vrot.slane %v6409_v47, 4  ;;  %3223 = vperm.xlu0 %3676, %v7012_v31   ;;  %3253 = vperm.xlu1 %3677, %v7013_v51  }
 0x3b7   : > { %3590 = vmatmul.msk.f32.vlgmr.msrb.gmra.mxu2 %vm2837_vm2, %v2885_v2 }
 0x3b8   : > { %v2997_v13 = vmax.f32 %v2995_v41, %v2996_v44  ;;  %v2999_v29 = vmax.f32 %v6409_v47, %v2998_v43  ;;  %v7014_v43 = vld [vmem:[#allocation13_spill] sm:$0xff] }
 0x3ba   : > { %v3004_v55 = vsub.f32 %v6394_v42, %v2997_v13  ;;  %v3000_v6 = vrot.slane %v2999_v29, 2 }
 0x3bc   : > { %v3006_v45 = vmul.f32 1.442695, %v3004_v55  ;;  %v3001_v17 = vmax.f32 %v2999_v29, %v3000_v6 }
 0x3be   : > { %4212 = vpow2.f32 %v3006_v45  ;;  %v3002_v38 = vrot.slane %v3001_v17, 1  ;;  %3240 = vperm.xlu0 %3676, %v7014_v43   ;;  %3266 = vperm.xlu1 %3677, %v7015_v23  }
 0x3bf   : > { %4214 = vrcp.f32 %v2915_v59 }
 0x3c0   : > { %v3003_v32 = vmax.f32 %v3001_v17, %v3002_v38  ;;  %v2991_v38 = vld [vmem:[%s6530_s10] sm:$0xff] }
 0x3c2   : > { %v3005_v25 = vsub.f32 %v6409_v47, %v3003_v32 }
 0x3c4   : > { %v6415_v1 = vpop.eup %4212  ;;  %v3008_v15 = vmul.f32 1.442695, %v3005_v25 }
 0x3c5   : > { %v4215_v24 = vpop.eup %4214  ;;  %v3010_v8 = vrot.slane %v6415_v1, 4 }
 0x3c6   : > { %4216 = vpow2.f32 %v3008_v15  ;;  %v2932_v40 = vmul.f32 %v4215_v24, %v2915_v59  ;;  %vm2937_vm6 = vweird.f32 %v4215_v24 }
 0x3c7   : > { %v3011_v63 = vadd.f32 %v6415_v1, %v3010_v8  ;;  %vm6420_vm9 = vmor %vm2936_vm5, %vm2937_vm6 }
 0x3c8   : > { %v2933_v35 = vsub.f32 1.0, %v2932_v40 }
 0x3c9   : > { %v3012_v39 = vrot.slane %v3011_v63, 2 }
 0x3ca   : > { %v2934_v0 = vmul.f32 %v4215_v24, %v2933_v35 }
 0x3cb   : > { %v3013_v16 = vadd.f32 %v3012_v39, %v3011_v63 }
 0x3cc   : > { %v6424_v50 = vpop.eup %4216  ;;  %v2935_v53 = vadd.f32 %v4215_v24, %v2934_v0 }
 0x3cd   : > { %v3016_v34 = vrot.slane %v6424_v50, 4  ;;  %v3014_v12 = vrot.slane %v3013_v16, 1 }
 0x3ce   : > { %v2939_v26 = vsel %vm6420_vm9, %v4215_v24, %v2935_v53 }
 0x3cf   : > { %v3017_v27 = vadd.f32 %v6424_v50, %v3016_v34  ;;  %v2944_v48 = vsel %vm2941_vm10, %v2943_v56, %v2939_v26  ;;  %v3015_v57 = vadd.f32 %v3014_v12, %v3013_v16 }
 0x3d0   : > { %v2945_v3 = vmul.f32 %v6398_v46, %v2944_v48 }
 0x3d1   : > { %v3018_v61 = vrot.slane %v3017_v27, 2  ;;  %4218 = vrcp.f32 %v3015_v57  ;;  %v3033_v29 = vand.u32 2147483648, %v3015_v57  ;;  %v3031_v20 = vand.u32 2147483647, %v3015_v57 }
 0x3d2   : > { %2984 = vmatpush.msrb.mxu3 %v2945_v3  ;;  %vm3027_vm12 = vweird.f32 %v3015_v57 }
 0x3d3   : > { %3591 = vmatmul.msk.f32.vlgmr.msrb.gmra.mxu3 %vm2837_vm2, %v2885_v2  ;;  %v3019_v41 = vadd.f32 %v3018_v61, %v3017_v27  ;;  %v3034_v6 = vor.u32 1.1754944e-38, %v3033_v29  ;;  %vm3032_vm14 = vcmp.eq.f32.partialorder %v3031_v20, 8.507059e+37 }
 0x3d5   : > { %v3020_v4 = vrot.slane %v3019_v41, 1 }
 0x3d7   : > { %v4219_v28 = vpop.eup %4218  ;;  %v3021_v44 = vadd.f32 %v3020_v4, %v3019_v41 }
 0x3d8   : > { %v3023_v37 = vmul.f32 %v4219_v28, %v3015_v57  ;;  %vm3028_vm11 = vweird.f32 %v4219_v28 }
 0x3d9   : > { %4220 = vrcp.f32 %v3021_v44  ;;  %vm3029_vm13 = vmor %vm3027_vm12, %vm3028_vm11  ;;  %v3048_v25 = vand.u32 2147483648, %v3021_v44  ;;  %v3046_v15 = vand.u32 2147483647, %v3021_v44  ;;  %vm3042_vm0 = vweird.f32 %v3021_v44 }
 0x3da   : > { %v3024_v13 = vsub.f32 1.0, %v3023_v37 }
 0x3db   : > { %v3049_v24 = vor.u32 1.1754944e-38, %v3048_v25  ;;  %vm3047_vm3 = vcmp.eq.f32.partialorder %v3046_v15, 8.507059e+37 }
 0x3dc   : > { %v3025_v46 = vmul.f32 %v4219_v28, %v3024_v13 }
 0x3de   : > { %v3026_v7 = vadd.f32 %v4219_v28, %v3025_v46 }
 0x3df   : > { %v4221_v55 = vpop.eup %4220 }
 0x3e0   : > { %v3030_v30 = vsel %vm3029_vm13, %v4219_v28, %v3026_v7  ;;  %v3038_v59 = vmul.f32 %v4221_v55, %v3021_v44  ;;  %vm3043_vm15 = vweird.f32 %v4221_v55 }
 0x3e1   : > { %v3035_v45 = vsel %vm3032_vm14, %v3034_v6, %v3030_v30  ;;  %vm3044_vm1 = vmor %vm3042_vm0, %vm3043_vm15 }
 0x3e2   : > { %v3036_v17 = vmul.f32 %v6415_v1, %v3035_v45  ;;  %v3039_v32 = vsub.f32 1.0, %v3038_v59 }
 0x3e4   : > { %3070 = vmatpush.msra.mxu0 %v3036_v17  ;;  %v3040_v62 = vmul.f32 %v4221_v55, %v3039_v32 }
 0x3e5   : > { %3592 = vmatmul.msk.f32.vlgmr.msra.gmra.mxu0 %vm2837_vm2, %v2991_v38 }
 0x3e6   : > { %v3041_v19 = vadd.f32 %v4221_v55, %v3040_v62 }
 0x3e8   : > { %v3045_v8 = vsel %vm3044_vm1, %v4221_v55, %v3041_v19 }
 0x3e9   : > { %v3050_v14 = vsel %vm3047_vm3, %v3049_v24, %v3045_v8 }
 0x3ea   : > { %v3051_v1 = vmul.f32 %v6424_v50, %v3050_v14 }
 0x3ec   : > { %3090 = vmatpush.msra.mxu1 %v3051_v1 }
 0x3ed   : > { %3593 = vmatmul.msk.f32.vlgmr.msra.gmra.mxu1 %vm2837_vm2, %v2991_v38 }
 0x428   : > { %v3224_v15 = vpop.permute.xlu0 %3223 }
 0x43a   : > { %v2966_v10 = vpop.f32.mrf.mxu2 }
 0x43b   : > { %v2989_v54 = vadd.f32 %v2966_v10, %v6394_v42 }
 0x43d   : > { %3097 = vst [vmem:[#allocation6] sm:$0xff] %v2989_v54  ;;  %v3101_v63 = vrot.slane %v2989_v54, 4 }
 0x43f   : > { %v3102_v33 = vmax.f32 %v2989_v54, %v3101_v63 }
 0x441   : > { %v3103_v9 = vrot.slane %v3102_v33, 2 }
 0x443   : > { %v3104_v52 = vmax.f32 %v3102_v33, %v3103_v9 }
 0x445   : > { %v3105_v0 = vrot.slane %v3104_v52, 1 }
 0x447   : > { %v3106_v56 = vmax.f32 %v3104_v52, %v3105_v0 }
 0x449   : > { %v3113_v21 = vsub.f32 %v2989_v54, %v3106_v56 }
 0x44b   : > { %v3115_v34 = vmul.f32 1.442695, %v3113_v21 }
 0x44d   : > { %4222 = vpow2.f32 %v3115_v34 }
 0x453   : > { %v6452_v48 = vpop.eup %4222 }
 0x456   : > { %v2986_v40 = vpop.f32.mrf.mxu3 }
 0x457   : > { %v2990_v22 = vadd.f32 %v2986_v40, %v6409_v47 }
 0x459   : > { %3098 = vst [vmem:[#allocation6 + $0x8] sm:$0xff] %v2990_v22  ;;  %v3107_v35 = vrot.slane %v2990_v22, 4 }
 0x45b   : > { %v3108_v39 = vmax.f32 %v2990_v22, %v3107_v35 }
 0x45d   : > { %v3109_v18 = vrot.slane %v3108_v39, 2 }
 0x45f   : > { %v3110_v49 = vmax.f32 %v3108_v39, %v3109_v18 }
 0x461   : > { %v3111_v16 = vrot.slane %v3110_v49, 1 }
 0x462   : > { %v3072_v50 = vpop.f32.mrf.mxu0 }
 0x463   : > { %v3112_v53 = vmax.f32 %v3110_v49, %v3111_v16  ;;  %v3095_v42 = vadd.f32 %v3072_v50, %v6381_v58  ;;  %v3119_v58 = vrot.slane %v6452_v48, 4 }
 0x465   : > { %v3114_v36 = vsub.f32 %v2990_v22, %v3112_v53  ;;  %3099 = vst [vmem:[#allocation8] sm:$0xff] %v3095_v42  ;;  %v3161_v47 = vrot.slane %v3095_v42, 4  ;;  %v3120_v4 = vadd.f32 %v6452_v48, %v3119_v58 }
 0x467   : > { %v3117_v12 = vmul.f32 1.442695, %v3114_v36  ;;  %v3162_v60 = vmax.f32 %v3095_v42, %v3161_v47  ;;  %v3121_v43 = vrot.slane %v3120_v4, 2  ;;  %v3241_v36 = vpop.permute.xlu0 %3240 }
 0x469   : > { %4224 = vpow2.f32 %v3117_v12  ;;  %v3163_v26 = vrot.slane %v3162_v60, 2  ;;  %v3122_v13 = vadd.f32 %v3121_v43, %v3120_v4  ;;  %v7016_v4 = vld [vmem:[#allocation16_spill] sm:$0xff] }
 0x46a   : > { %v3092_v2 = vpop.f32.mrf.mxu1 }
 0x46b   : > { %v3164_v5 = vmax.f32 %v3162_v60, %v3163_v26  ;;  %v3096_v27 = vadd.f32 %v3092_v2, %v6383_v11  ;;  %v3123_v20 = vrot.slane %v3122_v13, 1 }
 0x46d   : > { %v3165_v57 = vrot.slane %v3164_v5, 1  ;;  %3100 = vst [vmem:[#allocation8 + $0x8] sm:$0xff] %v3096_v27  ;;  %v3167_v31 = vrot.slane %v3096_v27, 4  ;;  %v3124_v6 = vadd.f32 %v3123_v20, %v3122_v13  ;;  %v3254_v20 = vpop.permute.xlu1 %3253 }
 0x46f   : > { %v6455_v51 = vpop.eup %4224  ;;  %v3166_v3 = vmax.f32 %v3164_v5, %v3165_v57  ;;  %v3168_v61 = vmax.f32 %v3096_v27, %v3167_v31  ;;  %v3142_v63 = vand.u32 2147483648, %v3124_v6  ;;  %v3140_v35 = vand.u32 2147483647, %v3124_v6 }
 0x470   : > { %v3125_v41 = vrot.slane %v6455_v51, 4  ;;  %vm3136_vm4 = vweird.f32 %v3124_v6 }
 0x471   : > { %v3173_v28 = vsub.f32 %v3095_v42, %v3166_v3  ;;  %v3169_v44 = vrot.slane %v3168_v61, 2  ;;  %v3143_v16 = vor.u32 1.1754944e-38, %v3142_v63  ;;  %vm3141_vm7 = vcmp.eq.f32.partialorder %v3140_v35, 8.507059e+37 }
 0x472   : > { %v3126_v11 = vadd.f32 %v6455_v51, %v3125_v41 }
 0x473   : > { %v3175_v23 = vmul.f32 1.442695, %v3173_v28  ;;  %v3170_v37 = vmax.f32 %v3168_v61, %v3169_v44 }
 0x474   : > { %v3127_v29 = vrot.slane %v3126_v11, 2 }
 0x475   : > { %4226 = vpow2.f32 %v3175_v23  ;;  %v3171_v46 = vrot.slane %v3170_v37, 1 }
 0x476   : > { %v3128_v7 = vadd.f32 %v3127_v29, %v3126_v11  ;;  %4228 = vrcp.f32 %v3124_v6 }
 0x477   : > { %v3172_v55 = vmax.f32 %v3170_v37, %v3171_v46 }
 0x478   : > { %v3129_v30 = vrot.slane %v3128_v7, 1 }
 0x479   : > { %v3174_v59 = vsub.f32 %v3096_v27, %v3172_v55 }
 0x47a   : > { %v3130_v45 = vadd.f32 %v3129_v30, %v3128_v7 }
 0x47b   : > { %v6460_v17 = vpop.eup %4226  ;;  %v3177_v38 = vmul.f32 1.442695, %v3174_v59 }
 0x47c   : > { %v3179_v32 = vrot.slane %v6460_v17, 4  ;;  %4230 = vrcp.f32 %v3130_v45  ;;  %v4229_v62 = vpop.eup %4228  ;;  %v3157_v39 = vand.u32 2147483648, %v3130_v45  ;;  %v3155_v56 = vand.u32 2147483647, %v3130_v45 }
 0x47d   : > { %4232 = vpow2.f32 %v3177_v38  ;;  %v3132_v24 = vmul.f32 %v4229_v62, %v3124_v6  ;;  %vm3137_vm2 = vweird.f32 %v4229_v62  ;;  %vm3151_vm8 = vweird.f32 %v3130_v45 }
 0x47e   : > { %v3180_v25 = vadd.f32 %v6460_v17, %v3179_v32  ;;  %vm3138_vm6 = vmor %vm3136_vm4, %vm3137_vm2  ;;  %v3158_v34 = vor.u32 1.1754944e-38, %v3157_v39  ;;  %vm3156_vm10 = vcmp.eq.f32.partialorder %v3155_v56, 8.507059e+37 }
 0x47f   : > { %v3133_v10 = vsub.f32 1.0, %v3132_v24 }
 0x480   : > { %v3181_v19 = vrot.slane %v3180_v25, 2 }
 0x481   : > { %v3134_v33 = vmul.f32 %v4229_v62, %v3133_v10 }
 0x482   : > { %v4231_v8 = vpop.eup %4230  ;;  %v3182_v14 = vadd.f32 %v3181_v19, %v3180_v25 }
 0x483   : > { %v6464_v1 = vpop.eup %4232  ;;  %v3147_v54 = vmul.f32 %v4231_v8, %v3130_v45  ;;  %v3135_v0 = vadd.f32 %v4229_v62, %v3134_v33  ;;  %vm3152_vm5 = vweird.f32 %v4231_v8 }
 0x484   : > { %v3185_v40 = vrot.slane %v6464_v1, 4  ;;  %v3183_v22 = vrot.slane %v3182_v14, 1  ;;  %vm3153_vm9 = vmor %vm3151_vm8, %vm3152_vm5 }
 0x485   : > { %v3148_v9 = vsub.f32 1.0, %v3147_v54  ;;  %v3139_v21 = vsel %vm3138_vm6, %v4229_v62, %v3135_v0 }
 0x486   : > { %v3184_v52 = vadd.f32 %v3183_v22, %v3182_v14  ;;  %v3186_v18 = vadd.f32 %v6464_v1, %v3185_v40  ;;  %v3144_v42 = vsel %vm3141_vm7, %v3143_v16, %v3139_v21  ;;  %v3267_v14 = vpop.permute.xlu1 %3266 }
 0x487   : > { %v3149_v49 = vmul.f32 %v4231_v8, %v3148_v9  ;;  %v3145_v12 = vmul.f32 %v6452_v48, %v3144_v42 }
 0x488   : > { %v3187_v50 = vrot.slane %v3186_v18, 2  ;;  %4234 = vrcp.f32 %v3184_v52  ;;  %v3202_v13 = vand.u32 2147483648, %v3184_v52  ;;  %v3200_v29 = vand.u32 2147483647, %v3184_v52 }
 0x489   : > { %v3150_v53 = vadd.f32 %v4231_v8, %v3149_v49  ;;  %v3226_v27 = vmul.f32 %v3224_v15, %v3145_v12  ;;  %v3243_v57 = vmul.f32 %v3241_v36, %v3145_v12  ;;  %vm3196_vm12 = vweird.f32 %v3184_v52 }
 0x48a   : > { %v3188_v47 = vadd.f32 %v3187_v50, %v3186_v18  ;;  %v3203_v30 = vor.u32 1.1754944e-38, %v3202_v13  ;;  %vm3201_vm14 = vcmp.eq.f32.partialorder %v3200_v29, 8.507059e+37 }
 0x48b   : > { %v3154_v60 = vsel %vm3153_vm9, %v4231_v8, %v3150_v53  ;;  %v3228_v48 = vadd.f32 %v7016_v4, %v3226_v27  ;;  %v3245_v44 = vadd.f32 %v7016_v4, %v3243_v57 }
 0x48c   : > { %v3159_v26 = vsel %vm3156_vm10, %v3158_v34, %v3154_v60  ;;  %v3189_v2 = vrot.slane %v3188_v47, 1 }
 0x48d   : > { %v3160_v5 = vmul.f32 %v6455_v51, %v3159_v26 }
 0x48e   : > { %v4235_v31 = vpop.eup %4234  ;;  %v3190_v58 = vadd.f32 %v3189_v2, %v3188_v47 }
 0x48f   : > { %v3227_v3 = vmul.f32 %v3224_v15, %v3160_v5  ;;  %v3244_v61 = vmul.f32 %v3241_v36, %v3160_v5  ;;  %v3192_v41 = vmul.f32 %v4235_v31, %v3184_v52  ;;  %vm3197_vm11 = vweird.f32 %v4235_v31 }
 0x490   : > { %4236 = vrcp.f32 %v3190_v58  ;;  %vm3198_vm13 = vmor %vm3196_vm12, %vm3197_vm11  ;;  %v3217_v38 = vand.u32 2147483648, %v3190_v58  ;;  %v3215_v25 = vand.u32 2147483647, %v3190_v58  ;;  %vm3211_vm0 = vweird.f32 %v3190_v58 }
 0x491   : > { %v3229_v28 = vadd.f32 %v7016_v4, %v3227_v3  ;;  %v3246_v51 = vadd.f32 %v7016_v4, %v3244_v61  ;;  %v3193_v43 = vsub.f32 1.0, %v3192_v41 }
 0x492   : > { %v3218_v19 = vor.u32 1.1754944e-38, %v3217_v38  ;;  %vm3216_vm3 = vcmp.eq.f32.partialorder %v3215_v25, 8.507059e+37 }
 0x493   : > { %v3230_v11 = vpack.c.bf16 %v3229_v28, %v3228_v48  ;;  %v3247_v23 = vpack.c.bf16 %v3246_v51, %v3245_v44  ;;  %v3194_v37 = vmul.f32 %v4235_v31, %v3193_v43 }
 0x495   : > { %3237 = vst [vmem:[%s3236_s16] sm:$0xff] %v3230_v11  ;;  %v3195_v7 = vadd.f32 %v4235_v31, %v3194_v37 }
 0x496   : > { %v4237_v46 = vpop.eup %4236  ;;  %3250 = vst [vmem:[%s3249_s18] sm:$0xff] %v3247_v23 }
 0x497   : > { %v3207_v55 = vmul.f32 %v4237_v46, %v3190_v58  ;;  %v3199_v6 = vsel %vm3198_vm13, %v4235_v31, %v3195_v7  ;;  %vm3212_vm15 = vweird.f32 %v4237_v46 }
 0x498   : > { %v3204_v45 = vsel %vm3201_vm14, %v3203_v30, %v3199_v6  ;;  %vm3213_vm1 = vmor %vm3211_vm0, %vm3212_vm15 }
 0x499   : > { %v3208_v59 = vsub.f32 1.0, %v3207_v55  ;;  %v3205_v62 = vmul.f32 %v6460_v17, %v3204_v45 }
 0x49b   : > { %v3209_v32 = vmul.f32 %v4237_v46, %v3208_v59  ;;  %v3256_v54 = vmul.f32 %v3254_v20, %v3205_v62  ;;  %v3269_v40 = vmul.f32 %v3267_v14, %v3205_v62 }
 0x49d   : > { %v3210_v15 = vadd.f32 %v4237_v46, %v3209_v32  ;;  %v3258_v33 = vadd.f32 %v7016_v4, %v3256_v54  ;;  %v3271_v35 = vadd.f32 %v7016_v4, %v3269_v40 }
 0x49f   : > { %v3214_v24 = vsel %vm3213_vm1, %v4237_v46, %v3210_v15 }
 0x4a0   : > { %v3219_v8 = vsel %vm3216_vm3, %v3218_v19, %v3214_v24 }
 0x4a1   : > { %v3220_v10 = vmul.f32 %v6464_v1, %v3219_v8 }
 0x4a3   : > { %v3257_v63 = vmul.f32 %v3254_v20, %v3220_v10  ;;  %v3270_v22 = vmul.f32 %v3267_v14, %v3220_v10 }
 0x4a5   : > { %v3259_v17 = vadd.f32 %v7016_v4, %v3257_v63  ;;  %v3272_v9 = vadd.f32 %v7016_v4, %v3270_v22 }
 0x4a7   : > { %v3260_v39 = vpack.c.bf16 %v3259_v17, %v3258_v33  ;;  %v3273_v52 = vpack.c.bf16 %v3272_v9, %v3271_v35 }
 0x4a9   : > { %3263 = vst [vmem:[%s3262_s19] sm:$0xff] %v3260_v39 }
 0x4aa   : > { %3276 = vst [vmem:[%s3275_s20] sm:$0xff] %v3273_v52 }
 0x4ab PF: > { %p6489_p6 = scmp.eq.s32.totalorder %s3441_s24, 3  ;;  %s3288_s30 = sshll.u32 %s6531_s11, 4  ;;  %s3289_s30 = int_to_ptr.hbm [resolvable:$true] %s3288_s30 }
 0x4ac   : > { %s4331_s21 = smov [#allocation6]   ;;  %s4332_s13 = smov [#allocation8]  }
 0x4ad   : > { %s3286_s26 = sshll.u32 %s4331_s21, 4  ;;  %s3301_s14 = sshll.u32 %s4332_s13, 4  ;;  %s3287_s26 = int_to_ptr.vmem [resolvable:$true] %s3286_s26  ;;  %s3302_s14 = int_to_ptr.vmem [resolvable:$true] %s3301_s14 }
 0x4ae   : > { %3618 = dma.vmem_to_hbm [thread:$0]  (%p6489_p6), %s3287_s26, 256, %s3289_s30, [#allocation7]  }
 0x4af   : > { %s3303_s17 = sshll.u32 %s6532_s12, 4  ;;  %s3304_s17 = int_to_ptr.hbm [resolvable:$true] %s3303_s17 }
 0x4b0   : > { %3620 = dma.vmem_to_hbm [thread:$0]  (%p6489_p6), %s3302_s14, 256, %s3304_s17, [#allocation9]  }
 0x4b1   : > { %4309 = dma.done.wait (%p6489_p6), [#allocation7], 256  }
 0x4b2   : > { %4311 = vsyncadd (%p6489_p6), [#allocation7], 4294967040 }
 0x4b3   : > { %4313 = dma.done.wait (%p6489_p6), [#allocation9], 256  }
 0x4b4   : > { %4315 = vsyncadd (%p6489_p6), [#allocation9], 4294967040 }
 0x4b5 PF: > { %s25_s23 = sadd.s32 1, %s4326_s23   ;;  %s7018_s21 = smov %s4322_s22 }
 0x4b6   : > { %p22_p7 = scmp.ge.s32.totalorder %s25_s23, 6   ;;  %s7019_s22 = smov %s7021_s25 }
 0x4b8   :  { %24 = sbr.rel (!%p22_p7) target bundleno = 3 (0x3), region = 127 }
 0x4bd   :  { %3322 = vsyncpa [#allocation7], 1 }
 0x4be   :  { %3324 = vsyncpa [#allocation7 + $0x1], 1 }
 0x4bf   :  { %3325 = vsyncpa [#allocation9], 1 }

</bundles_post_ra>
